<compile_context>
chip_gen: v6e
topology: v6e:2x2x1
jax: 0.10.0
libtpu: 0.0.40
codegen_flags: <defaults>
</compile_context>

<pallas_src>
import functools

import numpy as np

import jax
import jax.numpy as jnp
from jax.experimental import pallas as pl
from jax.experimental.pallas import tpu as pltpu


K_SZ, STRIDE, PAD = 4, 2, 1
C_IN, C_HID, C_LAT, K_CODES = 3, 32, 8, 16


# ----------------------------------------------------------------------------
# Constant 0/1 gather / scatter matrices (built once per static shape, on host)
# ----------------------------------------------------------------------------
@functools.lru_cache(maxsize=None)
def _conv_gather_mats(h_in, w_in, k, stride, pad):
    """G[t] (h_in*w_in, h_out*w_out): column m has a 1 at the flat input index read by
    kernel tap t for output pixel m (all-zero column == zero padding)."""
    h_out = (h_in + 2 * pad - k) // stride + 1
    w_out = (w_in + 2 * pad - k) // stride + 1
    g = np.zeros((k * k, h_in * w_in, h_out * w_out), np.float32)
    for kh in range(k):
        for kw in range(k):
            t = kh * k + kw
            for oy in range(h_out):
                iy = oy * stride + kh - pad
                if not (0 <= iy < h_in):
                    continue
                for ox in range(w_out):
                    ix = ox * stride + kw - pad
                    if 0 <= ix < w_in:
                        g[t, iy * w_in + ix, oy * w_out + ox] = 1.0
    return g


@functools.lru_cache(maxsize=None)
def _deconv_scatter_mats(h_in, w_in, k, stride, pad):
    """S[t] (h_in*w_in, h_out*w_out): row s has a 1 at the flat output index that input
    pixel s contributes to through kernel tap t (sub-pixel form, no zero-dilated input)."""
    h_out = (h_in - 1) * stride - 2 * pad + k
    w_out = (w_in - 1) * stride - 2 * pad + k
    s = np.zeros((k * k, h_in * w_in, h_out * w_out), np.float32)
    for kh in range(k):
        for kw in range(k):
            t = kh * k + kw
            for iy in range(h_in):
                oy = iy * stride + kh - pad
                if not (0 <= oy < h_out):
                    continue
                for ix in range(w_in):
                    ox = ix * stride + kw - pad
                    if 0 <= ox < w_out:
                        s[t, iy * w_in + ix, oy * w_out + ox] = 1.0
    return s


# ----------------------------------------------------------------------------
# Pre-lowering: PyTorch layouts -> per-tap weights -> one constant matrix per conv
# ----------------------------------------------------------------------------
def _conv_tap_weights(w_oikk):
    """Conv2d weight (Cout, Cin, kH, kW) -> (kH*kW, Cout, Cin) f32."""
    co, ci, kh, kw = w_oikk.shape
    return jnp.transpose(w_oikk, (2, 3, 0, 1)).reshape(kh * kw, co, ci).astype(jnp.float32)


def _deconv_tap_weights(w_iokk):
    """ConvTranspose2d weight (Cin, Cout, kH, kW) -> (kH*kW, Cout, Cin) f32."""
    ci, co, kh, kw = w_iokk.shape
    return jnp.transpose(w_iokk, (2, 3, 1, 0)).reshape(kh * kw, co, ci).astype(jnp.float32)


def _lower_conv_matrix(w_taps, g_taps, in_major, out_major):
    """A[idx_in(ci,mi), idx_out(co,mo)] = sum_t W[t,co,ci] * G[t,mi,mo]   (bf16).

    At most one tap contributes per (mi, mo), so every A entry is a single weight value:
    casting A to bf16 is exactly casting W to bf16.  'c' major = channel*M + m, 'm' major =
    m*C + channel."""
    a = jnp.einsum('tqc,tim->ciqm', w_taps, jnp.asarray(g_taps, jnp.float32))
    if in_major == 'm':
        a = jnp.transpose(a, (1, 0, 2, 3))
    if out_major == 'm':
        a = jnp.transpose(a, (0, 1, 3, 2))
    d0, d1, d2, d3 = a.shape
    return a.reshape(d0 * d1, d2 * d3).astype(jnp.bfloat16)


def _lower_bias(b, m_out, out_major):
    b = b.astype(jnp.float32)
    flat = jnp.repeat(b, m_out) if out_major == 'c' else jnp.tile(b, m_out)
    return flat[None, :]


def _vq_constants(codebook, m_lat):
    """Block-diagonal score / lookup matrices (bf16 hi/lo split of the f32 codebook) plus
    the per-code squared norms and code-index pattern, in k-major flattened layout."""
    cb = codebook.astype(jnp.float32)                                  # (Kc, D)
    kc, d = cb.shape
    cb_hi = cb.astype(jnp.bfloat16).astype(jnp.float32)
    cb_lo = cb - cb_hi
    eye_m = jnp.eye(m_lat, dtype=jnp.float32)

    def score_mat(c):   # E_sc[m*D+d, k*M+m'] = c[k,d] * (m == m')
        return jnp.einsum('kd,mn->mdkn', c, eye_m).reshape(m_lat * d, kc * m_lat).astype(jnp.bfloat16)

    def lookup_mat(c):  # E_lk[k*M+m, m'*D+d] = c[k,d] * (m == m')
        return jnp.einsum('kd,mn->kmnd', c, eye_m).reshape(kc * m_lat, m_lat * d).astype(jnp.bfloat16)

    cbsq_t = jnp.repeat(jnp.sum(cb * cb, axis=1), m_lat)[None, :]      # (1, Kc*M) f32
    kpat = jnp.repeat(jnp.arange(kc, dtype=jnp.float32), m_lat)[None, :]
    return (score_mat(cb_hi), score_mat(cb_lo),
            lookup_mat(cb_hi), lookup_mat(cb_lo), cbsq_t, kpat)


# ----------------------------------------------------------------------------
# Fused kernel: 4 dense matmuls + lane-dense VQ, everything VMEM/vreg resident
# ----------------------------------------------------------------------------
def _make_kernel(m_lat, kc):
    # kc must be a power of two for the roll-butterfly reduction (it is: 16).
    def kernel(x_ref,
               a1_ref, b1_ref, a2_ref, b2_ref,
               esc_hi_ref, esc_lo_ref, cbsq_ref, kpat_ref,
               elk_hi_ref, elk_lo_ref,
               a3_ref, b3_ref, a4_ref, b4_ref,
               out_ref):
        f32, bf16 = jnp.float32, jnp.bfloat16

        # ---------------- encoder ----------------
        x = x_ref[...]                                                       # (B, 768) bf16
        h1 = jnp.dot(x, a1_ref[...], preferred_element_type=f32) + b1_ref[...]
        h1 = jnp.maximum(h1, 0.0)                                            # (B, 2048) f32
        z = (jnp.dot(h1.astype(bf16), a2_ref[...], preferred_element_type=f32)
             + b2_ref[...])                                                  # (B, M*D) f32, m-major

        # ---------------- vector quantizer ----------------
        # hi/lo compensated scores: ~2^-17 relative error vs full-f32 distances.
        z_hi = z.astype(bf16)
        z_lo = (z - z_hi.astype(f32)).astype(bf16)
        scores = (jnp.dot(z_hi, esc_hi_ref[...], preferred_element_type=f32)
                  + jnp.dot(z_hi, esc_lo_ref[...], preferred_element_type=f32)
                  + jnp.dot(z_lo, esc_hi_ref[...], preferred_element_type=f32))   # (B, Kc*M)
        # ||z||^2 is constant per position -> drop it; argmin unchanged.
        dist = cbsq_ref[...] - 2.0 * scores                                   # (B, Kc*M) f32

        def group_min(v):
            # Butterfly all-reduce min over the Kc codes: column index is k*M + m, so
            # rotating the lane axis by multiples of M stays within the same position m.
            r = v
            s = (kc // 2) * m_lat
            while s >= m_lat:
                r = jnp.minimum(r, pltpu.roll(r, shift=s, axis=1))
                s //= 2
            return r

        kpat = kpat_ref[...]                                                  # (1, Kc*M) f32
        minv = group_min(dist)                                                # group min at every lane
        cand = jnp.where(dist <= minv, kpat, float(kc))
        idx = group_min(cand)                                                 # first-occurrence argmin
        onehot = (kpat == idx).astype(bf16)                                   # exact 0/1, (B, Kc*M)
        zq = (jnp.dot(onehot, elk_hi_ref[...], preferred_element_type=f32)
              + jnp.dot(onehot, elk_lo_ref[...], preferred_element_type=f32))  # (B, M*D) m-major

        # ---------------- decoder ----------------
        h3 = (jnp.dot(zq.astype(bf16), a3_ref[...], preferred_element_type=f32)
              + b3_ref[...])
        h3 = jnp.maximum(h3, 0.0)                                             # (B, 2048) f32
        x_hat = (jnp.dot(h3.astype(bf16), a4_ref[...], preferred_element_type=f32)
                 + b4_ref[...])                                               # (B, 768) f32
        out_ref[...] = x_hat                                                  # lane-dense store

    return kernel


# ----------------------------------------------------------------------------
# Wrapper: constant lowering + batch tiling + single pallas_call
# ----------------------------------------------------------------------------
@jax.jit
def vqvae_forward(x_nchw, params):
    n, c_in, h, w = x_nchw.shape
    h1, w1 = (h + 2 * PAD - K_SZ) // STRIDE + 1, (w + 2 * PAD - K_SZ) // STRIDE + 1
    h2, w2 = (h1 + 2 * PAD - K_SZ) // STRIDE + 1, (w1 + 2 * PAD - K_SZ) // STRIDE + 1
    m0, m1, m2 = h * w, h1 * w1, h2 * w2

    # Per-tap weights from native PyTorch layouts, then whole-conv constant matrices.
    # (Re-lowered every call from the current params; the einsums are tiny XLA ops.)
    a1 = _lower_conv_matrix(_conv_tap_weights(params["enc_w1"]),
                            _conv_gather_mats(h, w, K_SZ, STRIDE, PAD), 'c', 'c')
    a2 = _lower_conv_matrix(_conv_tap_weights(params["enc_w2"]),
                            _conv_gather_mats(h1, w1, K_SZ, STRIDE, PAD), 'c', 'm')
    a3 = _lower_conv_matrix(_deconv_tap_weights(params["dec_w1"]),
                            _deconv_scatter_mats(h2, w2, K_SZ, STRIDE, PAD), 'm', 'c')
    a4 = _lower_conv_matrix(_deconv_tap_weights(params["dec_w2"]),
                            _deconv_scatter_mats(h1, w1, K_SZ, STRIDE, PAD), 'c', 'c')

    b1f = _lower_bias(params["enc_b1"], m1, 'c')
    b2f = _lower_bias(params["enc_b2"], m2, 'm')
    b3f = _lower_bias(params["dec_b1"], m1, 'c')
    b4f = _lower_bias(params["dec_b2"], m0, 'c')

    kc = params["codebook"].shape[0]
    esc_hi, esc_lo, elk_hi, elk_lo, cbsq_t, kpat = _vq_constants(params["codebook"], m2)

    # Batch tile: multiple of 8 (sublane-friendly), <=64, and >=2 grid steps when the batch
    # allows it so ("parallel",) puts work on both v7x TensorCores.
    block_b = min(64, max(8, -(-n // 2)))
    block_b = -(-block_b // 8) * 8
    n_pad = -(-n // block_b) * block_b
    grid = (n_pad // block_b,)

    # NCHW -> (N, C*H*W) bf16 (c-major flat), zero-padded along batch.
    x_flat = x_nchw.reshape(n, c_in * m0).astype(jnp.bfloat16)
    if n_pad != n:
        x_flat = jnp.pad(x_flat, ((0, n_pad - n), (0, 0)))

    consts = [a1, b1f, a2, b2f, esc_hi, esc_lo, cbsq_t, kpat,
              elk_hi, elk_lo, a3, b3f, a4, b4f]

    in_specs = ([pl.BlockSpec((block_b, c_in * m0), lambda i: (i, 0))]
                + [pl.BlockSpec(c.shape, lambda i: (0, 0)) for c in consts])

    matmul_mats = (a1, a2, esc_hi, esc_hi, esc_lo, elk_hi, elk_lo, a3, a4)
    flops = 2 * n_pad * sum(int(m.shape[0]) * int(m.shape[1]) for m in matmul_mats)
    bytes_accessed = (x_flat.size * 2 + n_pad * c_in * m0 * 4
                      + sum(int(c.size) * c.dtype.itemsize for c in consts))
    cost = pl.CostEstimate(flops=flops, transcendentals=0,
                           bytes_accessed=int(bytes_accessed))

    out = pl.pallas_call(
        _make_kernel(m2, kc),
        out_shape=jax.ShapeDtypeStruct((n_pad, c_in * m0), jnp.float32),
        grid=grid,
        in_specs=in_specs,
        out_specs=pl.BlockSpec((block_b, c_in * m0), lambda i: (i, 0)),
        compiler_params=pltpu.CompilerParams(
            dimension_semantics=("parallel",)),   # megacore split over batch tiles (v7x)
        cost_estimate=cost,
    )(x_flat, *consts)

    return out[:n].reshape(n, c_in, h, w)


# ----------------------------------------------------------------------------
# Parameters (native PyTorch layouts) and demo
# ----------------------------------------------------------------------------
def init_params(key):
    ks = jax.random.split(key, 5)
    s = 0.1
    return {
        "enc_w1": s * jax.random.normal(ks[0], (C_HID, C_IN, K_SZ, K_SZ), jnp.float32),   # Conv2d(3,32)
        "enc_b1": jnp.zeros((C_HID,), jnp.float32),
        "enc_w2": s * jax.random.normal(ks[1], (C_LAT, C_HID, K_SZ, K_SZ), jnp.float32),  # Conv2d(32,8)
        "enc_b2": jnp.zeros((C_LAT,), jnp.float32),
        "codebook": jax.random.normal(ks[2], (K_CODES, C_LAT), jnp.float32),              # VQ codebook
        "dec_w1": s * jax.random.normal(ks[3], (C_LAT, C_HID, K_SZ, K_SZ), jnp.float32),  # ConvT(8,32)
        "dec_b1": jnp.zeros((C_HID,), jnp.float32),
        "dec_w2": s * jax.random.normal(ks[4], (C_HID, C_IN, K_SZ, K_SZ), jnp.float32),   # ConvT(32,3)
        "dec_b2": jnp.zeros((C_IN,), jnp.float32),
    }


if __name__ == "__main__":
    key = jax.random.PRNGKey(0)
    k_params, k_x = jax.random.split(key)
    params = init_params(k_params)
    x = jax.random.normal(k_x, (2, 3, 16, 16), jnp.float32)

    x_hat = vqvae_forward(x, params)
    jax.block_until_ready(x_hat)

    assert x_hat.shape == (2, 3, 16, 16), x_hat.shape
    assert bool(jnp.all(jnp.isfinite(x_hat)))
    print("KERNEL_OK")
</pallas_src>

<mosaic_0001>
module attributes {stable_mosaic.version = 11 : i64} {
  func.func @kernel(%arg0: i32, %arg1: memref<8x768xbf16, #tpu.memory_space<vmem>>, %arg2: memref<768x2048xbf16, #tpu.memory_space<vmem>>, %arg3: memref<1x2048xf32, #tpu.memory_space<vmem>>, %arg4: memref<2048x128xbf16, #tpu.memory_space<vmem>>, %arg5: memref<1x128xf32, #tpu.memory_space<vmem>>, %arg6: memref<128x256xbf16, #tpu.memory_space<vmem>>, %arg7: memref<128x256xbf16, #tpu.memory_space<vmem>>, %arg8: memref<1x256xf32, #tpu.memory_space<vmem>>, %arg9: memref<1x256xf32, #tpu.memory_space<vmem>>, %arg10: memref<256x128xbf16, #tpu.memory_space<vmem>>, %arg11: memref<256x128xbf16, #tpu.memory_space<vmem>>, %arg12: memref<128x2048xbf16, #tpu.memory_space<vmem>>, %arg13: memref<1x2048xf32, #tpu.memory_space<vmem>>, %arg14: memref<2048x768xbf16, #tpu.memory_space<vmem>>, %arg15: memref<1x768xf32, #tpu.memory_space<vmem>>, %arg16: memref<8x768xf32, #tpu.memory_space<vmem>>) attributes {dimension_semantics = [#tpu.dimension_semantics<parallel>], iteration_bounds = array<i64: 1>, scalar_prefetch = 0 : i64, scratch_operands = 0 : i64, tpu.core_type = #tpu.core_type<tc>, window_params = [{transform_indices = @transform_0, window_bounds = array<i64: 8, 768>}, {pipeline_mode = #tpu.pipeline_mode<synchronous>, transform_indices = @transform_1, window_bounds = array<i64: 768, 2048>}, {pipeline_mode = #tpu.pipeline_mode<synchronous>, transform_indices = @transform_2, window_bounds = array<i64: 1, 2048>}, {pipeline_mode = #tpu.pipeline_mode<synchronous>, transform_indices = @transform_3, window_bounds = array<i64: 2048, 128>}, {pipeline_mode = #tpu.pipeline_mode<synchronous>, transform_indices = @transform_4, window_bounds = array<i64: 1, 128>}, {pipeline_mode = #tpu.pipeline_mode<synchronous>, transform_indices = @transform_5, window_bounds = array<i64: 128, 256>}, {pipeline_mode = #tpu.pipeline_mode<synchronous>, transform_indices = @transform_6, window_bounds = array<i64: 128, 256>}, {pipeline_mode = #tpu.pipeline_mode<synchronous>, transform_indices = @transform_7, window_bounds = array<i64: 1, 256>}, {pipeline_mode = #tpu.pipeline_mode<synchronous>, transform_indices = @transform_8, window_bounds = array<i64: 1, 256>}, {pipeline_mode = #tpu.pipeline_mode<synchronous>, transform_indices = @transform_9, window_bounds = array<i64: 256, 128>}, {pipeline_mode = #tpu.pipeline_mode<synchronous>, transform_indices = @transform_10, window_bounds = array<i64: 256, 128>}, {pipeline_mode = #tpu.pipeline_mode<synchronous>, transform_indices = @transform_11, window_bounds = array<i64: 128, 2048>}, {pipeline_mode = #tpu.pipeline_mode<synchronous>, transform_indices = @transform_12, window_bounds = array<i64: 1, 2048>}, {pipeline_mode = #tpu.pipeline_mode<synchronous>, transform_indices = @transform_13, window_bounds = array<i64: 2048, 768>}, {pipeline_mode = #tpu.pipeline_mode<synchronous>, transform_indices = @transform_14, window_bounds = array<i64: 1, 768>}, {transform_indices = @transform_15, window_bounds = array<i64: 8, 768>}]} {
    %c0 = arith.constant 0 : index
    %c0_0 = arith.constant 0 : index
    %0 = vector.load %arg1[%c0, %c0_0] : memref<8x768xbf16, #tpu.memory_space<vmem>>, vector<8x768xbf16>
    %c0_1 = arith.constant 0 : index
    %c0_2 = arith.constant 0 : index
    %1 = vector.load %arg2[%c0_1, %c0_2] : memref<768x2048xbf16, #tpu.memory_space<vmem>>, vector<768x2048xbf16>
    %cst = arith.constant dense<0.000000e+00> : vector<8x2048xf32>
    %2 = tpu.matmul %0, %1, %cst {dimension_numbers = #tpu.dot_dimension_numbers<[1], [0], [0], [1], [0, 0, 1, 1], [], []>} : vector<8x768xbf16>, vector<768x2048xbf16>, vector<8x2048xf32> -> vector<8x2048xf32>
    %c0_3 = arith.constant 0 : index
    %c0_4 = arith.constant 0 : index
    %3 = vector.load %arg3[%c0_3, %c0_4] : memref<1x2048xf32, #tpu.memory_space<vmem>>, vector<1x2048xf32>
    %4 = vector.broadcast %3 : vector<1x2048xf32> to vector<8x2048xf32>
    %5 = arith.addf %2, %4 : vector<8x2048xf32>
    %cst_5 = arith.constant 0.000000e+00 : f32
    %6 = vector.broadcast %cst_5 : f32 to vector<8x2048xf32>
    %7 = arith.maximumf %5, %6 : vector<8x2048xf32>
    %8 = arith.truncf %7 : vector<8x2048xf32> to vector<8x2048xbf16>
    %c0_6 = arith.constant 0 : index
    %c0_7 = arith.constant 0 : index
    %9 = vector.load %arg4[%c0_6, %c0_7] : memref<2048x128xbf16, #tpu.memory_space<vmem>>, vector<2048x128xbf16>
    %cst_8 = arith.constant dense<0.000000e+00> : vector<8x128xf32>
    %10 = tpu.matmul %8, %9, %cst_8 {dimension_numbers = #tpu.dot_dimension_numbers<[1], [0], [0], [1], [0, 0, 1, 1], [], []>} : vector<8x2048xbf16>, vector<2048x128xbf16>, vector<8x128xf32> -> vector<8x128xf32>
    %c0_9 = arith.constant 0 : index
    %c0_10 = arith.constant 0 : index
    %11 = vector.load %arg5[%c0_9, %c0_10] : memref<1x128xf32, #tpu.memory_space<vmem>>, vector<1x128xf32>
    %12 = vector.broadcast %11 : vector<1x128xf32> to vector<8x128xf32>
    %13 = arith.addf %10, %12 : vector<8x128xf32>
    %14 = arith.truncf %13 : vector<8x128xf32> to vector<8x128xbf16>
    %15 = arith.extf %14 : vector<8x128xbf16> to vector<8x128xf32>
    %16 = arith.subf %13, %15 : vector<8x128xf32>
    %17 = arith.truncf %16 : vector<8x128xf32> to vector<8x128xbf16>
    %c0_11 = arith.constant 0 : index
    %c0_12 = arith.constant 0 : index
    %18 = vector.load %arg6[%c0_11, %c0_12] : memref<128x256xbf16, #tpu.memory_space<vmem>>, vector<128x256xbf16>
    %cst_13 = arith.constant dense<0.000000e+00> : vector<8x256xf32>
    %19 = tpu.matmul %14, %18, %cst_13 {dimension_numbers = #tpu.dot_dimension_numbers<[1], [0], [0], [1], [0, 0, 1, 1], [], []>} : vector<8x128xbf16>, vector<128x256xbf16>, vector<8x256xf32> -> vector<8x256xf32>
    %c0_14 = arith.constant 0 : index
    %c0_15 = arith.constant 0 : index
    %20 = vector.load %arg7[%c0_14, %c0_15] : memref<128x256xbf16, #tpu.memory_space<vmem>>, vector<128x256xbf16>
    %cst_16 = arith.constant dense<0.000000e+00> : vector<8x256xf32>
    %21 = tpu.matmul %14, %20, %cst_16 {dimension_numbers = #tpu.dot_dimension_numbers<[1], [0], [0], [1], [0, 0, 1, 1], [], []>} : vector<8x128xbf16>, vector<128x256xbf16>, vector<8x256xf32> -> vector<8x256xf32>
    %22 = arith.addf %19, %21 : vector<8x256xf32>
    %c0_17 = arith.constant 0 : index
    %c0_18 = arith.constant 0 : index
    %23 = vector.load %arg6[%c0_17, %c0_18] : memref<128x256xbf16, #tpu.memory_space<vmem>>, vector<128x256xbf16>
    %cst_19 = arith.constant dense<0.000000e+00> : vector<8x256xf32>
    %24 = tpu.matmul %17, %23, %cst_19 {dimension_numbers = #tpu.dot_dimension_numbers<[1], [0], [0], [1], [0, 0, 1, 1], [], []>} : vector<8x128xbf16>, vector<128x256xbf16>, vector<8x256xf32> -> vector<8x256xf32>
    %25 = arith.addf %22, %24 : vector<8x256xf32>
    %c0_20 = arith.constant 0 : index
    %c0_21 = arith.constant 0 : index
    %26 = vector.load %arg8[%c0_20, %c0_21] : memref<1x256xf32, #tpu.memory_space<vmem>>, vector<1x256xf32>
    %cst_22 = arith.constant 2.000000e+00 : f32
    %27 = vector.broadcast %cst_22 : f32 to vector<8x256xf32>
    %28 = arith.mulf %27, %25 : vector<8x256xf32>
    %29 = vector.broadcast %26 : vector<1x256xf32> to vector<8x256xf32>
    %30 = arith.subf %29, %28 : vector<8x256xf32>
    %c0_23 = arith.constant 0 : index
    %c0_24 = arith.constant 0 : index
    %31 = vector.load %arg9[%c0_23, %c0_24] : memref<1x256xf32, #tpu.memory_space<vmem>>, vector<1x256xf32>
    %c128_i32 = arith.constant 128 : i32
    %32 = tpu.dynamic_rotate %30 by %c128_i32 dim 1 : vector<8x256xf32>, i32 -> vector<8x256xf32>
    %33 = arith.minimumf %30, %32 : vector<8x256xf32>
    %c64_i32 = arith.constant 64 : i32
    %34 = tpu.dynamic_rotate %33 by %c64_i32 dim 1 : vector<8x256xf32>, i32 -> vector<8x256xf32>
    %35 = arith.minimumf %33, %34 : vector<8x256xf32>
    %c32_i32 = arith.constant 32 : i32
    %36 = tpu.dynamic_rotate %35 by %c32_i32 dim 1 : vector<8x256xf32>, i32 -> vector<8x256xf32>
    %37 = arith.minimumf %35, %36 : vector<8x256xf32>
    %c16_i32 = arith.constant 16 : i32
    %38 = tpu.dynamic_rotate %37 by %c16_i32 dim 1 : vector<8x256xf32>, i32 -> vector<8x256xf32>
    %39 = arith.minimumf %37, %38 : vector<8x256xf32>
    %40 = arith.cmpf ole, %30, %39 : vector<8x256xf32>
    %cst_25 = arith.constant 1.600000e+01 : f32
    %41 = vector.shape_cast %31 : vector<1x256xf32> to vector<1x256xf32>
    %42 = vector.broadcast %41 : vector<1x256xf32> to vector<8x256xf32>
    %43 = vector.broadcast %cst_25 : f32 to vector<8x256xf32>
    %44 = arith.select %40, %42, %43 : vector<8x256xi1>, vector<8x256xf32>
    %c128_i32_26 = arith.constant 128 : i32
    %45 = tpu.dynamic_rotate %44 by %c128_i32_26 dim 1 : vector<8x256xf32>, i32 -> vector<8x256xf32>
    %46 = arith.minimumf %44, %45 : vector<8x256xf32>
    %c64_i32_27 = arith.constant 64 : i32
    %47 = tpu.dynamic_rotate %46 by %c64_i32_27 dim 1 : vector<8x256xf32>, i32 -> vector<8x256xf32>
    %48 = arith.minimumf %46, %47 : vector<8x256xf32>
    %c32_i32_28 = arith.constant 32 : i32
    %49 = tpu.dynamic_rotate %48 by %c32_i32_28 dim 1 : vector<8x256xf32>, i32 -> vector<8x256xf32>
    %50 = arith.minimumf %48, %49 : vector<8x256xf32>
    %c16_i32_29 = arith.constant 16 : i32
    %51 = tpu.dynamic_rotate %50 by %c16_i32_29 dim 1 : vector<8x256xf32>, i32 -> vector<8x256xf32>
    %52 = arith.minimumf %50, %51 : vector<8x256xf32>
    %53 = vector.broadcast %31 : vector<1x256xf32> to vector<8x256xf32>
    %54 = arith.cmpf oeq, %53, %52 : vector<8x256xf32>
    %55 = arith.extui %54 : vector<8x256xi1> to vector<8x256xi32>
    %56 = arith.sitofp %55 : vector<8x256xi32> to vector<8x256xf32>
    %57 = arith.truncf %56 : vector<8x256xf32> to vector<8x256xbf16>
    %c0_30 = arith.constant 0 : index
    %c0_31 = arith.constant 0 : index
    %58 = vector.load %arg10[%c0_30, %c0_31] : memref<256x128xbf16, #tpu.memory_space<vmem>>, vector<256x128xbf16>
    %cst_32 = arith.constant dense<0.000000e+00> : vector<8x128xf32>
    %59 = tpu.matmul %57, %58, %cst_32 {dimension_numbers = #tpu.dot_dimension_numbers<[1], [0], [0], [1], [0, 0, 1, 1], [], []>} : vector<8x256xbf16>, vector<256x128xbf16>, vector<8x128xf32> -> vector<8x128xf32>
    %c0_33 = arith.constant 0 : index
    %c0_34 = arith.constant 0 : index
    %60 = vector.load %arg11[%c0_33, %c0_34] : memref<256x128xbf16, #tpu.memory_space<vmem>>, vector<256x128xbf16>
    %cst_35 = arith.constant dense<0.000000e+00> : vector<8x128xf32>
    %61 = tpu.matmul %57, %60, %cst_35 {dimension_numbers = #tpu.dot_dimension_numbers<[1], [0], [0], [1], [0, 0, 1, 1], [], []>} : vector<8x256xbf16>, vector<256x128xbf16>, vector<8x128xf32> -> vector<8x128xf32>
    %62 = arith.addf %59, %61 : vector<8x128xf32>
    %63 = arith.truncf %62 : vector<8x128xf32> to vector<8x128xbf16>
    %c0_36 = arith.constant 0 : index
    %c0_37 = arith.constant 0 : index
    %64 = vector.load %arg12[%c0_36, %c0_37] : memref<128x2048xbf16, #tpu.memory_space<vmem>>, vector<128x2048xbf16>
    %cst_38 = arith.constant dense<0.000000e+00> : vector<8x2048xf32>
    %65 = tpu.matmul %63, %64, %cst_38 {dimension_numbers = #tpu.dot_dimension_numbers<[1], [0], [0], [1], [0, 0, 1, 1], [], []>} : vector<8x128xbf16>, vector<128x2048xbf16>, vector<8x2048xf32> -> vector<8x2048xf32>
    %c0_39 = arith.constant 0 : index
    %c0_40 = arith.constant 0 : index
    %66 = vector.load %arg13[%c0_39, %c0_40] : memref<1x2048xf32, #tpu.memory_space<vmem>>, vector<1x2048xf32>
    %67 = vector.broadcast %66 : vector<1x2048xf32> to vector<8x2048xf32>
    %68 = arith.addf %65, %67 : vector<8x2048xf32>
    %cst_41 = arith.constant 0.000000e+00 : f32
    %69 = vector.broadcast %cst_41 : f32 to vector<8x2048xf32>
    %70 = arith.maximumf %68, %69 : vector<8x2048xf32>
    %71 = arith.truncf %70 : vector<8x2048xf32> to vector<8x2048xbf16>
    %c0_42 = arith.constant 0 : index
    %c0_43 = arith.constant 0 : index
    %72 = vector.load %arg14[%c0_42, %c0_43] : memref<2048x768xbf16, #tpu.memory_space<vmem>>, vector<2048x768xbf16>
    %cst_44 = arith.constant dense<0.000000e+00> : vector<8x768xf32>
    %73 = tpu.matmul %71, %72, %cst_44 {dimension_numbers = #tpu.dot_dimension_numbers<[1], [0], [0], [1], [0, 0, 1, 1], [], []>} : vector<8x2048xbf16>, vector<2048x768xbf16>, vector<8x768xf32> -> vector<8x768xf32>
    %c0_45 = arith.constant 0 : index
    %c0_46 = arith.constant 0 : index
    %74 = vector.load %arg15[%c0_45, %c0_46] : memref<1x768xf32, #tpu.memory_space<vmem>>, vector<1x768xf32>
    %75 = vector.broadcast %74 : vector<1x768xf32> to vector<8x768xf32>
    %76 = arith.addf %73, %75 : vector<8x768xf32>
    %c0_47 = arith.constant 0 : index
    %c0_48 = arith.constant 0 : index
    %77 = vector.load %arg16[%c0_47, %c0_48] : memref<8x768xf32, #tpu.memory_space<vmem>>, vector<8x768xf32>
    tpu.vector_store %arg16[%c0_47, %c0_48], %76 {strides = array<i32>} : memref<8x768xf32, #tpu.memory_space<vmem>>, vector<8x768xf32>,
    return
  }
  func.func @transform_0(%arg0: i32) -> (i32, i32) {
    %c0_i32 = arith.constant 0 : i32
    %c0_i32_0 = arith.constant 0 : i32
    return %arg0, %c0_i32 : i32, i32
  }
  func.func @transform_1(%arg0: i32) -> (i32, i32) {
    %c0_i32 = arith.constant 0 : i32
    %c0_i32_0 = arith.constant 0 : i32
    %c0_i32_1 = arith.constant 0 : i32
    return %c0_i32, %c0_i32_0 : i32, i32
  }
  func.func @transform_2(%arg0: i32) -> (i32, i32) {
    %c0_i32 = arith.constant 0 : i32
    %c0_i32_0 = arith.constant 0 : i32
    %c0_i32_1 = arith.constant 0 : i32
    return %c0_i32, %c0_i32_0 : i32, i32
  }
  func.func @transform_3(%arg0: i32) -> (i32, i32) {
    %c0_i32 = arith.constant 0 : i32
    %c0_i32_0 = arith.constant 0 : i32
    %c0_i32_1 = arith.constant 0 : i32
    return %c0_i32, %c0_i32_0 : i32, i32
  }
  func.func @transform_4(%arg0: i32) -> (i32, i32) {
    %c0_i32 = arith.constant 0 : i32
    %c0_i32_0 = arith.constant 0 : i32
    %c0_i32_1 = arith.constant 0 : i32
    return %c0_i32, %c0_i32_0 : i32, i32
  }
  func.func @transform_5(%arg0: i32) -> (i32, i32) {
    %c0_i32 = arith.constant 0 : i32
    %c0_i32_0 = arith.constant 0 : i32
    %c0_i32_1 = arith.constant 0 : i32
    return %c0_i32, %c0_i32_0 : i32, i32
  }
  func.func @transform_6(%arg0: i32) -> (i32, i32) {
    %c0_i32 = arith.constant 0 : i32
    %c0_i32_0 = arith.constant 0 : i32
    %c0_i32_1 = arith.constant 0 : i32
    return %c0_i32, %c0_i32_0 : i32, i32
  }
  func.func @transform_7(%arg0: i32) -> (i32, i32) {
    %c0_i32 = arith.constant 0 : i32
    %c0_i32_0 = arith.constant 0 : i32
    %c0_i32_1 = arith.constant 0 : i32
    return %c0_i32, %c0_i32_0 : i32, i32
  }
  func.func @transform_8(%arg0: i32) -> (i32, i32) {
    %c0_i32 = arith.constant 0 : i32
    %c0_i32_0 = arith.constant 0 : i32
    %c0_i32_1 = arith.constant 0 : i32
    return %c0_i32, %c0_i32_0 : i32, i32
  }
  func.func @transform_9(%arg0: i32) -> (i32, i32) {
    %c0_i32 = arith.constant 0 : i32
    %c0_i32_0 = arith.constant 0 : i32
    %c0_i32_1 = arith.constant 0 : i32
    return %c0_i32, %c0_i32_0 : i32, i32
  }
  func.func @transform_10(%arg0: i32) -> (i32, i32) {
    %c0_i32 = arith.constant 0 : i32
    %c0_i32_0 = arith.constant 0 : i32
    %c0_i32_1 = arith.constant 0 : i32
    return %c0_i32, %c0_i32_0 : i32, i32
  }
  func.func @transform_11(%arg0: i32) -> (i32, i32) {
    %c0_i32 = arith.constant 0 : i32
    %c0_i32_0 = arith.constant 0 : i32
    %c0_i32_1 = arith.constant 0 : i32
    return %c0_i32, %c0_i32_0 : i32, i32
  }
  func.func @transform_12(%arg0: i32) -> (i32, i32) {
    %c0_i32 = arith.constant 0 : i32
    %c0_i32_0 = arith.constant 0 : i32
    %c0_i32_1 = arith.constant 0 : i32
    return %c0_i32, %c0_i32_0 : i32, i32
  }
  func.func @transform_13(%arg0: i32) -> (i32, i32) {
    %c0_i32 = arith.constant 0 : i32
    %c0_i32_0 = arith.constant 0 : i32
    %c0_i32_1 = arith.constant 0 : i32
    return %c0_i32, %c0_i32_0 : i32, i32
  }
  func.func @transform_14(%arg0: i32) -> (i32, i32) {
    %c0_i32 = arith.constant 0 : i32
    %c0_i32_0 = arith.constant 0 : i32
    %c0_i32_1 = arith.constant 0 : i32
    return %c0_i32, %c0_i32_0 : i32, i32
  }
  func.func @transform_15(%arg0: i32) -> (i32, i32) {
    %c0_i32 = arith.constant 0 : i32
    %c0_i32_0 = arith.constant 0 : i32
    return %arg0, %c0_i32 : i32, i32
  }
}

</mosaic_0001>

<bundles_post_ra>
// kernel: tile.8
= control target key start
LH: loop header
LB: loop body
LE: loop exit
PB: predicated region body
PF: predicated region fallthrough
CT: control target
= control target key end

     0   :  { %s28_s0 = inlined_call_operand.vmem [shape: f32[8], index: 0, kind: input, shape index: {}]   ;;  %s29_s1 = inlined_call_operand.vmem [shape: f32[16,8], index: 1, kind: output, shape index: {}]  }
   0x1   :  { %v4_v0 = vld [vmem:[%s28_s0] ss:$0 sm:$0xff] }
   0x2   :  { %5 = vst [vmem:[%s29_s1] sm:$0xff] %v4_v0  ;;  %8 = vst [vmem:[%s29_s1 + $0x8] sm:$0xff] %v4_v0 }

// kernel: tile.9
= control target key start
LH: loop header
LB: loop body
LE: loop exit
PB: predicated region body
PF: predicated region fallthrough
CT: control target
= control target key end

     0   :  { %s133_s10 = smov 120   ;;  %s134_s11 = smov 104   ;;  %vm3_vm0 = vcmask 64512   ;;  %vm9_vm1 = vcmask 1048512   ;;  %vm15_vm2 = vcmask 982912   ;;  %vm21_vm3 = vcmask 917312   ;;  %s209_s0 = inlined_call_operand.vmem [shape: f32[16,8], index: 0, kind: input, shape index: {}]   ;;  %s210_s1 = inlined_call_operand.vmem [shape: f32[1,128], index: 1, kind: output, shape index: {}]  }
   0x1   :  { %v103_v0 = vld [vmem:[%s209_s0 + $0xf] sm:$0x1]   ;;  %v105_v1 = vld [vmem:[%s209_s0 + $0xd] sm:$0x1]   ;;  %v104_v2 = vld [vmem:[%s209_s0 + $0xe] sm:$0x1]  }
   0x2   :  { %7 = vrot.lane.b32.xlu0 %v103_v0, %s133_s10  ;;  %19 = vrot.lane.b32.xlu1 %v105_v1, %s134_s11  ;;  %v106_v3 = vld [vmem:[%s209_s0 + $0xc] sm:$0x1]   ;;  %s135_s16 = smov 112   ;;  %s136_s17 = smov 96   ;;  %v107_v4 = vld [vmem:[%s209_s0 + $0xb] sm:$0x1]  }
   0x3   :  { %v108_v5 = vld [vmem:[%s209_s0 + $0xa] sm:$0x1]   ;;  %v2_v6 = vld [vmem:[%s209_s0] sm:$0x1]   ;;  %s137_s24 = smov 88   ;;  %s138_s25 = smov 80  }
   0x4   :  { %4 = vst.msk [vmem:[#allocation0] sm:$0x1] %vm3_vm0, %v2_v6   ;;  %v109_v7 = vld [vmem:[%s209_s0 + $0x9] sm:$0x1]   ;;  %v110_v8 = vld [vmem:[%s209_s0 + $0x8] sm:$0x1]  }
   0x5   :  { %s139_s30 = smov 72   ;;  %s140_s2 = smov 64   ;;  %v111_v9 = vld [vmem:[%s209_s0 + $0x7] sm:$0x1]   ;;  %v112_v10 = vld [vmem:[%s209_s0 + $0x6] sm:$0x1]  }
   0x6   :  { %13 = vrot.lane.b32.xlu0 %v104_v2, %s135_s16  ;;  %25 = vrot.lane.b32.xlu1 %v106_v3, %s136_s17  ;;  %s141_s7 = smov 56   ;;  %s142_s8 = smov 48   ;;  %v113_v11 = vld [vmem:[%s209_s0 + $0x5] sm:$0x1]   ;;  %v114_v12 = vld [vmem:[%s209_s0 + $0x4] sm:$0x1]  }
   0x7   :  { %s143_s13 = smov 40   ;;  %s144_s14 = smov 32   ;;  %v115_v13 = vld [vmem:[%s209_s0 + $0x3] sm:$0x1]   ;;  %v116_v14 = vld [vmem:[%s209_s0 + $0x2] sm:$0x1]  }
   0x8   :  { %s145_s19 = smov 24   ;;  %s146_s20 = smov 16   ;;  %v117_v15 = vld [vmem:[%s209_s0 + $0x1] sm:$0x1]   ;;  %vm27_vm4 = vcmask 851712   ;;  %vm33_vm5 = vcmask 786112  }
   0x9   :  { %s147_s0 = smov 8   ;;  %vm39_vm6 = vcmask 720512   ;;  %vm45_vm7 = vcmask 654912   ;;  %vm51_vm8 = vcmask 589312   ;;  %vm57_vm9 = vcmask 523712  }
   0xa   :  { %31 = vrot.lane.b32.xlu0 %v107_v4, %s137_s24  ;;  %37 = vrot.lane.b32.xlu1 %v108_v5, %s138_s25  ;;  %vm63_vm10 = vcmask 458112   ;;  %vm69_vm11 = vcmask 392512   ;;  %vm75_vm12 = vcmask 326912   ;;  %vm81_vm13 = vcmask 261312  }
   0xb   :  { %vm87_vm14 = vcmask 195712   ;;  %vm93_vm15 = vcmask 130112  }
   0xe   :  { %43 = vrot.lane.b32.xlu0 %v109_v7, %s139_s30  ;;  %49 = vrot.lane.b32.xlu1 %v110_v8, %s140_s2 }
  0x12   :  { %55 = vrot.lane.b32.xlu0 %v111_v9, %s141_s7  ;;  %61 = vrot.lane.b32.xlu1 %v112_v10, %s142_s8 }
  0x16   :  { %67 = vrot.lane.b32.xlu0 %v113_v11, %s143_s13  ;;  %73 = vrot.lane.b32.xlu1 %v114_v12, %s144_s14 }
  0x1a   :  { %79 = vrot.lane.b32.xlu0 %v115_v13, %s145_s19  ;;  %85 = vrot.lane.b32.xlu1 %v116_v14, %s146_s20 }
  0x1e   :  { %91 = vrot.lane.b32.xlu0 %v117_v15, %s147_s0 }
  0x74   :  { %v8_v16 = vpop.permute.xlu0 %7   ;;  %v20_v17 = vpop.permute.xlu1 %19  }
  0x75   :  { %10 = vst.msk [vmem:[#allocation0] sm:$0x1] %vm9_vm1, %v8_v16  }
  0x78   :  { %v14_v18 = vpop.permute.xlu0 %13   ;;  %v26_v19 = vpop.permute.xlu1 %25  }
  0x79   :  { %16 = vst.msk [vmem:[#allocation0] sm:$0x1] %vm15_vm2, %v14_v18  }
  0x7a   :  { %22 = vst.msk [vmem:[#allocation0] sm:$0x1] %vm21_vm3, %v20_v17  }
  0x7b   :  { %28 = vst.msk [vmem:[#allocation0] sm:$0x1] %vm27_vm4, %v26_v19  }
  0x7c   :  { %v32_v20 = vpop.permute.xlu0 %31   ;;  %v38_v21 = vpop.permute.xlu1 %37  }
  0x7d   :  { %34 = vst.msk [vmem:[#allocation0] sm:$0x1] %vm33_vm5, %v32_v20  }
  0x7e   :  { %40 = vst.msk [vmem:[#allocation0] sm:$0x1] %vm39_vm6, %v38_v21  }
  0x80   :  { %v44_v22 = vpop.permute.xlu0 %43   ;;  %v50_v23 = vpop.permute.xlu1 %49  }
  0x81   :  { %46 = vst.msk [vmem:[#allocation0] sm:$0x1] %vm45_vm7, %v44_v22  }
  0x82   :  { %52 = vst.msk [vmem:[#allocation0] sm:$0x1] %vm51_vm8, %v50_v23  }
  0x84   :  { %v56_v24 = vpop.permute.xlu0 %55   ;;  %v62_v25 = vpop.permute.xlu1 %61  }
  0x85   :  { %58 = vst.msk [vmem:[#allocation0] sm:$0x1] %vm57_vm9, %v56_v24  }
  0x86   :  { %64 = vst.msk [vmem:[#allocation0] sm:$0x1] %vm63_vm10, %v62_v25  }
  0x88   :  { %v68_v26 = vpop.permute.xlu0 %67   ;;  %v74_v27 = vpop.permute.xlu1 %73  }
  0x89   :  { %70 = vst.msk [vmem:[#allocation0] sm:$0x1] %vm69_vm11, %v68_v26  }
  0x8a   :  { %76 = vst.msk [vmem:[#allocation0] sm:$0x1] %vm75_vm12, %v74_v27  }
  0x8c   :  { %v80_v28 = vpop.permute.xlu0 %79   ;;  %v86_v29 = vpop.permute.xlu1 %85  }
  0x8d   :  { %82 = vst.msk [vmem:[#allocation0] sm:$0x1] %vm81_vm13, %v80_v28  }
  0x8e   :  { %88 = vst.msk [vmem:[#allocation0] sm:$0x1] %vm87_vm14, %v86_v29  }
  0x90   :  { %v92_v30 = vpop.permute.xlu0 %91  }
  0x91   :  { %94 = vst.msk [vmem:[#allocation0] sm:$0x1] %vm93_vm15, %v92_v30  }
  0x98   :  { %v99_v31 = vld [vmem:[#allocation0] sm:$0x1] }
  0x99   :  { %102 = vst [vmem:[%s210_s1] sm:$0x1] %v99_v31 }

// kernel: vqvae_forward.1
= control target key start
LH: loop header
LB: loop body
LE: loop exit
PB: predicated region body
PF: predicated region fallthrough
CT: control target
= control target key end

     0   :  { %s18169_s18 = smov 64   ;;  %s18171_s19 = smov 16   ;;  %s24394_s1 = inlined_call_operand.vmem [shape: bf16[768,2048], index: 1, kind: input, shape index: {}]   ;;  %s24395_s0 = inlined_call_operand.vmem [shape: bf16[8,768], index: 0, kind: input, shape index: {}]   ;;  %s24396_s2 = inlined_call_operand.vmem [shape: f32[1,2048], index: 2, kind: input, shape index: {}]   ;;  %s24397_s3 = inlined_call_operand.vmem [shape: bf16[2048,128], index: 3, kind: input, shape index: {}]   ;;  %s24398_s6 = inlined_call_operand.vmem [shape: bf16[128,256], index: 6, kind: input, shape index: {}]   ;;  %s24399_s5 = inlined_call_operand.vmem [shape: bf16[128,256], index: 5, kind: input, shape index: {}]   ;;  %s24400_s4 = inlined_call_operand.vmem [shape: f32[1,128], index: 4, kind: input, shape index: {}]   ;;  %s24401_s7 = inlined_call_operand.vmem [shape: f32[1,256], index: 7, kind: input, shape index: {}]   ;;  %s24402_s8 = inlined_call_operand.vmem [shape: f32[1,256], index: 8, kind: input, shape index: {}]   ;;  %s24403_s10 = inlined_call_operand.vmem [shape: bf16[256,128], index: 10, kind: input, shape index: {}]   ;;  %s24404_s9 = inlined_call_operand.vmem [shape: bf16[256,128], index: 9, kind: input, shape index: {}]   ;;  %s24405_s11 = inlined_call_operand.vmem [shape: bf16[128,2048], index: 11, kind: input, shape index: {}]   ;;  %s24406_s13 = inlined_call_operand.vmem [shape: bf16[2048,768], index: 13, kind: input, shape index: {}]   ;;  %s24407_s12 = inlined_call_operand.vmem [shape: f32[1,2048], index: 12, kind: input, shape index: {}]   ;;  %s24408_s14 = inlined_call_operand.vmem [shape: f32[1,768], index: 14, kind: input, shape index: {}]   ;;  %s24409_s15 = inlined_call_operand.vmem [shape: f32[8,768], index: 15, kind: output, shape index: {}]  }
   0x1   :  { %v166_v0 = vld [vmem:[%s24394_s1 + $0x380] sm:$0xff]  ;;  %v18345_v54 = vld [vmem:[%s24395_s0 + $0x8] sm:$0xff] }
   0x2   :  { %v174_v1 = vld [vmem:[%s24394_s1 + $0x3c0] sm:$0xff]  ;;  %v18359_v59 = vcombine.high %v18345_v54, %v18345_v54 }
   0x3   :  { %v422_v2 = vld [vmem:[%s24394_s1 + $0xb80] sm:$0xff]  ;;  %v14819_v3 = vcombine.high %v166_v0, %v174_v1  ;;  %v14818_v5 = vcombine.low %v166_v0, %v174_v1 }
   0x4   :  { %v430_v4 = vld [vmem:[%s24394_s1 + $0xbc0] sm:$0xff]  ;;  %4840 = vmatprep.mubr.bf16.mxu1 %v18359_v59 }
   0x5   :  { %v150_v6 = vld [vmem:[%s24394_s1 + $0x300] sm:$0xff]  ;;  %v15075_v8 = vcombine.high %v422_v2, %v430_v4  ;;  %v15074_v9 = vcombine.low %v422_v2, %v430_v4  ;;  %4767 = vmatprep.subr.bf16.mxu0 %v14819_v3 }
   0x6   :  { %v158_v7 = vld [vmem:[%s24394_s1 + $0x340] sm:$0xff]  ;;  %4768 = vmatpush1.bf16.msra.mxu0 %v14818_v5 }
   0x7   :  { %v14803_v10 = vcombine.high %v150_v6, %v158_v7  ;;  %v406_v11 = vld [vmem:[%s24394_s1 + $0xb00] sm:$0xff]  ;;  %4808 = vmatprep.subr.bf16.mxu1 %v15075_v8  ;;  %v14802_v18 = vcombine.low %v150_v6, %v158_v7 }
   0x8   :  { %v414_v12 = vld [vmem:[%s24394_s1 + $0xb40] sm:$0xff]  ;;  %4809 = vmatpush1.bf16.msra.mxu1 %v15074_v9 }
   0x9   :  { %v134_v13 = vld [vmem:[%s24394_s1 + $0x280] sm:$0xff]  ;;  %v15059_v14 = vcombine.high %v406_v11, %v414_v12  ;;  %4769 = vmatprep.subr.bf16.mxu0 %v14803_v10  ;;  %v15058_v19 = vcombine.low %v406_v11, %v414_v12 }
   0xa   :  { %v142_v15 = vld [vmem:[%s24394_s1 + $0x2c0] sm:$0xff]  ;;  %4770 = vmatpush1.bf16.msra.mxu0 %v14802_v18 }
   0xb   :  { %v390_v16 = vld [vmem:[%s24394_s1 + $0xa80] sm:$0xff]  ;;  %v14787_v20 = vcombine.high %v134_v13, %v142_v15  ;;  %4810 = vmatprep.subr.bf16.mxu1 %v15059_v14  ;;  %v14786_v26 = vcombine.low %v134_v13, %v142_v15 }
   0xc   :  { %v398_v17 = vld [vmem:[%s24394_s1 + $0xac0] sm:$0xff]  ;;  %4811 = vmatpush1.bf16.msra.mxu1 %v15058_v19 }
   0xd   :  { %v15043_v21 = vcombine.high %v390_v16, %v398_v17  ;;  %v118_v22 = vld [vmem:[%s24394_s1 + $0x200] sm:$0xff]  ;;  %4771 = vmatprep.subr.bf16.mxu0 %v14787_v20  ;;  %v15042_v27 = vcombine.low %v390_v16, %v398_v17 }
   0xe   :  { %v126_v23 = vld [vmem:[%s24394_s1 + $0x240] sm:$0xff]  ;;  %4772 = vmatpush1.bf16.msra.mxu0 %v14786_v26 }
   0xf   :  { %v374_v24 = vld [vmem:[%s24394_s1 + $0xa00] sm:$0xff]  ;;  %v14771_v28 = vcombine.high %v118_v22, %v126_v23  ;;  %4812 = vmatprep.subr.bf16.mxu1 %v15043_v21  ;;  %v14770_v34 = vcombine.low %v118_v22, %v126_v23 }
  0x10   :  { %v382_v25 = vld [vmem:[%s24394_s1 + $0xa40] sm:$0xff]  ;;  %4813 = vmatpush1.bf16.msra.mxu1 %v15042_v27 }
  0x11   :  { %v15027_v29 = vcombine.high %v374_v24, %v382_v25  ;;  %v102_v30 = vld [vmem:[%s24394_s1 + $0x180] sm:$0xff]  ;;  %4773 = vmatprep.subr.bf16.mxu0 %v14771_v28  ;;  %v15026_v35 = vcombine.low %v374_v24, %v382_v25 }
  0x12   :  { %v110_v31 = vld [vmem:[%s24394_s1 + $0x1c0] sm:$0xff]  ;;  %4774 = vmatpush1.bf16.msra.mxu0 %v14770_v34 }
  0x13   :  { %v358_v32 = vld [vmem:[%s24394_s1 + $0x980] sm:$0xff]  ;;  %v14755_v36 = vcombine.high %v102_v30, %v110_v31  ;;  %4814 = vmatprep.subr.bf16.mxu1 %v15027_v29  ;;  %v14754_v42 = vcombine.low %v102_v30, %v110_v31 }
  0x14   :  { %v366_v33 = vld [vmem:[%s24394_s1 + $0x9c0] sm:$0xff]  ;;  %4815 = vmatpush1.bf16.msra.mxu1 %v15026_v35 }
  0x15   :  { %v15011_v37 = vcombine.high %v358_v32, %v366_v33  ;;  %v86_v38 = vld [vmem:[%s24394_s1 + $0x100] sm:$0xff]  ;;  %4775 = vmatprep.subr.bf16.mxu0 %v14755_v36  ;;  %v15010_v43 = vcombine.low %v358_v32, %v366_v33 }
  0x16   :  { %v94_v39 = vld [vmem:[%s24394_s1 + $0x140] sm:$0xff]  ;;  %4776 = vmatpush1.bf16.msra.mxu0 %v14754_v42 }
  0x17   :  { %v342_v40 = vld [vmem:[%s24394_s1 + $0x900] sm:$0xff]  ;;  %v14739_v44 = vcombine.high %v86_v38, %v94_v39  ;;  %4816 = vmatprep.subr.bf16.mxu1 %v15011_v37  ;;  %v14738_v50 = vcombine.low %v86_v38, %v94_v39 }
  0x18   :  { %v350_v41 = vld [vmem:[%s24394_s1 + $0x940] sm:$0xff]  ;;  %4817 = vmatpush1.bf16.msra.mxu1 %v15010_v43 }
  0x19   :  { %v14995_v45 = vcombine.high %v342_v40, %v350_v41  ;;  %v70_v46 = vld [vmem:[%s24394_s1 + $0x80] sm:$0xff]  ;;  %4777 = vmatprep.subr.bf16.mxu0 %v14739_v44  ;;  %v14994_v51 = vcombine.low %v342_v40, %v350_v41 }
  0x1a   :  { %v78_v47 = vld [vmem:[%s24394_s1 + $0xc0] sm:$0xff]  ;;  %4778 = vmatpush1.bf16.msra.mxu0 %v14738_v50 }
  0x1b   :  { %v326_v48 = vld [vmem:[%s24394_s1 + $0x880] sm:$0xff]  ;;  %v14723_v52 = vcombine.high %v70_v46, %v78_v47  ;;  %4818 = vmatprep.subr.bf16.mxu1 %v14995_v45  ;;  %v14722_v62 = vcombine.low %v70_v46, %v78_v47 }
  0x1c   :  { %v334_v49 = vld [vmem:[%s24394_s1 + $0x8c0] sm:$0xff]  ;;  %4819 = vmatpush1.bf16.msra.mxu1 %v14994_v51 }
  0x1d   :  { %v18340_v53 = vld [vmem:[%s24395_s0] sm:$0xff]  ;;  %v14979_v55 = vcombine.high %v326_v48, %v334_v49  ;;  %4779 = vmatprep.subr.bf16.mxu0 %v14723_v52  ;;  %v14978_v63 = vcombine.low %v326_v48, %v334_v49 }
  0x1e   :  { %v54_v56 = vld [vmem:[%s24394_s1] sm:$0xff]  ;;  %v18355_v58 = vcombine.high %v18340_v53, %v18340_v53  ;;  %4780 = vmatpush1.bf16.msra.mxu0 %v14722_v62 }
  0x1f   :  { %v62_v57 = vld [vmem:[%s24394_s1 + $0x40] sm:$0xff]  ;;  %4820 = vmatprep.subr.bf16.mxu1 %v14979_v55 }
  0x20   :  { %v310_v60 = vld [vmem:[%s24394_s1 + $0x800] sm:$0xff]  ;;  %4799 = vmatprep.mubr.bf16.mxu0 %v18355_v58  ;;  %v14707_v0 = vcombine.high %v54_v56, %v62_v57  ;;  %v14706_v6 = vcombine.low %v54_v56, %v62_v57  ;;  %4821 = vmatpush1.bf16.msra.mxu1 %v14978_v63 }
  0x21   :  { %v318_v61 = vld [vmem:[%s24394_s1 + $0x840] sm:$0xff] }
  0x22   :  { %v14963_v1 = vcombine.high %v310_v60, %v318_v61  ;;  %v294_v2 = vld [vmem:[%s24394_s1 + $0x780] sm:$0xff]  ;;  %4781 = vmatprep.subr.bf16.mxu0 %v14707_v0  ;;  %v14962_v7 = vcombine.low %v310_v60, %v318_v61 }
  0x23   :  { %v302_v3 = vld [vmem:[%s24394_s1 + $0x7c0] sm:$0xff]  ;;  %4782 = vmatpush1.bf16.msra.mxu0 %v14706_v6 }
  0x24   :  { %v550_v4 = vld [vmem:[%s24394_s1 + $0xf80] sm:$0xff]  ;;  %v14947_v8 = vcombine.high %v294_v2, %v302_v3  ;;  %4822 = vmatprep.subr.bf16.mxu1 %v14963_v1  ;;  %v14946_v14 = vcombine.low %v294_v2, %v302_v3 }
  0x25   :  { %v558_v5 = vld [vmem:[%s24394_s1 + $0xfc0] sm:$0xff]  ;;  %4823 = vmatpush1.bf16.msra.mxu1 %v14962_v7 }
  0x26   :  { %v15203_v9 = vcombine.high %v550_v4, %v558_v5  ;;  %v278_v10 = vld [vmem:[%s24394_s1 + $0x700] sm:$0xff]  ;;  %4783 = vmatprep.subr.bf16.mxu0 %v14947_v8  ;;  %v15202_v15 = vcombine.low %v550_v4, %v558_v5  ;;  %v167_v8 = vld [vmem:[%s24394_s1 + $0x388] sm:$0xff] }
  0x27   :  { %v286_v11 = vld [vmem:[%s24394_s1 + $0x740] sm:$0xff]  ;;  %4784 = vmatpush2.bf16.msra.mxu0 %v14946_v14 }
  0x28   :  { %v534_v12 = vld [vmem:[%s24394_s1 + $0xf00] sm:$0xff]  ;;  %v14931_v16 = vcombine.high %v278_v10, %v286_v11  ;;  %4824 = vmatprep.subr.bf16.mxu1 %v15203_v9  ;;  %v14930_v22 = vcombine.low %v278_v10, %v286_v11  ;;  %v175_v9 = vld [vmem:[%s24394_s1 + $0x3c8] sm:$0xff] }
  0x29   :  { %v542_v13 = vld [vmem:[%s24394_s1 + $0xf40] sm:$0xff]  ;;  %4825 = vmatpush2.bf16.msra.mxu1 %v15202_v15 }
  0x2a   :  { %v15187_v17 = vcombine.high %v534_v12, %v542_v13  ;;  %v262_v18 = vld [vmem:[%s24394_s1 + $0x680] sm:$0xff]  ;;  %4785 = vmatprep.subr.bf16.mxu0 %v14931_v16  ;;  %v15186_v23 = vcombine.low %v534_v12, %v542_v13  ;;  %v14821_v13 = vcombine.high %v167_v8, %v175_v9  ;;  %v18485_v16 = vcombine.low %v18340_v53, %v18340_v53 }
  0x2b   :  { %v270_v19 = vld [vmem:[%s24394_s1 + $0x6c0] sm:$0xff]  ;;  %4786 = vmatpush2.bf16.msra.mxu0 %v14930_v22 }
  0x2c   :  { %v518_v20 = vld [vmem:[%s24394_s1 + $0xe80] sm:$0xff]  ;;  %v14915_v24 = vcombine.high %v262_v18, %v270_v19  ;;  %4826 = vmatprep.subr.bf16.mxu1 %v15187_v17  ;;  %v14914_v30 = vcombine.low %v262_v18, %v270_v19  ;;  %v151_v17 = vld [vmem:[%s24394_s1 + $0x308] sm:$0xff]  ;;  %v18496_v19 = vld [vmem:[%s24395_s0 + $0x10] sm:$0xff] }
  0x2d   :  { %v526_v21 = vld [vmem:[%s24394_s1 + $0xec0] sm:$0xff]  ;;  %4827 = vmatpush2.bf16.msra.mxu1 %v15186_v23  ;;  %v159_v18 = vld [vmem:[%s24394_s1 + $0x348] sm:$0xff] }
  0x2e   :  { %v15171_v25 = vcombine.high %v518_v20, %v526_v21  ;;  %v246_v26 = vld [vmem:[%s24394_s1 + $0x600] sm:$0xff]  ;;  %4787 = vmatprep.subr.bf16.mxu0 %v14915_v24  ;;  %v15170_v31 = vcombine.low %v518_v20, %v526_v21  ;;  %v18500_v20 = vcombine.low %v18345_v54, %v18345_v54  ;;  %v14820_v21 = vcombine.low %v167_v8, %v175_v9  ;;  %v135_v54 = vld [vmem:[%s24394_s1 + $0x288] sm:$0xff] }
  0x2f   :  { %v254_v27 = vld [vmem:[%s24394_s1 + $0x640] sm:$0xff]  ;;  %4788 = vmatpush2.bf16.msra.mxu0 %v14914_v30  ;;  %v14805_v23 = vcombine.high %v151_v17, %v159_v18 }
  0x30   :  { %v502_v28 = vld [vmem:[%s24394_s1 + $0xe00] sm:$0xff]  ;;  %v14899_v32 = vcombine.high %v246_v26, %v254_v27  ;;  %4828 = vmatprep.subr.bf16.mxu1 %v15171_v25  ;;  %v14898_v38 = vcombine.low %v246_v26, %v254_v27  ;;  %v18510_v26 = vcombine.high %v18496_v19, %v18496_v19  ;;  %v143_v27 = vld [vmem:[%s24394_s1 + $0x2c8] sm:$0xff] }
  0x31   :  { %v510_v29 = vld [vmem:[%s24394_s1 + $0xe40] sm:$0xff]  ;;  %4829 = vmatpush2.bf16.msra.mxu1 %v15170_v31  ;;  %v14789_v31 = vcombine.high %v135_v54, %v143_v27 }
  0x32   :  { %v15155_v33 = vcombine.high %v502_v28, %v510_v29  ;;  %v230_v34 = vld [vmem:[%s24394_s1 + $0x580] sm:$0xff]  ;;  %4789 = vmatprep.subr.bf16.mxu0 %v14899_v32  ;;  %v15154_v39 = vcombine.low %v502_v28, %v510_v29  ;;  %v14804_v29 = vcombine.low %v151_v17, %v159_v18 }
  0x33   :  { %v238_v35 = vld [vmem:[%s24394_s1 + $0x5c0] sm:$0xff]  ;;  %4790 = vmatpush2.bf16.msra.mxu0 %v14898_v38 }
  0x34   :  { %v486_v36 = vld [vmem:[%s24394_s1 + $0xd80] sm:$0xff]  ;;  %v14883_v40 = vcombine.high %v230_v34, %v238_v35  ;;  %4830 = vmatprep.subr.bf16.mxu1 %v15155_v33  ;;  %v14882_v46 = vcombine.low %v230_v34, %v238_v35  ;;  %v119_v34 = vld [vmem:[%s24394_s1 + $0x208] sm:$0xff] }
  0x35   :  { %v494_v37 = vld [vmem:[%s24394_s1 + $0xdc0] sm:$0xff]  ;;  %4831 = vmatpush2.bf16.msra.mxu1 %v15154_v39  ;;  %v127_v35 = vld [vmem:[%s24394_s1 + $0x248] sm:$0xff] }
  0x36   :  { %v15139_v41 = vcombine.high %v486_v36, %v494_v37  ;;  %v214_v42 = vld [vmem:[%s24394_s1 + $0x500] sm:$0xff]  ;;  %4791 = vmatprep.subr.bf16.mxu0 %v14883_v40  ;;  %v15138_v47 = vcombine.low %v486_v36, %v494_v37  ;;  %v14788_v37 = vcombine.low %v135_v54, %v143_v27  ;;  %v14773_v39 = vcombine.high %v119_v34, %v127_v35 }
  0x37   :  { %v222_v43 = vld [vmem:[%s24394_s1 + $0x540] sm:$0xff]  ;;  %4792 = vmatpush2.bf16.msra.mxu0 %v14882_v46 }
  0x38   :  { %v470_v44 = vld [vmem:[%s24394_s1 + $0xd00] sm:$0xff]  ;;  %v14867_v48 = vcombine.high %v214_v42, %v222_v43  ;;  %4832 = vmatprep.subr.bf16.mxu1 %v15139_v41  ;;  %v14866_v56 = vcombine.low %v214_v42, %v222_v43  ;;  %v103_v42 = vld [vmem:[%s24394_s1 + $0x188] sm:$0xff] }
  0x39   :  { %v478_v45 = vld [vmem:[%s24394_s1 + $0xd40] sm:$0xff]  ;;  %4833 = vmatpush2.bf16.msra.mxu1 %v15138_v47  ;;  %v111_v43 = vld [vmem:[%s24394_s1 + $0x1c8] sm:$0xff] }
  0x3a   :  { %v15123_v49 = vcombine.high %v470_v44, %v478_v45  ;;  %v198_v50 = vld [vmem:[%s24394_s1 + $0x480] sm:$0xff]  ;;  %4793 = vmatprep.subr.bf16.mxu0 %v14867_v48  ;;  %v15122_v57 = vcombine.low %v470_v44, %v478_v45  ;;  %v14772_v45 = vcombine.low %v119_v34, %v127_v35  ;;  %v14757_v47 = vcombine.high %v103_v42, %v111_v43 }
  0x3b   :  { %v206_v51 = vld [vmem:[%s24394_s1 + $0x4c0] sm:$0xff]  ;;  %4794 = vmatpush2.bf16.msra.mxu0 %v14866_v56 }
  0x3c   :  { %v454_v52 = vld [vmem:[%s24394_s1 + $0xc80] sm:$0xff]  ;;  %v14851_v60 = vcombine.high %v198_v50, %v206_v51  ;;  %4834 = vmatprep.subr.bf16.mxu1 %v15123_v49  ;;  %v14850_v2 = vcombine.low %v198_v50, %v206_v51  ;;  %v87_v50 = vld [vmem:[%s24394_s1 + $0x108] sm:$0xff] }
  0x3d   :  { %v462_v55 = vld [vmem:[%s24394_s1 + $0xcc0] sm:$0xff]  ;;  %4835 = vmatpush2.bf16.msra.mxu1 %v15122_v57  ;;  %v95_v51 = vld [vmem:[%s24394_s1 + $0x148] sm:$0xff] }
  0x3e   :  { %v15107_v61 = vcombine.high %v454_v52, %v462_v55  ;;  %v182_v62 = vld [vmem:[%s24394_s1 + $0x400] sm:$0xff]  ;;  %4795 = vmatprep.subr.bf16.mxu0 %v14851_v60  ;;  %v15106_v3 = vcombine.low %v454_v52, %v462_v55  ;;  %v14756_v55 = vcombine.low %v103_v42, %v111_v43  ;;  %v14741_v57 = vcombine.high %v87_v50, %v95_v51 }
  0x3f   :  { %v190_v63 = vld [vmem:[%s24394_s1 + $0x440] sm:$0xff]  ;;  %4796 = vmatpush2.bf16.msra.mxu0 %v14850_v2 }
  0x40   :  { %v438_v0 = vld [vmem:[%s24394_s1 + $0xc00] sm:$0xff]  ;;  %v14835_v4 = vcombine.high %v182_v62, %v190_v63  ;;  %4836 = vmatprep.subr.bf16.mxu1 %v15107_v61  ;;  %v14834_v10 = vcombine.low %v182_v62, %v190_v63  ;;  %v71_v62 = vld [vmem:[%s24394_s1 + $0x88] sm:$0xff] }
  0x41   :  { %v446_v1 = vld [vmem:[%s24394_s1 + $0xc40] sm:$0xff]  ;;  %4837 = vmatpush2.bf16.msra.mxu1 %v15106_v3  ;;  %v79_v63 = vld [vmem:[%s24394_s1 + $0xc8] sm:$0xff] }
  0x42   :  { %v15091_v5 = vcombine.high %v438_v0, %v446_v1  ;;  %v678_v6 = vld [vmem:[%s24394_s1 + $0x1380] sm:$0xff]  ;;  %4797 = vmatprep.subr.bf16.mxu0 %v14835_v4  ;;  %v15090_v11 = vcombine.low %v438_v0, %v446_v1  ;;  %v14740_v1 = vcombine.low %v87_v50, %v95_v51  ;;  %v14725_v3 = vcombine.high %v71_v62, %v79_v63 }
  0x43   :  { %v686_v7 = vld [vmem:[%s24394_s1 + $0x13c0] sm:$0xff]  ;;  %4798 = vmatpush2.bf16.msra.mxu0 %v14834_v10  ;;  %v14724_v9 = vcombine.low %v71_v62, %v79_v63 }
  0x44   :  { %v15331_v12 = vcombine.high %v678_v6, %v686_v7  ;;  %4838 = vmatprep.subr.bf16.mxu1 %v15091_v5  ;;  %v662_v14 = vld [vmem:[%s24394_s1 + $0x1300] sm:$0xff]  ;;  %v15330_v53 = vcombine.low %v678_v6, %v686_v7  ;;  %v55_v6 = vld [vmem:[%s24394_s1 + $0x8] sm:$0xff] }
  0x45   :  { %v670_v15 = vld [vmem:[%s24394_s1 + $0x1340] sm:$0xff]  ;;  %4839 = vmatpush2.bf16.msra.mxu1 %v15090_v11  ;;  %v63_v7 = vld [vmem:[%s24394_s1 + $0x48] sm:$0xff] }
  0x46   :  { %4849 = vmatprep.subr.bf16.mxu0 %v15331_v12  ;;  %v15315_v22 = vcombine.high %v662_v14, %v670_v15  ;;  %4890 = vmatprep.subr.bf16.mxu1 %v14821_v13  ;;  %v646_v24 = vld [vmem:[%s24394_s1 + $0x1280] sm:$0xff]  ;;  %v15314_v28 = vcombine.low %v662_v14, %v670_v15  ;;  %v14709_v11 = vcombine.high %v55_v6, %v63_v7  ;;  %v295_v14 = vld [vmem:[%s24394_s1 + $0x788] sm:$0xff] }
  0x47   :  { %v654_v25 = vld [vmem:[%s24394_s1 + $0x12c0] sm:$0xff]  ;;  %4800 = vmatmul.mubr.bf16.vlgmr.msra.gmra.mxu0 %v18485_v16  ;;  %v303_v15 = vld [vmem:[%s24394_s1 + $0x7c8] sm:$0xff]  ;;  %v14708_v18 = vcombine.low %v55_v6, %v63_v7 }
  0x48   :  { %4841 = vmatmul.mubr.bf16.vlgmr.msra.gmra.mxu1 %v18500_v20  ;;  %4850 = vmatpush1.bf16.msra.mxu0 %v15330_v53  ;;  %v15299_v30 = vcombine.high %v646_v24, %v654_v25  ;;  %v630_v32 = vld [vmem:[%s24394_s1 + $0x1200] sm:$0xff]  ;;  %v15298_v36 = vcombine.low %v646_v24, %v654_v25  ;;  %v279_v24 = vld [vmem:[%s24394_s1 + $0x708] sm:$0xff]  ;;  %v14948_v27 = vcombine.low %v295_v14, %v303_v15 }
  0x49   :  { %4891 = vmatpush1.bf16.msra.mxu1 %v14820_v21  ;;  %4851 = vmatprep.subr.bf16.mxu0 %v15315_v22  ;;  %v638_v33 = vld [vmem:[%s24394_s1 + $0x1240] sm:$0xff]  ;;  %v14949_v21 = vcombine.high %v295_v14, %v303_v15  ;;  %v287_v25 = vld [vmem:[%s24394_s1 + $0x748] sm:$0xff] }
  0x4a   :  { %4892 = vmatprep.subr.bf16.mxu1 %v14805_v23  ;;  %4881 = vmatprep.mubr.bf16.mxu0 %v18510_v26  ;;  %v15283_v38 = vcombine.high %v630_v32, %v638_v33  ;;  %v614_v40 = vld [vmem:[%s24394_s1 + $0x1180] sm:$0xff]  ;;  %v15282_v44 = vcombine.low %v630_v32, %v638_v33  ;;  %v263_v32 = vld [vmem:[%s24394_s1 + $0x688] sm:$0xff]  ;;  %v14932_v35 = vcombine.low %v279_v24, %v287_v25 }
  0x4b   :  { %4922 = vmatprep.mubr.bf16.mxu1 %v18355_v58  ;;  %v622_v41 = vld [vmem:[%s24394_s1 + $0x11c0] sm:$0xff]  ;;  %v271_v33 = vld [vmem:[%s24394_s1 + $0x6c8] sm:$0xff] }
  0x4c   :  { %4852 = vmatpush1.bf16.msra.mxu0 %v15314_v28  ;;  %v15267_v46 = vcombine.high %v614_v40, %v622_v41  ;;  %v598_v48 = vld [vmem:[%s24394_s1 + $0x1100] sm:$0xff]  ;;  %v15266_v52 = vcombine.low %v614_v40, %v622_v41  ;;  %v247_v40 = vld [vmem:[%s24394_s1 + $0x608] sm:$0xff]  ;;  %v14916_v43 = vcombine.low %v263_v32, %v271_v33 }
  0x4d   :  { %4893 = vmatpush1.bf16.msra.mxu1 %v14804_v29  ;;  %4853 = vmatprep.subr.bf16.mxu0 %v15299_v30  ;;  %v606_v49 = vld [vmem:[%s24394_s1 + $0x1140] sm:$0xff]  ;;  %v14933_v29 = vcombine.high %v279_v24, %v287_v25  ;;  %v255_v41 = vld [vmem:[%s24394_s1 + $0x648] sm:$0xff] }
  0x4e   :  { %4894 = vmatprep.subr.bf16.mxu1 %v14789_v31  ;;  %v15251_v56 = vcombine.high %v598_v48, %v606_v49  ;;  %v582_v60 = vld [vmem:[%s24394_s1 + $0x1080] sm:$0xff]  ;;  %v15250_v0 = vcombine.low %v598_v48, %v606_v49  ;;  %v231_v48 = vld [vmem:[%s24394_s1 + $0x588] sm:$0xff]  ;;  %v14900_v51 = vcombine.low %v247_v40, %v255_v41 }
  0x4f   :  { %v590_v61 = vld [vmem:[%s24394_s1 + $0x10c0] sm:$0xff]  ;;  %v239_v49 = vld [vmem:[%s24394_s1 + $0x5c8] sm:$0xff] }
  0x50   :  { %4854 = vmatpush1.bf16.msra.mxu0 %v15298_v36  ;;  %v15235_v2 = vcombine.high %v582_v60, %v590_v61  ;;  %v566_v4 = vld [vmem:[%s24394_s1 + $0x1000] sm:$0xff]  ;;  %v15234_v8 = vcombine.low %v582_v60, %v590_v61  ;;  %v215_v60 = vld [vmem:[%s24394_s1 + $0x508] sm:$0xff]  ;;  %v14884_v63 = vcombine.low %v231_v48, %v239_v49 }
  0x51   :  { %4895 = vmatpush1.bf16.msra.mxu1 %v14788_v37  ;;  %4855 = vmatprep.subr.bf16.mxu0 %v15283_v38  ;;  %v574_v5 = vld [vmem:[%s24394_s1 + $0x1040] sm:$0xff]  ;;  %v14917_v37 = vcombine.high %v263_v32, %v271_v33  ;;  %v223_v61 = vld [vmem:[%s24394_s1 + $0x548] sm:$0xff] }
  0x52   :  { %4896 = vmatprep.subr.bf16.mxu1 %v14773_v39  ;;  %v15219_v10 = vcombine.high %v566_v4, %v574_v5  ;;  %v806_v12 = vld [vmem:[%s24394_s1 + $0x1780] sm:$0xff]  ;;  %v15218_v17 = vcombine.low %v566_v4, %v574_v5  ;;  %v199_v4 = vld [vmem:[%s24394_s1 + $0x488] sm:$0xff]  ;;  %v14868_v7 = vcombine.low %v215_v60, %v223_v61 }
  0x53   :  { %v814_v13 = vld [vmem:[%s24394_s1 + $0x17c0] sm:$0xff]  ;;  %v207_v5 = vld [vmem:[%s24394_s1 + $0x4c8] sm:$0xff] }
  0x54   :  { %4856 = vmatpush1.bf16.msra.mxu0 %v15282_v44  ;;  %v15459_v53 = vcombine.high %v806_v12, %v814_v13  ;;  %v790_v22 = vld [vmem:[%s24394_s1 + $0x1700] sm:$0xff]  ;;  %v15458_v54 = vcombine.low %v806_v12, %v814_v13  ;;  %v183_v12 = vld [vmem:[%s24394_s1 + $0x408] sm:$0xff]  ;;  %v14852_v15 = vcombine.low %v199_v4, %v207_v5 }
  0x55   :  { %4897 = vmatpush1.bf16.msra.mxu1 %v14772_v45  ;;  %4857 = vmatprep.subr.bf16.mxu0 %v15267_v46  ;;  %v798_v23 = vld [vmem:[%s24394_s1 + $0x1740] sm:$0xff]  ;;  %v14901_v45 = vcombine.high %v247_v40, %v255_v41  ;;  %v191_v13 = vld [vmem:[%s24394_s1 + $0x448] sm:$0xff] }
  0x56   :  { %4898 = vmatprep.subr.bf16.mxu1 %v14757_v47  ;;  %v15443_v28 = vcombine.high %v790_v22, %v798_v23  ;;  %v774_v30 = vld [vmem:[%s24394_s1 + $0x1680] sm:$0xff]  ;;  %v15442_v34 = vcombine.low %v790_v22, %v798_v23  ;;  %v679_v22 = vld [vmem:[%s24394_s1 + $0x1388] sm:$0xff]  ;;  %v14836_v25 = vcombine.low %v183_v12, %v191_v13 }
  0x57   :  { %v782_v31 = vld [vmem:[%s24394_s1 + $0x16c0] sm:$0xff]  ;;  %v687_v23 = vld [vmem:[%s24394_s1 + $0x13c8] sm:$0xff] }
  0x58   :  { %4858 = vmatpush1.bf16.msra.mxu0 %v15266_v52  ;;  %v15427_v36 = vcombine.high %v774_v30, %v782_v31  ;;  %v758_v38 = vld [vmem:[%s24394_s1 + $0x1600] sm:$0xff]  ;;  %v15426_v42 = vcombine.low %v774_v30, %v782_v31  ;;  %v18698_v30 = vcombine.low %v18496_v19, %v18496_v19  ;;  %v663_v31 = vld [vmem:[%s24394_s1 + $0x1308] sm:$0xff] }
  0x59   :  { %4899 = vmatpush1.bf16.msra.mxu1 %v14756_v55  ;;  %4859 = vmatprep.subr.bf16.mxu0 %v15251_v56  ;;  %v766_v39 = vld [vmem:[%s24394_s1 + $0x1640] sm:$0xff]  ;;  %v14885_v55 = vcombine.high %v231_v48, %v239_v49  ;;  %v671_v32 = vld [vmem:[%s24394_s1 + $0x1348] sm:$0xff] }
  0x5a   :  { %4900 = vmatprep.subr.bf16.mxu1 %v14741_v57  ;;  %v15411_v44 = vcombine.high %v758_v38, %v766_v39  ;;  %v742_v46 = vld [vmem:[%s24394_s1 + $0x1580] sm:$0xff]  ;;  %v15410_v50 = vcombine.low %v758_v38, %v766_v39  ;;  %v391_v19 = vld [vmem:[%s24394_s1 + $0xa88] sm:$0xff]  ;;  %v15316_v41 = vcombine.low %v663_v31, %v671_v32 }
  0x5b   :  { %v750_v47 = vld [vmem:[%s24394_s1 + $0x15c0] sm:$0xff]  ;;  %v647_v38 = vld [vmem:[%s24394_s1 + $0x1288] sm:$0xff] }
  0x5c   :  { %4860 = vmatpush1.bf16.msra.mxu0 %v15250_v0  ;;  %v15395_v52 = vcombine.high %v742_v46, %v750_v47  ;;  %v726_v56 = vld [vmem:[%s24394_s1 + $0x1500] sm:$0xff]  ;;  %v15394_v62 = vcombine.low %v742_v46, %v750_v47  ;;  %v655_v39 = vld [vmem:[%s24394_s1 + $0x12c8] sm:$0xff] }
  0x5d   :  { %4901 = vmatpush1.bf16.msra.mxu1 %v14740_v1  ;;  %4861 = vmatprep.subr.bf16.mxu0 %v15235_v2  ;;  %v734_v57 = vld [vmem:[%s24394_s1 + $0x1540] sm:$0xff]  ;;  %v14869_v1 = vcombine.high %v215_v60, %v223_v61  ;;  %v631_v46 = vld [vmem:[%s24394_s1 + $0x1208] sm:$0xff]  ;;  %v15300_v49 = vcombine.low %v647_v38, %v655_v39 }
  0x5e   :  { %4902 = vmatprep.subr.bf16.mxu1 %v14725_v3  ;;  %v15379_v0 = vcombine.high %v726_v56, %v734_v57  ;;  %v710_v2 = vld [vmem:[%s24394_s1 + $0x1480] sm:$0xff]  ;;  %v15378_v6 = vcombine.low %v726_v56, %v734_v57  ;;  %v639_v47 = vld [vmem:[%s24394_s1 + $0x1248] sm:$0xff] }
  0x5f   :  { %v718_v3 = vld [vmem:[%s24394_s1 + $0x14c0] sm:$0xff]  ;;  %v615_v56 = vld [vmem:[%s24394_s1 + $0x1188] sm:$0xff]  ;;  %v15284_v61 = vcombine.low %v631_v46, %v639_v47 }
  0x60   :  { %4862 = vmatpush1.bf16.msra.mxu0 %v15234_v8  ;;  %v15363_v8 = vcombine.high %v710_v2, %v718_v3  ;;  %v15362_v14 = vcombine.low %v710_v2, %v718_v3  ;;  %v623_v57 = vld [vmem:[%s24394_s1 + $0x11c8] sm:$0xff] }
  0x61   :  { %4903 = vmatpush1.bf16.msra.mxu1 %v14724_v9  ;;  %4863 = vmatprep.subr.bf16.mxu0 %v15219_v10  ;;  %v14853_v9 = vcombine.high %v199_v4, %v207_v5  ;;  %v694_v10 = vld [vmem:[%s24394_s1 + $0x1400] sm:$0xff]  ;;  %v599_v2 = vld [vmem:[%s24394_s1 + $0x1108] sm:$0xff]  ;;  %v15268_v5 = vcombine.low %v615_v56, %v623_v57 }
  0x62   :  { %4904 = vmatprep.subr.bf16.mxu1 %v14709_v11  ;;  %v702_v11 = vld [vmem:[%s24394_s1 + $0x1440] sm:$0xff]  ;;  %v607_v3 = vld [vmem:[%s24394_s1 + $0x1148] sm:$0xff] }
  0x63   :  { %v15346_v24 = vcombine.low %v694_v10, %v702_v11 }
  0x64   :  { %4864 = vmatpush1.bf16.msra.mxu0 %v15218_v17  ;;  %v15347_v17 = vcombine.high %v694_v10, %v702_v11  ;;  %v583_v10 = vld [vmem:[%s24394_s1 + $0x1088] sm:$0xff] }
  0x65   :  { %4905 = vmatpush1.bf16.msra.mxu1 %v14708_v18  ;;  %4865 = vmatprep.subr.bf16.mxu0 %v15459_v53  ;;  %v14837_v18 = vcombine.high %v183_v12, %v191_v13  ;;  %v423_v53 = vld [vmem:[%s24394_s1 + $0xb88] sm:$0xff]  ;;  %v15252_v13 = vcombine.low %v599_v2, %v607_v3 }
  0x66   :  { %4906 = vmatprep.subr.bf16.mxu1 %v14949_v21  ;;  %v431_v21 = vld [vmem:[%s24394_s1 + $0xbc8] sm:$0xff] }
  0x67   :  { %v15076_v33 = vcombine.low %v423_v53, %v431_v21  ;;  %v591_v11 = vld [vmem:[%s24394_s1 + $0x10c8] sm:$0xff] }
  0x68   :  { %4866 = vmatpush2.bf16.msra.mxu0 %v15458_v54  ;;  %v15077_v54 = vcombine.high %v423_v53, %v431_v21  ;;  %v567_v53 = vld [vmem:[%s24394_s1 + $0x1008] sm:$0xff] }
  0x69   :  { %4907 = vmatpush2.bf16.msra.mxu1 %v14948_v27  ;;  %4867 = vmatprep.subr.bf16.mxu0 %v15443_v28  ;;  %v15333_v27 = vcombine.high %v679_v22, %v687_v23  ;;  %v407_v28 = vld [vmem:[%s24394_s1 + $0xb08] sm:$0xff] }
  0x6a   :  { %4908 = vmatprep.subr.bf16.mxu1 %v14933_v29  ;;  %v415_v29 = vld [vmem:[%s24394_s1 + $0xb48] sm:$0xff] }
  0x6b   :  { %v15060_v40 = vcombine.low %v407_v28, %v415_v29  ;;  %v575_v21 = vld [vmem:[%s24394_s1 + $0x1048] sm:$0xff] }
  0x6c   :  { %4868 = vmatpush2.bf16.msra.mxu0 %v15442_v34  ;;  %v15332_v34 = vcombine.low %v679_v22, %v687_v23  ;;  %v15236_v23 = vcombine.low %v583_v10, %v591_v11 }
  0x6d   :  { %4909 = vmatpush2.bf16.msra.mxu1 %v14932_v35  ;;  %4869 = vmatprep.subr.bf16.mxu0 %v15427_v36  ;;  %v15061_v35 = vcombine.high %v407_v28, %v415_v29  ;;  %v15317_v36 = vcombine.high %v663_v31, %v671_v32  ;;  %v807_v28 = vld [vmem:[%s24394_s1 + $0x1788] sm:$0xff]  ;;  %v15220_v32 = vcombine.low %v567_v53, %v575_v21 }
  0x6e   :  { %4910 = vmatprep.subr.bf16.mxu1 %v14917_v37  ;;  %v399_v37 = vld [vmem:[%s24394_s1 + $0xac8] sm:$0xff] }
  0x6f   :  { %v15044_v48 = vcombine.low %v391_v19, %v399_v37  ;;  %v815_v29 = vld [vmem:[%s24394_s1 + $0x17c8] sm:$0xff] }
  0x70   :  { %4870 = vmatpush2.bf16.msra.mxu0 %v15426_v42  ;;  %v15045_v42 = vcombine.high %v391_v19, %v399_v37  ;;  %v791_v19 = vld [vmem:[%s24394_s1 + $0x1708] sm:$0xff] }
  0x71   :  { %4911 = vmatpush2.bf16.msra.mxu1 %v14916_v43  ;;  %4871 = vmatprep.subr.bf16.mxu0 %v15411_v44  ;;  %v15301_v43 = vcombine.high %v647_v38, %v655_v39  ;;  %v375_v44 = vld [vmem:[%s24394_s1 + $0xa08] sm:$0xff]  ;;  %v15460_v39 = vcombine.low %v807_v28, %v815_v29 }
  0x72   :  { %4912 = vmatprep.subr.bf16.mxu1 %v14901_v45  ;;  %v383_v45 = vld [vmem:[%s24394_s1 + $0xa48] sm:$0xff] }
  0x73   :  { %v15028_v60 = vcombine.low %v375_v44, %v383_v45  ;;  %v799_v37 = vld [vmem:[%s24394_s1 + $0x1748] sm:$0xff] }
  0x74   :  { %4872 = vmatpush2.bf16.msra.mxu0 %v15410_v50  ;;  %v15029_v50 = vcombine.high %v375_v44, %v383_v45  ;;  %v775_v44 = vld [vmem:[%s24394_s1 + $0x1688] sm:$0xff] }
  0x75   :  { %4913 = vmatpush2.bf16.msra.mxu1 %v14900_v51  ;;  %4873 = vmatprep.subr.bf16.mxu0 %v15395_v52  ;;  %v15285_v51 = vcombine.high %v631_v46, %v639_v47  ;;  %v359_v52 = vld [vmem:[%s24394_s1 + $0x988] sm:$0xff]  ;;  %v15444_v47 = vcombine.low %v791_v19, %v799_v37 }
  0x76   :  { %4914 = vmatprep.subr.bf16.mxu1 %v14885_v55  ;;  %v367_v55 = vld [vmem:[%s24394_s1 + $0x9c8] sm:$0xff] }
  0x77   :  { %v15012_v4 = vcombine.low %v359_v52, %v367_v55  ;;  %v783_v45 = vld [vmem:[%s24394_s1 + $0x16c8] sm:$0xff] }
  0x78   :  { %4874 = vmatpush2.bf16.msra.mxu0 %v15394_v62  ;;  %v15013_v62 = vcombine.high %v359_v52, %v367_v55  ;;  %v759_v52 = vld [vmem:[%s24394_s1 + $0x1608] sm:$0xff] }
  0x79   :  { %4915 = vmatpush2.bf16.msra.mxu1 %v14884_v63  ;;  %4875 = vmatprep.subr.bf16.mxu0 %v15379_v0  ;;  %v15269_v63 = vcombine.high %v615_v56, %v623_v57  ;;  %v343_v0 = vld [vmem:[%s24394_s1 + $0x908] sm:$0xff]  ;;  %v15428_v57 = vcombine.low %v775_v44, %v783_v45 }
  0x7a   :  { %4916 = vmatprep.subr.bf16.mxu1 %v14869_v1  ;;  %v351_v1 = vld [vmem:[%s24394_s1 + $0x948] sm:$0xff] }
  0x7b   :  { %v14996_v12 = vcombine.low %v343_v0, %v351_v1  ;;  %v767_v55 = vld [vmem:[%s24394_s1 + $0x1648] sm:$0xff] }
  0x7c   :  { %4876 = vmatpush2.bf16.msra.mxu0 %v15378_v6  ;;  %v14997_v6 = vcombine.high %v343_v0, %v351_v1  ;;  %v743_v0 = vld [vmem:[%s24394_s1 + $0x1588] sm:$0xff] }
  0x7d   :  { %4917 = vmatpush2.bf16.msra.mxu1 %v14868_v7  ;;  %4877 = vmatprep.subr.bf16.mxu0 %v15363_v8  ;;  %v15253_v7 = vcombine.high %v599_v2, %v607_v3  ;;  %v327_v8 = vld [vmem:[%s24394_s1 + $0x888] sm:$0xff]  ;;  %v15412_v3 = vcombine.low %v759_v52, %v767_v55 }
  0x7e   :  { %4918 = vmatprep.subr.bf16.mxu1 %v14853_v9  ;;  %v335_v9 = vld [vmem:[%s24394_s1 + $0x8c8] sm:$0xff] }
  0x7f   :  { %v14980_v22 = vcombine.low %v327_v8, %v335_v9  ;;  %v751_v1 = vld [vmem:[%s24394_s1 + $0x15c8] sm:$0xff] }
  0x80   :  { %4878 = vmatpush2.bf16.msra.mxu0 %v15362_v14  ;;  %v14981_v14 = vcombine.high %v327_v8, %v335_v9  ;;  %v727_v8 = vld [vmem:[%s24394_s1 + $0x1508] sm:$0xff] }
  0x81   :  { %4919 = vmatpush2.bf16.msra.mxu1 %v14852_v15  ;;  %4879 = vmatprep.subr.bf16.mxu0 %v15347_v17  ;;  %v15237_v15 = vcombine.high %v583_v10, %v591_v11  ;;  %v311_v17 = vld [vmem:[%s24394_s1 + $0x808] sm:$0xff]  ;;  %v15396_v11 = vcombine.low %v743_v0, %v751_v1 }
  0x82   :  { %4920 = vmatprep.subr.bf16.mxu1 %v14837_v18  ;;  %v319_v18 = vld [vmem:[%s24394_s1 + $0x848] sm:$0xff] }
  0x83   :  { %v14964_v31 = vcombine.low %v311_v17, %v319_v18  ;;  %v735_v9 = vld [vmem:[%s24394_s1 + $0x1548] sm:$0xff] }
  0x84   :  { %4880 = vmatpush2.bf16.msra.mxu0 %v15346_v24  ;;  %v14965_v24 = vcombine.high %v311_v17, %v319_v18  ;;  %v711_v17 = vld [vmem:[%s24394_s1 + $0x1488] sm:$0xff] }
  0x85   :  { %4921 = vmatpush2.bf16.msra.mxu1 %v14836_v25  ;;  %4931 = vmatprep.subr.bf16.mxu0 %v15077_v54  ;;  %v15221_v25 = vcombine.high %v567_v53, %v575_v21  ;;  %v551_v54 = vld [vmem:[%s24394_s1 + $0xf88] sm:$0xff]  ;;  %v15380_v21 = vcombine.low %v727_v8, %v735_v9 }
  0x86   :  { %4972 = vmatprep.subr.bf16.mxu1 %v15333_v27  ;;  %v559_v27 = vld [vmem:[%s24394_s1 + $0xfc8] sm:$0xff] }
  0x87   :  { %4882 = vmatmul.mubr.bf16.vlgmr.msra.gmra.mxu0 %v18698_v30  ;;  %v15204_v38 = vcombine.low %v551_v54, %v559_v27  ;;  %v719_v18 = vld [vmem:[%s24394_s1 + $0x14c8] sm:$0xff] }
  0x88   :  { %4923 = vmatmul.mubr.bf16.vlgmr.msra.gmra.mxu1 %v18485_v16  ;;  %4932 = vmatpush1.bf16.msra.mxu0 %v15076_v33  ;;  %v15205_v33 = vcombine.high %v551_v54, %v559_v27  ;;  %v695_v54 = vld [vmem:[%s24394_s1 + $0x1408] sm:$0xff] }
  0x89   :  { %4973 = vmatpush1.bf16.msra.mxu1 %v15332_v34  ;;  %4933 = vmatprep.subr.bf16.mxu0 %v15061_v35  ;;  %v15461_v34 = vcombine.high %v807_v28, %v815_v29  ;;  %v535_v35 = vld [vmem:[%s24394_s1 + $0xf08] sm:$0xff]  ;;  %v15364_v29 = vcombine.low %v711_v17, %v719_v18 }
  0x8a   :  { %4974 = vmatprep.subr.bf16.mxu1 %v15317_v36  ;;  %4963 = vmatprep.mubr.bf16.mxu0 %v18359_v59  ;;  %v543_v36 = vld [vmem:[%s24394_s1 + $0xf48] sm:$0xff] }
  0x8b   :  { %5004 = vmatprep.mubr.bf16.mxu1 %v18510_v26  ;;  %v15188_v46 = vcombine.low %v535_v35, %v543_v36  ;;  %v703_v27 = vld [vmem:[%s24394_s1 + $0x1448] sm:$0xff] }
  0x8c   :  { %4934 = vmatpush1.bf16.msra.mxu0 %v15060_v40  ;;  %v15189_v40 = vcombine.high %v535_v35, %v543_v36  ;;  %v424_v35 = vld [vmem:[%s24394_s1 + $0xb90] sm:$0xff] }
  0x8d   :  { %4975 = vmatpush1.bf16.msra.mxu1 %v15316_v41  ;;  %4935 = vmatprep.subr.bf16.mxu0 %v15045_v42  ;;  %v15445_v41 = vcombine.high %v791_v19, %v799_v37  ;;  %v519_v42 = vld [vmem:[%s24394_s1 + $0xe88] sm:$0xff]  ;;  %v432_v36 = vld [vmem:[%s24394_s1 + $0xbd0] sm:$0xff]  ;;  %v15348_v37 = vcombine.low %v695_v54, %v703_v27 }
  0x8e   :  { %4976 = vmatprep.subr.bf16.mxu1 %v15301_v43  ;;  %v527_v43 = vld [vmem:[%s24394_s1 + $0xec8] sm:$0xff] }
  0x8f   :  { %v15172_v56 = vcombine.low %v519_v42, %v527_v43 }
  0x90   :  { %4936 = vmatpush1.bf16.msra.mxu0 %v15044_v48  ;;  %v15173_v48 = vcombine.high %v519_v42, %v527_v43  ;;  %v408_v42 = vld [vmem:[%s24394_s1 + $0xb10] sm:$0xff] }
  0x91   :  { %4977 = vmatpush1.bf16.msra.mxu1 %v15300_v49  ;;  %4937 = vmatprep.subr.bf16.mxu0 %v15029_v50  ;;  %v15429_v49 = vcombine.high %v775_v44, %v783_v45  ;;  %v503_v50 = vld [vmem:[%s24394_s1 + $0xe08] sm:$0xff]  ;;  %v416_v43 = vld [vmem:[%s24394_s1 + $0xb50] sm:$0xff]  ;;  %v15078_v45 = vcombine.low %v424_v35, %v432_v36 }
  0x92   :  { %4978 = vmatprep.subr.bf16.mxu1 %v15285_v51  ;;  %v511_v51 = vld [vmem:[%s24394_s1 + $0xe48] sm:$0xff] }
  0x93   :  { %v15156_v2 = vcombine.low %v503_v50, %v511_v51 }
  0x94   :  { %4938 = vmatpush1.bf16.msra.mxu0 %v15028_v60  ;;  %v15157_v60 = vcombine.high %v503_v50, %v511_v51  ;;  %v392_v50 = vld [vmem:[%s24394_s1 + $0xa90] sm:$0xff] }
  0x95   :  { %4979 = vmatpush1.bf16.msra.mxu1 %v15284_v61  ;;  %4939 = vmatprep.subr.bf16.mxu0 %v15013_v62  ;;  %v15413_v61 = vcombine.high %v759_v52, %v767_v55  ;;  %v487_v62 = vld [vmem:[%s24394_s1 + $0xd88] sm:$0xff]  ;;  %v400_v51 = vld [vmem:[%s24394_s1 + $0xad0] sm:$0xff]  ;;  %v15062_v55 = vcombine.low %v408_v42, %v416_v43 }
  0x96   :  { %4980 = vmatprep.subr.bf16.mxu1 %v15269_v63  ;;  %v495_v63 = vld [vmem:[%s24394_s1 + $0xdc8] sm:$0xff] }
  0x97   :  { %v15140_v10 = vcombine.low %v487_v62, %v495_v63 }
  0x98   :  { %4940 = vmatpush1.bf16.msra.mxu0 %v15012_v4  ;;  %v15141_v4 = vcombine.high %v487_v62, %v495_v63  ;;  %v376_v62 = vld [vmem:[%s24394_s1 + $0xa10] sm:$0xff] }
  0x99   :  { %4981 = vmatpush1.bf16.msra.mxu1 %v15268_v5  ;;  %4941 = vmatprep.subr.bf16.mxu0 %v14997_v6  ;;  %v15397_v5 = vcombine.high %v743_v0, %v751_v1  ;;  %v471_v6 = vld [vmem:[%s24394_s1 + $0xd08] sm:$0xff]  ;;  %v384_v63 = vld [vmem:[%s24394_s1 + $0xa50] sm:$0xff]  ;;  %v15046_v1 = vcombine.low %v392_v50, %v400_v51 }
  0x9a   :  { %4982 = vmatprep.subr.bf16.mxu1 %v15253_v7  ;;  %v479_v7 = vld [vmem:[%s24394_s1 + $0xd48] sm:$0xff] }
  0x9b   :  { %v15124_v53 = vcombine.low %v471_v6, %v479_v7 }
  0x9c   :  { %4942 = vmatpush1.bf16.msra.mxu0 %v14996_v12  ;;  %v15125_v12 = vcombine.high %v471_v6, %v479_v7  ;;  %v360_v6 = vld [vmem:[%s24394_s1 + $0x990] sm:$0xff] }
  0x9d   :  { %4983 = vmatpush1.bf16.msra.mxu1 %v15252_v13  ;;  %4943 = vmatprep.subr.bf16.mxu0 %v14981_v14  ;;  %v15381_v13 = vcombine.high %v727_v8, %v735_v9  ;;  %v455_v14 = vld [vmem:[%s24394_s1 + $0xc88] sm:$0xff]  ;;  %v368_v7 = vld [vmem:[%s24394_s1 + $0x9d0] sm:$0xff]  ;;  %v15030_v9 = vcombine.low %v376_v62, %v384_v63 }
  0x9e   :  { %4984 = vmatprep.subr.bf16.mxu1 %v15237_v15  ;;  %v463_v15 = vld [vmem:[%s24394_s1 + $0xcc8] sm:$0xff] }
  0x9f   :  { %v15108_v28 = vcombine.low %v455_v14, %v463_v15 }
  0xa0   :  { %4944 = vmatpush1.bf16.msra.mxu0 %v14980_v22  ;;  %v15109_v22 = vcombine.high %v455_v14, %v463_v15  ;;  %v344_v14 = vld [vmem:[%s24394_s1 + $0x910] sm:$0xff] }
  0xa1   :  { %4985 = vmatpush1.bf16.msra.mxu1 %v15236_v23  ;;  %4945 = vmatprep.subr.bf16.mxu0 %v14965_v24  ;;  %v15365_v23 = vcombine.high %v711_v17, %v719_v18  ;;  %v439_v24 = vld [vmem:[%s24394_s1 + $0xc08] sm:$0xff]  ;;  %v352_v15 = vld [vmem:[%s24394_s1 + $0x950] sm:$0xff]  ;;  %v15014_v18 = vcombine.low %v360_v6, %v368_v7 }
  0xa2   :  { %4986 = vmatprep.subr.bf16.mxu1 %v15221_v25  ;;  %v447_v25 = vld [vmem:[%s24394_s1 + $0xc48] sm:$0xff] }
  0xa3   :  { %v15092_v19 = vcombine.low %v439_v24, %v447_v25 }
  0xa4   :  { %4946 = vmatpush1.bf16.msra.mxu0 %v14964_v31  ;;  %v15093_v31 = vcombine.high %v439_v24, %v447_v25  ;;  %v328_v24 = vld [vmem:[%s24394_s1 + $0x890] sm:$0xff] }
  0xa5   :  { %4987 = vmatpush1.bf16.msra.mxu1 %v15220_v32  ;;  %4947 = vmatprep.subr.bf16.mxu0 %v15205_v33  ;;  %v15349_v32 = vcombine.high %v695_v54, %v703_v27  ;;  %v168_v33 = vld [vmem:[%s24394_s1 + $0x390] sm:$0xff]  ;;  %v14998_v27 = vcombine.low %v344_v14, %v352_v15 }
  0xa6   :  { %4988 = vmatprep.subr.bf16.mxu1 %v15461_v34  ;;  %v176_v34 = vld [vmem:[%s24394_s1 + $0x3d0] sm:$0xff] }
  0xa7   :  { %v14822_v44 = vcombine.low %v168_v33, %v176_v34  ;;  %v336_v25 = vld [vmem:[%s24394_s1 + $0x8d0] sm:$0xff] }
  0xa8   :  { %4948 = vmatpush2.bf16.msra.mxu0 %v15204_v38  ;;  %v14823_v38 = vcombine.high %v168_v33, %v176_v34  ;;  %v312_v33 = vld [vmem:[%s24394_s1 + $0x810] sm:$0xff] }
  0xa9   :  { %4989 = vmatpush2.bf16.msra.mxu1 %v15460_v39  ;;  %4949 = vmatprep.subr.bf16.mxu0 %v15189_v40  ;;  %v15079_v39 = vcombine.high %v424_v35, %v432_v36  ;;  %v152_v40 = vld [vmem:[%s24394_s1 + $0x310] sm:$0xff]  ;;  %v14982_v36 = vcombine.low %v328_v24, %v336_v25 }
  0xaa   :  { %4990 = vmatprep.subr.bf16.mxu1 %v15445_v41  ;;  %v160_v41 = vld [vmem:[%s24394_s1 + $0x350] sm:$0xff] }
  0xab   :  { %v14806_v52 = vcombine.low %v152_v40, %v160_v41  ;;  %v320_v34 = vld [vmem:[%s24394_s1 + $0x850] sm:$0xff] }
  0xac   :  { %4950 = vmatpush2.bf16.msra.mxu0 %v15188_v46  ;;  %v14807_v46 = vcombine.high %v152_v40, %v160_v41  ;;  %v552_v40 = vld [vmem:[%s24394_s1 + $0xf90] sm:$0xff] }
  0xad   :  { %4991 = vmatpush2.bf16.msra.mxu1 %v15444_v47  ;;  %4951 = vmatprep.subr.bf16.mxu0 %v15173_v48  ;;  %v15063_v47 = vcombine.high %v408_v42, %v416_v43  ;;  %v136_v48 = vld [vmem:[%s24394_s1 + $0x290] sm:$0xff]  ;;  %v14966_v43 = vcombine.low %v312_v33, %v320_v34 }
  0xae   :  { %4992 = vmatprep.subr.bf16.mxu1 %v15429_v49  ;;  %v144_v49 = vld [vmem:[%s24394_s1 + $0x2d0] sm:$0xff] }
  0xaf   :  { %v14790_v0 = vcombine.low %v136_v48, %v144_v49  ;;  %v560_v41 = vld [vmem:[%s24394_s1 + $0xfd0] sm:$0xff] }
  0xb0   :  { %4952 = vmatpush2.bf16.msra.mxu0 %v15172_v56  ;;  %v14791_v56 = vcombine.high %v136_v48, %v144_v49  ;;  %v536_v48 = vld [vmem:[%s24394_s1 + $0xf10] sm:$0xff] }
  0xb1   :  { %4993 = vmatpush2.bf16.msra.mxu1 %v15428_v57  ;;  %4953 = vmatprep.subr.bf16.mxu0 %v15157_v60  ;;  %v15047_v57 = vcombine.high %v392_v50, %v400_v51  ;;  %v120_v60 = vld [vmem:[%s24394_s1 + $0x210] sm:$0xff]  ;;  %v15206_v51 = vcombine.low %v552_v40, %v560_v41 }
  0xb2   :  { %4994 = vmatprep.subr.bf16.mxu1 %v15413_v61  ;;  %v128_v61 = vld [vmem:[%s24394_s1 + $0x250] sm:$0xff] }
  0xb3   :  { %v14774_v8 = vcombine.low %v120_v60, %v128_v61  ;;  %v544_v49 = vld [vmem:[%s24394_s1 + $0xf50] sm:$0xff] }
  0xb4   :  { %4954 = vmatpush2.bf16.msra.mxu0 %v15156_v2  ;;  %v14775_v2 = vcombine.high %v120_v60, %v128_v61  ;;  %v520_v60 = vld [vmem:[%s24394_s1 + $0xe90] sm:$0xff] }
  0xb5   :  { %4995 = vmatpush2.bf16.msra.mxu1 %v15412_v3  ;;  %4955 = vmatprep.subr.bf16.mxu0 %v15141_v4  ;;  %v15031_v3 = vcombine.high %v376_v62, %v384_v63  ;;  %v104_v4 = vld [vmem:[%s24394_s1 + $0x190] sm:$0xff]  ;;  %v15190_v63 = vcombine.low %v536_v48, %v544_v49 }
  0xb6   :  { %4996 = vmatprep.subr.bf16.mxu1 %v15397_v5  ;;  %v112_v5 = vld [vmem:[%s24394_s1 + $0x1d0] sm:$0xff] }
  0xb7   :  { %v14758_v17 = vcombine.low %v104_v4, %v112_v5  ;;  %v528_v61 = vld [vmem:[%s24394_s1 + $0xed0] sm:$0xff] }
  0xb8   :  { %4956 = vmatpush2.bf16.msra.mxu0 %v15140_v10  ;;  %v14759_v10 = vcombine.high %v104_v4, %v112_v5  ;;  %v504_v4 = vld [vmem:[%s24394_s1 + $0xe10] sm:$0xff] }
  0xb9   :  { %4997 = vmatpush2.bf16.msra.mxu1 %v15396_v11  ;;  %4957 = vmatprep.subr.bf16.mxu0 %v15125_v12  ;;  %v15015_v11 = vcombine.high %v360_v6, %v368_v7  ;;  %v88_v12 = vld [vmem:[%s24394_s1 + $0x110] sm:$0xff]  ;;  %v15174_v7 = vcombine.low %v520_v60, %v528_v61 }
  0xba   :  { %4998 = vmatprep.subr.bf16.mxu1 %v15381_v13  ;;  %v96_v13 = vld [vmem:[%s24394_s1 + $0x150] sm:$0xff] }
  0xbb   :  { %v14742_v54 = vcombine.low %v88_v12, %v96_v13  ;;  %v512_v5 = vld [vmem:[%s24394_s1 + $0xe50] sm:$0xff] }
  0xbc   :  { %4958 = vmatpush2.bf16.msra.mxu0 %v15124_v53  ;;  %v14743_v53 = vcombine.high %v88_v12, %v96_v13  ;;  %v488_v12 = vld [vmem:[%s24394_s1 + $0xd90] sm:$0xff] }
  0xbd   :  { %4999 = vmatpush2.bf16.msra.mxu1 %v15380_v21  ;;  %4959 = vmatprep.subr.bf16.mxu0 %v15109_v22  ;;  %v14999_v21 = vcombine.high %v344_v14, %v352_v15  ;;  %v72_v22 = vld [vmem:[%s24394_s1 + $0x90] sm:$0xff]  ;;  %v15158_v15 = vcombine.low %v504_v4, %v512_v5 }
  0xbe   :  { %5000 = vmatprep.subr.bf16.mxu1 %v15365_v23  ;;  %v80_v23 = vld [vmem:[%s24394_s1 + $0xd0] sm:$0xff] }
  0xbf   :  { %v14726_v35 = vcombine.low %v72_v22, %v80_v23  ;;  %v496_v13 = vld [vmem:[%s24394_s1 + $0xdd0] sm:$0xff] }
  0xc0   :  { %4960 = vmatpush2.bf16.msra.mxu0 %v15108_v28  ;;  %v14727_v28 = vcombine.high %v72_v22, %v80_v23  ;;  %v472_v22 = vld [vmem:[%s24394_s1 + $0xd10] sm:$0xff] }
  0xc1   :  { %5001 = vmatpush2.bf16.msra.mxu1 %v15364_v29  ;;  %4961 = vmatprep.subr.bf16.mxu0 %v15093_v31  ;;  %v14983_v29 = vcombine.high %v328_v24, %v336_v25  ;;  %v56_v31 = vld [vmem:[%s24394_s1 + $0x10] sm:$0xff]  ;;  %v15142_v25 = vcombine.low %v488_v12, %v496_v13 }
  0xc2   :  { %5002 = vmatprep.subr.bf16.mxu1 %v15349_v32  ;;  %v64_v32 = vld [vmem:[%s24394_s1 + $0x50] sm:$0xff] }
  0xc3   :  { %v14710_v42 = vcombine.low %v56_v31, %v64_v32  ;;  %v480_v23 = vld [vmem:[%s24394_s1 + $0xd50] sm:$0xff] }
  0xc4   :  { %4962 = vmatpush2.bf16.msra.mxu0 %v15092_v19  ;;  %v14711_v19 = vcombine.high %v56_v31, %v64_v32  ;;  %v456_v31 = vld [vmem:[%s24394_s1 + $0xc90] sm:$0xff] }
  0xc5   :  { %5003 = vmatpush2.bf16.msra.mxu1 %v15348_v37  ;;  %5013 = vmatprep.subr.bf16.mxu0 %v14823_v38  ;;  %v14967_v37 = vcombine.high %v312_v33, %v320_v34  ;;  %v296_v38 = vld [vmem:[%s24394_s1 + $0x790] sm:$0xff]  ;;  %v826_v34 = vlaneseq }
  0xc6   :  { %5054 = vmatprep.subr.bf16.mxu1 %v15079_v39  ;;  %v304_v39 = vld [vmem:[%s24394_s1 + $0x7d0] sm:$0xff] }
  0xc7   :  { %4964 = vmatmul.mubr.bf16.vlgmr.msra.gmra.mxu0 %v18500_v20  ;;  %v14950_v50 = vcombine.low %v296_v38, %v304_v39  ;;  %v464_v32 = vld [vmem:[%s24394_s1 + $0xcd0] sm:$0xff] }
  0xc8   :  { %5005 = vmatmul.mubr.bf16.vlgmr.msra.gmra.mxu1 %v18698_v30  ;;  %5014 = vmatpush1.bf16.msra.mxu0 %v14822_v44  ;;  %v14951_v44 = vcombine.high %v296_v38, %v304_v39  ;;  %v192_v38 = vld [vmem:[%s24394_s1 + $0x450] sm:$0xff] }
  0xc9   :  { %5055 = vmatpush1.bf16.msra.mxu1 %v15078_v45  ;;  %5015 = vmatprep.subr.bf16.mxu0 %v14807_v46  ;;  %v15207_v45 = vcombine.high %v552_v40, %v560_v41  ;;  %v280_v46 = vld [vmem:[%s24394_s1 + $0x710] sm:$0xff] }
  0xca   :  { %5056 = vmatprep.subr.bf16.mxu1 %v15063_v47  ;;  %5045 = vmatprep.mubr.bf16.mxu0 %v18355_v58  ;;  %v288_v47 = vld [vmem:[%s24394_s1 + $0x750] sm:$0xff] }
  0xcb   :  { %5086 = vmatprep.mubr.bf16.mxu1 %v18359_v59  ;;  %v14934_v62 = vcombine.low %v280_v46, %v288_v47  ;;  %v440_v39 = vld [vmem:[%s24394_s1 + $0xc10] sm:$0xff] }
  0xcc   :  { %5016 = vmatpush1.bf16.msra.mxu0 %v14806_v52  ;;  %v14935_v52 = vcombine.high %v280_v46, %v288_v47  ;;  %v448_v40 = vld [vmem:[%s24394_s1 + $0xc50] sm:$0xff] }
  0xcd   :  { %5057 = vmatpush1.bf16.msra.mxu1 %v15062_v55  ;;  %5017 = vmatprep.subr.bf16.mxu0 %v14791_v56  ;;  %v15191_v55 = vcombine.high %v536_v48, %v544_v49  ;;  %v264_v56 = vld [vmem:[%s24394_s1 + $0x690] sm:$0xff]  ;;  %v169_v48 = vld [vmem:[%s24394_s1 + $0x398] sm:$0xff] }
  0xce   :  { %5058 = vmatprep.subr.bf16.mxu1 %v15047_v57  ;;  %v272_v57 = vld [vmem:[%s24394_s1 + $0x6d0] sm:$0xff]  ;;  %v177_v49 = vld [vmem:[%s24394_s1 + $0x3d8] sm:$0xff] }
  0xcf   :  { %v14918_v6 = vcombine.low %v264_v56, %v272_v57  ;;  %v680_v46 = vld [vmem:[%s24394_s1 + $0x1390] sm:$0xff] }
  0xd0   :  { %5018 = vmatpush1.bf16.msra.mxu0 %v14790_v0  ;;  %v14919_v0 = vcombine.high %v264_v56, %v272_v57  ;;  %v688_v47 = vld [vmem:[%s24394_s1 + $0x13d0] sm:$0xff]  ;;  %v14825_v57 = vcombine.high %v169_v48, %v177_v49 }
  0xd1   :  { %5059 = vmatpush1.bf16.msra.mxu1 %v15046_v1  ;;  %5019 = vmatprep.subr.bf16.mxu0 %v14775_v2  ;;  %v15175_v1 = vcombine.high %v520_v60, %v528_v61  ;;  %v248_v2 = vld [vmem:[%s24394_s1 + $0x610] sm:$0xff]  ;;  %v15335_v56 = vcombine.high %v680_v46, %v688_v47 }
  0xd2   :  { %5060 = vmatprep.subr.bf16.mxu1 %v15031_v3  ;;  %v256_v3 = vld [vmem:[%s24394_s1 + $0x650] sm:$0xff] }
  0xd3   :  { %v14902_v14 = vcombine.low %v248_v2, %v256_v3  ;;  %v664_v61 = vld [vmem:[%s24394_s1 + $0x1310] sm:$0xff] }
  0xd4   :  { %5020 = vmatpush1.bf16.msra.mxu0 %v14774_v8  ;;  %v14903_v8 = vcombine.high %v248_v2, %v256_v3  ;;  %v15334_v2 = vcombine.low %v680_v46, %v688_v47  ;;  %v14824_v3 = vcombine.low %v169_v48, %v177_v49  ;;  %v600_v46 = vld [vmem:[%s24394_s1 + $0x1110] sm:$0xff]  ;;  %v89_v48 = vld [vmem:[%s24394_s1 + $0x118] sm:$0xff] }
  0xd5   :  { %5061 = vmatpush1.bf16.msra.mxu1 %v15030_v9  ;;  %5021 = vmatprep.subr.bf16.mxu0 %v14759_v10  ;;  %v15159_v9 = vcombine.high %v504_v4, %v512_v5  ;;  %v232_v10 = vld [vmem:[%s24394_s1 + $0x590] sm:$0xff]  ;;  %v97_v49 = vld [vmem:[%s24394_s1 + $0x158] sm:$0xff] }
  0xd6   :  { %5062 = vmatprep.subr.bf16.mxu1 %v15015_v11  ;;  %v240_v11 = vld [vmem:[%s24394_s1 + $0x5d0] sm:$0xff] }
  0xd7   :  { %v14886_v24 = vcombine.low %v232_v10, %v240_v11  ;;  %v608_v47 = vld [vmem:[%s24394_s1 + $0x1150] sm:$0xff] }
  0xd8   :  { %5022 = vmatpush1.bf16.msra.mxu0 %v14758_v17  ;;  %v14887_v17 = vcombine.high %v232_v10, %v240_v11  ;;  %v137_v10 = vld [vmem:[%s24394_s1 + $0x298] sm:$0xff] }
  0xd9   :  { %5063 = vmatpush1.bf16.msra.mxu1 %v15014_v18  ;;  %5023 = vmatprep.subr.bf16.mxu0 %v14743_v53  ;;  %v15143_v18 = vcombine.high %v488_v12, %v496_v13  ;;  %v216_v53 = vld [vmem:[%s24394_s1 + $0x510] sm:$0xff]  ;;  %v145_v11 = vld [vmem:[%s24394_s1 + $0x2d8] sm:$0xff] }
  0xda   :  { %5064 = vmatprep.subr.bf16.mxu1 %v14999_v21  ;;  %v224_v21 = vld [vmem:[%s24394_s1 + $0x550] sm:$0xff] }
  0xdb   :  { %v14870_v33 = vcombine.low %v216_v53, %v224_v21 }
  0xdc   :  { %5024 = vmatpush1.bf16.msra.mxu0 %v14742_v54  ;;  %v14871_v54 = vcombine.high %v216_v53, %v224_v21 }
  0xdd   :  { %5065 = vmatpush1.bf16.msra.mxu1 %v14998_v27  ;;  %5025 = vmatprep.subr.bf16.mxu0 %v14727_v28  ;;  %v15127_v27 = vcombine.high %v472_v22, %v480_v23  ;;  %v200_v28 = vld [vmem:[%s24394_s1 + $0x490] sm:$0xff] }
  0xde   :  { %5066 = vmatprep.subr.bf16.mxu1 %v14983_v29  ;;  %v208_v29 = vld [vmem:[%s24394_s1 + $0x4d0] sm:$0xff] }
  0xdf   :  { %v14854_v41 = vcombine.low %v200_v28, %v208_v29 }
  0xe0   :  { %5026 = vmatpush1.bf16.msra.mxu0 %v14726_v35  ;;  %v15126_v35 = vcombine.low %v472_v22, %v480_v23  ;;  %v14793_v23 = vcombine.high %v137_v10, %v145_v11 }
  0xe1   :  { %5067 = vmatpush1.bf16.msra.mxu1 %v14982_v36  ;;  %5027 = vmatprep.subr.bf16.mxu0 %v14711_v19  ;;  %v14855_v36 = vcombine.high %v200_v28, %v208_v29  ;;  %v15111_v19 = vcombine.high %v456_v31, %v464_v32  ;;  %v129_v28 = vld [vmem:[%s24394_s1 + $0x258] sm:$0xff] }
  0xe2   :  { %5068 = vmatprep.subr.bf16.mxu1 %v14967_v37  ;;  %v184_v37 = vld [vmem:[%s24394_s1 + $0x410] sm:$0xff] }
  0xe4   :  { %5028 = vmatpush1.bf16.msra.mxu0 %v14710_v42  ;;  %v19074_v42 = vshrl.u32 %v826_v34, 7  ;;  %v14792_v34 = vcombine.low %v137_v10, %v145_v11 }
  0xe5   :  { %5069 = vmatpush1.bf16.msra.mxu1 %v14966_v43  ;;  %5029 = vmatprep.subr.bf16.mxu0 %v14951_v44  ;;  %v15110_v43 = vcombine.low %v456_v31, %v464_v32  ;;  %v14839_v44 = vcombine.high %v184_v37, %v192_v38 }
  0xe6   :  { %5070 = vmatprep.subr.bf16.mxu1 %v15207_v45  ;;  %v15095_v45 = vcombine.high %v440_v39, %v448_v40  ;;  %v19097_v60 = vsub.s32 1, %v19074_v42 }
  0xe8   :  { %5030 = vmatpush2.bf16.msra.mxu0 %v14950_v50  ;;  %v14838_v50 = vcombine.low %v184_v37, %v192_v38  ;;  %v616_v37 = vld [vmem:[%s24394_s1 + $0x1190] sm:$0xff] }
  0xe9   :  { %5071 = vmatpush2.bf16.msra.mxu1 %v15206_v51  ;;  %5031 = vmatprep.subr.bf16.mxu0 %v14935_v52  ;;  %v19089_v51 = vsub.s32 0, %v19074_v42  ;;  %v15094_v52 = vcombine.low %v440_v39, %v448_v40  ;;  %v624_v38 = vld [vmem:[%s24394_s1 + $0x11d0] sm:$0xff]  ;;  %v105_v39 = vld [vmem:[%s24394_s1 + $0x198] sm:$0xff] }
  0xea   :  { %5072 = vmatprep.subr.bf16.mxu1 %v15191_v55  ;;  %v19094_v55 = vld [vmem:[%s24396_s2] sm:$0xff]  ;;  %v113_v40 = vld [vmem:[%s24394_s1 + $0x1d8] sm:$0xff] }
  0xeb   :  { %v833_v5 = vrot.slane %v19094_v55, %v19097_v60 }
  0xec   :  { %5032 = vmatpush2.bf16.msra.mxu0 %v14934_v62  ;;  %v672_v62 = vld [vmem:[%s24394_s1 + $0x1350] sm:$0xff] }
  0xed   :  { %5073 = vmatpush2.bf16.msra.mxu1 %v15190_v63  ;;  %5033 = vmatprep.subr.bf16.mxu0 %v14919_v0  ;;  %v153_v63 = vld [vmem:[%s24394_s1 + $0x318] sm:$0xff]  ;;  %v15319_v4 = vcombine.high %v664_v61, %v672_v62 }
  0xee   :  { %5074 = vmatprep.subr.bf16.mxu1 %v15175_v1  ;;  %v161_v0 = vld [vmem:[%s24394_s1 + $0x358] sm:$0xff]  ;;  %v829_v1 = vrot.slane %v19094_v55, %v19089_v51 }
  0xf0   :  { %5034 = vmatpush2.bf16.msra.mxu0 %v14918_v6  ;;  %v14809_v6 = vcombine.high %v153_v63, %v161_v0 }
  0xf1   :  { %5075 = vmatpush2.bf16.msra.mxu1 %v15174_v7  ;;  %5035 = vmatprep.subr.bf16.mxu0 %v14903_v8  ;;  %v648_v7 = vld [vmem:[%s24394_s1 + $0x1290] sm:$0xff] }
  0xf2   :  { %5076 = vmatprep.subr.bf16.mxu1 %v15159_v9  ;;  %v656_v8 = vld [vmem:[%s24394_s1 + $0x12d0] sm:$0xff] }
  0xf3   :  { %v15302_v32 = vcombine.low %v648_v7, %v656_v8 }
  0xf4   :  { %5036 = vmatpush2.bf16.msra.mxu0 %v14902_v14  ;;  %v15318_v14 = vcombine.low %v664_v61, %v672_v62  ;;  %v584_v61 = vld [vmem:[%s24394_s1 + $0x1090] sm:$0xff] }
  0xf5   :  { %5077 = vmatpush2.bf16.msra.mxu1 %v15158_v15  ;;  %5037 = vmatprep.subr.bf16.mxu0 %v14887_v17  ;;  %v14808_v17 = vcombine.low %v153_v63, %v161_v0  ;;  %v592_v62 = vld [vmem:[%s24394_s1 + $0x10d0] sm:$0xff]  ;;  %v73_v63 = vld [vmem:[%s24394_s1 + $0x98] sm:$0xff] }
  0xf6   :  { %5078 = vmatprep.subr.bf16.mxu1 %v15143_v18  ;;  %v15303_v18 = vcombine.high %v648_v7, %v656_v8  ;;  %v81_v0 = vld [vmem:[%s24394_s1 + $0xd8] sm:$0xff] }
  0xf7   :  { %v57_v7 = vld [vmem:[%s24394_s1 + $0x18] sm:$0xff]  ;;  %v14728_v10 = vcombine.low %v73_v63, %v81_v0 }
  0xf8   :  { %5038 = vmatpush2.bf16.msra.mxu0 %v14886_v24  ;;  %v632_v24 = vld [vmem:[%s24394_s1 + $0x1210] sm:$0xff]  ;;  %v65_v8 = vld [vmem:[%s24394_s1 + $0x58] sm:$0xff] }
  0xf9   :  { %5079 = vmatpush2.bf16.msra.mxu1 %v15142_v25  ;;  %5039 = vmatprep.subr.bf16.mxu0 %v14871_v54  ;;  %v640_v25 = vld [vmem:[%s24394_s1 + $0x1250] sm:$0xff] }
  0xfa   :  { %5080 = vmatprep.subr.bf16.mxu1 %v15127_v27  ;;  %v121_v27 = vld [vmem:[%s24394_s1 + $0x218] sm:$0xff] }
  0xfc   :  { %5040 = vmatpush2.bf16.msra.mxu0 %v14870_v33 }
  0xfd   :  { %5081 = vmatpush2.bf16.msra.mxu1 %v15126_v35  ;;  %5041 = vmatprep.subr.bf16.mxu0 %v14855_v36  ;;  %v15287_v35 = vcombine.high %v632_v24, %v640_v25 }
  0xfe   :  { %5082 = vmatprep.subr.bf16.mxu1 %v15111_v19  ;;  %v14777_v19 = vcombine.high %v121_v27, %v129_v28 }
 0x100   :  { %5042 = vmatpush2.bf16.msra.mxu0 %v14854_v41  ;;  %v15286_v41 = vcombine.low %v632_v24, %v640_v25  ;;  %v792_v24 = vld [vmem:[%s24394_s1 + $0x1710] sm:$0xff] }
 0x101   :  { %5083 = vmatpush2.bf16.msra.mxu1 %v15110_v43  ;;  %5043 = vmatprep.subr.bf16.mxu0 %v14839_v44  ;;  %v14776_v43 = vcombine.low %v121_v27, %v129_v28  ;;  %v15271_v44 = vcombine.high %v616_v37, %v624_v38  ;;  %v800_v25 = vld [vmem:[%s24394_s1 + $0x1750] sm:$0xff]  ;;  %v289_v27 = vld [vmem:[%s24394_s1 + $0x758] sm:$0xff] }
 0x102   :  { %5084 = vmatprep.subr.bf16.mxu1 %v15095_v45  ;;  %v14761_v45 = vcombine.high %v105_v39, %v113_v40 }
 0x104   :  { %5044 = vmatpush2.bf16.msra.mxu0 %v14838_v50  ;;  %v15270_v50 = vcombine.low %v616_v37, %v624_v38  ;;  %v15446_v37 = vcombine.low %v792_v24, %v800_v25 }
 0x105   :  { %5085 = vmatpush2.bf16.msra.mxu1 %v15094_v52  ;;  %5095 = vmatprep.subr.bf16.mxu0 %v15335_v56  ;;  %v14760_v52 = vcombine.low %v105_v39, %v113_v40  ;;  %v15255_v56 = vcombine.high %v600_v46, %v608_v47 }
 0x106   :  { %5136 = vmatprep.subr.bf16.mxu1 %v14825_v57  ;;  %v14745_v57 = vcombine.high %v89_v48, %v97_v49 }
 0x107   :  { %v4801_v9 = vpop.f32.mrf.mxu0  ;;  %5046 = vmatmul.mubr.bf16.vlgmr.msra.gmra.mxu0 %v18485_v16 }
 0x108   :  { %v4802_v12 = vadd.f32 %v4801_v9, %v829_v1  ;;  %v4842_v13 = vpop.f32.mrf.mxu1  ;;  %5087 = vmatmul.mubr.bf16.vlgmr.msra.gmra.mxu1 %v18500_v20  ;;  %5096 = vmatpush1.bf16.msra.mxu0 %v15334_v2  ;;  %v15254_v1 = vcombine.low %v600_v46, %v608_v47  ;;  %v14744_v2 = vcombine.low %v89_v48, %v97_v49 }
 0x109   :  { %5137 = vmatpush1.bf16.msra.mxu1 %v14824_v3  ;;  %v4803_v15 = vpop.f32.mrf.mxu0  ;;  %5097 = vmatprep.subr.bf16.mxu0 %v15319_v4  ;;  %v15239_v3 = vcombine.high %v584_v61, %v592_v62  ;;  %v14729_v4 = vcombine.high %v73_v63, %v81_v0  ;;  %v15238_v9 = vcombine.low %v584_v61, %v592_v62 }
 0x10a   :  { %v19129_v53 = vadd.f32 %v4842_v13, %v4802_v12  ;;  %v4804_v21 = vadd.f32 %v4803_v15, %v833_v5  ;;  %v4844_v22 = vpop.f32.mrf.mxu1  ;;  %5138 = vmatprep.subr.bf16.mxu1 %v14809_v6  ;;  %5127 = vmatprep.mubr.bf16.mxu0 %v18510_v26  ;;  %v568_v5 = vld [vmem:[%s24394_s1 + $0x1010] sm:$0xff]  ;;  %v14713_v12 = vcombine.high %v57_v7, %v65_v8  ;;  %v297_v15 = vld [vmem:[%s24394_s1 + $0x798] sm:$0xff] }
 0x10b   :  { %v4805_v54 = vpop.f32.mrf.mxu0  ;;  %5168 = vmatprep.mubr.bf16.mxu1 %v18355_v58  ;;  %v576_v6 = vld [vmem:[%s24394_s1 + $0x1050] sm:$0xff] }
 0x10c   :  { %v19145_v29 = vadd.f32 %v4844_v22, %v4804_v21  ;;  %v4846_v31 = vpop.f32.mrf.mxu1  ;;  %5098 = vmatpush1.bf16.msra.mxu0 %v15318_v14  ;;  %v15223_v11 = vcombine.high %v568_v5, %v576_v6  ;;  %v808_v13 = vld [vmem:[%s24394_s1 + $0x1790] sm:$0xff]  ;;  %v14712_v21 = vcombine.low %v57_v7, %v65_v8  ;;  %v281_v54 = vld [vmem:[%s24394_s1 + $0x718] sm:$0xff] }
 0x10d   :  { %5139 = vmatpush1.bf16.msra.mxu1 %v14808_v17  ;;  %v4806_v33 = vpop.f32.mrf.mxu0  ;;  %5099 = vmatprep.subr.bf16.mxu0 %v15303_v18  ;;  %v816_v14 = vld [vmem:[%s24394_s1 + $0x17d0] sm:$0xff]  ;;  %v305_v17 = vld [vmem:[%s24394_s1 + $0x7d8] sm:$0xff]  ;;  %v15222_v18 = vcombine.low %v568_v5, %v576_v6  ;;  %v14936_v38 = vcombine.low %v281_v54, %v289_v27 }
 0x10e   :  { %v4847_v36 = vpop.f32.mrf.mxu1  ;;  %5140 = vmatprep.subr.bf16.mxu1 %v14793_v23  ;;  %v15463_v22 = vcombine.high %v808_v13, %v816_v14  ;;  %v14953_v23 = vcombine.high %v297_v15, %v305_v17  ;;  %v15462_v28 = vcombine.low %v808_v13, %v816_v14  ;;  %v14952_v31 = vcombine.low %v297_v15, %v305_v17 }
 0x10f   :  { %v14937_v33 = vcombine.high %v281_v54, %v289_v27  ;;  %v265_v36 = vld [vmem:[%s24394_s1 + $0x698] sm:$0xff] }
 0x110   :  { %5100 = vmatpush1.bf16.msra.mxu0 %v15302_v32  ;;  %v15447_v32 = vcombine.high %v792_v24, %v800_v25 }
 0x111   :  { %5141 = vmatpush1.bf16.msra.mxu1 %v14792_v34  ;;  %5101 = vmatprep.subr.bf16.mxu0 %v15287_v35  ;;  %v776_v34 = vld [vmem:[%s24394_s1 + $0x1690] sm:$0xff] }
 0x112   :  { %5142 = vmatprep.subr.bf16.mxu1 %v14777_v19  ;;  %v784_v35 = vld [vmem:[%s24394_s1 + $0x16d0] sm:$0xff]  ;;  %v273_v19 = vld [vmem:[%s24394_s1 + $0x6d8] sm:$0xff] }
 0x113   :  { %v15431_v39 = vcombine.high %v776_v34, %v784_v35  ;;  %v14921_v40 = vcombine.high %v265_v36, %v273_v19  ;;  %v15430_v46 = vcombine.low %v776_v34, %v784_v35  ;;  %v14920_v47 = vcombine.low %v265_v36, %v273_v19 }
 0x114   :  { %5102 = vmatpush1.bf16.msra.mxu0 %v15286_v41  ;;  %v760_v41 = vld [vmem:[%s24394_s1 + $0x1610] sm:$0xff] }
 0x115   :  { %5143 = vmatpush1.bf16.msra.mxu1 %v14776_v43  ;;  %5103 = vmatprep.subr.bf16.mxu0 %v15271_v44  ;;  %v768_v43 = vld [vmem:[%s24394_s1 + $0x1650] sm:$0xff]  ;;  %v249_v44 = vld [vmem:[%s24394_s1 + $0x618] sm:$0xff] }
 0x116   :  { %5144 = vmatprep.subr.bf16.mxu1 %v14761_v45  ;;  %v257_v45 = vld [vmem:[%s24394_s1 + $0x658] sm:$0xff]  ;;  %v15415_v48 = vcombine.high %v760_v41, %v768_v43  ;;  %v15414_v61 = vcombine.low %v760_v41, %v768_v43 }
 0x117   :  { %v14905_v49 = vcombine.high %v249_v44, %v257_v45  ;;  %v14904_v62 = vcombine.low %v249_v44, %v257_v45 }
 0x118   :  { %5104 = vmatpush1.bf16.msra.mxu0 %v15270_v50  ;;  %v744_v50 = vld [vmem:[%s24394_s1 + $0x1590] sm:$0xff] }
 0x119   :  { %5145 = vmatpush1.bf16.msra.mxu1 %v14760_v52  ;;  %5105 = vmatprep.subr.bf16.mxu0 %v15255_v56  ;;  %v752_v52 = vld [vmem:[%s24394_s1 + $0x15d0] sm:$0xff]  ;;  %v233_v56 = vld [vmem:[%s24394_s1 + $0x598] sm:$0xff] }
 0x11a   :  { %5146 = vmatprep.subr.bf16.mxu1 %v14745_v57  ;;  %v241_v57 = vld [vmem:[%s24394_s1 + $0x5d8] sm:$0xff]  ;;  %v15399_v63 = vcombine.high %v744_v50, %v752_v52  ;;  %v15398_v5 = vcombine.low %v744_v50, %v752_v52 }
 0x11b   :  { %v14889_v0 = vcombine.high %v233_v56, %v241_v57  ;;  %v14888_v6 = vcombine.low %v233_v56, %v241_v57  ;;  %v657_v50 = vld [vmem:[%s24394_s1 + $0x12d8] sm:$0xff] }
 0x11c   :  { %5106 = vmatpush1.bf16.msra.mxu0 %v15254_v1  ;;  %v728_v1 = vld [vmem:[%s24394_s1 + $0x1510] sm:$0xff] }
 0x11d   :  { %5147 = vmatpush1.bf16.msra.mxu1 %v14744_v2  ;;  %5107 = vmatprep.subr.bf16.mxu0 %v15239_v3  ;;  %v736_v2 = vld [vmem:[%s24394_s1 + $0x1550] sm:$0xff]  ;;  %v217_v3 = vld [vmem:[%s24394_s1 + $0x518] sm:$0xff] }
 0x11e   :  { %5148 = vmatprep.subr.bf16.mxu1 %v14729_v4  ;;  %v225_v4 = vld [vmem:[%s24394_s1 + $0x558] sm:$0xff]  ;;  %v15383_v7 = vcombine.high %v728_v1, %v736_v2  ;;  %v15382_v13 = vcombine.low %v728_v1, %v736_v2 }
 0x11f   :  { %v14873_v8 = vcombine.high %v217_v3, %v225_v4  ;;  %v14872_v14 = vcombine.low %v217_v3, %v225_v4  ;;  %v385_v3 = vld [vmem:[%s24394_s1 + $0xa58] sm:$0xff] }
 0x120   :  { %5108 = vmatpush1.bf16.msra.mxu0 %v15238_v9  ;;  %v712_v9 = vld [vmem:[%s24394_s1 + $0x1490] sm:$0xff] }
 0x121   :  { %5149 = vmatpush1.bf16.msra.mxu1 %v14728_v10  ;;  %5109 = vmatprep.subr.bf16.mxu0 %v15223_v11  ;;  %v720_v10 = vld [vmem:[%s24394_s1 + $0x14d0] sm:$0xff]  ;;  %v201_v11 = vld [vmem:[%s24394_s1 + $0x498] sm:$0xff] }
 0x122   :  { %5150 = vmatprep.subr.bf16.mxu1 %v14713_v12  ;;  %v209_v12 = vld [vmem:[%s24394_s1 + $0x4d8] sm:$0xff]  ;;  %v15367_v15 = vcombine.high %v712_v9, %v720_v10  ;;  %v15366_v24 = vcombine.low %v712_v9, %v720_v10 }
 0x123   :  { %v14857_v17 = vcombine.high %v201_v11, %v209_v12  ;;  %v14856_v25 = vcombine.low %v201_v11, %v209_v12 }
 0x124   :  { %5110 = vmatpush1.bf16.msra.mxu0 %v15222_v18  ;;  %v696_v18 = vld [vmem:[%s24394_s1 + $0x1410] sm:$0xff] }
 0x125   :  { %5151 = vmatpush1.bf16.msra.mxu1 %v14712_v21  ;;  %5111 = vmatprep.subr.bf16.mxu0 %v15463_v22  ;;  %v704_v21 = vld [vmem:[%s24394_s1 + $0x1450] sm:$0xff]  ;;  %v185_v22 = vld [vmem:[%s24394_s1 + $0x418] sm:$0xff] }
 0x126   :  { %5152 = vmatprep.subr.bf16.mxu1 %v14953_v23  ;;  %v193_v23 = vld [vmem:[%s24394_s1 + $0x458] sm:$0xff]  ;;  %v15351_v54 = vcombine.high %v696_v18, %v704_v21  ;;  %v15350_v34 = vcombine.low %v696_v18, %v704_v21 }
 0x127   :  { %v14841_v27 = vcombine.high %v185_v22, %v193_v23  ;;  %v14840_v35 = vcombine.low %v185_v22, %v193_v23 }
 0x128   :  { %5112 = vmatpush2.bf16.msra.mxu0 %v15462_v28  ;;  %v425_v28 = vld [vmem:[%s24394_s1 + $0xb98] sm:$0xff] }
 0x129   :  { %5153 = vmatpush2.bf16.msra.mxu1 %v14952_v31  ;;  %5113 = vmatprep.subr.bf16.mxu0 %v15447_v32  ;;  %v433_v31 = vld [vmem:[%s24394_s1 + $0xbd8] sm:$0xff] }
 0x12a   :  { %5154 = vmatprep.subr.bf16.mxu1 %v14937_v33  ;;  %v681_v32 = vld [vmem:[%s24394_s1 + $0x1398] sm:$0xff]  ;;  %v15081_v36 = vcombine.high %v425_v28, %v433_v31  ;;  %v15080_v41 = vcombine.low %v425_v28, %v433_v31 }
 0x12b   :  { %v689_v33 = vld [vmem:[%s24394_s1 + $0x13d8] sm:$0xff] }
 0x12c   :  { %5114 = vmatpush2.bf16.msra.mxu0 %v15446_v37  ;;  %v15337_v19 = vcombine.high %v681_v32, %v689_v33  ;;  %v409_v37 = vld [vmem:[%s24394_s1 + $0xb18] sm:$0xff]  ;;  %v15336_v43 = vcombine.low %v681_v32, %v689_v33 }
 0x12d   :  { %5155 = vmatpush2.bf16.msra.mxu1 %v14936_v38  ;;  %5115 = vmatprep.subr.bf16.mxu0 %v15431_v39  ;;  %v417_v38 = vld [vmem:[%s24394_s1 + $0xb58] sm:$0xff] }
 0x12e   :  { %5156 = vmatprep.subr.bf16.mxu1 %v14921_v40  ;;  %v665_v39 = vld [vmem:[%s24394_s1 + $0x1318] sm:$0xff]  ;;  %v15065_v44 = vcombine.high %v409_v37, %v417_v38  ;;  %v15064_v57 = vcombine.low %v409_v37, %v417_v38 }
 0x12f   :  { %v673_v40 = vld [vmem:[%s24394_s1 + $0x1358] sm:$0xff] }
 0x130   :  { %5116 = vmatpush2.bf16.msra.mxu0 %v15430_v46  ;;  %v15321_v45 = vcombine.high %v665_v39, %v673_v40  ;;  %v393_v46 = vld [vmem:[%s24394_s1 + $0xa98] sm:$0xff] }
 0x131   :  { %5157 = vmatpush2.bf16.msra.mxu1 %v14920_v47  ;;  %5117 = vmatprep.subr.bf16.mxu0 %v15415_v48  ;;  %v401_v47 = vld [vmem:[%s24394_s1 + $0xad8] sm:$0xff] }
 0x132   :  { %5158 = vmatprep.subr.bf16.mxu1 %v14905_v49  ;;  %v649_v49 = vld [vmem:[%s24394_s1 + $0x1298] sm:$0xff] }
 0x133   :  { %v15305_v2 = vcombine.high %v649_v49, %v657_v50  ;;  %v15304_v9 = vcombine.low %v649_v49, %v657_v50  ;;  %v553_v50 = vld [vmem:[%s24394_s1 + $0xf98] sm:$0xff] }
 0x134   :  { %5118 = vmatpush2.bf16.msra.mxu0 %v15414_v61 }
 0x135   :  { %5159 = vmatpush2.bf16.msra.mxu1 %v14904_v62  ;;  %5119 = vmatprep.subr.bf16.mxu0 %v15399_v63  ;;  %v15320_v62 = vcombine.low %v665_v39, %v673_v40  ;;  %v15049_v63 = vcombine.high %v393_v46, %v401_v47 }
 0x136   :  { %5160 = vmatprep.subr.bf16.mxu1 %v14889_v0 }
 0x138   :  { %5120 = vmatpush2.bf16.msra.mxu0 %v15398_v5  ;;  %v641_v5 = vld [vmem:[%s24394_s1 + $0x1258] sm:$0xff] }
 0x139   :  { %5161 = vmatpush2.bf16.msra.mxu1 %v14888_v6  ;;  %5121 = vmatprep.subr.bf16.mxu0 %v15383_v7  ;;  %v15048_v7 = vcombine.low %v393_v46, %v401_v47 }
 0x13a   :  { %5162 = vmatprep.subr.bf16.mxu1 %v14873_v8 }
 0x13c   :  { %5122 = vmatpush2.bf16.msra.mxu0 %v15382_v13  ;;  %v361_v13 = vld [vmem:[%s24394_s1 + $0x998] sm:$0xff] }
 0x13d   :  { %5163 = vmatpush2.bf16.msra.mxu1 %v14872_v14  ;;  %5123 = vmatprep.subr.bf16.mxu0 %v15367_v15  ;;  %v369_v14 = vld [vmem:[%s24394_s1 + $0x9d8] sm:$0xff] }
 0x13e   :  { %5164 = vmatprep.subr.bf16.mxu1 %v14857_v17  ;;  %v617_v15 = vld [vmem:[%s24394_s1 + $0x1198] sm:$0xff]  ;;  %v15017_v22 = vcombine.high %v361_v13, %v369_v14  ;;  %v15016_v28 = vcombine.low %v361_v13, %v369_v14 }
 0x13f   :  { %v625_v17 = vld [vmem:[%s24394_s1 + $0x11d8] sm:$0xff] }
 0x140   :  { %5124 = vmatpush2.bf16.msra.mxu0 %v15366_v24  ;;  %v15273_v23 = vcombine.high %v617_v15, %v625_v17  ;;  %v345_v24 = vld [vmem:[%s24394_s1 + $0x918] sm:$0xff]  ;;  %v15272_v31 = vcombine.low %v617_v15, %v625_v17 }
 0x141   :  { %5165 = vmatpush2.bf16.msra.mxu1 %v14856_v25  ;;  %5125 = vmatprep.subr.bf16.mxu0 %v15351_v54  ;;  %v353_v25 = vld [vmem:[%s24394_s1 + $0x958] sm:$0xff] }
 0x142   :  { %5166 = vmatprep.subr.bf16.mxu1 %v14841_v27  ;;  %v601_v54 = vld [vmem:[%s24394_s1 + $0x1118] sm:$0xff]  ;;  %v15001_v32 = vcombine.high %v345_v24, %v353_v25  ;;  %v15000_v37 = vcombine.low %v345_v24, %v353_v25 }
 0x143   :  { %v609_v27 = vld [vmem:[%s24394_s1 + $0x1158] sm:$0xff] }
 0x144   :  { %5126 = vmatpush2.bf16.msra.mxu0 %v15350_v34  ;;  %v15257_v33 = vcombine.high %v601_v54, %v609_v27  ;;  %v329_v34 = vld [vmem:[%s24394_s1 + $0x898] sm:$0xff]  ;;  %v15256_v38 = vcombine.low %v601_v54, %v609_v27 }
 0x145   :  { %5167 = vmatpush2.bf16.msra.mxu1 %v14840_v35  ;;  %5177 = vmatprep.subr.bf16.mxu0 %v15081_v36  ;;  %v337_v35 = vld [vmem:[%s24394_s1 + $0x8d8] sm:$0xff] }
 0x146   :  { %5218 = vmatprep.subr.bf16.mxu1 %v15337_v19  ;;  %v585_v36 = vld [vmem:[%s24394_s1 + $0x1098] sm:$0xff]  ;;  %v14985_v39 = vcombine.high %v329_v34, %v337_v35  ;;  %v14984_v46 = vcombine.low %v329_v34, %v337_v35 }
 0x147   :  { %v4883_v48 = vpop.f32.mrf.mxu0  ;;  %5128 = vmatmul.mubr.bf16.vlgmr.msra.gmra.mxu0 %v18698_v30  ;;  %v593_v19 = vld [vmem:[%s24394_s1 + $0x10d8] sm:$0xff] }
 0x148   :  { %v19329_v52 = vadd.f32 %v4883_v48, %v19129_v53  ;;  %v19331_v56 = vpop.f32.mrf.mxu1  ;;  %5169 = vmatmul.mubr.bf16.vlgmr.msra.gmra.mxu1 %v18485_v16  ;;  %5178 = vmatpush1.bf16.msra.mxu0 %v15080_v41  ;;  %v377_v53 = vld [vmem:[%s24394_s1 + $0xa18] sm:$0xff]  ;;  %v15241_v40 = vcombine.high %v585_v36, %v593_v19  ;;  %v15240_v47 = vcombine.low %v585_v36, %v593_v19 }
 0x149   :  { %5219 = vmatpush1.bf16.msra.mxu1 %v15336_v43  ;;  %v4885_v61 = vpop.f32.mrf.mxu0  ;;  %5179 = vmatprep.subr.bf16.mxu0 %v15065_v44  ;;  %v15033_v10 = vcombine.high %v377_v53, %v385_v3  ;;  %v15032_v18 = vcombine.low %v377_v53, %v385_v3  ;;  %v313_v41 = vld [vmem:[%s24394_s1 + $0x818] sm:$0xff] }
 0x14a   :  { %v19335_v0 = vadd.f32 %v4885_v61, %v19145_v29  ;;  %v19337_v1 = vpop.f32.mrf.mxu1  ;;  %5220 = vmatprep.subr.bf16.mxu1 %v15321_v45  ;;  %5209 = vmatprep.mubr.bf16.mxu0 %v18359_v59  ;;  %v633_v29 = vld [vmem:[%s24394_s1 + $0x1218] sm:$0xff] }
 0x14b   :  { %v4887_v4 = vpop.f32.mrf.mxu0  ;;  %5250 = vmatprep.mubr.bf16.mxu1 %v18510_v26  ;;  %v15289_v12 = vcombine.high %v633_v29, %v641_v5  ;;  %v15288_v21 = vcombine.low %v633_v29, %v641_v5  ;;  %v321_v43 = vld [vmem:[%s24394_s1 + $0x858] sm:$0xff] }
 0x14c   :  { %v4928_v6 = vpop.f32.mrf.mxu1  ;;  %5180 = vmatpush1.bf16.msra.mxu0 %v15064_v57  ;;  %v569_v44 = vld [vmem:[%s24394_s1 + $0x1018] sm:$0xff]  ;;  %v14969_v48 = vcombine.high %v313_v41, %v321_v43 }
 0x14d   :  { %5221 = vmatpush1.bf16.msra.mxu1 %v15320_v62  ;;  %v4888_v8 = vpop.f32.mrf.mxu0  ;;  %5181 = vmatprep.subr.bf16.mxu0 %v15049_v63  ;;  %v577_v45 = vld [vmem:[%s24394_s1 + $0x1058] sm:$0xff]  ;;  %v14968_v63 = vcombine.low %v313_v41, %v321_v43 }
 0x14e   :  { %v4929_v11 = vpop.f32.mrf.mxu1  ;;  %5222 = vmatprep.subr.bf16.mxu1 %v15305_v2  ;;  %v15225_v49 = vcombine.high %v569_v44, %v577_v45  ;;  %v561_v57 = vld [vmem:[%s24394_s1 + $0xfd8] sm:$0xff]  ;;  %v15224_v2 = vcombine.low %v569_v44, %v577_v45 }
 0x14f   :  { %v809_v61 = vld [vmem:[%s24394_s1 + $0x1798] sm:$0xff]  ;;  %v15209_v53 = vcombine.high %v553_v50, %v561_v57 }
 0x150   :  { %5182 = vmatpush1.bf16.msra.mxu0 %v15048_v7  ;;  %v817_v62 = vld [vmem:[%s24394_s1 + $0x17d8] sm:$0xff]  ;;  %v15208_v7 = vcombine.low %v553_v50, %v561_v57 }
 0x151   :  { %5223 = vmatpush1.bf16.msra.mxu1 %v15304_v9  ;;  %5183 = vmatprep.subr.bf16.mxu0 %v15033_v10  ;;  %v15465_v3 = vcombine.high %v809_v61, %v817_v62  ;;  %v537_v4 = vld [vmem:[%s24394_s1 + $0xf18] sm:$0xff]  ;;  %v15464_v8 = vcombine.low %v809_v61, %v817_v62 }
 0x152   :  { %5224 = vmatprep.subr.bf16.mxu1 %v15289_v12  ;;  %v545_v29 = vld [vmem:[%s24394_s1 + $0xf58] sm:$0xff] }
 0x153   :  { %v793_v5 = vld [vmem:[%s24394_s1 + $0x1718] sm:$0xff]  ;;  %v15193_v9 = vcombine.high %v537_v4, %v545_v29  ;;  %v15192_v15 = vcombine.low %v537_v4, %v545_v29 }
 0x154   :  { %5184 = vmatpush1.bf16.msra.mxu0 %v15032_v18  ;;  %v801_v6 = vld [vmem:[%s24394_s1 + $0x1758] sm:$0xff] }
 0x155   :  { %5225 = vmatpush1.bf16.msra.mxu1 %v15288_v21  ;;  %5185 = vmatprep.subr.bf16.mxu0 %v15017_v22  ;;  %v15449_v10 = vcombine.high %v793_v5, %v801_v6  ;;  %v521_v11 = vld [vmem:[%s24394_s1 + $0xe98] sm:$0xff]  ;;  %v15448_v17 = vcombine.low %v793_v5, %v801_v6 }
 0x156   :  { %5226 = vmatprep.subr.bf16.mxu1 %v15273_v23  ;;  %v529_v12 = vld [vmem:[%s24394_s1 + $0xed8] sm:$0xff] }
 0x157   :  { %v777_v13 = vld [vmem:[%s24394_s1 + $0x1698] sm:$0xff]  ;;  %v15177_v18 = vcombine.high %v521_v11, %v529_v12  ;;  %v15176_v54 = vcombine.low %v521_v11, %v529_v12  ;;  %v178_v11 = vld [vmem:[%s24394_s1 + $0x3e0] sm:$0xff] }
 0x158   :  { %5186 = vmatpush1.bf16.msra.mxu0 %v15016_v28  ;;  %v785_v14 = vld [vmem:[%s24394_s1 + $0x16d8] sm:$0xff]  ;;  %v426_v12 = vld [vmem:[%s24394_s1 + $0xba0] sm:$0xff] }
 0x159   :  { %5227 = vmatpush1.bf16.msra.mxu1 %v15272_v31  ;;  %5187 = vmatprep.subr.bf16.mxu0 %v15001_v32  ;;  %v15433_v21 = vcombine.high %v777_v13, %v785_v14  ;;  %v505_v22 = vld [vmem:[%s24394_s1 + $0xe18] sm:$0xff]  ;;  %v15432_v27 = vcombine.low %v777_v13, %v785_v14  ;;  %v434_v13 = vld [vmem:[%s24394_s1 + $0xbe0] sm:$0xff]  ;;  %v19513_v14 = vsub.s32 3, %v19074_v42 }
 0x15a   :  { %5228 = vmatprep.subr.bf16.mxu1 %v15257_v33  ;;  %v513_v23 = vld [vmem:[%s24394_s1 + $0xe58] sm:$0xff] }
 0x15b   :  { %v761_v24 = vld [vmem:[%s24394_s1 + $0x1618] sm:$0xff]  ;;  %v15161_v28 = vcombine.high %v505_v22, %v513_v23  ;;  %v15160_v36 = vcombine.low %v505_v22, %v513_v23  ;;  %v15083_v22 = vcombine.high %v426_v12, %v434_v13  ;;  %v154_v23 = vld [vmem:[%s24394_s1 + $0x320] sm:$0xff] }
 0x15c   :  { %5188 = vmatpush1.bf16.msra.mxu0 %v15000_v37  ;;  %v769_v25 = vld [vmem:[%s24394_s1 + $0x1658] sm:$0xff] }
 0x15d   :  { %5229 = vmatpush1.bf16.msra.mxu1 %v15256_v38  ;;  %5189 = vmatprep.subr.bf16.mxu0 %v14985_v39  ;;  %v15417_v31 = vcombine.high %v761_v24, %v769_v25  ;;  %v489_v32 = vld [vmem:[%s24394_s1 + $0xd98] sm:$0xff]  ;;  %v15416_v19 = vcombine.low %v761_v24, %v769_v25  ;;  %v162_v24 = vld [vmem:[%s24394_s1 + $0x360] sm:$0xff] }
 0x15e   :  { %5230 = vmatprep.subr.bf16.mxu1 %v15241_v40  ;;  %v497_v33 = vld [vmem:[%s24394_s1 + $0xdd8] sm:$0xff]  ;;  %v410_v25 = vld [vmem:[%s24394_s1 + $0xb20] sm:$0xff] }
 0x15f   :  { %v745_v34 = vld [vmem:[%s24394_s1 + $0x1598] sm:$0xff]  ;;  %v15145_v37 = vcombine.high %v489_v32, %v497_v33  ;;  %v15144_v44 = vcombine.low %v489_v32, %v497_v33  ;;  %v14811_v32 = vcombine.high %v154_v23, %v162_v24 }
 0x160   :  { %5190 = vmatpush1.bf16.msra.mxu0 %v14984_v46  ;;  %v753_v35 = vld [vmem:[%s24394_s1 + $0x15d8] sm:$0xff] }
 0x161   :  { %5231 = vmatpush1.bf16.msra.mxu1 %v15240_v47  ;;  %5191 = vmatprep.subr.bf16.mxu0 %v14969_v48  ;;  %v15401_v38 = vcombine.high %v745_v34, %v753_v35  ;;  %v473_v39 = vld [vmem:[%s24394_s1 + $0xd18] sm:$0xff]  ;;  %v15400_v45 = vcombine.low %v745_v34, %v753_v35  ;;  %v138_v35 = vld [vmem:[%s24394_s1 + $0x2a0] sm:$0xff] }
 0x162   :  { %5232 = vmatprep.subr.bf16.mxu1 %v15225_v49  ;;  %v481_v40 = vld [vmem:[%s24394_s1 + $0xd58] sm:$0xff] }
 0x163   :  { %v729_v41 = vld [vmem:[%s24394_s1 + $0x1518] sm:$0xff]  ;;  %v15129_v46 = vcombine.high %v473_v39, %v481_v40  ;;  %v15128_v61 = vcombine.low %v473_v39, %v481_v40  ;;  %v14810_v40 = vcombine.low %v154_v23, %v162_v24 }
 0x164   :  { %5192 = vmatpush1.bf16.msra.mxu0 %v14968_v63  ;;  %v737_v43 = vld [vmem:[%s24394_s1 + $0x1558] sm:$0xff] }
 0x165   :  { %5233 = vmatpush1.bf16.msra.mxu1 %v15224_v2  ;;  %5193 = vmatprep.subr.bf16.mxu0 %v15209_v53  ;;  %v15385_v47 = vcombine.high %v729_v41, %v737_v43  ;;  %v457_v48 = vld [vmem:[%s24394_s1 + $0xc98] sm:$0xff]  ;;  %v15384_v62 = vcombine.low %v729_v41, %v737_v43 }
 0x166   :  { %5234 = vmatprep.subr.bf16.mxu1 %v15465_v3  ;;  %v465_v49 = vld [vmem:[%s24394_s1 + $0xcd8] sm:$0xff] }
 0x167   :  { %v713_v50 = vld [vmem:[%s24394_s1 + $0x1498] sm:$0xff]  ;;  %v15113_v63 = vcombine.high %v457_v48, %v465_v49  ;;  %v15112_v5 = vcombine.low %v457_v48, %v465_v49  ;;  %v130_v49 = vld [vmem:[%s24394_s1 + $0x260] sm:$0xff] }
 0x168   :  { %5194 = vmatpush2.bf16.msra.mxu0 %v15208_v7  ;;  %v721_v57 = vld [vmem:[%s24394_s1 + $0x14d8] sm:$0xff] }
 0x169   :  { %5235 = vmatpush2.bf16.msra.mxu1 %v15464_v8  ;;  %5195 = vmatprep.subr.bf16.mxu0 %v15193_v9  ;;  %v15369_v2 = vcombine.high %v713_v50, %v721_v57  ;;  %v441_v53 = vld [vmem:[%s24394_s1 + $0xc18] sm:$0xff]  ;;  %v15368_v6 = vcombine.low %v713_v50, %v721_v57  ;;  %v19498_v8 = vsub.s32 2, %v19074_v42  ;;  %v378_v57 = vld [vmem:[%s24394_s1 + $0xa20] sm:$0xff] }
 0x16a   :  { %5236 = vmatprep.subr.bf16.mxu1 %v15449_v10  ;;  %v449_v3 = vld [vmem:[%s24394_s1 + $0xc58] sm:$0xff]  ;;  %v170_v10 = vld [vmem:[%s24394_s1 + $0x3a0] sm:$0xff] }
 0x16b   :  { %v697_v4 = vld [vmem:[%s24394_s1 + $0x1418] sm:$0xff]  ;;  %v15097_v7 = vcombine.high %v441_v53, %v449_v3 }
 0x16c   :  { %5196 = vmatpush2.bf16.msra.mxu0 %v15192_v15  ;;  %v705_v29 = vld [vmem:[%s24394_s1 + $0x1458] sm:$0xff]  ;;  %v15096_v15 = vcombine.low %v441_v53, %v449_v3 }
 0x16d   :  { %5237 = vmatpush2.bf16.msra.mxu1 %v15448_v17  ;;  %5197 = vmatprep.subr.bf16.mxu0 %v15177_v18  ;;  %v15353_v9 = vcombine.high %v697_v4, %v705_v29  ;;  %v15352_v17 = vcombine.low %v697_v4, %v705_v29  ;;  %v14827_v18 = vcombine.high %v170_v10, %v178_v11 }
 0x16e   :  { %5238 = vmatprep.subr.bf16.mxu1 %v15433_v21  ;;  %v837_v21 = vrot.slane %v19094_v55, %v19498_v8 }
 0x170   :  { %5198 = vmatpush2.bf16.msra.mxu0 %v15176_v54  ;;  %v418_v54 = vld [vmem:[%s24394_s1 + $0xb60] sm:$0xff]  ;;  %v4925_v33 = vadd.f32 %v19331_v56, %v837_v21 }
 0x171   :  { %5239 = vmatpush2.bf16.msra.mxu1 %v15432_v27  ;;  %5199 = vmatprep.subr.bf16.mxu0 %v15161_v28  ;;  %v841_v27 = vrot.slane %v19094_v55, %v19513_v14  ;;  %v14826_v28 = vcombine.low %v170_v10, %v178_v11  ;;  %v15067_v34 = vcombine.high %v410_v25, %v418_v54  ;;  %v394_v55 = vld [vmem:[%s24394_s1 + $0xaa0] sm:$0xff] }
 0x172   :  { %5240 = vmatprep.subr.bf16.mxu1 %v15417_v31  ;;  %v15082_v31 = vcombine.low %v426_v12, %v434_v13  ;;  %v402_v56 = vld [vmem:[%s24394_s1 + $0xae0] sm:$0xff]  ;;  %v15066_v43 = vcombine.low %v410_v25, %v418_v54 }
 0x173   :  { %v15051_v48 = vcombine.high %v394_v55, %v402_v56  ;;  %v15050_v3 = vcombine.low %v394_v55, %v402_v56  ;;  %v370_v10 = vld [vmem:[%s24394_s1 + $0x9e0] sm:$0xff] }
 0x174   :  { %5200 = vmatpush2.bf16.msra.mxu0 %v15160_v36  ;;  %v146_v36 = vld [vmem:[%s24394_s1 + $0x2e0] sm:$0xff] }
 0x175   :  { %5241 = vmatpush2.bf16.msra.mxu1 %v15416_v19  ;;  %5201 = vmatprep.subr.bf16.mxu0 %v15145_v37  ;;  %v4927_v37 = vadd.f32 %v19337_v1, %v841_v27  ;;  %v122_v1 = vld [vmem:[%s24394_s1 + $0x220] sm:$0xff] }
 0x176   :  { %5242 = vmatprep.subr.bf16.mxu1 %v15401_v38  ;;  %v14779_v4 = vcombine.high %v122_v1, %v130_v49  ;;  %v14778_v11 = vcombine.low %v122_v1, %v130_v49  ;;  %v346_v21 = vld [vmem:[%s24394_s1 + $0x920] sm:$0xff] }
 0x177   :  { %v74_v27 = vld [vmem:[%s24394_s1 + $0xa0] sm:$0xff] }
 0x178   :  { %5202 = vmatpush2.bf16.msra.mxu0 %v15144_v44  ;;  %v14795_v44 = vcombine.high %v138_v35, %v146_v36  ;;  %v66_v55 = vld [vmem:[%s24394_s1 + $0x60] sm:$0xff] }
 0x179   :  { %5243 = vmatpush2.bf16.msra.mxu1 %v15400_v45  ;;  %5203 = vmatprep.subr.bf16.mxu0 %v15129_v46  ;;  %v314_v56 = vld [vmem:[%s24394_s1 + $0x820] sm:$0xff] }
 0x17a   :  { %5244 = vmatprep.subr.bf16.mxu1 %v15385_v47 }
 0x17c   :  { %5204 = vmatpush2.bf16.msra.mxu0 %v15128_v61  ;;  %v386_v61 = vld [vmem:[%s24394_s1 + $0xa60] sm:$0xff] }
 0x17d   :  { %5245 = vmatpush2.bf16.msra.mxu1 %v15384_v62  ;;  %5205 = vmatprep.subr.bf16.mxu0 %v15113_v63  ;;  %v15034_v12 = vcombine.low %v378_v57, %v386_v61 }
 0x17e   :  { %5246 = vmatprep.subr.bf16.mxu1 %v15369_v2  ;;  %v14794_v2 = vcombine.low %v138_v35, %v146_v36 }
 0x180   :  { %5206 = vmatpush2.bf16.msra.mxu0 %v15112_v5  ;;  %v15035_v5 = vcombine.high %v378_v57, %v386_v61  ;;  %v282_v57 = vld [vmem:[%s24394_s1 + $0x720] sm:$0xff] }
 0x181   :  { %5247 = vmatpush2.bf16.msra.mxu1 %v15368_v6  ;;  %5207 = vmatprep.subr.bf16.mxu0 %v15097_v7  ;;  %v106_v6 = vld [vmem:[%s24394_s1 + $0x1a0] sm:$0xff] }
 0x182   :  { %5248 = vmatprep.subr.bf16.mxu1 %v15353_v9  ;;  %v114_v7 = vld [vmem:[%s24394_s1 + $0x1e0] sm:$0xff] }
 0x183   :  { %v362_v9 = vld [vmem:[%s24394_s1 + $0x9a0] sm:$0xff]  ;;  %v14763_v13 = vcombine.high %v106_v6, %v114_v7  ;;  %v14762_v23 = vcombine.low %v106_v6, %v114_v7 }
 0x184   :  { %5208 = vmatpush2.bf16.msra.mxu0 %v15096_v15  ;;  %v15019_v15 = vcombine.high %v362_v9, %v370_v10  ;;  %v15018_v24 = vcombine.low %v362_v9, %v370_v10  ;;  %v290_v61 = vld [vmem:[%s24394_s1 + $0x760] sm:$0xff] }
 0x185   :  { %5249 = vmatpush2.bf16.msra.mxu1 %v15352_v17  ;;  %5259 = vmatprep.subr.bf16.mxu0 %v14827_v18  ;;  %v90_v17 = vld [vmem:[%s24394_s1 + $0x120] sm:$0xff]  ;;  %v14938_v10 = vcombine.low %v282_v57, %v290_v61 }
 0x186   :  { %5300 = vmatprep.subr.bf16.mxu1 %v15083_v22  ;;  %v98_v18 = vld [vmem:[%s24394_s1 + $0x160] sm:$0xff] }
 0x187   :  { %v4965_v19 = vpop.f32.mrf.mxu0  ;;  %5210 = vmatmul.mubr.bf16.vlgmr.msra.gmra.mxu0 %v18500_v20  ;;  %v354_v22 = vld [vmem:[%s24394_s1 + $0x960] sm:$0xff]  ;;  %v14747_v25 = vcombine.high %v90_v17, %v98_v18 }
 0x188   :  { %v4966_v38 = vadd.f32 %v4965_v19, %v4925_v33  ;;  %v5006_v39 = vpop.f32.mrf.mxu1  ;;  %5251 = vmatmul.mubr.bf16.vlgmr.msra.gmra.mxu1 %v18698_v30  ;;  %5260 = vmatpush1.bf16.msra.mxu0 %v14826_v28  ;;  %v15003_v54 = vcombine.high %v346_v21, %v354_v22  ;;  %v82_v28 = vld [vmem:[%s24394_s1 + $0xe0] sm:$0xff]  ;;  %v14746_v33 = vcombine.low %v90_v17, %v98_v18 }
 0x189   :  { %5301 = vmatpush1.bf16.msra.mxu1 %v15082_v31  ;;  %v4967_v41 = vpop.f32.mrf.mxu0  ;;  %5261 = vmatprep.subr.bf16.mxu0 %v14811_v32  ;;  %v330_v31 = vld [vmem:[%s24394_s1 + $0x8a0] sm:$0xff]  ;;  %v14731_v35 = vcombine.high %v74_v27, %v82_v28 }
 0x18a   :  { %v19547_v45 = vadd.f32 %v5006_v39, %v4966_v38  ;;  %v4968_v46 = vadd.f32 %v4967_v41, %v4927_v37  ;;  %v5008_v47 = vpop.f32.mrf.mxu1  ;;  %5302 = vmatprep.subr.bf16.mxu1 %v15067_v34  ;;  %5291 = vmatprep.mubr.bf16.mxu0 %v18355_v58  ;;  %v338_v32 = vld [vmem:[%s24394_s1 + $0x8e0] sm:$0xff]  ;;  %v15002_v34 = vcombine.low %v346_v21, %v354_v22 }
 0x18b   :  { %v4969_v50 = vpop.f32.mrf.mxu0  ;;  %5332 = vmatprep.mubr.bf16.mxu1 %v18359_v59  ;;  %v14987_v36 = vcombine.high %v330_v31, %v338_v32  ;;  %v58_v19 = vld [vmem:[%s24394_s1 + $0x20] sm:$0xff]  ;;  %v14730_v38 = vcombine.low %v74_v27, %v82_v28  ;;  %v14986_v39 = vcombine.low %v330_v31, %v338_v32 }
 0x18c   :  { %v19563_v62 = vadd.f32 %v5008_v47, %v4968_v46  ;;  %v5010_v63 = vpop.f32.mrf.mxu1  ;;  %5262 = vmatpush1.bf16.msra.mxu0 %v14810_v40  ;;  %v322_v37 = vld [vmem:[%s24394_s1 + $0x860] sm:$0xff]  ;;  %v14715_v40 = vcombine.high %v58_v19, %v66_v55 }
 0x18d   :  { %5303 = vmatpush1.bf16.msra.mxu1 %v15066_v43  ;;  %v4970_v53 = vpop.f32.mrf.mxu0  ;;  %5263 = vmatprep.subr.bf16.mxu0 %v14795_v44  ;;  %v14971_v41 = vcombine.high %v314_v56, %v322_v37  ;;  %v298_v43 = vld [vmem:[%s24394_s1 + $0x7a0] sm:$0xff]  ;;  %v14970_v1 = vcombine.low %v314_v56, %v322_v37 }
 0x18e   :  { %v5011_v29 = vpop.f32.mrf.mxu1  ;;  %5304 = vmatprep.subr.bf16.mxu1 %v15051_v48  ;;  %v306_v44 = vld [vmem:[%s24394_s1 + $0x7e0] sm:$0xff]  ;;  %v14714_v48 = vcombine.low %v58_v19, %v66_v55 }
 0x18f   :  { %v554_v46 = vld [vmem:[%s24394_s1 + $0xfa0] sm:$0xff]  ;;  %v14955_v49 = vcombine.high %v298_v43, %v306_v44  ;;  %v14954_v53 = vcombine.low %v298_v43, %v306_v44 }
 0x190   :  { %5264 = vmatpush1.bf16.msra.mxu0 %v14794_v2  ;;  %v562_v47 = vld [vmem:[%s24394_s1 + $0xfe0] sm:$0xff] }
 0x191   :  { %5305 = vmatpush1.bf16.msra.mxu1 %v15050_v3  ;;  %5265 = vmatprep.subr.bf16.mxu0 %v14779_v4  ;;  %v15211_v50 = vcombine.high %v554_v46, %v562_v47  ;;  %v538_v63 = vld [vmem:[%s24394_s1 + $0xf20] sm:$0xff]  ;;  %v15210_v3 = vcombine.low %v554_v46, %v562_v47  ;;  %v14939_v4 = vcombine.high %v282_v57, %v290_v61 }
 0x192   :  { %5306 = vmatprep.subr.bf16.mxu1 %v15035_v5  ;;  %v546_v2 = vld [vmem:[%s24394_s1 + $0xf60] sm:$0xff] }
 0x193   :  { %v15195_v29 = vcombine.high %v538_v63, %v546_v2  ;;  %v266_v5 = vld [vmem:[%s24394_s1 + $0x6a0] sm:$0xff] }
 0x194   :  { %5266 = vmatpush1.bf16.msra.mxu0 %v14778_v11  ;;  %v274_v6 = vld [vmem:[%s24394_s1 + $0x6e0] sm:$0xff]  ;;  %v15194_v11 = vcombine.low %v538_v63, %v546_v2 }
 0x195   :  { %5307 = vmatpush1.bf16.msra.mxu1 %v15034_v12  ;;  %5267 = vmatprep.subr.bf16.mxu0 %v14763_v13  ;;  %v522_v7 = vld [vmem:[%s24394_s1 + $0xea0] sm:$0xff]  ;;  %v14923_v12 = vcombine.high %v266_v5, %v274_v6  ;;  %v14922_v22 = vcombine.low %v266_v5, %v274_v6  ;;  %v171_v6 = vld [vmem:[%s24394_s1 + $0x3a8] sm:$0xff] }
 0x196   :  { %5308 = vmatprep.subr.bf16.mxu1 %v15019_v15  ;;  %v530_v9 = vld [vmem:[%s24394_s1 + $0xee0] sm:$0xff] }
 0x197   :  { %v15179_v13 = vcombine.high %v522_v7, %v530_v9  ;;  %v250_v15 = vld [vmem:[%s24394_s1 + $0x620] sm:$0xff] }
 0x198   :  { %5268 = vmatpush1.bf16.msra.mxu0 %v14762_v23  ;;  %v258_v17 = vld [vmem:[%s24394_s1 + $0x660] sm:$0xff]  ;;  %v15178_v23 = vcombine.low %v522_v7, %v530_v9  ;;  %v179_v7 = vld [vmem:[%s24394_s1 + $0x3e8] sm:$0xff] }
 0x199   :  { %5309 = vmatpush1.bf16.msra.mxu1 %v15018_v24  ;;  %5269 = vmatprep.subr.bf16.mxu0 %v14747_v25  ;;  %v506_v18 = vld [vmem:[%s24394_s1 + $0xe20] sm:$0xff]  ;;  %v14907_v24 = vcombine.high %v250_v15, %v258_v17  ;;  %v14906_v32 = vcombine.low %v250_v15, %v258_v17  ;;  %v19725_v15 = vsub.s32 5, %v19074_v42 }
 0x19a   :  { %5310 = vmatprep.subr.bf16.mxu1 %v15003_v54  ;;  %v514_v21 = vld [vmem:[%s24394_s1 + $0xe60] sm:$0xff] }
 0x19b   :  { %v15163_v25 = vcombine.high %v506_v18, %v514_v21  ;;  %v234_v54 = vld [vmem:[%s24394_s1 + $0x5a0] sm:$0xff] }
 0x19c   :  { %5270 = vmatpush1.bf16.msra.mxu0 %v14746_v33  ;;  %v242_v27 = vld [vmem:[%s24394_s1 + $0x5e0] sm:$0xff]  ;;  %v15162_v33 = vcombine.low %v506_v18, %v514_v21  ;;  %v155_v21 = vld [vmem:[%s24394_s1 + $0x328] sm:$0xff] }
 0x19d   :  { %5311 = vmatpush1.bf16.msra.mxu1 %v15002_v34  ;;  %5271 = vmatprep.subr.bf16.mxu0 %v14731_v35  ;;  %v490_v28 = vld [vmem:[%s24394_s1 + $0xda0] sm:$0xff]  ;;  %v14891_v34 = vcombine.high %v234_v54, %v242_v27  ;;  %v14890_v37 = vcombine.low %v234_v54, %v242_v27  ;;  %v14828_v54 = vcombine.low %v171_v6, %v179_v7 }
 0x19e   :  { %5312 = vmatprep.subr.bf16.mxu1 %v14987_v36  ;;  %v498_v31 = vld [vmem:[%s24394_s1 + $0xde0] sm:$0xff] }
 0x19f   :  { %v15147_v35 = vcombine.high %v490_v28, %v498_v31  ;;  %v218_v36 = vld [vmem:[%s24394_s1 + $0x520] sm:$0xff] }
 0x1a0   :  { %5272 = vmatpush1.bf16.msra.mxu0 %v14730_v38  ;;  %v226_v19 = vld [vmem:[%s24394_s1 + $0x560] sm:$0xff]  ;;  %v15146_v38 = vcombine.low %v490_v28, %v498_v31 }
 0x1a1   :  { %5313 = vmatpush1.bf16.msra.mxu1 %v14986_v39  ;;  %5273 = vmatprep.subr.bf16.mxu0 %v14715_v40  ;;  %v474_v55 = vld [vmem:[%s24394_s1 + $0xd20] sm:$0xff]  ;;  %v14875_v39 = vcombine.high %v218_v36, %v226_v19  ;;  %v14874_v47 = vcombine.low %v218_v36, %v226_v19  ;;  %v147_v36 = vld [vmem:[%s24394_s1 + $0x2e8] sm:$0xff] }
 0x1a2   :  { %5314 = vmatprep.subr.bf16.mxu1 %v14971_v41  ;;  %v482_v56 = vld [vmem:[%s24394_s1 + $0xd60] sm:$0xff] }
 0x1a3   :  { %v15131_v40 = vcombine.high %v474_v55, %v482_v56  ;;  %v202_v41 = vld [vmem:[%s24394_s1 + $0x4a0] sm:$0xff] }
 0x1a4   :  { %5274 = vmatpush1.bf16.msra.mxu0 %v14714_v48  ;;  %v210_v43 = vld [vmem:[%s24394_s1 + $0x4e0] sm:$0xff]  ;;  %v15130_v48 = vcombine.low %v474_v55, %v482_v56 }
 0x1a5   :  { %5315 = vmatpush1.bf16.msra.mxu1 %v14970_v1  ;;  %5275 = vmatprep.subr.bf16.mxu0 %v14955_v49  ;;  %v458_v44 = vld [vmem:[%s24394_s1 + $0xca0] sm:$0xff]  ;;  %v14859_v1 = vcombine.high %v202_v41, %v210_v43  ;;  %v14858_v2 = vcombine.low %v202_v41, %v210_v43 }
 0x1a6   :  { %5316 = vmatprep.subr.bf16.mxu1 %v15211_v50  ;;  %v466_v46 = vld [vmem:[%s24394_s1 + $0xce0] sm:$0xff] }
 0x1a7   :  { %v15115_v49 = vcombine.high %v458_v44, %v466_v46  ;;  %v186_v50 = vld [vmem:[%s24394_s1 + $0x420] sm:$0xff] }
 0x1a8   :  { %5276 = vmatpush2.bf16.msra.mxu0 %v14954_v53  ;;  %v194_v57 = vld [vmem:[%s24394_s1 + $0x460] sm:$0xff]  ;;  %v15114_v53 = vcombine.low %v458_v44, %v466_v46 }
 0x1a9   :  { %5317 = vmatpush2.bf16.msra.mxu1 %v15210_v3  ;;  %5277 = vmatprep.subr.bf16.mxu0 %v14939_v4  ;;  %v442_v61 = vld [vmem:[%s24394_s1 + $0xc20] sm:$0xff]  ;;  %v14843_v3 = vcombine.high %v186_v50, %v194_v57  ;;  %v14842_v9 = vcombine.low %v186_v50, %v194_v57 }
 0x1aa   :  { %5318 = vmatprep.subr.bf16.mxu1 %v15195_v29  ;;  %v450_v63 = vld [vmem:[%s24394_s1 + $0xc60] sm:$0xff] }
 0x1ab   :  { %v15099_v4 = vcombine.high %v442_v61, %v450_v63  ;;  %v682_v29 = vld [vmem:[%s24394_s1 + $0x13a0] sm:$0xff] }
 0x1ac   :  { %5278 = vmatpush2.bf16.msra.mxu0 %v14938_v10  ;;  %v690_v5 = vld [vmem:[%s24394_s1 + $0x13e0] sm:$0xff]  ;;  %v19722_v10 = vsub.s32 4, %v19074_v42 }
 0x1ad   :  { %5319 = vmatpush2.bf16.msra.mxu1 %v15194_v11  ;;  %5279 = vmatprep.subr.bf16.mxu0 %v14923_v12  ;;  %v15098_v11 = vcombine.low %v442_v61, %v450_v63  ;;  %v15339_v12 = vcombine.high %v682_v29, %v690_v5  ;;  %v666_v17 = vld [vmem:[%s24394_s1 + $0x1320] sm:$0xff] }
 0x1ae   :  { %5320 = vmatprep.subr.bf16.mxu1 %v15179_v13  ;;  %v14829_v13 = vcombine.high %v171_v6, %v179_v7  ;;  %v674_v18 = vld [vmem:[%s24394_s1 + $0x1360] sm:$0xff]  ;;  %v107_v6 = vld [vmem:[%s24394_s1 + $0x1a8] sm:$0xff] }
 0x1af   :  { %v15323_v27 = vcombine.high %v666_v17, %v674_v18  ;;  %v15322_v56 = vcombine.low %v666_v17, %v674_v18  ;;  %v634_v46 = vld [vmem:[%s24394_s1 + $0x1220] sm:$0xff]  ;;  %v115_v7 = vld [vmem:[%s24394_s1 + $0x1e8] sm:$0xff] }
 0x1b0   :  { %5280 = vmatpush2.bf16.msra.mxu0 %v14922_v22  ;;  %v163_v22 = vld [vmem:[%s24394_s1 + $0x368] sm:$0xff]  ;;  %v602_v17 = vld [vmem:[%s24394_s1 + $0x1120] sm:$0xff] }
 0x1b1   :  { %5321 = vmatpush2.bf16.msra.mxu1 %v15178_v23  ;;  %5281 = vmatprep.subr.bf16.mxu0 %v14907_v24  ;;  %v19742_v23 = vld [vmem:[%s24396_s2] sm:$0xff]  ;;  %v14813_v31 = vcombine.high %v155_v21, %v163_v22 }
 0x1b2   :  { %5322 = vmatprep.subr.bf16.mxu1 %v15163_v25  ;;  %v845_v24 = vrot.slane %v19742_v23, %v19722_v10  ;;  %v15338_v25 = vcombine.low %v682_v29, %v690_v5  ;;  %v849_v28 = vrot.slane %v19742_v23, %v19725_v15  ;;  %v618_v29 = vld [vmem:[%s24394_s1 + $0x11a0] sm:$0xff] }
 0x1b3   :  { %v626_v5 = vld [vmem:[%s24394_s1 + $0x11e0] sm:$0xff] }
 0x1b4   :  { %5282 = vmatpush2.bf16.msra.mxu0 %v14906_v32  ;;  %v650_v32 = vld [vmem:[%s24394_s1 + $0x12a0] sm:$0xff] }
 0x1b5   :  { %5323 = vmatpush2.bf16.msra.mxu1 %v15162_v33  ;;  %5283 = vmatprep.subr.bf16.mxu0 %v14891_v34  ;;  %v658_v33 = vld [vmem:[%s24394_s1 + $0x12e0] sm:$0xff] }
 0x1b6   :  { %5324 = vmatprep.subr.bf16.mxu1 %v15147_v35  ;;  %v139_v35 = vld [vmem:[%s24394_s1 + $0x2a8] sm:$0xff]  ;;  %v15306_v61 = vcombine.low %v650_v32, %v658_v33  ;;  %v610_v18 = vld [vmem:[%s24394_s1 + $0x1160] sm:$0xff] }
 0x1b7   :  { %v14797_v44 = vcombine.high %v139_v35, %v147_v36 }
 0x1b8   :  { %5284 = vmatpush2.bf16.msra.mxu0 %v14890_v37 }
 0x1b9   :  { %5325 = vmatpush2.bf16.msra.mxu1 %v15146_v38  ;;  %5285 = vmatprep.subr.bf16.mxu0 %v14875_v39  ;;  %v14812_v38 = vcombine.low %v155_v21, %v163_v22  ;;  %v15307_v39 = vcombine.high %v650_v32, %v658_v33  ;;  %v91_v21 = vld [vmem:[%s24394_s1 + $0x128] sm:$0xff] }
 0x1ba   :  { %5326 = vmatprep.subr.bf16.mxu1 %v15131_v40  ;;  %v99_v22 = vld [vmem:[%s24394_s1 + $0x168] sm:$0xff] }
 0x1bb   :  { %v75_v32 = vld [vmem:[%s24394_s1 + $0xa8] sm:$0xff] }
 0x1bc   :  { %5286 = vmatpush2.bf16.msra.mxu0 %v14874_v47  ;;  %v642_v47 = vld [vmem:[%s24394_s1 + $0x1260] sm:$0xff]  ;;  %v83_v33 = vld [vmem:[%s24394_s1 + $0xe8] sm:$0xff] }
 0x1bd   :  { %5327 = vmatpush2.bf16.msra.mxu1 %v15130_v48  ;;  %5287 = vmatprep.subr.bf16.mxu0 %v14859_v1  ;;  %v123_v1 = vld [vmem:[%s24394_s1 + $0x228] sm:$0xff] }
 0x1be   :  { %5328 = vmatprep.subr.bf16.mxu1 %v15115_v49  ;;  %v131_v49 = vld [vmem:[%s24394_s1 + $0x268] sm:$0xff] }
 0x1c0   :  { %5288 = vmatpush2.bf16.msra.mxu0 %v14858_v2  ;;  %v14796_v2 = vcombine.low %v139_v35, %v147_v36  ;;  %v14748_v35 = vcombine.low %v91_v21, %v99_v22 }
 0x1c1   :  { %5329 = vmatpush2.bf16.msra.mxu1 %v15114_v53  ;;  %5289 = vmatprep.subr.bf16.mxu0 %v14843_v3  ;;  %v15291_v53 = vcombine.high %v634_v46, %v642_v47 }
 0x1c2   :  { %5330 = vmatprep.subr.bf16.mxu1 %v15099_v4  ;;  %v14781_v4 = vcombine.high %v123_v1, %v131_v49 }
 0x1c4   :  { %5290 = vmatpush2.bf16.msra.mxu0 %v14842_v9  ;;  %v15290_v9 = vcombine.low %v634_v46, %v642_v47  ;;  %v810_v46 = vld [vmem:[%s24394_s1 + $0x17a0] sm:$0xff] }
 0x1c5   :  { %5331 = vmatpush2.bf16.msra.mxu1 %v15098_v11  ;;  %5341 = vmatprep.subr.bf16.mxu0 %v15339_v12  ;;  %v14780_v11 = vcombine.low %v123_v1, %v131_v49  ;;  %v15275_v12 = vcombine.high %v618_v29, %v626_v5  ;;  %v818_v47 = vld [vmem:[%s24394_s1 + $0x17e0] sm:$0xff]  ;;  %v307_v1 = vld [vmem:[%s24394_s1 + $0x7e8] sm:$0xff] }
 0x1c6   :  { %5382 = vmatprep.subr.bf16.mxu1 %v14829_v13  ;;  %v14765_v13 = vcombine.high %v107_v6, %v115_v7 }
 0x1c7   :  { %v5047_v34 = vpop.f32.mrf.mxu0  ;;  %5292 = vmatmul.mubr.bf16.vlgmr.msra.gmra.mxu0 %v18485_v16 }
 0x1c8   :  { %v5048_v19 = vadd.f32 %v5047_v34, %v845_v24  ;;  %v5088_v55 = vpop.f32.mrf.mxu1  ;;  %5333 = vmatmul.mubr.bf16.vlgmr.msra.gmra.mxu1 %v18500_v20  ;;  %5342 = vmatpush1.bf16.msra.mxu0 %v15338_v25  ;;  %v15274_v24 = vcombine.low %v618_v29, %v626_v5  ;;  %v14764_v25 = vcombine.low %v107_v6, %v115_v7 }
 0x1c9   :  { %5383 = vmatpush1.bf16.msra.mxu1 %v14828_v54  ;;  %v5049_v37 = vpop.f32.mrf.mxu0  ;;  %5343 = vmatprep.subr.bf16.mxu0 %v15323_v27  ;;  %v15259_v54 = vcombine.high %v602_v17, %v610_v18  ;;  %v14749_v27 = vcombine.high %v91_v21, %v99_v22  ;;  %v15258_v34 = vcombine.low %v602_v17, %v610_v18 }
 0x1ca   :  { %v19762_v40 = vadd.f32 %v5088_v55, %v5048_v19  ;;  %v5050_v41 = vadd.f32 %v5049_v37, %v849_v28  ;;  %v5090_v43 = vpop.f32.mrf.mxu1  ;;  %5384 = vmatprep.subr.bf16.mxu1 %v14813_v31  ;;  %5373 = vmatprep.mubr.bf16.mxu0 %v18510_v26  ;;  %v586_v28 = vld [vmem:[%s24394_s1 + $0x10a0] sm:$0xff]  ;;  %v14733_v19 = vcombine.high %v75_v32, %v83_v33  ;;  %v59_v37 = vld [vmem:[%s24394_s1 + $0x28] sm:$0xff] }
 0x1cb   :  { %v5051_v48 = vpop.f32.mrf.mxu0  ;;  %5414 = vmatprep.mubr.bf16.mxu1 %v18355_v58  ;;  %v594_v31 = vld [vmem:[%s24394_s1 + $0x10e0] sm:$0xff]  ;;  %v15466_v29 = vcombine.low %v810_v46, %v818_v47 }
 0x1cc   :  { %v19778_v50 = vadd.f32 %v5090_v43, %v5050_v41  ;;  %v5092_v57 = vpop.f32.mrf.mxu1  ;;  %5344 = vmatpush1.bf16.msra.mxu0 %v15322_v56  ;;  %v15243_v36 = vcombine.high %v586_v28, %v594_v31  ;;  %v570_v55 = vld [vmem:[%s24394_s1 + $0x1020] sm:$0xff]  ;;  %v14732_v41 = vcombine.low %v75_v32, %v83_v33  ;;  %v299_v48 = vld [vmem:[%s24394_s1 + $0x7a8] sm:$0xff] }
 0x1cd   :  { %5385 = vmatpush1.bf16.msra.mxu1 %v14812_v38  ;;  %v5052_v63 = vpop.f32.mrf.mxu0  ;;  %5345 = vmatprep.subr.bf16.mxu0 %v15307_v39  ;;  %v578_v56 = vld [vmem:[%s24394_s1 + $0x1060] sm:$0xff]  ;;  %v67_v38 = vld [vmem:[%s24394_s1 + $0x68] sm:$0xff]  ;;  %v15242_v39 = vcombine.low %v586_v28, %v594_v31  ;;  %v14956_v5 = vcombine.low %v299_v48, %v307_v1 }
 0x1ce   :  { %v5093_v3 = vpop.f32.mrf.mxu1  ;;  %5386 = vmatprep.subr.bf16.mxu1 %v14797_v44  ;;  %v15227_v43 = vcombine.high %v570_v55, %v578_v56  ;;  %v14717_v44 = vcombine.high %v59_v37, %v67_v38  ;;  %v15226_v49 = vcombine.low %v570_v55, %v578_v56  ;;  %v14716_v57 = vcombine.low %v59_v37, %v67_v38 }
 0x1cf   :  { %v14957_v63 = vcombine.high %v299_v48, %v307_v1  ;;  %v283_v3 = vld [vmem:[%s24394_s1 + $0x728] sm:$0xff] }
 0x1d0   :  { %5346 = vmatpush1.bf16.msra.mxu0 %v15306_v61  ;;  %v15467_v61 = vcombine.high %v810_v46, %v818_v47 }
 0x1d1   :  { %5387 = vmatpush1.bf16.msra.mxu1 %v14796_v2  ;;  %5347 = vmatprep.subr.bf16.mxu0 %v15291_v53  ;;  %v794_v2 = vld [vmem:[%s24394_s1 + $0x1720] sm:$0xff] }
 0x1d2   :  { %5388 = vmatprep.subr.bf16.mxu1 %v14781_v4  ;;  %v802_v53 = vld [vmem:[%s24394_s1 + $0x1760] sm:$0xff]  ;;  %v291_v4 = vld [vmem:[%s24394_s1 + $0x768] sm:$0xff] }
 0x1d3   :  { %v15451_v6 = vcombine.high %v794_v2, %v802_v53  ;;  %v14941_v7 = vcombine.high %v283_v3, %v291_v4  ;;  %v15450_v17 = vcombine.low %v794_v2, %v802_v53  ;;  %v14940_v18 = vcombine.low %v283_v3, %v291_v4 }
 0x1d4   :  { %5348 = vmatpush1.bf16.msra.mxu0 %v15290_v9  ;;  %v778_v9 = vld [vmem:[%s24394_s1 + $0x16a0] sm:$0xff] }
 0x1d5   :  { %5389 = vmatpush1.bf16.msra.mxu1 %v14780_v11  ;;  %5349 = vmatprep.subr.bf16.mxu0 %v15275_v12  ;;  %v786_v11 = vld [vmem:[%s24394_s1 + $0x16e0] sm:$0xff]  ;;  %v267_v12 = vld [vmem:[%s24394_s1 + $0x6a8] sm:$0xff] }
 0x1d6   :  { %5390 = vmatprep.subr.bf16.mxu1 %v14765_v13  ;;  %v275_v13 = vld [vmem:[%s24394_s1 + $0x6e8] sm:$0xff]  ;;  %v15435_v21 = vcombine.high %v778_v9, %v786_v11  ;;  %v15434_v28 = vcombine.low %v778_v9, %v786_v11 }
 0x1d7   :  { %v14925_v22 = vcombine.high %v267_v12, %v275_v13  ;;  %v14924_v31 = vcombine.low %v267_v12, %v275_v13 }
 0x1d8   :  { %5350 = vmatpush1.bf16.msra.mxu0 %v15274_v24  ;;  %v762_v24 = vld [vmem:[%s24394_s1 + $0x1620] sm:$0xff] }
 0x1d9   :  { %5391 = vmatpush1.bf16.msra.mxu1 %v14764_v25  ;;  %5351 = vmatprep.subr.bf16.mxu0 %v15259_v54  ;;  %v770_v25 = vld [vmem:[%s24394_s1 + $0x1660] sm:$0xff]  ;;  %v251_v54 = vld [vmem:[%s24394_s1 + $0x628] sm:$0xff] }
 0x1da   :  { %5392 = vmatprep.subr.bf16.mxu1 %v14749_v27  ;;  %v259_v27 = vld [vmem:[%s24394_s1 + $0x668] sm:$0xff]  ;;  %v15419_v32 = vcombine.high %v762_v24, %v770_v25  ;;  %v15418_v55 = vcombine.low %v762_v24, %v770_v25 }
 0x1db   :  { %v14909_v33 = vcombine.high %v251_v54, %v259_v27  ;;  %v14908_v56 = vcombine.low %v251_v54, %v259_v27 }
 0x1dc   :  { %5352 = vmatpush1.bf16.msra.mxu0 %v15258_v34  ;;  %v746_v34 = vld [vmem:[%s24394_s1 + $0x15a0] sm:$0xff] }
 0x1dd   :  { %5393 = vmatpush1.bf16.msra.mxu1 %v14748_v35  ;;  %5353 = vmatprep.subr.bf16.mxu0 %v15243_v36  ;;  %v754_v35 = vld [vmem:[%s24394_s1 + $0x15e0] sm:$0xff]  ;;  %v235_v36 = vld [vmem:[%s24394_s1 + $0x5a8] sm:$0xff] }
 0x1de   :  { %5394 = vmatprep.subr.bf16.mxu1 %v14733_v19  ;;  %v243_v19 = vld [vmem:[%s24394_s1 + $0x5e8] sm:$0xff]  ;;  %v15403_v37 = vcombine.high %v746_v34, %v754_v35  ;;  %v15402_v46 = vcombine.low %v746_v34, %v754_v35 }
 0x1df   :  { %v14893_v38 = vcombine.high %v235_v36, %v243_v19  ;;  %v14892_v47 = vcombine.low %v235_v36, %v243_v19 }
 0x1e0   :  { %5354 = vmatpush1.bf16.msra.mxu0 %v15242_v39  ;;  %v730_v39 = vld [vmem:[%s24394_s1 + $0x1520] sm:$0xff] }
 0x1e1   :  { %5395 = vmatpush1.bf16.msra.mxu1 %v14732_v41  ;;  %5355 = vmatprep.subr.bf16.mxu0 %v15227_v43  ;;  %v738_v41 = vld [vmem:[%s24394_s1 + $0x1560] sm:$0xff]  ;;  %v219_v43 = vld [vmem:[%s24394_s1 + $0x528] sm:$0xff] }
 0x1e2   :  { %5396 = vmatprep.subr.bf16.mxu1 %v14717_v44  ;;  %v227_v44 = vld [vmem:[%s24394_s1 + $0x568] sm:$0xff]  ;;  %v15387_v48 = vcombine.high %v730_v39, %v738_v41  ;;  %v15386_v2 = vcombine.low %v730_v39, %v738_v41 }
 0x1e3   :  { %v14877_v1 = vcombine.high %v219_v43, %v227_v44  ;;  %v14876_v53 = vcombine.low %v219_v43, %v227_v44  ;;  %v659_v39 = vld [vmem:[%s24394_s1 + $0x12e8] sm:$0xff] }
 0x1e4   :  { %5356 = vmatpush1.bf16.msra.mxu0 %v15226_v49  ;;  %v714_v49 = vld [vmem:[%s24394_s1 + $0x14a0] sm:$0xff] }
 0x1e5   :  { %5397 = vmatpush1.bf16.msra.mxu1 %v14716_v57  ;;  %5357 = vmatprep.subr.bf16.mxu0 %v15467_v61  ;;  %v722_v57 = vld [vmem:[%s24394_s1 + $0x14e0] sm:$0xff]  ;;  %v203_v61 = vld [vmem:[%s24394_s1 + $0x4a8] sm:$0xff] }
 0x1e6   :  { %5398 = vmatprep.subr.bf16.mxu1 %v14957_v63  ;;  %v211_v63 = vld [vmem:[%s24394_s1 + $0x4e8] sm:$0xff]  ;;  %v15371_v3 = vcombine.high %v714_v49, %v722_v57  ;;  %v15370_v9 = vcombine.low %v714_v49, %v722_v57 }
 0x1e7   :  { %v14861_v4 = vcombine.high %v203_v61, %v211_v63  ;;  %v14860_v11 = vcombine.low %v203_v61, %v211_v63  ;;  %v387_v61 = vld [vmem:[%s24394_s1 + $0xa68] sm:$0xff] }
 0x1e8   :  { %5358 = vmatpush2.bf16.msra.mxu0 %v15466_v29  ;;  %v698_v29 = vld [vmem:[%s24394_s1 + $0x1420] sm:$0xff] }
 0x1e9   :  { %5399 = vmatpush2.bf16.msra.mxu1 %v14956_v5  ;;  %5359 = vmatprep.subr.bf16.mxu0 %v15451_v6  ;;  %v706_v5 = vld [vmem:[%s24394_s1 + $0x1460] sm:$0xff]  ;;  %v187_v6 = vld [vmem:[%s24394_s1 + $0x428] sm:$0xff] }
 0x1ea   :  { %5400 = vmatprep.subr.bf16.mxu1 %v14941_v7  ;;  %v195_v7 = vld [vmem:[%s24394_s1 + $0x468] sm:$0xff]  ;;  %v15355_v12 = vcombine.high %v698_v29, %v706_v5  ;;  %v15354_v24 = vcombine.low %v698_v29, %v706_v5 }
 0x1eb   :  { %v14845_v13 = vcombine.high %v187_v6, %v195_v7  ;;  %v14844_v25 = vcombine.low %v187_v6, %v195_v7 }
 0x1ec   :  { %5360 = vmatpush2.bf16.msra.mxu0 %v15450_v17  ;;  %v427_v17 = vld [vmem:[%s24394_s1 + $0xba8] sm:$0xff] }
 0x1ed   :  { %5401 = vmatpush2.bf16.msra.mxu1 %v14940_v18  ;;  %5361 = vmatprep.subr.bf16.mxu0 %v15435_v21  ;;  %v435_v18 = vld [vmem:[%s24394_s1 + $0xbe8] sm:$0xff] }
 0x1ee   :  { %5402 = vmatprep.subr.bf16.mxu1 %v14925_v22  ;;  %v683_v21 = vld [vmem:[%s24394_s1 + $0x13a8] sm:$0xff]  ;;  %v15085_v54 = vcombine.high %v427_v17, %v435_v18  ;;  %v15084_v34 = vcombine.low %v427_v17, %v435_v18 }
 0x1ef   :  { %v691_v22 = vld [vmem:[%s24394_s1 + $0x13e8] sm:$0xff] }
 0x1f0   :  { %5362 = vmatpush2.bf16.msra.mxu0 %v15434_v28  ;;  %v15341_v27 = vcombine.high %v683_v21, %v691_v22  ;;  %v411_v28 = vld [vmem:[%s24394_s1 + $0xb28] sm:$0xff]  ;;  %v15340_v35 = vcombine.low %v683_v21, %v691_v22 }
 0x1f1   :  { %5403 = vmatpush2.bf16.msra.mxu1 %v14924_v31  ;;  %5363 = vmatprep.subr.bf16.mxu0 %v15419_v32  ;;  %v419_v31 = vld [vmem:[%s24394_s1 + $0xb68] sm:$0xff] }
 0x1f2   :  { %5404 = vmatprep.subr.bf16.mxu1 %v14909_v33  ;;  %v667_v32 = vld [vmem:[%s24394_s1 + $0x1328] sm:$0xff]  ;;  %v15069_v36 = vcombine.high %v411_v28, %v419_v31  ;;  %v15068_v44 = vcombine.low %v411_v28, %v419_v31 }
 0x1f3   :  { %v675_v33 = vld [vmem:[%s24394_s1 + $0x1368] sm:$0xff] }
 0x1f4   :  { %5364 = vmatpush2.bf16.msra.mxu0 %v15418_v55  ;;  %v15325_v19 = vcombine.high %v667_v32, %v675_v33  ;;  %v395_v55 = vld [vmem:[%s24394_s1 + $0xaa8] sm:$0xff] }
 0x1f5   :  { %5405 = vmatpush2.bf16.msra.mxu1 %v14908_v56  ;;  %5365 = vmatprep.subr.bf16.mxu0 %v15403_v37  ;;  %v403_v56 = vld [vmem:[%s24394_s1 + $0xae8] sm:$0xff] }
 0x1f6   :  { %5406 = vmatprep.subr.bf16.mxu1 %v14893_v38  ;;  %v651_v38 = vld [vmem:[%s24394_s1 + $0x12a8] sm:$0xff] }
 0x1f7   :  { %v15309_v57 = vcombine.high %v651_v38, %v659_v39  ;;  %v15308_v29 = vcombine.low %v651_v38, %v659_v39  ;;  %v315_v39 = vld [vmem:[%s24394_s1 + $0x828] sm:$0xff] }
 0x1f8   :  { %5366 = vmatpush2.bf16.msra.mxu0 %v15402_v46 }
 0x1f9   :  { %5407 = vmatpush2.bf16.msra.mxu1 %v14892_v47  ;;  %5367 = vmatprep.subr.bf16.mxu0 %v15387_v48  ;;  %v15324_v47 = vcombine.low %v667_v32, %v675_v33  ;;  %v15053_v48 = vcombine.high %v395_v55, %v403_v56 }
 0x1fa   :  { %5408 = vmatprep.subr.bf16.mxu1 %v14877_v1 }
 0x1fc   :  { %5368 = vmatpush2.bf16.msra.mxu0 %v15386_v2  ;;  %v643_v2 = vld [vmem:[%s24394_s1 + $0x1268] sm:$0xff] }
 0x1fd   :  { %5409 = vmatpush2.bf16.msra.mxu1 %v14876_v53  ;;  %5369 = vmatprep.subr.bf16.mxu0 %v15371_v3  ;;  %v15052_v3 = vcombine.low %v395_v55, %v403_v56 }
 0x1fe   :  { %5410 = vmatprep.subr.bf16.mxu1 %v14861_v4 }
 0x200   :  { %5370 = vmatpush2.bf16.msra.mxu0 %v15370_v9  ;;  %v363_v9 = vld [vmem:[%s24394_s1 + $0x9a8] sm:$0xff] }
 0x201   :  { %5411 = vmatpush2.bf16.msra.mxu1 %v14860_v11  ;;  %5371 = vmatprep.subr.bf16.mxu0 %v15355_v12  ;;  %v371_v11 = vld [vmem:[%s24394_s1 + $0x9e8] sm:$0xff] }
 0x202   :  { %5412 = vmatprep.subr.bf16.mxu1 %v14845_v13  ;;  %v619_v12 = vld [vmem:[%s24394_s1 + $0x11a8] sm:$0xff]  ;;  %v15021_v21 = vcombine.high %v363_v9, %v371_v11  ;;  %v15020_v28 = vcombine.low %v363_v9, %v371_v11 }
 0x203   :  { %v627_v13 = vld [vmem:[%s24394_s1 + $0x11e8] sm:$0xff] }
 0x204   :  { %5372 = vmatpush2.bf16.msra.mxu0 %v15354_v24  ;;  %v15277_v22 = vcombine.high %v619_v12, %v627_v13  ;;  %v347_v24 = vld [vmem:[%s24394_s1 + $0x928] sm:$0xff]  ;;  %v15276_v31 = vcombine.low %v619_v12, %v627_v13 }
 0x205   :  { %5413 = vmatpush2.bf16.msra.mxu1 %v14844_v25  ;;  %5423 = vmatprep.subr.bf16.mxu0 %v15085_v54  ;;  %v355_v25 = vld [vmem:[%s24394_s1 + $0x968] sm:$0xff] }
 0x206   :  { %5464 = vmatprep.subr.bf16.mxu1 %v15341_v27  ;;  %v603_v54 = vld [vmem:[%s24394_s1 + $0x1128] sm:$0xff]  ;;  %v15005_v32 = vcombine.high %v347_v24, %v355_v25  ;;  %v15004_v55 = vcombine.low %v347_v24, %v355_v25 }
 0x207   :  { %v5129_v37 = vpop.f32.mrf.mxu0  ;;  %5374 = vmatmul.mubr.bf16.vlgmr.msra.gmra.mxu0 %v18698_v30  ;;  %v611_v27 = vld [vmem:[%s24394_s1 + $0x1168] sm:$0xff] }
 0x208   :  { %v19962_v41 = vadd.f32 %v5129_v37, %v19762_v40  ;;  %v19964_v43 = vpop.f32.mrf.mxu1  ;;  %5415 = vmatmul.mubr.bf16.vlgmr.msra.gmra.mxu1 %v18485_v16  ;;  %5424 = vmatpush1.bf16.msra.mxu0 %v15084_v34  ;;  %v379_v40 = vld [vmem:[%s24394_s1 + $0xa28] sm:$0xff]  ;;  %v15261_v33 = vcombine.high %v603_v54, %v611_v27  ;;  %v15260_v56 = vcombine.low %v603_v54, %v611_v27 }
 0x209   :  { %5465 = vmatpush1.bf16.msra.mxu1 %v15340_v35  ;;  %v5131_v46 = vpop.f32.mrf.mxu0  ;;  %5425 = vmatprep.subr.bf16.mxu0 %v15069_v36  ;;  %v15037_v5 = vcombine.high %v379_v40, %v387_v61  ;;  %v15036_v17 = vcombine.low %v379_v40, %v387_v61  ;;  %v331_v34 = vld [vmem:[%s24394_s1 + $0x8a8] sm:$0xff] }
 0x20a   :  { %v19968_v1 = vadd.f32 %v5131_v46, %v19778_v50  ;;  %v19970_v49 = vpop.f32.mrf.mxu1  ;;  %5466 = vmatprep.subr.bf16.mxu1 %v15325_v19  ;;  %5455 = vmatprep.mubr.bf16.mxu0 %v18359_v59  ;;  %v635_v50 = vld [vmem:[%s24394_s1 + $0x1228] sm:$0xff] }
 0x20b   :  { %v5133_v63 = vpop.f32.mrf.mxu0  ;;  %5496 = vmatprep.mubr.bf16.mxu1 %v18510_v26  ;;  %v15293_v7 = vcombine.high %v635_v50, %v643_v2  ;;  %v15292_v18 = vcombine.low %v635_v50, %v643_v2  ;;  %v339_v35 = vld [vmem:[%s24394_s1 + $0x8e8] sm:$0xff] }
 0x20c   :  { %v5174_v53 = vpop.f32.mrf.mxu1  ;;  %5426 = vmatpush1.bf16.msra.mxu0 %v15068_v44  ;;  %v587_v36 = vld [vmem:[%s24394_s1 + $0x10a8] sm:$0xff]  ;;  %v14989_v37 = vcombine.high %v331_v34, %v339_v35 }
 0x20d   :  { %5467 = vmatpush1.bf16.msra.mxu1 %v15324_v47  ;;  %v5134_v4 = vpop.f32.mrf.mxu0  ;;  %5427 = vmatprep.subr.bf16.mxu0 %v15053_v48  ;;  %v595_v19 = vld [vmem:[%s24394_s1 + $0x10e8] sm:$0xff]  ;;  %v14988_v48 = vcombine.low %v331_v34, %v339_v35 }
 0x20e   :  { %v5175_v6 = vpop.f32.mrf.mxu1  ;;  %5468 = vmatprep.subr.bf16.mxu1 %v15309_v57  ;;  %v15245_v38 = vcombine.high %v587_v36, %v595_v19  ;;  %v323_v44 = vld [vmem:[%s24394_s1 + $0x868] sm:$0xff]  ;;  %v15244_v57 = vcombine.low %v587_v36, %v595_v19 }
 0x20f   :  { %v571_v46 = vld [vmem:[%s24394_s1 + $0x1028] sm:$0xff]  ;;  %v14973_v40 = vcombine.high %v315_v39, %v323_v44 }
 0x210   :  { %5428 = vmatpush1.bf16.msra.mxu0 %v15052_v3  ;;  %v579_v47 = vld [vmem:[%s24394_s1 + $0x1068] sm:$0xff]  ;;  %v14972_v3 = vcombine.low %v315_v39, %v323_v44 }
 0x211   :  { %5469 = vmatpush1.bf16.msra.mxu1 %v15308_v29  ;;  %5429 = vmatprep.subr.bf16.mxu0 %v15037_v5  ;;  %v15229_v61 = vcombine.high %v571_v46, %v579_v47  ;;  %v555_v63 = vld [vmem:[%s24394_s1 + $0xfa8] sm:$0xff]  ;;  %v15228_v4 = vcombine.low %v571_v46, %v579_v47 }
 0x212   :  { %5470 = vmatprep.subr.bf16.mxu1 %v15293_v7  ;;  %v563_v50 = vld [vmem:[%s24394_s1 + $0xfe8] sm:$0xff] }
 0x213   :  { %v811_v2 = vld [vmem:[%s24394_s1 + $0x17a8] sm:$0xff]  ;;  %v15213_v29 = vcombine.high %v555_v63, %v563_v50  ;;  %v15212_v12 = vcombine.low %v555_v63, %v563_v50 }
 0x214   :  { %5430 = vmatpush1.bf16.msra.mxu0 %v15036_v17  ;;  %v819_v53 = vld [vmem:[%s24394_s1 + $0x17e8] sm:$0xff] }
 0x215   :  { %5471 = vmatpush1.bf16.msra.mxu1 %v15292_v18  ;;  %5431 = vmatprep.subr.bf16.mxu0 %v15021_v21  ;;  %v15469_v5 = vcombine.high %v811_v2, %v819_v53  ;;  %v539_v6 = vld [vmem:[%s24394_s1 + $0xf28] sm:$0xff]  ;;  %v15468_v13 = vcombine.low %v811_v2, %v819_v53 }
 0x216   :  { %5472 = vmatprep.subr.bf16.mxu1 %v15277_v22  ;;  %v547_v7 = vld [vmem:[%s24394_s1 + $0xf68] sm:$0xff] }
 0x217   :  { %v795_v9 = vld [vmem:[%s24394_s1 + $0x1728] sm:$0xff]  ;;  %v15197_v17 = vcombine.high %v539_v6, %v547_v7  ;;  %v15196_v54 = vcombine.low %v539_v6, %v547_v7 }
 0x218   :  { %5432 = vmatpush1.bf16.msra.mxu0 %v15020_v28  ;;  %v803_v11 = vld [vmem:[%s24394_s1 + $0x1768] sm:$0xff] }
 0x219   :  { %5473 = vmatpush1.bf16.msra.mxu1 %v15276_v31  ;;  %5433 = vmatprep.subr.bf16.mxu0 %v15005_v32  ;;  %v15453_v18 = vcombine.high %v795_v9, %v803_v11  ;;  %v523_v21 = vld [vmem:[%s24394_s1 + $0xea8] sm:$0xff]  ;;  %v15452_v27 = vcombine.low %v795_v9, %v803_v11 }
 0x21a   :  { %5474 = vmatprep.subr.bf16.mxu1 %v15261_v33  ;;  %v531_v22 = vld [vmem:[%s24394_s1 + $0xee8] sm:$0xff] }
 0x21b   :  { %v779_v24 = vld [vmem:[%s24394_s1 + $0x16a8] sm:$0xff]  ;;  %v15181_v28 = vcombine.high %v523_v21, %v531_v22  ;;  %v15180_v36 = vcombine.low %v523_v21, %v531_v22 }
 0x21c   :  { %5434 = vmatpush1.bf16.msra.mxu0 %v15004_v55  ;;  %v787_v25 = vld [vmem:[%s24394_s1 + $0x16e8] sm:$0xff] }
 0x21d   :  { %5475 = vmatpush1.bf16.msra.mxu1 %v15260_v56  ;;  %5435 = vmatprep.subr.bf16.mxu0 %v14989_v37  ;;  %v15437_v31 = vcombine.high %v779_v24, %v787_v25  ;;  %v507_v32 = vld [vmem:[%s24394_s1 + $0xe28] sm:$0xff]  ;;  %v15436_v19 = vcombine.low %v779_v24, %v787_v25 }
 0x21e   :  { %5476 = vmatprep.subr.bf16.mxu1 %v15245_v38  ;;  %v515_v33 = vld [vmem:[%s24394_s1 + $0xe68] sm:$0xff] }
 0x21f   :  { %v763_v34 = vld [vmem:[%s24394_s1 + $0x1628] sm:$0xff]  ;;  %v15165_v55 = vcombine.high %v507_v32, %v515_v33  ;;  %v15164_v46 = vcombine.low %v507_v32, %v515_v33  ;;  %v180_v32 = vld [vmem:[%s24394_s1 + $0x3f0] sm:$0xff] }
 0x220   :  { %5436 = vmatpush1.bf16.msra.mxu0 %v14988_v48  ;;  %v771_v35 = vld [vmem:[%s24394_s1 + $0x1668] sm:$0xff]  ;;  %v428_v33 = vld [vmem:[%s24394_s1 + $0xbb0] sm:$0xff] }
 0x221   :  { %5477 = vmatpush1.bf16.msra.mxu1 %v15244_v57  ;;  %5437 = vmatprep.subr.bf16.mxu0 %v14973_v40  ;;  %v15421_v56 = vcombine.high %v763_v34, %v771_v35  ;;  %v491_v37 = vld [vmem:[%s24394_s1 + $0xda8] sm:$0xff]  ;;  %v15420_v47 = vcombine.low %v763_v34, %v771_v35  ;;  %v436_v34 = vld [vmem:[%s24394_s1 + $0xbf0] sm:$0xff]  ;;  %v20146_v35 = vsub.s32 7, %v19074_v42 }
 0x222   :  { %5478 = vmatprep.subr.bf16.mxu1 %v15229_v61  ;;  %v499_v38 = vld [vmem:[%s24394_s1 + $0xde8] sm:$0xff] }
 0x223   :  { %v747_v39 = vld [vmem:[%s24394_s1 + $0x15a8] sm:$0xff]  ;;  %v15149_v48 = vcombine.high %v491_v37, %v499_v38  ;;  %v15148_v2 = vcombine.low %v491_v37, %v499_v38  ;;  %v15087_v37 = vcombine.high %v428_v33, %v436_v34  ;;  %v156_v38 = vld [vmem:[%s24394_s1 + $0x330] sm:$0xff] }
 0x224   :  { %5438 = vmatpush1.bf16.msra.mxu0 %v14972_v3  ;;  %v755_v44 = vld [vmem:[%s24394_s1 + $0x15e8] sm:$0xff] }
 0x225   :  { %5479 = vmatpush1.bf16.msra.mxu1 %v15228_v4  ;;  %5439 = vmatprep.subr.bf16.mxu0 %v15213_v29  ;;  %v15405_v57 = vcombine.high %v747_v39, %v755_v44  ;;  %v475_v40 = vld [vmem:[%s24394_s1 + $0xd28] sm:$0xff]  ;;  %v15404_v53 = vcombine.low %v747_v39, %v755_v44  ;;  %v412_v39 = vld [vmem:[%s24394_s1 + $0xb30] sm:$0xff] }
 0x226   :  { %5480 = vmatprep.subr.bf16.mxu1 %v15469_v5  ;;  %v483_v61 = vld [vmem:[%s24394_s1 + $0xd68] sm:$0xff]  ;;  %v420_v44 = vld [vmem:[%s24394_s1 + $0xb70] sm:$0xff] }
 0x227   :  { %v731_v63 = vld [vmem:[%s24394_s1 + $0x1528] sm:$0xff]  ;;  %v15133_v3 = vcombine.high %v475_v40, %v483_v61  ;;  %v15132_v9 = vcombine.low %v475_v40, %v483_v61  ;;  %v15071_v61 = vcombine.high %v412_v39, %v420_v44 }
 0x228   :  { %5440 = vmatpush2.bf16.msra.mxu0 %v15212_v12  ;;  %v739_v50 = vld [vmem:[%s24394_s1 + $0x1568] sm:$0xff] }
 0x229   :  { %5481 = vmatpush2.bf16.msra.mxu1 %v15468_v13  ;;  %5441 = vmatprep.subr.bf16.mxu0 %v15197_v17  ;;  %v15389_v4 = vcombine.high %v731_v63, %v739_v50  ;;  %v459_v29 = vld [vmem:[%s24394_s1 + $0xca8] sm:$0xff]  ;;  %v15388_v11 = vcombine.low %v731_v63, %v739_v50  ;;  %v140_v63 = vld [vmem:[%s24394_s1 + $0x2b0] sm:$0xff] }
 0x22a   :  { %5482 = vmatprep.subr.bf16.mxu1 %v15453_v18  ;;  %v467_v5 = vld [vmem:[%s24394_s1 + $0xce8] sm:$0xff]  ;;  %v148_v50 = vld [vmem:[%s24394_s1 + $0x2f0] sm:$0xff] }
 0x22b   :  { %v715_v6 = vld [vmem:[%s24394_s1 + $0x14a8] sm:$0xff]  ;;  %v15117_v12 = vcombine.high %v459_v29, %v467_v5  ;;  %v15116_v24 = vcombine.low %v459_v29, %v467_v5 }
 0x22c   :  { %5442 = vmatpush2.bf16.msra.mxu0 %v15196_v54  ;;  %v723_v7 = vld [vmem:[%s24394_s1 + $0x14e8] sm:$0xff] }
 0x22d   :  { %5483 = vmatpush2.bf16.msra.mxu1 %v15452_v27  ;;  %5443 = vmatprep.subr.bf16.mxu0 %v15181_v28  ;;  %v15373_v13 = vcombine.high %v715_v6, %v723_v7  ;;  %v443_v17 = vld [vmem:[%s24394_s1 + $0xc28] sm:$0xff]  ;;  %v15372_v25 = vcombine.low %v715_v6, %v723_v7  ;;  %v20131_v27 = vsub.s32 6, %v19074_v42  ;;  %v164_v42 = vld [vmem:[%s24394_s1 + $0x370] sm:$0xff]  ;;  %v15070_v6 = vcombine.low %v412_v39, %v420_v44 }
 0x22e   :  { %5484 = vmatprep.subr.bf16.mxu1 %v15437_v31  ;;  %v451_v18 = vld [vmem:[%s24394_s1 + $0xc68] sm:$0xff]  ;;  %v172_v31 = vld [vmem:[%s24394_s1 + $0x3b0] sm:$0xff]  ;;  %v14814_v29 = vcombine.low %v156_v38, %v164_v42  ;;  %v14799_v7 = vcombine.high %v140_v63, %v148_v50 }
 0x22f   :  { %v699_v21 = vld [vmem:[%s24394_s1 + $0x1428] sm:$0xff]  ;;  %v15101_v54 = vcombine.high %v443_v17, %v451_v18  ;;  %v92_v44 = vld [vmem:[%s24394_s1 + $0x130] sm:$0xff] }
 0x230   :  { %5444 = vmatpush2.bf16.msra.mxu0 %v15180_v36  ;;  %v707_v22 = vld [vmem:[%s24394_s1 + $0x1468] sm:$0xff]  ;;  %v15100_v36 = vcombine.low %v443_v17, %v451_v18  ;;  %v132_v17 = vld [vmem:[%s24394_s1 + $0x270] sm:$0xff] }
 0x231   :  { %5485 = vmatpush2.bf16.msra.mxu1 %v15436_v19  ;;  %5445 = vmatprep.subr.bf16.mxu0 %v15165_v55  ;;  %v15357_v28 = vcombine.high %v699_v21, %v707_v22  ;;  %v15356_v19 = vcombine.low %v699_v21, %v707_v22  ;;  %v14831_v55 = vcombine.high %v172_v31, %v180_v32  ;;  %v380_v21 = vld [vmem:[%s24394_s1 + $0xa30] sm:$0xff] }
 0x232   :  { %5486 = vmatprep.subr.bf16.mxu1 %v15421_v56  ;;  %v853_v56 = vrot.slane %v19742_v23, %v20131_v27  ;;  %v388_v22 = vld [vmem:[%s24394_s1 + $0xa70] sm:$0xff] }
 0x234   :  { %5446 = vmatpush2.bf16.msra.mxu0 %v15164_v46  ;;  %v857_v46 = vrot.slane %v19742_v23, %v20146_v35  ;;  %v5171_v40 = vadd.f32 %v19964_v43, %v853_v56  ;;  %v396_v23 = vld [vmem:[%s24394_s1 + $0xab0] sm:$0xff] }
 0x235   :  { %5487 = vmatpush2.bf16.msra.mxu1 %v15420_v47  ;;  %5447 = vmatprep.subr.bf16.mxu0 %v15149_v48  ;;  %v14830_v47 = vcombine.low %v172_v31, %v180_v32  ;;  %v15086_v48 = vcombine.low %v428_v33, %v436_v34  ;;  %v404_v43 = vld [vmem:[%s24394_s1 + $0xaf0] sm:$0xff]  ;;  %v15039_v34 = vcombine.high %v380_v21, %v388_v22 }
 0x236   :  { %5488 = vmatprep.subr.bf16.mxu1 %v15405_v57  ;;  %v14815_v57 = vcombine.high %v156_v38, %v164_v42  ;;  %v15054_v31 = vcombine.low %v396_v23, %v404_v43  ;;  %v372_v56 = vld [vmem:[%s24394_s1 + $0x9f0] sm:$0xff]  ;;  %v15038_v38 = vcombine.low %v380_v21, %v388_v22 }
 0x237   :  { %v308_v21 = vld [vmem:[%s24394_s1 + $0x7f0] sm:$0xff] }
 0x238   :  { %5448 = vmatpush2.bf16.msra.mxu0 %v15148_v2  ;;  %v556_v22 = vld [vmem:[%s24394_s1 + $0xfb0] sm:$0xff] }
 0x239   :  { %5489 = vmatpush2.bf16.msra.mxu1 %v15404_v53  ;;  %5449 = vmatprep.subr.bf16.mxu0 %v15133_v3  ;;  %v5173_v53 = vadd.f32 %v19970_v49, %v857_v46  ;;  %v124_v49 = vld [vmem:[%s24394_s1 + $0x230] sm:$0xff] }
 0x23a   :  { %5490 = vmatprep.subr.bf16.mxu1 %v15389_v4  ;;  %v14783_v32 = vcombine.high %v124_v49, %v132_v17  ;;  %v100_v46 = vld [vmem:[%s24394_s1 + $0x170] sm:$0xff] }
 0x23c   :  { %5450 = vmatpush2.bf16.msra.mxu0 %v15132_v9 }
 0x23d   :  { %5491 = vmatpush2.bf16.msra.mxu1 %v15388_v11  ;;  %5451 = vmatprep.subr.bf16.mxu0 %v15117_v12 }
 0x23e   :  { %5492 = vmatprep.subr.bf16.mxu1 %v15373_v13  ;;  %v15055_v13 = vcombine.high %v396_v23, %v404_v43  ;;  %v332_v23 = vld [vmem:[%s24394_s1 + $0x8b0] sm:$0xff] }
 0x23f   :  { %v340_v43 = vld [vmem:[%s24394_s1 + $0x8f0] sm:$0xff] }
 0x240   :  { %5452 = vmatpush2.bf16.msra.mxu0 %v15116_v24 }
 0x241   :  { %5493 = vmatpush2.bf16.msra.mxu1 %v15372_v25  ;;  %5453 = vmatprep.subr.bf16.mxu0 %v15101_v54  ;;  %v14798_v54 = vcombine.low %v140_v63, %v148_v50  ;;  %v76_v50 = vld [vmem:[%s24394_s1 + $0xb0] sm:$0xff] }
 0x242   :  { %5494 = vmatprep.subr.bf16.mxu1 %v15357_v28 }
 0x244   :  { %5454 = vmatpush2.bf16.msra.mxu0 %v15100_v36  ;;  %v108_v36 = vld [vmem:[%s24394_s1 + $0x1b0] sm:$0xff] }
 0x245   :  { %5495 = vmatpush2.bf16.msra.mxu1 %v15356_v19  ;;  %5505 = vmatprep.subr.bf16.mxu0 %v14831_v55  ;;  %v116_v19 = vld [vmem:[%s24394_s1 + $0x1f0] sm:$0xff] }
 0x246   :  { %5546 = vmatprep.subr.bf16.mxu1 %v15087_v37  ;;  %v364_v55 = vld [vmem:[%s24394_s1 + $0x9b0] sm:$0xff]  ;;  %v14782_v37 = vcombine.low %v124_v49, %v132_v17  ;;  %v14767_v42 = vcombine.high %v108_v36, %v116_v19 }
 0x247   :  { %v5211_v2 = vpop.f32.mrf.mxu0  ;;  %5456 = vmatmul.mubr.bf16.vlgmr.msra.gmra.mxu0 %v18500_v20  ;;  %v15023_v39 = vcombine.high %v364_v55, %v372_v56 }
 0x248   :  { %v5212_v3 = vadd.f32 %v5211_v2, %v5171_v40  ;;  %v5252_v4 = vpop.f32.mrf.mxu1  ;;  %5497 = vmatmul.mubr.bf16.vlgmr.msra.gmra.mxu1 %v18698_v30  ;;  %5506 = vmatpush1.bf16.msra.mxu0 %v14830_v47  ;;  %v348_v47 = vld [vmem:[%s24394_s1 + $0x930] sm:$0xff]  ;;  %v15022_v40 = vcombine.low %v364_v55, %v372_v56 }
 0x249   :  { %5547 = vmatpush1.bf16.msra.mxu1 %v15086_v48  ;;  %v5213_v5 = vpop.f32.mrf.mxu0  ;;  %5507 = vmatprep.subr.bf16.mxu0 %v14815_v57  ;;  %v356_v48 = vld [vmem:[%s24394_s1 + $0x970] sm:$0xff]  ;;  %v14766_v57 = vcombine.low %v108_v36, %v116_v19 }
 0x24a   :  { %v20180_v9 = vadd.f32 %v5252_v4, %v5212_v3  ;;  %v5214_v11 = vadd.f32 %v5213_v5, %v5173_v53  ;;  %v5254_v12 = vpop.f32.mrf.mxu1  ;;  %5548 = vmatprep.subr.bf16.mxu1 %v15071_v61  ;;  %5537 = vmatprep.mubr.bf16.mxu0 %v18355_v58  ;;  %v14751_v61 = vcombine.high %v92_v44, %v100_v46  ;;  %v84_v2 = vld [vmem:[%s24394_s1 + $0xf0] sm:$0xff] }
 0x24b   :  { %v5215_v18 = vpop.f32.mrf.mxu0  ;;  %5578 = vmatprep.mubr.bf16.mxu1 %v18359_v59  ;;  %v15007_v63 = vcombine.high %v348_v47, %v356_v48  ;;  %v14750_v53 = vcombine.low %v92_v44, %v100_v46  ;;  %v15006_v3 = vcombine.low %v348_v47, %v356_v48  ;;  %v14735_v4 = vcombine.high %v76_v50, %v84_v2  ;;  %v60_v5 = vld [vmem:[%s24394_s1 + $0x30] sm:$0xff] }
 0x24c   :  { %v20196_v24 = vadd.f32 %v5254_v12, %v5214_v11  ;;  %v5256_v25 = vpop.f32.mrf.mxu1  ;;  %5508 = vmatpush1.bf16.msra.mxu0 %v14814_v29  ;;  %v14991_v29 = vcombine.high %v332_v23, %v340_v43  ;;  %v324_v11 = vld [vmem:[%s24394_s1 + $0x870] sm:$0xff]  ;;  %v14734_v12 = vcombine.low %v76_v50, %v84_v2 }
 0x24d   :  { %5549 = vmatpush1.bf16.msra.mxu1 %v15070_v6  ;;  %v5216_v28 = vpop.f32.mrf.mxu0  ;;  %5509 = vmatprep.subr.bf16.mxu0 %v14799_v7  ;;  %v68_v6 = vld [vmem:[%s24394_s1 + $0x70] sm:$0xff] }
 0x24e   :  { %v5257_v33 = vpop.f32.mrf.mxu1  ;;  %5550 = vmatprep.subr.bf16.mxu1 %v15055_v13  ;;  %v316_v7 = vld [vmem:[%s24394_s1 + $0x830] sm:$0xff]  ;;  %v14990_v13 = vcombine.low %v332_v23, %v340_v43  ;;  %v14719_v49 = vcombine.high %v60_v5, %v68_v6 }
 0x24f   :  { %v14975_v17 = vcombine.high %v316_v7, %v324_v11  ;;  %v300_v18 = vld [vmem:[%s24394_s1 + $0x7b0] sm:$0xff]  ;;  %v14974_v28 = vcombine.low %v316_v7, %v324_v11 }
 0x250   :  { %5510 = vmatpush1.bf16.msra.mxu0 %v14798_v54  ;;  %v564_v25 = vld [vmem:[%s24394_s1 + $0xff0] sm:$0xff]  ;;  %v14718_v54 = vcombine.low %v60_v5, %v68_v6  ;;  %v14958_v55 = vcombine.low %v300_v18, %v308_v21 }
 0x251   :  { %5551 = vmatpush1.bf16.msra.mxu1 %v15054_v31  ;;  %5511 = vmatprep.subr.bf16.mxu0 %v14783_v32  ;;  %v14959_v31 = vcombine.high %v300_v18, %v308_v21  ;;  %v15215_v32 = vcombine.high %v556_v22, %v564_v25  ;;  %v284_v33 = vld [vmem:[%s24394_s1 + $0x730] sm:$0xff]  ;;  %v15214_v56 = vcombine.low %v556_v22, %v564_v25 }
 0x252   :  { %5552 = vmatprep.subr.bf16.mxu1 %v15039_v34  ;;  %v292_v34 = vld [vmem:[%s24394_s1 + $0x770] sm:$0xff] }
 0x253   :  { %v540_v36 = vld [vmem:[%s24394_s1 + $0xf30] sm:$0xff]  ;;  %v14942_v47 = vcombine.low %v284_v33, %v292_v34 }
 0x254   :  { %5512 = vmatpush1.bf16.msra.mxu0 %v14782_v37  ;;  %v548_v19 = vld [vmem:[%s24394_s1 + $0xf70] sm:$0xff]  ;;  %v14943_v37 = vcombine.high %v284_v33, %v292_v34 }
 0x255   :  { %5553 = vmatpush1.bf16.msra.mxu1 %v15038_v38  ;;  %5513 = vmatprep.subr.bf16.mxu0 %v14767_v42  ;;  %v15199_v38 = vcombine.high %v540_v36, %v548_v19  ;;  %v268_v42 = vld [vmem:[%s24394_s1 + $0x6b0] sm:$0xff]  ;;  %v15198_v48 = vcombine.low %v540_v36, %v548_v19 }
 0x256   :  { %5554 = vmatprep.subr.bf16.mxu1 %v15023_v39  ;;  %v276_v39 = vld [vmem:[%s24394_s1 + $0x6f0] sm:$0xff] }
 0x257   :  { %v524_v44 = vld [vmem:[%s24394_s1 + $0xeb0] sm:$0xff]  ;;  %v14926_v23 = vcombine.low %v268_v42, %v276_v39 }
 0x258   :  { %5514 = vmatpush1.bf16.msra.mxu0 %v14766_v57  ;;  %v532_v46 = vld [vmem:[%s24394_s1 + $0xef0] sm:$0xff]  ;;  %v14927_v57 = vcombine.high %v268_v42, %v276_v39 }
 0x259   :  { %5555 = vmatpush1.bf16.msra.mxu1 %v15022_v40  ;;  %5515 = vmatprep.subr.bf16.mxu0 %v14751_v61  ;;  %v15183_v40 = vcombine.high %v524_v44, %v532_v46  ;;  %v252_v61 = vld [vmem:[%s24394_s1 + $0x630] sm:$0xff]  ;;  %v15182_v43 = vcombine.low %v524_v44, %v532_v46 }
 0x25a   :  { %5556 = vmatprep.subr.bf16.mxu1 %v15007_v63  ;;  %v260_v63 = vld [vmem:[%s24394_s1 + $0x670] sm:$0xff] }
 0x25b   :  { %v508_v50 = vld [vmem:[%s24394_s1 + $0xe30] sm:$0xff]  ;;  %v14910_v7 = vcombine.low %v252_v61, %v260_v63 }
 0x25c   :  { %5516 = vmatpush1.bf16.msra.mxu0 %v14750_v53  ;;  %v516_v2 = vld [vmem:[%s24394_s1 + $0xe70] sm:$0xff]  ;;  %v14911_v53 = vcombine.high %v252_v61, %v260_v63  ;;  %v173_v61 = vld [vmem:[%s24394_s1 + $0x3b8] sm:$0xff] }
 0x25d   :  { %5557 = vmatpush1.bf16.msra.mxu1 %v15006_v3  ;;  %5517 = vmatprep.subr.bf16.mxu0 %v14735_v4  ;;  %v15167_v3 = vcombine.high %v508_v50, %v516_v2  ;;  %v236_v4 = vld [vmem:[%s24394_s1 + $0x5b0] sm:$0xff]  ;;  %v15166_v11 = vcombine.low %v508_v50, %v516_v2  ;;  %v181_v63 = vld [vmem:[%s24394_s1 + $0x3f8] sm:$0xff] }
 0x25e   :  { %5558 = vmatprep.subr.bf16.mxu1 %v14991_v29  ;;  %v244_v29 = vld [vmem:[%s24394_s1 + $0x5f0] sm:$0xff] }
 0x25f   :  { %v492_v5 = vld [vmem:[%s24394_s1 + $0xdb0] sm:$0xff]  ;;  %v14894_v22 = vcombine.low %v236_v4, %v244_v29 }
 0x260   :  { %5518 = vmatpush1.bf16.msra.mxu0 %v14734_v12  ;;  %v500_v6 = vld [vmem:[%s24394_s1 + $0xdf0] sm:$0xff]  ;;  %v14895_v12 = vcombine.high %v236_v4, %v244_v29  ;;  %v157_v29 = vld [vmem:[%s24394_s1 + $0x338] sm:$0xff] }
 0x261   :  { %5559 = vmatpush1.bf16.msra.mxu1 %v14990_v13  ;;  %5519 = vmatprep.subr.bf16.mxu0 %v14719_v49  ;;  %v15151_v13 = vcombine.high %v492_v5, %v500_v6  ;;  %v220_v49 = vld [vmem:[%s24394_s1 + $0x530] sm:$0xff]  ;;  %v15150_v25 = vcombine.low %v492_v5, %v500_v6  ;;  %v165_v5 = vld [vmem:[%s24394_s1 + $0x378] sm:$0xff] }
 0x262   :  { %5560 = vmatprep.subr.bf16.mxu1 %v14975_v17  ;;  %v228_v17 = vld [vmem:[%s24394_s1 + $0x570] sm:$0xff] }
 0x263   :  { %v476_v18 = vld [vmem:[%s24394_s1 + $0xd30] sm:$0xff]  ;;  %v14878_v36 = vcombine.low %v220_v49, %v228_v17 }
 0x264   :  { %5520 = vmatpush1.bf16.msra.mxu0 %v14718_v54  ;;  %v484_v21 = vld [vmem:[%s24394_s1 + $0xd70] sm:$0xff]  ;;  %v14879_v54 = vcombine.high %v220_v49, %v228_v17 }
 0x265   :  { %5561 = vmatpush1.bf16.msra.mxu1 %v14974_v28  ;;  %5521 = vmatprep.subr.bf16.mxu0 %v14959_v31  ;;  %v15135_v28 = vcombine.high %v476_v18, %v484_v21  ;;  %v204_v31 = vld [vmem:[%s24394_s1 + $0x4b0] sm:$0xff]  ;;  %v15134_v19 = vcombine.low %v476_v18, %v484_v21  ;;  %v14817_v18 = vcombine.high %v157_v29, %v165_v5  ;;  %v141_v21 = vld [vmem:[%s24394_s1 + $0x2b8] sm:$0xff] }
 0x266   :  { %5562 = vmatprep.subr.bf16.mxu1 %v15215_v32  ;;  %v212_v32 = vld [vmem:[%s24394_s1 + $0x4f0] sm:$0xff] }
 0x267   :  { %v460_v33 = vld [vmem:[%s24394_s1 + $0xcb0] sm:$0xff]  ;;  %v14862_v44 = vcombine.low %v204_v31, %v212_v32 }
 0x268   :  { %5522 = vmatpush2.bf16.msra.mxu0 %v14958_v55  ;;  %v468_v34 = vld [vmem:[%s24394_s1 + $0xcf0] sm:$0xff]  ;;  %v14863_v55 = vcombine.high %v204_v31, %v212_v32 }
 0x269   :  { %5563 = vmatpush2.bf16.msra.mxu1 %v15214_v56  ;;  %5523 = vmatprep.subr.bf16.mxu0 %v14943_v37  ;;  %v15119_v56 = vcombine.high %v460_v33, %v468_v34  ;;  %v188_v37 = vld [vmem:[%s24394_s1 + $0x430] sm:$0xff]  ;;  %v15118_v46 = vcombine.low %v460_v33, %v468_v34  ;;  %v14816_v34 = vcombine.low %v157_v29, %v165_v5 }
 0x26a   :  { %5564 = vmatprep.subr.bf16.mxu1 %v15199_v38  ;;  %v196_v38 = vld [vmem:[%s24394_s1 + $0x470] sm:$0xff] }
 0x26b   :  { %v444_v42 = vld [vmem:[%s24394_s1 + $0xc30] sm:$0xff]  ;;  %v14846_v50 = vcombine.low %v188_v37, %v196_v38 }
 0x26c   :  { %5524 = vmatpush2.bf16.msra.mxu0 %v14942_v47  ;;  %v452_v39 = vld [vmem:[%s24394_s1 + $0xc70] sm:$0xff]  ;;  %v14847_v47 = vcombine.high %v188_v37, %v196_v38 }
 0x26d   :  { %5565 = vmatpush2.bf16.msra.mxu1 %v15198_v48  ;;  %5525 = vmatprep.subr.bf16.mxu0 %v14927_v57  ;;  %v15103_v48 = vcombine.high %v444_v42, %v452_v39  ;;  %v684_v57 = vld [vmem:[%s24394_s1 + $0x13b0] sm:$0xff]  ;;  %v15102_v2 = vcombine.low %v444_v42, %v452_v39  ;;  %v125_v39 = vld [vmem:[%s24394_s1 + $0x238] sm:$0xff] }
 0x26e   :  { %5566 = vmatprep.subr.bf16.mxu1 %v15183_v40  ;;  %v692_v40 = vld [vmem:[%s24394_s1 + $0x13f0] sm:$0xff] }
 0x26f   :  { %v676_v4 = vld [vmem:[%s24394_s1 + $0x1370] sm:$0xff] }
 0x270   :  { %5526 = vmatpush2.bf16.msra.mxu0 %v14926_v23  ;;  %v823_v23 = vld [vmem:[%s24396_s2 + $0x8] sm:$0xff]  ;;  %v660_v49 = vld [vmem:[%s24394_s1 + $0x12f0] sm:$0xff] }
 0x271   :  { %5567 = vmatpush2.bf16.msra.mxu1 %v15182_v43  ;;  %5527 = vmatprep.subr.bf16.mxu0 %v14911_v53  ;;  %v15343_v43 = vcombine.high %v684_v57, %v692_v40  ;;  %v14833_v53 = vcombine.high %v173_v61, %v181_v63  ;;  %v861_v6 = vrot.slane %v823_v23, %v19089_v51  ;;  %v636_v32 = vld [vmem:[%s24394_s1 + $0x1230] sm:$0xff] }
 0x272   :  { %5568 = vmatprep.subr.bf16.mxu1 %v15167_v3  ;;  %v668_v3 = vld [vmem:[%s24394_s1 + $0x1330] sm:$0xff]  ;;  %v865_v17 = vrot.slane %v823_v23, %v19097_v60  ;;  %v109_v23 = vld [vmem:[%s24394_s1 + $0x1b8] sm:$0xff] }
 0x273   :  { %v15326_v31 = vcombine.low %v668_v3, %v676_v4  ;;  %v612_v5 = vld [vmem:[%s24394_s1 + $0x1170] sm:$0xff] }
 0x274   :  { %5528 = vmatpush2.bf16.msra.mxu0 %v14910_v7  ;;  %v15342_v7 = vcombine.low %v684_v57, %v692_v40  ;;  %v620_v57 = vld [vmem:[%s24394_s1 + $0x11b0] sm:$0xff] }
 0x275   :  { %5569 = vmatpush2.bf16.msra.mxu1 %v15166_v11  ;;  %5529 = vmatprep.subr.bf16.mxu0 %v14895_v12  ;;  %v14832_v11 = vcombine.low %v173_v61, %v181_v63  ;;  %v15327_v12 = vcombine.high %v668_v3, %v676_v4  ;;  %v604_v3 = vld [vmem:[%s24394_s1 + $0x1130] sm:$0xff] }
 0x276   :  { %5570 = vmatprep.subr.bf16.mxu1 %v15151_v13  ;;  %v652_v13 = vld [vmem:[%s24394_s1 + $0x12b0] sm:$0xff] }
 0x278   :  { %5530 = vmatpush2.bf16.msra.mxu0 %v14894_v22 }
 0x279   :  { %5571 = vmatpush2.bf16.msra.mxu1 %v15150_v25  ;;  %5531 = vmatprep.subr.bf16.mxu0 %v14879_v54  ;;  %v149_v25 = vld [vmem:[%s24394_s1 + $0x2f8] sm:$0xff] }
 0x27a   :  { %5572 = vmatprep.subr.bf16.mxu1 %v15135_v28  ;;  %v14801_v38 = vcombine.high %v141_v21, %v149_v25  ;;  %v14800_v61 = vcombine.low %v141_v21, %v149_v25  ;;  %v85_v25 = vld [vmem:[%s24394_s1 + $0xf8] sm:$0xff] }
 0x27c   :  { %5532 = vmatpush2.bf16.msra.mxu0 %v14878_v36  ;;  %v15311_v36 = vcombine.high %v652_v13, %v660_v49 }
 0x27d   :  { %5573 = vmatpush2.bf16.msra.mxu1 %v15134_v19  ;;  %5533 = vmatprep.subr.bf16.mxu0 %v14863_v55  ;;  %v644_v19 = vld [vmem:[%s24394_s1 + $0x1270] sm:$0xff] }
 0x27e   :  { %5574 = vmatprep.subr.bf16.mxu1 %v15119_v56  ;;  %v15295_v63 = vcombine.high %v636_v32, %v644_v19 }
 0x280   :  { %5534 = vmatpush2.bf16.msra.mxu0 %v14862_v44  ;;  %v133_v44 = vld [vmem:[%s24394_s1 + $0x278] sm:$0xff] }
 0x281   :  { %5575 = vmatpush2.bf16.msra.mxu1 %v15118_v46  ;;  %5535 = vmatprep.subr.bf16.mxu0 %v14847_v47  ;;  %v14784_v4 = vcombine.low %v125_v39, %v133_v44 }
 0x282   :  { %5576 = vmatprep.subr.bf16.mxu1 %v15103_v48  ;;  %v15310_v48 = vcombine.low %v652_v13, %v660_v49  ;;  %v588_v13 = vld [vmem:[%s24394_s1 + $0x10b0] sm:$0xff] }
 0x284   :  { %5536 = vmatpush2.bf16.msra.mxu0 %v14846_v50  ;;  %v628_v50 = vld [vmem:[%s24394_s1 + $0x11f0] sm:$0xff] }
 0x285   :  { %5577 = vmatpush2.bf16.msra.mxu1 %v15102_v2  ;;  %5587 = vmatprep.subr.bf16.mxu0 %v15343_v43  ;;  %v117_v43 = vld [vmem:[%s24394_s1 + $0x1f8] sm:$0xff]  ;;  %v15279_v29 = vcombine.high %v620_v57, %v628_v50 }
 0x286   :  { %5628 = vmatprep.subr.bf16.mxu1 %v14833_v53  ;;  %v15294_v53 = vcombine.low %v636_v32, %v644_v19  ;;  %v14768_v49 = vcombine.low %v109_v23, %v117_v43  ;;  %v69_v19 = vld [vmem:[%s24394_s1 + $0x78] sm:$0xff] }
 0x287   :  { %v5293_v22 = vpop.f32.mrf.mxu0  ;;  %5538 = vmatmul.mubr.bf16.vlgmr.msra.gmra.mxu0 %v18485_v16 }
 0x288   :  { %v5294_v54 = vadd.f32 %v5293_v22, %v861_v6  ;;  %v5334_v28 = vpop.f32.mrf.mxu1  ;;  %5579 = vmatmul.mubr.bf16.vlgmr.msra.gmra.mxu1 %v18500_v20  ;;  %5588 = vmatpush1.bf16.msra.mxu0 %v15342_v7  ;;  %v14769_v6 = vcombine.high %v109_v23, %v117_v43  ;;  %v93_v7 = vld [vmem:[%s24394_s1 + $0x138] sm:$0xff] }
 0x289   :  { %5629 = vmatpush1.bf16.msra.mxu1 %v14832_v11  ;;  %v5295_v33 = vpop.f32.mrf.mxu0  ;;  %5589 = vmatprep.subr.bf16.mxu0 %v15327_v12  ;;  %v101_v11 = vld [vmem:[%s24394_s1 + $0x178] sm:$0xff]  ;;  %v15278_v12 = vcombine.low %v620_v57, %v628_v50  ;;  %v804_v50 = vld [vmem:[%s24394_s1 + $0x1770] sm:$0xff] }
 0x28a   :  { %v20391_v55 = vadd.f32 %v5334_v28, %v5294_v54  ;;  %v5296_v56 = vadd.f32 %v5295_v33, %v865_v17  ;;  %v5336_v37 = vpop.f32.mrf.mxu1  ;;  %5630 = vmatprep.subr.bf16.mxu1 %v14817_v18  ;;  %5619 = vmatprep.mubr.bf16.mxu0 %v18510_v26  ;;  %v15263_v17 = vcombine.high %v604_v3, %v612_v5  ;;  %v596_v18 = vld [vmem:[%s24394_s1 + $0x10f0] sm:$0xff]  ;;  %v77_v22 = vld [vmem:[%s24394_s1 + $0xb8] sm:$0xff] }
 0x28b   :  { %v5297_v42 = vpop.f32.mrf.mxu0  ;;  %5660 = vmatprep.mubr.bf16.mxu1 %v18355_v58  ;;  %v14785_v58 = vcombine.high %v125_v39, %v133_v44  ;;  %v14753_v21 = vcombine.high %v93_v7, %v101_v11  ;;  %v15262_v54 = vcombine.low %v604_v3, %v612_v5  ;;  %v572_v28 = vld [vmem:[%s24394_s1 + $0x1030] sm:$0xff]  ;;  %v15247_v32 = vcombine.high %v588_v13, %v596_v18  ;;  %v293_v23 = vld [vmem:[%s24394_s1 + $0x778] sm:$0xff] }
 0x28c   :  { %v20401_v46 = vadd.f32 %v5336_v37, %v5296_v56  ;;  %v5338_v47 = vpop.f32.mrf.mxu1  ;;  %5590 = vmatpush1.bf16.msra.mxu0 %v15326_v31  ;;  %v14752_v31 = vcombine.low %v93_v7, %v101_v11  ;;  %v580_v33 = vld [vmem:[%s24394_s1 + $0x1070] sm:$0xff]  ;;  %v15246_v56 = vcombine.low %v588_v13, %v596_v18  ;;  %v277_v7 = vld [vmem:[%s24394_s1 + $0x6f8] sm:$0xff] }
 0x28d   :  { %5631 = vmatpush1.bf16.msra.mxu1 %v14816_v34  ;;  %v5298_v40 = vpop.f32.mrf.mxu0  ;;  %5591 = vmatprep.subr.bf16.mxu0 %v15311_v36  ;;  %v14737_v34 = vcombine.high %v77_v22, %v85_v25  ;;  %v61_v36 = vld [vmem:[%s24394_s1 + $0x38] sm:$0xff]  ;;  %v812_v37 = vld [vmem:[%s24394_s1 + $0x17b0] sm:$0xff]  ;;  %v15231_v42 = vcombine.high %v572_v28, %v580_v33  ;;  %v15230_v57 = vcombine.low %v572_v28, %v580_v33 }
 0x28e   :  { %v5339_v2 = vpop.f32.mrf.mxu1  ;;  %5632 = vmatprep.subr.bf16.mxu1 %v14801_v38  ;;  %v14736_v38 = vcombine.low %v77_v22, %v85_v25  ;;  %v820_v39 = vld [vmem:[%s24394_s1 + $0x17f0] sm:$0xff]  ;;  %v14721_v44 = vcombine.high %v61_v36, %v69_v19  ;;  %v301_v47 = vld [vmem:[%s24394_s1 + $0x7b8] sm:$0xff] }
 0x28f   :  { %v796_v40 = vld [vmem:[%s24394_s1 + $0x1730] sm:$0xff]  ;;  %v15470_v43 = vcombine.low %v812_v37, %v820_v39  ;;  %v261_v22 = vld [vmem:[%s24394_s1 + $0x678] sm:$0xff] }
 0x290   :  { %5592 = vmatpush1.bf16.msra.mxu0 %v15310_v48  ;;  %v309_v48 = vld [vmem:[%s24394_s1 + $0x7f8] sm:$0xff]  ;;  %v15454_v11 = vcombine.low %v796_v40, %v804_v50 }
 0x291   :  { %5633 = vmatpush1.bf16.msra.mxu1 %v14800_v61  ;;  %5593 = vmatprep.subr.bf16.mxu0 %v15295_v63  ;;  %v14720_v61 = vcombine.low %v61_v36, %v69_v19  ;;  %v15471_v63 = vcombine.high %v812_v37, %v820_v39  ;;  %v14961_v2 = vcombine.high %v301_v47, %v309_v48  ;;  %v245_v36 = vld [vmem:[%s24394_s1 + $0x5f8] sm:$0xff] }
 0x292   :  { %5634 = vmatprep.subr.bf16.mxu1 %v14785_v58  ;;  %v285_v58 = vld [vmem:[%s24394_s1 + $0x738] sm:$0xff]  ;;  %v14960_v3 = vcombine.low %v301_v47, %v309_v48 }
 0x293   :  { %v14945_v5 = vcombine.high %v285_v58, %v293_v23  ;;  %v14944_v13 = vcombine.low %v285_v58, %v293_v23  ;;  %v229_v47 = vld [vmem:[%s24394_s1 + $0x578] sm:$0xff] }
 0x294   :  { %5594 = vmatpush1.bf16.msra.mxu0 %v15294_v53  ;;  %v780_v53 = vld [vmem:[%s24394_s1 + $0x16b0] sm:$0xff]  ;;  %v213_v58 = vld [vmem:[%s24394_s1 + $0x4f8] sm:$0xff] }
 0x295   :  { %5635 = vmatpush1.bf16.msra.mxu1 %v14784_v4  ;;  %5595 = vmatprep.subr.bf16.mxu0 %v15279_v29  ;;  %v15455_v4 = vcombine.high %v796_v40, %v804_v50  ;;  %v788_v29 = vld [vmem:[%s24394_s1 + $0x16f0] sm:$0xff] }
 0x296   :  { %5636 = vmatprep.subr.bf16.mxu1 %v14769_v6  ;;  %v269_v6 = vld [vmem:[%s24394_s1 + $0x6b8] sm:$0xff]  ;;  %v15438_v25 = vcombine.low %v780_v53, %v788_v29 }
 0x297   :  { %v14929_v18 = vcombine.high %v269_v6, %v277_v7  ;;  %v14928_v28 = vcombine.low %v269_v6, %v277_v7  ;;  %v197_v6 = vld [vmem:[%s24394_s1 + $0x478] sm:$0xff] }
 0x298   :  { %5596 = vmatpush1.bf16.msra.mxu0 %v15278_v12  ;;  %v764_v12 = vld [vmem:[%s24394_s1 + $0x1630] sm:$0xff] }
 0x299   :  { %5637 = vmatpush1.bf16.msra.mxu1 %v14768_v49  ;;  %5597 = vmatprep.subr.bf16.mxu0 %v15263_v17  ;;  %v15439_v49 = vcombine.high %v780_v53, %v788_v29  ;;  %v772_v17 = vld [vmem:[%s24394_s1 + $0x1670] sm:$0xff] }
 0x29a   :  { %5638 = vmatprep.subr.bf16.mxu1 %v14753_v21  ;;  %v253_v21 = vld [vmem:[%s24394_s1 + $0x638] sm:$0xff]  ;;  %v15422_v19 = vcombine.low %v764_v12, %v772_v17 }
 0x29b   :  { %v14913_v33 = vcombine.high %v253_v21, %v261_v22  ;;  %v14912_v37 = vcombine.low %v253_v21, %v261_v22  ;;  %v693_v21 = vld [vmem:[%s24394_s1 + $0x13f8] sm:$0xff] }
 0x29c   :  { %5598 = vmatpush1.bf16.msra.mxu0 %v15262_v54  ;;  %v748_v54 = vld [vmem:[%s24394_s1 + $0x15b0] sm:$0xff] }
 0x29d   :  { %5639 = vmatpush1.bf16.msra.mxu1 %v14752_v31  ;;  %5599 = vmatprep.subr.bf16.mxu0 %v15247_v32  ;;  %v15423_v31 = vcombine.high %v764_v12, %v772_v17  ;;  %v756_v32 = vld [vmem:[%s24394_s1 + $0x15f0] sm:$0xff] }
 0x29e   :  { %5640 = vmatprep.subr.bf16.mxu1 %v14737_v34  ;;  %v237_v34 = vld [vmem:[%s24394_s1 + $0x5b8] sm:$0xff]  ;;  %v15406_v48 = vcombine.low %v748_v54, %v756_v32 }
 0x29f   :  { %v14897_v39 = vcombine.high %v237_v34, %v245_v36  ;;  %v14896_v40 = vcombine.low %v237_v34, %v245_v36  ;;  %v677_v34 = vld [vmem:[%s24394_s1 + $0x1378] sm:$0xff] }
 0x2a0   :  { %5600 = vmatpush1.bf16.msra.mxu0 %v15246_v56  ;;  %v732_v56 = vld [vmem:[%s24394_s1 + $0x1530] sm:$0xff] }
 0x2a1   :  { %5641 = vmatpush1.bf16.msra.mxu1 %v14736_v38  ;;  %5601 = vmatprep.subr.bf16.mxu0 %v15231_v42  ;;  %v15407_v38 = vcombine.high %v748_v54, %v756_v32  ;;  %v740_v42 = vld [vmem:[%s24394_s1 + $0x1570] sm:$0xff] }
 0x2a2   :  { %5642 = vmatprep.subr.bf16.mxu1 %v14721_v44  ;;  %v221_v44 = vld [vmem:[%s24394_s1 + $0x538] sm:$0xff]  ;;  %v15390_v23 = vcombine.low %v732_v56, %v740_v42 }
 0x2a3   :  { %v14881_v50 = vcombine.high %v221_v44, %v229_v47  ;;  %v14880_v53 = vcombine.low %v221_v44, %v229_v47  ;;  %v653_v44 = vld [vmem:[%s24394_s1 + $0x12b8] sm:$0xff] }
 0x2a4   :  { %5602 = vmatpush1.bf16.msra.mxu0 %v15230_v57  ;;  %v716_v57 = vld [vmem:[%s24394_s1 + $0x14b0] sm:$0xff]  ;;  %v661_v47 = vld [vmem:[%s24394_s1 + $0x12f8] sm:$0xff] }
 0x2a5   :  { %5643 = vmatpush1.bf16.msra.mxu1 %v14720_v61  ;;  %5603 = vmatprep.subr.bf16.mxu0 %v15471_v63  ;;  %v15391_v61 = vcombine.high %v732_v56, %v740_v42  ;;  %v724_v63 = vld [vmem:[%s24394_s1 + $0x14f0] sm:$0xff] }
 0x2a6   :  { %5644 = vmatprep.subr.bf16.mxu1 %v14961_v2  ;;  %v205_v2 = vld [vmem:[%s24394_s1 + $0x4b8] sm:$0xff]  ;;  %v15374_v7 = vcombine.low %v716_v57, %v724_v63 }
 0x2a7   :  { %v14865_v29 = vcombine.high %v205_v2, %v213_v58  ;;  %v14864_v12 = vcombine.low %v205_v2, %v213_v58 }
 0x2a8   :  { %5604 = vmatpush2.bf16.msra.mxu0 %v15470_v43  ;;  %v700_v43 = vld [vmem:[%s24394_s1 + $0x1430] sm:$0xff] }
 0x2a9   :  { %5645 = vmatpush2.bf16.msra.mxu1 %v14960_v3  ;;  %5605 = vmatprep.subr.bf16.mxu0 %v15455_v4  ;;  %v15375_v3 = vcombine.high %v716_v57, %v724_v63  ;;  %v708_v4 = vld [vmem:[%s24394_s1 + $0x1470] sm:$0xff] }
 0x2aa   :  { %5646 = vmatprep.subr.bf16.mxu1 %v14945_v5  ;;  %v189_v5 = vld [vmem:[%s24394_s1 + $0x438] sm:$0xff]  ;;  %v15358_v22 = vcombine.low %v700_v43, %v708_v4 }
 0x2ab   :  { %v14849_v17 = vcombine.high %v189_v5, %v197_v6  ;;  %v14848_v54 = vcombine.low %v189_v5, %v197_v6  ;;  %v15312_v6 = vcombine.low %v653_v44, %v661_v47 }
 0x2ac   :  { %5606 = vmatpush2.bf16.msra.mxu0 %v15454_v11  ;;  %v429_v11 = vld [vmem:[%s24394_s1 + $0xbb8] sm:$0xff] }
 0x2ad   :  { %5647 = vmatpush2.bf16.msra.mxu1 %v14944_v13  ;;  %5607 = vmatprep.subr.bf16.mxu0 %v15439_v49  ;;  %v15359_v13 = vcombine.high %v700_v43, %v708_v4  ;;  %v437_v49 = vld [vmem:[%s24394_s1 + $0xbf8] sm:$0xff] }
 0x2ae   :  { %5648 = vmatprep.subr.bf16.mxu1 %v14929_v18  ;;  %v685_v18 = vld [vmem:[%s24394_s1 + $0x13b8] sm:$0xff]  ;;  %v15088_v36 = vcombine.low %v429_v11, %v437_v49 }
 0x2af   :  { %v15345_v32 = vcombine.high %v685_v18, %v693_v21  ;;  %v15344_v56 = vcombine.low %v685_v18, %v693_v21  ;;  %v637_v43 = vld [vmem:[%s24394_s1 + $0x1238] sm:$0xff] }
 0x2b0   :  { %5608 = vmatpush2.bf16.msra.mxu0 %v15438_v25  ;;  %v413_v25 = vld [vmem:[%s24394_s1 + $0xb38] sm:$0xff] }
 0x2b1   :  { %5649 = vmatpush2.bf16.msra.mxu1 %v14928_v28  ;;  %5609 = vmatprep.subr.bf16.mxu0 %v15423_v31  ;;  %v15089_v28 = vcombine.high %v429_v11, %v437_v49  ;;  %v421_v31 = vld [vmem:[%s24394_s1 + $0xb78] sm:$0xff] }
 0x2b2   :  { %5650 = vmatprep.subr.bf16.mxu1 %v14913_v33  ;;  %v669_v33 = vld [vmem:[%s24394_s1 + $0x1338] sm:$0xff] }
 0x2b3   :  { %v15329_v42 = vcombine.high %v669_v33, %v677_v34 }
 0x2b4   :  { %5610 = vmatpush2.bf16.msra.mxu0 %v15422_v19  ;;  %v397_v19 = vld [vmem:[%s24394_s1 + $0xab8] sm:$0xff] }
 0x2b5   :  { %5651 = vmatpush2.bf16.msra.mxu1 %v14912_v37  ;;  %5611 = vmatprep.subr.bf16.mxu0 %v15407_v38  ;;  %v15073_v37 = vcombine.high %v413_v25, %v421_v31  ;;  %v405_v38 = vld [vmem:[%s24394_s1 + $0xaf8] sm:$0xff] }
 0x2b6   :  { %5652 = vmatprep.subr.bf16.mxu1 %v14897_v39  ;;  %v15057_v2 = vcombine.high %v397_v19, %v405_v38 }
 0x2b8   :  { %5612 = vmatpush2.bf16.msra.mxu0 %v15406_v48 }
 0x2b9   :  { %5653 = vmatpush2.bf16.msra.mxu1 %v14896_v40  ;;  %5613 = vmatprep.subr.bf16.mxu0 %v15391_v61  ;;  %v15072_v40 = vcombine.low %v413_v25, %v421_v31  ;;  %v381_v61 = vld [vmem:[%s24394_s1 + $0xa38] sm:$0xff] }
 0x2ba   :  { %5654 = vmatprep.subr.bf16.mxu1 %v14881_v50  ;;  %v15328_v50 = vcombine.low %v669_v33, %v677_v34 }
 0x2bc   :  { %5614 = vmatpush2.bf16.msra.mxu0 %v15390_v23 }
 0x2bd   :  { %5655 = vmatpush2.bf16.msra.mxu1 %v14880_v53  ;;  %5615 = vmatprep.subr.bf16.mxu0 %v15375_v3  ;;  %v645_v3 = vld [vmem:[%s24394_s1 + $0x1278] sm:$0xff] }
 0x2be   :  { %5656 = vmatprep.subr.bf16.mxu1 %v14865_v29  ;;  %v365_v29 = vld [vmem:[%s24394_s1 + $0x9b8] sm:$0xff]  ;;  %v15296_v18 = vcombine.low %v637_v43, %v645_v3 }
 0x2c0   :  { %5616 = vmatpush2.bf16.msra.mxu0 %v15374_v7 }
 0x2c1   :  { %5657 = vmatpush2.bf16.msra.mxu1 %v14864_v12  ;;  %5617 = vmatprep.subr.bf16.mxu0 %v15359_v13  ;;  %v15297_v12 = vcombine.high %v637_v43, %v645_v3  ;;  %v629_v13 = vld [vmem:[%s24394_s1 + $0x11f8] sm:$0xff] }
 0x2c2   :  { %5658 = vmatprep.subr.bf16.mxu1 %v14849_v17  ;;  %v349_v17 = vld [vmem:[%s24394_s1 + $0x938] sm:$0xff] }
 0x2c3   :  { %v565_v43 = vld [vmem:[%s24394_s1 + $0xff8] sm:$0xff] }
 0x2c4   :  { %5618 = vmatpush2.bf16.msra.mxu0 %v15358_v22  ;;  %v357_v22 = vld [vmem:[%s24394_s1 + $0x978] sm:$0xff] }
 0x2c5   :  { %5659 = vmatpush2.bf16.msra.mxu1 %v14848_v54  ;;  %5669 = vmatprep.subr.bf16.mxu0 %v15089_v28  ;;  %v605_v54 = vld [vmem:[%s24394_s1 + $0x1138] sm:$0xff]  ;;  %v15009_v34 = vcombine.high %v349_v17, %v357_v22 }
 0x2c6   :  { %5710 = vmatprep.subr.bf16.mxu1 %v15345_v32  ;;  %v613_v28 = vld [vmem:[%s24394_s1 + $0x1178] sm:$0xff] }
 0x2c7   :  { %v5375_v39 = vpop.f32.mrf.mxu0  ;;  %5620 = vmatmul.mubr.bf16.vlgmr.msra.gmra.mxu0 %v18698_v30  ;;  %v333_v32 = vld [vmem:[%s24394_s1 + $0x8b8] sm:$0xff] }
 0x2c8   :  { %v20585_v48 = vadd.f32 %v5375_v39, %v20391_v55  ;;  %v20587_v57 = vpop.f32.mrf.mxu1  ;;  %5661 = vmatmul.mubr.bf16.vlgmr.msra.gmra.mxu1 %v18485_v16  ;;  %5670 = vmatpush1.bf16.msra.mxu0 %v15088_v36  ;;  %v389_v55 = vld [vmem:[%s24394_s1 + $0xa78] sm:$0xff]  ;;  %v15313_v16 = vcombine.high %v653_v44, %v661_v47  ;;  %v15264_v39 = vcombine.low %v605_v54, %v613_v28 }
 0x2c9   :  { %5711 = vmatpush1.bf16.msra.mxu1 %v15344_v56  ;;  %v5377_v63 = vpop.f32.mrf.mxu0  ;;  %5671 = vmatprep.subr.bf16.mxu0 %v15073_v37  ;;  %v15041_v7 = vcombine.high %v381_v61, %v389_v55  ;;  %v15040_v49 = vcombine.low %v381_v61, %v389_v55  ;;  %v341_v36 = vld [vmem:[%s24394_s1 + $0x8f8] sm:$0xff] }
 0x2ca   :  { %v20597_v58 = vadd.f32 %v5377_v63, %v20401_v46  ;;  %v20599_v23 = vpop.f32.mrf.mxu1  ;;  %5712 = vmatprep.subr.bf16.mxu1 %v15329_v42  ;;  %5701 = vmatprep.mubr.bf16.mxu0 %v18359_v59  ;;  %v15056_v46 = vcombine.low %v397_v19, %v405_v38  ;;  %v373_v59 = vld [vmem:[%s24394_s1 + $0x9f8] sm:$0xff]  ;;  %v15265_v19 = vcombine.high %v605_v54, %v613_v28 }
 0x2cb   :  { %v5379_v53 = vpop.f32.mrf.mxu0  ;;  %5742 = vmatprep.mubr.bf16.mxu1 %v18510_v26  ;;  %v621_v26 = vld [vmem:[%s24394_s1 + $0x11b8] sm:$0xff]  ;;  %v15025_v21 = vcombine.high %v365_v29, %v373_v59  ;;  %v15024_v31 = vcombine.low %v365_v29, %v373_v59  ;;  %v15008_v38 = vcombine.low %v349_v17, %v357_v22  ;;  %v14993_v44 = vcombine.high %v333_v32, %v341_v36 }
 0x2cc   :  { %v5420_v4 = vpop.f32.mrf.mxu1  ;;  %5672 = vmatpush1.bf16.msra.mxu0 %v15072_v40  ;;  %v15281_v25 = vcombine.high %v621_v26, %v629_v13  ;;  %v15280_v33 = vcombine.low %v621_v26, %v629_v13  ;;  %v589_v56 = vld [vmem:[%s24394_s1 + $0x10b8] sm:$0xff] }
 0x2cd   :  { %5713 = vmatpush1.bf16.msra.mxu1 %v15328_v50  ;;  %v5380_v5 = vpop.f32.mrf.mxu0  ;;  %5673 = vmatprep.subr.bf16.mxu0 %v15057_v2  ;;  %v597_v37 = vld [vmem:[%s24394_s1 + $0x10f8] sm:$0xff]  ;;  %v14992_v50 = vcombine.low %v333_v32, %v341_v36 }
 0x2ce   :  { %v5421_v11 = vpop.f32.mrf.mxu1  ;;  %5714 = vmatprep.subr.bf16.mxu1 %v15313_v16  ;;  %v317_v42 = vld [vmem:[%s24394_s1 + $0x838] sm:$0xff]  ;;  %v15249_v40 = vcombine.high %v589_v56, %v597_v37  ;;  %v15248_v55 = vcombine.low %v589_v56, %v597_v37 }
 0x2cf   :  { %v325_v47 = vld [vmem:[%s24394_s1 + $0x878] sm:$0xff] }
 0x2d0   :  { %5674 = vmatpush1.bf16.msra.mxu0 %v15056_v46  ;;  %v573_v61 = vld [vmem:[%s24394_s1 + $0x1038] sm:$0xff]  ;;  %v14977_v16 = vcombine.high %v317_v42, %v325_v47  ;;  %v14976_v46 = vcombine.low %v317_v42, %v325_v47 }
 0x2d1   :  { %5715 = vmatpush1.bf16.msra.mxu1 %v15312_v6  ;;  %5675 = vmatprep.subr.bf16.mxu0 %v15041_v7  ;;  %v581_v63 = vld [vmem:[%s24394_s1 + $0x1078] sm:$0xff] }
 0x2d2   :  { %5716 = vmatprep.subr.bf16.mxu1 %v15297_v12  ;;  %v557_v2 = vld [vmem:[%s24394_s1 + $0xfb8] sm:$0xff]  ;;  %v15233_v53 = vcombine.high %v573_v61, %v581_v63  ;;  %v15232_v5 = vcombine.low %v573_v61, %v581_v63 }
 0x2d3   :  { %v813_v3 = vld [vmem:[%s24394_s1 + $0x17b8] sm:$0xff]  ;;  %v15217_v6 = vcombine.high %v557_v2, %v565_v43  ;;  %v15216_v26 = vcombine.low %v557_v2, %v565_v43 }
 0x2d4   :  { %5676 = vmatpush1.bf16.msra.mxu0 %v15040_v49  ;;  %v821_v4 = vld [vmem:[%s24394_s1 + $0x17f8] sm:$0xff] }
 0x2d5   :  { %5717 = vmatpush1.bf16.msra.mxu1 %v15296_v18  ;;  %5677 = vmatprep.subr.bf16.mxu0 %v15025_v21  ;;  %v541_v29 = vld [vmem:[%s24394_s1 + $0xf38] sm:$0xff]  ;;  %v15473_v59 = vcombine.high %v813_v3, %v821_v4  ;;  %v15472_v17 = vcombine.low %v813_v3, %v821_v4 }
 0x2d6   :  { %5718 = vmatprep.subr.bf16.mxu1 %v15281_v25  ;;  %v549_v7 = vld [vmem:[%s24394_s1 + $0xf78] sm:$0xff] }
 0x2d7   :  { %v797_v11 = vld [vmem:[%s24394_s1 + $0x1738] sm:$0xff]  ;;  %v15201_v18 = vcombine.high %v541_v29, %v549_v7  ;;  %v15200_v54 = vcombine.low %v541_v29, %v549_v7 }
 0x2d8   :  { %5678 = vmatpush1.bf16.msra.mxu0 %v15024_v31  ;;  %v805_v12 = vld [vmem:[%s24394_s1 + $0x1778] sm:$0xff] }
 0x2d9   :  { %5719 = vmatpush1.bf16.msra.mxu1 %v15280_v33  ;;  %5679 = vmatprep.subr.bf16.mxu0 %v15009_v34  ;;  %v525_v13 = vld [vmem:[%s24394_s1 + $0xeb8] sm:$0xff]  ;;  %v15457_v22 = vcombine.high %v797_v11, %v805_v12  ;;  %v15456_v32 = vcombine.low %v797_v11, %v805_v12 }
 0x2da   :  { %5720 = vmatprep.subr.bf16.mxu1 %v15265_v19  ;;  %v533_v49 = vld [vmem:[%s24394_s1 + $0xef8] sm:$0xff] }
 0x2db   :  { %v781_v21 = vld [vmem:[%s24394_s1 + $0x16b8] sm:$0xff]  ;;  %v15185_v33 = vcombine.high %v525_v13, %v533_v49  ;;  %v15184_v56 = vcombine.low %v525_v13, %v533_v49 }
 0x2dc   :  { %5680 = vmatpush1.bf16.msra.mxu0 %v15008_v38  ;;  %v789_v25 = vld [vmem:[%s24394_s1 + $0x16f8] sm:$0xff] }
 0x2dd   :  { %5721 = vmatpush1.bf16.msra.mxu1 %v15264_v39  ;;  %5681 = vmatprep.subr.bf16.mxu0 %v14993_v44  ;;  %v509_v28 = vld [vmem:[%s24394_s1 + $0xe38] sm:$0xff]  ;;  %v15441_v36 = vcombine.high %v781_v21, %v789_v25  ;;  %v15440_v42 = vcombine.low %v781_v21, %v789_v25 }
 0x2de   :  { %5722 = vmatprep.subr.bf16.mxu1 %v15249_v40  ;;  %v517_v31 = vld [vmem:[%s24394_s1 + $0xe78] sm:$0xff] }
 0x2df   :  { %v765_v34 = vld [vmem:[%s24394_s1 + $0x1638] sm:$0xff]  ;;  %v15169_v39 = vcombine.high %v509_v28, %v517_v31  ;;  %v15168_v61 = vcombine.low %v509_v28, %v517_v31 }
 0x2e0   :  { %5682 = vmatpush1.bf16.msra.mxu0 %v14992_v50  ;;  %v773_v19 = vld [vmem:[%s24394_s1 + $0x1678] sm:$0xff] }
 0x2e1   :  { %5723 = vmatpush1.bf16.msra.mxu1 %v15248_v55  ;;  %5683 = vmatprep.subr.bf16.mxu0 %v14977_v16  ;;  %v493_v37 = vld [vmem:[%s24394_s1 + $0xdb8] sm:$0xff]  ;;  %v15425_v40 = vcombine.high %v765_v34, %v773_v19  ;;  %v15424_v2 = vcombine.low %v765_v34, %v773_v19  ;;  %v20759_v34 = vld [vmem:[%s24396_s2 + $0x8] sm:$0xff] }
 0x2e2   :  { %5724 = vmatprep.subr.bf16.mxu1 %v15233_v53  ;;  %v501_v38 = vld [vmem:[%s24394_s1 + $0xdf8] sm:$0xff] }
 0x2e3   :  { %v749_v44 = vld [vmem:[%s24394_s1 + $0x15b8] sm:$0xff]  ;;  %v15153_v55 = vcombine.high %v493_v37, %v501_v38  ;;  %v15152_v3 = vcombine.low %v493_v37, %v501_v38  ;;  %v5754_v37 = vmax.f32 %v19563_v62, 0.0 }
 0x2e4   :  { %5684 = vmatpush1.bf16.msra.mxu0 %v14976_v46  ;;  %v757_v47 = vld [vmem:[%s24394_s1 + $0x15f8] sm:$0xff] }
 0x2e5   :  { %5725 = vmatpush1.bf16.msra.mxu1 %v15232_v5  ;;  %5685 = vmatprep.subr.bf16.mxu0 %v15217_v6  ;;  %v477_v63 = vld [vmem:[%s24394_s1 + $0xd38] sm:$0xff]  ;;  %v15409_v53 = vcombine.high %v749_v44, %v757_v47  ;;  %v15408_v29 = vcombine.low %v749_v44, %v757_v47  ;;  %v16809_v47 = vld [vmem:[%s24397_s3 + $0xf0] sm:$0xff]  }
 0x2e6   :  { %5726 = vmatprep.subr.bf16.mxu1 %v15473_v59  ;;  %v485_v50 = vld [vmem:[%s24394_s1 + $0xd78] sm:$0xff] }
 0x2e7   :  { %v733_v16 = vld [vmem:[%s24394_s1 + $0x1538] sm:$0xff]  ;;  %v15137_v5 = vcombine.high %v477_v63, %v485_v50  ;;  %v15136_v11 = vcombine.low %v477_v63, %v485_v50 }
 0x2e8   :  { %5686 = vmatpush2.bf16.msra.mxu0 %v15216_v26  ;;  %v741_v43 = vld [vmem:[%s24394_s1 + $0x1578] sm:$0xff] }
 0x2e9   :  { %5727 = vmatpush2.bf16.msra.mxu1 %v15472_v17  ;;  %5687 = vmatprep.subr.bf16.mxu0 %v15201_v18  ;;  %v461_v4 = vld [vmem:[%s24394_s1 + $0xcb8] sm:$0xff]  ;;  %v15393_v59 = vcombine.high %v733_v16, %v741_v43  ;;  %v15392_v13 = vcombine.low %v733_v16, %v741_v43  ;;  %v16813_v16 = vld [vmem:[%s24397_s3 + $0xe8] sm:$0xff]  }
 0x2ea   :  { %5728 = vmatprep.subr.bf16.mxu1 %v15457_v22  ;;  %v469_v46 = vld [vmem:[%s24394_s1 + $0xcf8] sm:$0xff] }
 0x2eb   :  { %v717_v6 = vld [vmem:[%s24394_s1 + $0x14b8] sm:$0xff]  ;;  %v15121_v49 = vcombine.high %v461_v4, %v469_v46  ;;  %v15120_v22 = vcombine.low %v461_v4, %v469_v46  ;;  %v16815_v46 = vld [vmem:[%s24397_s3 + $0xa8] sm:$0xff]  }
 0x2ec   :  { %5688 = vmatpush2.bf16.msra.mxu0 %v15200_v54  ;;  %v725_v7 = vld [vmem:[%s24394_s1 + $0x14f8] sm:$0xff] }
 0x2ed   :  { %5729 = vmatpush2.bf16.msra.mxu1 %v15456_v32  ;;  %5689 = vmatprep.subr.bf16.mxu0 %v15185_v33  ;;  %v445_v12 = vld [vmem:[%s24394_s1 + $0xc38] sm:$0xff]  ;;  %v15377_v21 = vcombine.high %v717_v6, %v725_v7  ;;  %v15376_v25 = vcombine.low %v717_v6, %v725_v7  ;;  %v16817_v6 = vld [vmem:[%s24397_s3 + $0xe0] sm:$0xff]  }
 0x2ee   :  { %5730 = vmatprep.subr.bf16.mxu1 %v15441_v36  ;;  %v453_v26 = vld [vmem:[%s24394_s1 + $0xc78] sm:$0xff]  ;;  %v869_v36 = vrot.slane %v20759_v34, %v19498_v8  ;;  %v16818_v7 = vld [vmem:[%s24397_s3 + $0x20] sm:$0xff]  }
 0x2ef   :  { %v701_v17 = vld [vmem:[%s24394_s1 + $0x1438] sm:$0xff]  ;;  %v15105_v54 = vcombine.high %v445_v12, %v453_v26  ;;  %v15104_v31 = vcombine.low %v445_v12, %v453_v26 }
 0x2f0   :  { %5690 = vmatpush2.bf16.msra.mxu0 %v15184_v56  ;;  %v709_v18 = vld [vmem:[%s24394_s1 + $0x1478] sm:$0xff]  ;;  %v5752_v56 = vmax.f32 %v19335_v0, 0.0  ;;  %v16808_v0 = vld [vmem:[%s24397_s3 + $0x70] sm:$0xff]  }
 0x2f1   :  { %5731 = vmatpush2.bf16.msra.mxu1 %v15440_v42  ;;  %5691 = vmatprep.subr.bf16.mxu0 %v15169_v39  ;;  %v15361_v28 = vcombine.high %v701_v17, %v709_v18  ;;  %v15360_v32 = vcombine.low %v701_v17, %v709_v18  ;;  %v16804_v33 = vld [vmem:[%s24397_s3 + $0x78] sm:$0xff]   ;;  %v5417_v39 = vadd.f32 %v20587_v57, %v869_v36  ;;  %v16810_v57 = vld [vmem:[%s24397_s3 + $0x30] sm:$0xff]   ;;  %v5751_v36 = vmax.f32 %v19329_v52, 0.0 }
 0x2f2   :  { %5732 = vmatprep.subr.bf16.mxu1 %v15425_v40  ;;  %v16805_v19 = vld [vmem:[%s24397_s3 + $0xf8] sm:$0xff]   ;;  %v5768_v44 = vpack.c.bf16 %v5752_v56, %v5752_v56  ;;  %v5770_v40 = vpack.c.bf16 %v5754_v37, %v5754_v37  ;;  %v16825_v17 = vld [vmem:[%s24397_s3 + $0xd0] sm:$0xff]   ;;  %v5753_v37 = vmax.f32 %v19547_v45, 0.0  ;;  %v5758_v52 = vmax.f32 %v20196_v24, 0.0 }
 0x2f3   :  { %v16806_v38 = vld [vmem:[%s24397_s3 + $0x38] sm:$0xff]   ;;  %v16826_v18 = vld [vmem:[%s24397_s3 + $0x10] sm:$0xff]  }
 0x2f4   :  { %5692 = vmatpush2.bf16.msra.mxu0 %v15168_v61  ;;  %v16807_v42 = vld [vmem:[%s24397_s3 + $0xb8] sm:$0xff]   ;;  %v16841_v24 = vld [vmem:[%s24397_s3 + $0x1f0] sm:$0xff]  }
 0x2f5   :  { %5733 = vmatpush2.bf16.msra.mxu1 %v15424_v2  ;;  %5693 = vmatprep.subr.bf16.mxu0 %v15153_v55  ;;  %v16812_v2 = vld [vmem:[%s24397_s3 + $0x68] sm:$0xff]   ;;  %v16821_v12 = vld [vmem:[%s24397_s3 + $0xd8] sm:$0xff]  }
 0x2f6   :  { %5734 = vmatprep.subr.bf16.mxu1 %v15409_v53  ;;  %v16822_v26 = vld [vmem:[%s24397_s3 + $0x18] sm:$0xff]  }
 0x2f7   :  { %v16836_v56 = vld [vmem:[%s24397_s3 + $0x178] sm:$0xff]  }
 0x2f8   :  { %5694 = vmatpush2.bf16.msra.mxu0 %v15152_v3  ;;  %v16814_v3 = vld [vmem:[%s24397_s3 + $0x28] sm:$0xff]   ;;  %v16839_v45 = vld [vmem:[%s24397_s3 + $0x1b8] sm:$0xff]  }
 0x2f9   :  { %5735 = vmatpush2.bf16.msra.mxu1 %v15408_v29  ;;  %5695 = vmatprep.subr.bf16.mxu0 %v15137_v5  ;;  %v16816_v29 = vld [vmem:[%s24397_s3 + $0x60] sm:$0xff]  }
 0x2fa   :  { %5736 = vmatprep.subr.bf16.mxu1 %v15393_v59  ;;  %v16819_v59 = vld [vmem:[%s24397_s3 + $0xa0] sm:$0xff]  }
 0x2fc   :  { %5696 = vmatpush2.bf16.msra.mxu0 %v15136_v11  ;;  %v16820_v11 = vld [vmem:[%s24397_s3 + $0x58] sm:$0xff]  }
 0x2fd   :  { %5737 = vmatpush2.bf16.msra.mxu1 %v15392_v13  ;;  %5697 = vmatprep.subr.bf16.mxu0 %v15121_v49  ;;  %v16823_v13 = vld [vmem:[%s24397_s3 + $0x98] sm:$0xff]   ;;  %v16824_v49 = vld [vmem:[%s24397_s3 + $0x50] sm:$0xff]  }
 0x2fe   :  { %5738 = vmatprep.subr.bf16.mxu1 %v15377_v21  ;;  %v16827_v21 = vld [vmem:[%s24397_s3 + $0x90] sm:$0xff]  }
 0x300   :  { %5698 = vmatpush2.bf16.msra.mxu0 %v15120_v22  ;;  %v16828_v22 = vld [vmem:[%s24397_s3 + $0x48] sm:$0xff]  }
 0x301   :  { %5739 = vmatpush2.bf16.msra.mxu1 %v15376_v25  ;;  %5699 = vmatprep.subr.bf16.mxu0 %v15105_v54  ;;  %v16829_v25 = vld [vmem:[%s24397_s3 + $0xc8] sm:$0xff]  }
 0x302   :  { %5740 = vmatprep.subr.bf16.mxu1 %v15361_v28  ;;  %v16830_v54 = vld [vmem:[%s24397_s3 + $0x8] sm:$0xff]  }
 0x303   :  { %v16831_v28 = vld [vmem:[%s24397_s3 + $0x88] sm:$0xff]  }
 0x304   :  { %5700 = vmatpush2.bf16.msra.mxu0 %v15104_v31  ;;  %v16832_v31 = vld [vmem:[%s24397_s3 + $0x40] sm:$0xff]  }
 0x305   :  { %5741 = vmatpush2.bf16.msra.mxu1 %v15360_v32  ;;  %16573 = vmatprep.subr.bf16.mxu0 %v16804_v33  ;;  %v16833_v32 = vld [vmem:[%s24397_s3 + $0xc0] sm:$0xff]  }
 0x306   :  { %16595 = vmatprep.subr.bf16.mxu1 %v16805_v19  ;;  %v16834_v33 = vld [vmem:[%s24397_s3] sm:$0xff]  }
 0x307   :  { %v5457_v62 = vpop.f32.mrf.mxu0  ;;  %5702 = vmatmul.mubr.bf16.vlgmr.msra.gmra.mxu0 %v18500_v20  ;;  %v16811_v20 = vld [vmem:[%s24397_s3 + $0xb0] sm:$0xff]   ;;  %v16835_v19 = vld [vmem:[%s24397_s3 + $0x80] sm:$0xff]  }
 0x308   :  { %v5458_v61 = vadd.f32 %v5457_v62, %v5417_v39  ;;  %v5498_v63 = vpop.f32.mrf.mxu1  ;;  %5743 = vmatmul.mubr.bf16.vlgmr.msra.gmra.mxu1 %v18698_v30  ;;  %16574 = vmatpush3.bf16.msra.mxu0 %v16806_v38  ;;  %v16837_v38 = vld [vmem:[%s24397_s3 + $0x1f8] sm:$0xff]  }
 0x309   :  { %6846 = vmatprep.mubr.bf16.mxu0 %v5768_v44  ;;  %16596 = vmatpush3.bf16.msra.mxu1 %v16807_v42  ;;  %v20786_v50 = vpop.f32.mrf.mxu0  ;;  %v5756_v42 = vmax.f32 %v19968_v1, 0.0  ;;  %v16838_v39 = vld [vmem:[%s24397_s3 + $0x138] sm:$0xff]   ;;  %v5769_v44 = vpack.c.bf16 %v5753_v37, %v5753_v37  ;;  %v16840_v1 = vld [vmem:[%s24397_s3 + $0x170] sm:$0xff]  }
 0x30a   :  { %v20794_v55 = vadd.f32 %v5498_v63, %v5458_v61  ;;  %6886 = vmatprep.mubr.bf16.mxu1 %v5770_v40  ;;  %v20796_v30 = vpop.f32.mrf.mxu1  ;;  %16575 = vmatprep.subr.bf16.mxu0 %v16808_v0  ;;  %v5767_v0 = vpack.c.bf16 %v5751_v36, %v5751_v36  ;;  %v16842_v40 = vld [vmem:[%s24397_s3 + $0x130] sm:$0xff]   ;;  %v16844_v63 = vld [vmem:[%s24397_s3 + $0x168] sm:$0xff]   ;;  %v16870_v36 = vld [vmem:[%s24397_s3 + $0x238] sm:$0xff]  }
 0x30b   :  { %v5461_v43 = vpop.f32.mrf.mxu0  ;;  %16597 = vmatprep.subr.bf16.mxu1 %v16809_v47  ;;  %v5772_v62 = vpack.c.bf16 %v5756_v42, %v5756_v42  ;;  %v5774_v47 = vpack.c.bf16 %v5758_v52, %v5758_v52  ;;  %v16843_v61 = vld [vmem:[%s24397_s3 + $0x1b0] sm:$0xff]  }
 0x30c   :  { %v5502_v53 = vpop.f32.mrf.mxu1  ;;  %16576 = vmatpush3.bf16.msra.mxu0 %v16810_v57  ;;  %v16845_v57 = vld [vmem:[%s24397_s3 + $0x1e8] sm:$0xff]   ;;  %v16849_v43 = vld [vmem:[%s24397_s3 + $0x1e0] sm:$0xff]   ;;  %v16872_v37 = vld [vmem:[%s24397_s3 + $0x270] sm:$0xff]  }
 0x30d   :  { %16598 = vmatpush3.bf16.msra.mxu1 %v16811_v20  ;;  %v5462_v4 = vpop.f32.mrf.mxu0  ;;  %16577 = vmatprep.subr.bf16.mxu0 %v16812_v2  ;;  %v16846_v20 = vld [vmem:[%s24397_s3 + $0x128] sm:$0xff]   ;;  %v16850_v53 = vld [vmem:[%s24397_s3 + $0x120] sm:$0xff]   ;;  %v16873_v42 = vld [vmem:[%s24397_s3 + $0x2f0] sm:$0xff]  }
 0x30e   :  { %v5503_v5 = vpop.f32.mrf.mxu1  ;;  %16599 = vmatprep.subr.bf16.mxu1 %v16813_v16  ;;  %v16847_v2 = vld [vmem:[%s24397_s3 + $0x1a8] sm:$0xff]   ;;  %v16848_v16 = vld [vmem:[%s24397_s3 + $0x160] sm:$0xff]   ;;  %v16852_v4 = vld [vmem:[%s24397_s3 + $0x158] sm:$0xff]  }
 0x30f   :  { %v16855_v5 = vld [vmem:[%s24397_s3 + $0x198] sm:$0xff]  }
 0x310   :  { %16578 = vmatpush3.bf16.msra.mxu0 %v16814_v3  ;;  %v16851_v3 = vld [vmem:[%s24397_s3 + $0x1a0] sm:$0xff]  }
 0x311   :  { %16600 = vmatpush3.bf16.msra.mxu1 %v16815_v46  ;;  %16579 = vmatprep.subr.bf16.mxu0 %v16816_v29  ;;  %v16853_v46 = vld [vmem:[%s24397_s3 + $0x1d8] sm:$0xff]  }
 0x312   :  { %16601 = vmatprep.subr.bf16.mxu1 %v16817_v6  ;;  %v16854_v29 = vld [vmem:[%s24397_s3 + $0x118] sm:$0xff]   ;;  %v16856_v6 = vld [vmem:[%s24397_s3 + $0x150] sm:$0xff]  }
 0x314   :  { %16580 = vmatpush3.bf16.msra.mxu0 %v16818_v7  ;;  %v873_v7 = vrot.slane %v20759_v34, %v19513_v14 }
 0x315   :  { %16602 = vmatpush3.bf16.msra.mxu1 %v16819_v59  ;;  %16581 = vmatprep.subr.bf16.mxu0 %v16820_v11  ;;  %v16857_v59 = vld [vmem:[%s24397_s3 + $0x1d0] sm:$0xff]  }
 0x316   :  { %16603 = vmatprep.subr.bf16.mxu1 %v16821_v12  ;;  %v16858_v11 = vld [vmem:[%s24397_s3 + $0x110] sm:$0xff]  }
 0x317   :  { %v16859_v12 = vld [vmem:[%s24397_s3 + $0x190] sm:$0xff]  }
 0x318   :  { %16582 = vmatpush3.bf16.msra.mxu0 %v16822_v26  ;;  %v16860_v26 = vld [vmem:[%s24397_s3 + $0x148] sm:$0xff]  }
 0x319   :  { %16604 = vmatpush3.bf16.msra.mxu1 %v16823_v13  ;;  %16583 = vmatprep.subr.bf16.mxu0 %v16824_v49  ;;  %v5419_v13 = vadd.f32 %v20599_v23, %v873_v7  ;;  %v16861_v49 = vld [vmem:[%s24397_s3 + $0x1c8] sm:$0xff]   ;;  %v16864_v23 = vld [vmem:[%s24397_s3 + $0x140] sm:$0xff]   ;;  %v16890_v7 = vld [vmem:[%s24397_s3 + $0x210] sm:$0xff]  }
 0x31a   :  { %16605 = vmatprep.subr.bf16.mxu1 %v16825_v17 }
 0x31b   :  { %v5460_v17 = vadd.f32 %v20786_v50, %v5419_v13  ;;  %v16865_v50 = vld [vmem:[%s24397_s3 + $0x1c0] sm:$0xff]   ;;  %v16895_v13 = vld [vmem:[%s24397_s3 + $0x288] sm:$0xff]  }
 0x31c   :  { %16584 = vmatpush3.bf16.msra.mxu0 %v16826_v18  ;;  %v16862_v18 = vld [vmem:[%s24397_s3 + $0x108] sm:$0xff]  }
 0x31d   :  { %16606 = vmatpush3.bf16.msra.mxu1 %v16827_v21  ;;  %16585 = vmatprep.subr.bf16.mxu0 %v16828_v22  ;;  %v16863_v21 = vld [vmem:[%s24397_s3 + $0x188] sm:$0xff]   ;;  %v5501_v22 = vadd.f32 %v20796_v30, %v5460_v17  ;;  %v16869_v30 = vld [vmem:[%s24397_s3 + $0x2f8] sm:$0xff]   ;;  %v16897_v17 = vld [vmem:[%s24397_s3 + $0x2c0] sm:$0xff]  }
 0x31e   :  { %16607 = vmatprep.subr.bf16.mxu1 %v16829_v25  ;;  %v16866_v25 = vld [vmem:[%s24397_s3 + $0x100] sm:$0xff]  }
 0x320   :  { %16586 = vmatpush3.bf16.msra.mxu0 %v16830_v54  ;;  %v5755_v54 = vmax.f32 %v19962_v41, 0.0  ;;  %v5762_v41 = vmax.f32 %v5501_v22, 0.0  ;;  %v5761_v22 = vmax.f32 %v20794_v55, 0.0  ;;  %v16917_v55 = vld [vmem:[%s24397_s3 + $0x3b8] sm:$0xff]  }
 0x321   :  { %16608 = vmatpush3.bf16.msra.mxu1 %v16831_v28  ;;  %16587 = vmatprep.subr.bf16.mxu0 %v16832_v31  ;;  %v16867_v28 = vld [vmem:[%s24397_s3 + $0x180] sm:$0xff]   ;;  %v16868_v31 = vld [vmem:[%s24397_s3 + $0x278] sm:$0xff]  }
 0x322   :  { %16609 = vmatprep.subr.bf16.mxu1 %v16833_v32  ;;  %v5757_v32 = vmax.f32 %v20180_v9, 0.0  ;;  %v16871_v9 = vld [vmem:[%s24397_s3 + $0x2b8] sm:$0xff]   ;;  %v5778_v52 = vpack.c.bf16 %v5762_v41, %v5762_v41  ;;  %v16919_v41 = vld [vmem:[%s24397_s3 + $0x3b0] sm:$0xff]  }
 0x324   :  { %16588 = vmatpush3.bf16.msra.mxu0 %v16834_v33  ;;  %v5760_v33 = vmax.f32 %v20597_v58, 0.0 }
 0x325   :  { %16610 = vmatpush3.bf16.msra.mxu1 %v16835_v19  ;;  %16617 = vmatprep.subr.bf16.mxu0 %v16836_v56  ;;  %v5771_v19 = vpack.c.bf16 %v5755_v54, %v5755_v54  ;;  %v5773_v56 = vpack.c.bf16 %v5757_v32, %v5757_v32  ;;  %v16918_v32 = vld [vmem:[%s24397_s3 + $0x3f0] sm:$0xff]  }
 0x326   :  { %16639 = vmatprep.subr.bf16.mxu1 %v16837_v38  ;;  %v5776_v58 = vpack.c.bf16 %v5760_v33, %v5760_v33  ;;  %v16904_v33 = vld [vmem:[%s24397_s3 + $0x368] sm:$0xff]  }
 0x327   :  { %6847 = vmatmul.mubr.bf16.vlgmr.msra.gmra.mxu0 %v5767_v0  ;;  %v16874_v0 = vld [vmem:[%s24397_s3 + $0x230] sm:$0xff]  }
 0x328   :  { %6887 = vmatmul.mubr.bf16.vlgmr.msra.gmra.mxu1 %v5769_v44  ;;  %16618 = vmatpush3.bf16.msra.mxu0 %v16838_v39  ;;  %v16875_v44 = vld [vmem:[%s24397_s3 + $0x2b0] sm:$0xff]  }
 0x329   :  { %6926 = vmatprep.mubr.bf16.mxu0 %v5772_v62  ;;  %16640 = vmatpush3.bf16.msra.mxu1 %v16839_v45 }
 0x32a   :  { %6966 = vmatprep.mubr.bf16.mxu1 %v5774_v47  ;;  %16619 = vmatprep.subr.bf16.mxu0 %v16840_v1  ;;  %v16876_v1 = vld [vmem:[%s24397_s3 + $0x268] sm:$0xff]  }
 0x32b   :  { %16641 = vmatprep.subr.bf16.mxu1 %v16841_v24  ;;  %v16877_v24 = vld [vmem:[%s24397_s3 + $0x2e8] sm:$0xff]  }
 0x32c   :  { %16620 = vmatpush3.bf16.msra.mxu0 %v16842_v40 }
 0x32d   :  { %16642 = vmatpush3.bf16.msra.mxu1 %v16843_v61  ;;  %16621 = vmatprep.subr.bf16.mxu0 %v16844_v63  ;;  %v16878_v61 = vld [vmem:[%s24397_s3 + $0x228] sm:$0xff]  }
 0x32e   :  { %16643 = vmatprep.subr.bf16.mxu1 %v16845_v57  ;;  %v16879_v57 = vld [vmem:[%s24397_s3 + $0x2a8] sm:$0xff]  }
 0x330   :  { %16622 = vmatpush3.bf16.msra.mxu0 %v16846_v20  ;;  %v16880_v20 = vld [vmem:[%s24397_s3 + $0x260] sm:$0xff]  }
 0x331   :  { %16644 = vmatpush3.bf16.msra.mxu1 %v16847_v2  ;;  %16623 = vmatprep.subr.bf16.mxu0 %v16848_v16  ;;  %v16881_v16 = vld [vmem:[%s24397_s3 + $0x2e0] sm:$0xff]  }
 0x332   :  { %16645 = vmatprep.subr.bf16.mxu1 %v16849_v43  ;;  %v16882_v43 = vld [vmem:[%s24397_s3 + $0x220] sm:$0xff]  }
 0x334   :  { %16624 = vmatpush3.bf16.msra.mxu0 %v16850_v53  ;;  %v16883_v53 = vld [vmem:[%s24397_s3 + $0x2a0] sm:$0xff]  }
 0x335   :  { %16646 = vmatpush3.bf16.msra.mxu1 %v16851_v3  ;;  %16625 = vmatprep.subr.bf16.mxu0 %v16852_v4  ;;  %v16884_v3 = vld [vmem:[%s24397_s3 + $0x258] sm:$0xff]  }
 0x336   :  { %16647 = vmatprep.subr.bf16.mxu1 %v16853_v46  ;;  %v16885_v4 = vld [vmem:[%s24397_s3 + $0x2d8] sm:$0xff]  }
 0x337   :  { %v16886_v46 = vld [vmem:[%s24397_s3 + $0x218] sm:$0xff]  }
 0x338   :  { %16626 = vmatpush3.bf16.msra.mxu0 %v16854_v29  ;;  %v16887_v29 = vld [vmem:[%s24397_s3 + $0x298] sm:$0xff]  }
 0x339   :  { %16648 = vmatpush3.bf16.msra.mxu1 %v16855_v5  ;;  %16627 = vmatprep.subr.bf16.mxu0 %v16856_v6  ;;  %v16888_v5 = vld [vmem:[%s24397_s3 + $0x250] sm:$0xff]  }
 0x33a   :  { %16649 = vmatprep.subr.bf16.mxu1 %v16857_v59  ;;  %v16889_v6 = vld [vmem:[%s24397_s3 + $0x2d0] sm:$0xff]  }
 0x33b   :  { %v16891_v59 = vld [vmem:[%s24397_s3 + $0x290] sm:$0xff]  }
 0x33c   :  { %16628 = vmatpush3.bf16.msra.mxu0 %v16858_v11  ;;  %v16892_v11 = vld [vmem:[%s24397_s3 + $0x248] sm:$0xff]  }
 0x33d   :  { %16650 = vmatpush3.bf16.msra.mxu1 %v16859_v12  ;;  %16629 = vmatprep.subr.bf16.mxu0 %v16860_v26  ;;  %v16893_v12 = vld [vmem:[%s24397_s3 + $0x2c8] sm:$0xff]  }
 0x33e   :  { %16651 = vmatprep.subr.bf16.mxu1 %v16861_v49  ;;  %v16894_v26 = vld [vmem:[%s24397_s3 + $0x208] sm:$0xff]   ;;  %v16896_v49 = vld [vmem:[%s24397_s3 + $0x240] sm:$0xff]  }
 0x340   :  { %16630 = vmatpush3.bf16.msra.mxu0 %v16862_v18  ;;  %v16898_v18 = vld [vmem:[%s24397_s3 + $0x200] sm:$0xff]  }
 0x341   :  { %16652 = vmatpush3.bf16.msra.mxu1 %v16863_v21  ;;  %16631 = vmatprep.subr.bf16.mxu0 %v16864_v23  ;;  %v5759_v21 = vmax.f32 %v20585_v48, 0.0  ;;  %v16899_v23 = vld [vmem:[%s24397_s3 + $0x280] sm:$0xff]   ;;  %v16901_v48 = vld [vmem:[%s24397_s3 + $0x338] sm:$0xff]  }
 0x342   :  { %16653 = vmatprep.subr.bf16.mxu1 %v16865_v50  ;;  %v16900_v50 = vld [vmem:[%s24397_s3 + $0x378] sm:$0xff]  }
 0x343   :  { %v5775_v54 = vpack.c.bf16 %v5759_v21, %v5759_v21 }
 0x344   :  { %16632 = vmatpush3.bf16.msra.mxu0 %v16866_v25  ;;  %v16916_v25 = vld [vmem:[%s24397_s3 + $0x3f8] sm:$0xff]  }
 0x345   :  { %16654 = vmatpush3.bf16.msra.mxu1 %v16867_v28  ;;  %16661 = vmatprep.subr.bf16.mxu0 %v16868_v31  ;;  %v16902_v28 = vld [vmem:[%s24397_s3 + $0x370] sm:$0xff]   ;;  %v5777_v31 = vpack.c.bf16 %v5761_v22, %v5761_v22 }
 0x346   :  { %16683 = vmatprep.subr.bf16.mxu1 %v16869_v30  ;;  %v16903_v30 = vld [vmem:[%s24397_s3 + $0x330] sm:$0xff]  }
 0x347   :  { %v20990_v38 = vpop.f32.mrf.mxu0  ;;  %6927 = vmatmul.mubr.bf16.vlgmr.msra.gmra.mxu0 %v5771_v19  ;;  %v16905_v19 = vld [vmem:[%s24397_s3 + $0x328] sm:$0xff]  }
 0x348   :  { %v20995_v39 = vpop.f32.mrf.mxu1  ;;  %6967 = vmatmul.mubr.bf16.vlgmr.msra.gmra.mxu1 %v5773_v56  ;;  %16662 = vmatpush3.bf16.msra.mxu0 %v16870_v36  ;;  %v16920_v36 = vld [vmem:[%s24397_s3 + $0x3e8] sm:$0xff]  }
 0x349   :  { %7006 = vmatprep.mubr.bf16.mxu0 %v5776_v58  ;;  %16684 = vmatpush3.bf16.msra.mxu1 %v16871_v9  ;;  %v21000_v45 = vpop.f32.mrf.mxu0  ;;  %v16906_v9 = vld [vmem:[%s24397_s3 + $0x360] sm:$0xff]   ;;  %v16921_v56 = vld [vmem:[%s24397_s3 + $0x3a8] sm:$0xff]  }
 0x34a   :  { %7046 = vmatprep.mubr.bf16.mxu1 %v5778_v52  ;;  %v21008_v62 = vpop.f32.mrf.mxu1  ;;  %16663 = vmatprep.subr.bf16.mxu0 %v16872_v37  ;;  %v16922_v37 = vld [vmem:[%s24397_s3 + $0x3e0] sm:$0xff]  }
 0x34b   :  { %v5543_v47 = vpop.f32.mrf.mxu0  ;;  %16685 = vmatprep.subr.bf16.mxu1 %v16873_v42  ;;  %v16907_v58 = vld [vmem:[%s24397_s3 + $0x320] sm:$0xff]   ;;  %v16908_v42 = vld [vmem:[%s24397_s3 + $0x358] sm:$0xff]  }
 0x34c   :  { %v5584_v40 = vpop.f32.mrf.mxu1  ;;  %16664 = vmatpush3.bf16.msra.mxu0 %v16874_v0  ;;  %v16923_v52 = vld [vmem:[%s24397_s3 + $0x3a0] sm:$0xff]   ;;  %v16924_v0 = vld [vmem:[%s24397_s3 + $0x3d8] sm:$0xff]   ;;  %v16926_v47 = vld [vmem:[%s24397_s3 + $0x3d0] sm:$0xff]  }
 0x34d   :  { %16686 = vmatpush3.bf16.msra.mxu1 %v16875_v44  ;;  %v5544_v63 = vpop.f32.mrf.mxu0  ;;  %16665 = vmatprep.subr.bf16.mxu0 %v16876_v1  ;;  %v16909_v44 = vld [vmem:[%s24397_s3 + $0x318] sm:$0xff]   ;;  %v16910_v1 = vld [vmem:[%s24397_s3 + $0x350] sm:$0xff]  }
 0x34e   :  { %v5585_v2 = vpop.f32.mrf.mxu1  ;;  %16687 = vmatprep.subr.bf16.mxu1 %v16877_v24  ;;  %v16925_v24 = vld [vmem:[%s24397_s3 + $0x398] sm:$0xff]   ;;  %v16911_v40 = vld [vmem:[%s24397_s3 + $0x310] sm:$0xff]  }
 0x34f   :  { %v16927_v63 = vld [vmem:[%s24397_s3 + $0x390] sm:$0xff]   ;;  %v16914_v2 = vld [vmem:[%s24397_s3 + $0x340] sm:$0xff]  }
 0x350   :  { %16666 = vmatpush3.bf16.msra.mxu0 %v16878_v61  ;;  %v16912_v61 = vld [vmem:[%s24397_s3 + $0x348] sm:$0xff]  }
 0x351   :  { %16688 = vmatpush3.bf16.msra.mxu1 %v16879_v57  ;;  %16667 = vmatprep.subr.bf16.mxu0 %v16880_v20  ;;  %v16928_v57 = vld [vmem:[%s24397_s3 + $0x3c8] sm:$0xff]  }
 0x352   :  { %16689 = vmatprep.subr.bf16.mxu1 %v16881_v16  ;;  %v16913_v20 = vld [vmem:[%s24397_s3 + $0x308] sm:$0xff]  }
 0x353   :  { %v16929_v16 = vld [vmem:[%s24397_s3 + $0x388] sm:$0xff]  }
 0x354   :  { %16668 = vmatpush3.bf16.msra.mxu0 %v16882_v43  ;;  %v877_v43 = vrot.slane %v20759_v34, %v19722_v10 }
 0x355   :  { %16690 = vmatpush3.bf16.msra.mxu1 %v16883_v53  ;;  %16669 = vmatprep.subr.bf16.mxu0 %v16884_v3  ;;  %v16930_v53 = vld [vmem:[%s24397_s3 + $0x3c0] sm:$0xff]   ;;  %v881_v3 = vrot.slane %v20759_v34, %v19725_v15 }
 0x356   :  { %16691 = vmatprep.subr.bf16.mxu1 %v16885_v4  ;;  %v16915_v4 = vld [vmem:[%s24397_s3 + $0x300] sm:$0xff]  }
 0x358   :  { %16670 = vmatpush3.bf16.msra.mxu0 %v16886_v46  ;;  %v16931_v46 = vld [vmem:[%s24397_s3 + $0x380] sm:$0xff]  }
 0x359   :  { %16692 = vmatpush3.bf16.msra.mxu1 %v16887_v29  ;;  %16671 = vmatprep.subr.bf16.mxu0 %v16888_v5  ;;  %v5540_v29 = vadd.f32 %v20990_v38, %v877_v43  ;;  %v5542_v5 = vadd.f32 %v21000_v45, %v881_v3  ;;  %v21248_v43 = vld [vmem:[%s24399_s5 + $0x44] ss:$8 sps:$4 sm:$0xff]   ;;  %v21256_v3 = vld [vmem:[%s24399_s5 + $0x40] ss:$8 sps:$4 sm:$0xff]  }
 0x35a   :  { %16693 = vmatprep.subr.bf16.mxu1 %v16889_v6 }
 0x35b   :  { %v5581_v6 = vadd.f32 %v20995_v39, %v5540_v29  ;;  %v885_v39 = vrot.slane %v20759_v34, %v20131_v27  ;;  %v21269_v29 = vld [vmem:[%s24399_s5 + $0x34] ss:$8 sps:$4 sm:$0xff]  }
 0x35c   :  { %16672 = vmatpush3.bf16.msra.mxu0 %v16890_v7 }
 0x35d   :  { %16694 = vmatpush3.bf16.msra.mxu1 %v16891_v59  ;;  %16673 = vmatprep.subr.bf16.mxu0 %v16892_v11  ;;  %v5583_v59 = vadd.f32 %v21008_v62, %v5542_v5  ;;  %v889_v62 = vrot.slane %v20759_v34, %v20146_v35  ;;  %v16932_v34 = vld [vmem:[%s24398_s6 + $0x70] ss:$8 sps:$4 sm:$0xff]  }
 0x35e   :  { %16695 = vmatprep.subr.bf16.mxu1 %v16893_v12 }
 0x360   :  { %16674 = vmatpush3.bf16.msra.mxu0 %v16894_v26 }
 0x361   :  { %16696 = vmatpush3.bf16.msra.mxu1 %v16895_v13  ;;  %16675 = vmatprep.subr.bf16.mxu0 %v16896_v49 }
 0x362   :  { %16697 = vmatprep.subr.bf16.mxu1 %v16897_v17 }
 0x364   :  { %16676 = vmatpush3.bf16.msra.mxu0 %v16898_v18 }
 0x365   :  { %16698 = vmatpush3.bf16.msra.mxu1 %v16899_v23  ;;  %16705 = vmatprep.subr.bf16.mxu0 %v16900_v50 }
 0x366   :  { %16727 = vmatprep.subr.bf16.mxu1 %v16916_v25 }
 0x367   :  { %7007 = vmatmul.mubr.bf16.vlgmr.msra.gmra.mxu0 %v5775_v54 }
 0x368   :  { %7047 = vmatmul.mubr.bf16.vlgmr.msra.gmra.mxu1 %v5777_v31  ;;  %16706 = vmatpush3.bf16.msra.mxu0 %v16901_v48 }
 0x369   :  { %16707 = vmatprep.subr.bf16.mxu0 %v16902_v28  ;;  %16728 = vmatpush3.bf16.msra.mxu1 %v16917_v55 }
 0x36a   :  { %16729 = vmatprep.subr.bf16.mxu1 %v16918_v32 }
 0x36c   :  { %16708 = vmatpush3.bf16.msra.mxu0 %v16903_v30 }
 0x36d   :  { %16709 = vmatprep.subr.bf16.mxu0 %v16904_v33  ;;  %16730 = vmatpush3.bf16.msra.mxu1 %v16919_v41 }
 0x36e   :  { %16731 = vmatprep.subr.bf16.mxu1 %v16920_v36 }
 0x370   :  { %16710 = vmatpush3.bf16.msra.mxu0 %v16905_v19 }
 0x371   :  { %16711 = vmatprep.subr.bf16.mxu0 %v16906_v9  ;;  %16732 = vmatpush3.bf16.msra.mxu1 %v16921_v56 }
 0x372   :  { %16733 = vmatprep.subr.bf16.mxu1 %v16922_v37 }
 0x374   :  { %16712 = vmatpush3.bf16.msra.mxu0 %v16907_v58 }
 0x375   :  { %16713 = vmatprep.subr.bf16.mxu0 %v16908_v42  ;;  %16734 = vmatpush3.bf16.msra.mxu1 %v16923_v52 }
 0x376   :  { %16735 = vmatprep.subr.bf16.mxu1 %v16924_v0  ;;  %v16934_v0 = vld [vmem:[%s24398_s6 + $0x74] ss:$8 sps:$4 sm:$0xff]  }
 0x378   :  { %16714 = vmatpush3.bf16.msra.mxu0 %v16909_v44  ;;  %v21198_v44 = vld [vmem:[%s24399_s5 + $0x70] ss:$8 sps:$4 sm:$0xff]  }
 0x379   :  { %16715 = vmatprep.subr.bf16.mxu0 %v16910_v1  ;;  %16736 = vmatpush3.bf16.msra.mxu1 %v16925_v24  ;;  %v21203_v1 = vld [vmem:[%s24399_s5 + $0x74] ss:$8 sps:$4 sm:$0xff]   ;;  %v16938_v24 = vld [vmem:[%s24398_s6 + $0x60] ss:$8 sps:$4 sm:$0xff]  }
 0x37a   :  { %16737 = vmatprep.subr.bf16.mxu1 %v16926_v47  ;;  %v16940_v47 = vld [vmem:[%s24398_s6 + $0x64] ss:$8 sps:$4 sm:$0xff]  }
 0x37c   :  { %16716 = vmatpush3.bf16.msra.mxu0 %v16911_v40  ;;  %v21215_v40 = vld [vmem:[%s24399_s5 + $0x60] ss:$8 sps:$4 sm:$0xff]  }
 0x37d   :  { %16717 = vmatprep.subr.bf16.mxu0 %v16912_v61  ;;  %16738 = vmatpush3.bf16.msra.mxu1 %v16927_v63  ;;  %v21221_v61 = vld [vmem:[%s24399_s5 + $0x64] ss:$8 sps:$4 sm:$0xff]   ;;  %v16946_v63 = vld [vmem:[%s24398_s6 + $0x54] ss:$8 sps:$4 sm:$0xff]  }
 0x37e   :  { %16739 = vmatprep.subr.bf16.mxu1 %v16928_v57  ;;  %v16944_v57 = vld [vmem:[%s24398_s6 + $0x50] ss:$8 sps:$4 sm:$0xff]  }
 0x380   :  { %16718 = vmatpush3.bf16.msra.mxu0 %v16913_v20  ;;  %v21233_v20 = vld [vmem:[%s24399_s5 + $0x54] ss:$8 sps:$4 sm:$0xff]  }
 0x381   :  { %16719 = vmatprep.subr.bf16.mxu0 %v16914_v2  ;;  %16740 = vmatpush3.bf16.msra.mxu1 %v16929_v16  ;;  %v21238_v2 = vld [vmem:[%s24399_s5 + $0x50] ss:$8 sps:$4 sm:$0xff]   ;;  %v16952_v16 = vld [vmem:[%s24398_s6 + $0x44] ss:$8 sps:$4 sm:$0xff]  }
 0x382   :  { %16741 = vmatprep.subr.bf16.mxu1 %v16930_v53  ;;  %v16950_v53 = vld [vmem:[%s24398_s6 + $0x40] ss:$8 sps:$4 sm:$0xff]  }
 0x384   :  { %16720 = vmatpush3.bf16.msra.mxu0 %v16915_v4  ;;  %v16958_v4 = vld [vmem:[%s24398_s6 + $0x34] ss:$8 sps:$4 sm:$0xff]  }
 0x385   :  { %16742 = vmatpush3.bf16.msra.mxu1 %v16931_v46  ;;  %7250 = vmatprep.subr.bf16.mxu0 %v16934_v0  ;;  %v16956_v46 = vld [vmem:[%s24398_s6 + $0x30] ss:$8 sps:$4 sm:$0xff]   ;;  %v18168_v0 = vmov 0  }
 0x386   :  { %7371 = vmatprep.subr.bf16.mxu1 %v21203_v1 }
 0x387   :  { %v5621_v7 = vpop.f32.mrf.mxu0 }
 0x388   :  { %v5622_v11 = vadd.f32 %v5621_v7, %v5581_v6  ;;  %v5662_v12 = vpop.f32.mrf.mxu1  ;;  %v15474_v6 = vld [vmem:[%s24400_s4] ss:$0 sm:$0xff]  ;;  %v21277_v7 = vld [vmem:[%s24399_s5 + $0x30] ss:$8 sps:$4 sm:$0xff]  }
 0x389   :  { %v5623_v26 = vpop.f32.mrf.mxu0  ;;  %v5663_v25 = vadd.f32 %v5662_v12, %v885_v39 }
 0x38a   :  { %v5624_v13 = vadd.f32 %v5623_v26, %v5583_v59  ;;  %v5664_v49 = vpop.f32.mrf.mxu1  ;;  %v5763_v17 = vmax.f32 %v5622_v11, 0.0  ;;  %v16964_v59 = vld [vmem:[%s24398_s6 + $0x24] ss:$8 sps:$4 sm:$0xff]  }
 0x38b   :  { %v5625_v18 = vpop.f32.mrf.mxu0  ;;  %v5665_v54 = vadd.f32 %v5664_v49, %v889_v62  ;;  %v21287_v49 = vld [vmem:[%s24399_s5 + $0x24] ss:$8 sps:$4 sm:$0xff]  }
 0x38c   :  { %v5764_v21 = vmax.f32 %v5624_v13, 0.0  ;;  %v5666_v23 = vpop.f32.mrf.mxu1  ;;  %v5779_v45 = vpack.c.bf16 %v5763_v17, %v5763_v17 }
 0x38d   :  { %v5626_v38 = vpop.f32.mrf.mxu0 }
 0x38e   :  { %v5780_v50 = vpack.c.bf16 %v5764_v21, %v5764_v21  ;;  %v5667_v22 = vpop.f32.mrf.mxu1  ;;  %v16962_v38 = vld [vmem:[%s24398_s6 + $0x20] ss:$8 sps:$4 sm:$0xff]  }
 0x38f   :  { %v21296_v22 = vld [vmem:[%s24399_s5 + $0x20] ss:$8 sps:$4 sm:$0xff]  }
 0x390   :  { %7086 = vmatprep.mubr.bf16.mxu0 %v5780_v50 }
 0x391   :  { %7087 = vmatmul.mubr.bf16.vlgmr.msra.gmra.mxu0 %v5779_v45 }
 0x392   :  { %7251 = vmatpush1.bf16.msra.mxu0 %v16932_v34  ;;  %v16977_v34 = vld [vmem:[%s24399_s5] ss:$8 sps:$4 sm:$0xff]   ;;  %7282 = vmatprep.mubr.bf16.mxu0 %v18168_v0 }
 0x393   :  { %7252 = vmatprep.subr.bf16.mxu0 %v16940_v47 }
 0x396   :  { %7253 = vmatpush1.bf16.msra.mxu0 %v16938_v24 }
 0x397   :  { %7254 = vmatprep.subr.bf16.mxu0 %v16946_v63 }
 0x39a   :  { %7255 = vmatpush1.bf16.msra.mxu0 %v16944_v57 }
 0x39b   :  { %7256 = vmatprep.subr.bf16.mxu0 %v16952_v16 }
 0x39e   :  { %7257 = vmatpush1.bf16.msra.mxu0 %v16950_v53 }
 0x39f   :  { %7258 = vmatprep.subr.bf16.mxu0 %v16958_v4 }
 0x3a2   :  { %7259 = vmatpush1.bf16.msra.mxu0 %v16956_v46 }
 0x3a3   :  { %7260 = vmatprep.subr.bf16.mxu0 %v16964_v59 }
 0x3a6   :  { %7261 = vmatpush1.bf16.msra.mxu0 %v16962_v38 }
 0x3c7   :  { %v5703_v48 = vpop.f32.mrf.mxu0 }
 0x3c8   :  { %v5704_v28 = vadd.f32 %v5703_v48, %v5663_v25  ;;  %v5744_v55 = vpop.f32.mrf.mxu1 }
 0x3c9   :  { %v5705_v31 = vpop.f32.mrf.mxu0 }
 0x3ca   :  { %v5745_v32 = vadd.f32 %v5744_v55, %v5704_v28  ;;  %v5706_v30 = vadd.f32 %v5705_v31, %v5665_v54  ;;  %v5746_v33 = vpop.f32.mrf.mxu1 }
 0x3cb   :  { %v5707_v41 = vpop.f32.mrf.mxu0 }
 0x3cc   :  { %v5747_v36 = vadd.f32 %v5746_v33, %v5706_v30  ;;  %v5748_v19 = vpop.f32.mrf.mxu1  ;;  %v5765_v9 = vmax.f32 %v5745_v32, 0.0 }
 0x3cd   :  { %v5708_v56 = vpop.f32.mrf.mxu0  ;;  %v16968_v19 = vld [vmem:[%s24398_s6 + $0x10] ss:$8 sps:$4 sm:$0xff]  }
 0x3ce   :  { %v5766_v37 = vmax.f32 %v5747_v36, 0.0  ;;  %v5749_v58 = vpop.f32.mrf.mxu1  ;;  %v5781_v52 = vpack.c.bf16 %v5765_v9, %v5765_v9  ;;  %v16970_v9 = vld [vmem:[%s24398_s6 + $0x14] ss:$8 sps:$4 sm:$0xff]   ;;  %v16971_v56 = vld [vmem:[%s24399_s5 + $0x10] ss:$8 sps:$4 sm:$0xff]  }
 0x3cf   :  { %7262 = vmatprep.subr.bf16.mxu0 %v16970_v9  ;;  %v16976_v58 = vld [vmem:[%s24398_s6 + $0x4] ss:$8 sps:$4 sm:$0xff]  }
 0x3d0   :  { %v5782_v42 = vpack.c.bf16 %v5766_v37, %v5766_v37  ;;  %v16973_v37 = vld [vmem:[%s24399_s5 + $0x14] ss:$8 sps:$4 sm:$0xff]   ;;  %7263 = vmatpush1.bf16.msra.mxu0 %v16968_v19 }
 0x3d1   :  { %7264 = vmatprep.subr.bf16.mxu0 %v16976_v58 }
 0x3d2   :  { %7126 = vmatprep.mubr.bf16.mxu1 %v5782_v42  ;;  %v16974_v42 = vld [vmem:[%s24398_s6] ss:$8 sps:$4 sm:$0xff]  }
 0x3d3   :  { %7127 = vmatmul.mubr.bf16.vlgmr.msra.gmra.mxu1 %v5781_v52  ;;  %v16979_v52 = vld [vmem:[%s24399_s5 + $0x4] ss:$8 sps:$4 sm:$0xff]  }
 0x3d4   :  { %7372 = vmatpush1.bf16.msra.mxu1 %v21198_v44  ;;  %7265 = vmatpush1.bf16.msra.mxu0 %v16974_v42 }
 0x3d5   :  { %7373 = vmatprep.subr.bf16.mxu1 %v21221_v61  ;;  %7412 = vmatprep.subr.bf16.mxu0 %v21203_v1 }
 0x3d6   :  { %7403 = vmatprep.mubr.bf16.mxu1 %v18168_v0 }
 0x3d8   :  { %7374 = vmatpush1.bf16.msra.mxu1 %v21215_v40 }
 0x3d9   :  { %7375 = vmatprep.subr.bf16.mxu1 %v21233_v20 }
 0x3dc   :  { %7376 = vmatpush1.bf16.msra.mxu1 %v21238_v2 }
 0x3dd   :  { %7377 = vmatprep.subr.bf16.mxu1 %v21248_v43 }
 0x3e0   :  { %7378 = vmatpush1.bf16.msra.mxu1 %v21256_v3 }
 0x3e1   :  { %7379 = vmatprep.subr.bf16.mxu1 %v21269_v29 }
 0x3e4   :  { %7380 = vmatpush1.bf16.msra.mxu1 %v21277_v7 }
 0x3e5   :  { %7381 = vmatprep.subr.bf16.mxu1 %v21287_v49 }
 0x3e7   :  { %v16589_v5 = vpop.f32.mrf.mxu0 }
 0x3e8   :  { %v16611_v11 = vpop.f32.mrf.mxu1  ;;  %7382 = vmatpush1.bf16.msra.mxu1 %v21296_v22 }
 0x3e9   :  { %v16590_v12 = vpop.f32.mrf.mxu0  ;;  %7383 = vmatprep.subr.bf16.mxu1 %v16973_v37 }
 0x3ea   :  { %v16591_v26 = vadd.f32 %v16590_v12, %v16589_v5  ;;  %v16612_v13 = vpop.f32.mrf.mxu1 }
 0x3eb   :  { %v16613_v17 = vadd.f32 %v16612_v13, %v16611_v11  ;;  %v16592_v18 = vpop.f32.mrf.mxu0 }
 0x3ec   :  { %v6849_v21 = vadd.f32 %v16591_v26, %v15474_v6  ;;  %v16614_v23 = vpop.f32.mrf.mxu1  ;;  %7384 = vmatpush1.bf16.msra.mxu1 %v16971_v56 }
 0x3ed   :  { %v16593_v50 = vpop.f32.mrf.mxu0  ;;  %7385 = vmatprep.subr.bf16.mxu1 %v16979_v52 }
 0x3ee   :  { %v6889_v45 = vadd.f32 %v16613_v17, %v6849_v21  ;;  %v16615_v39 = vpop.f32.mrf.mxu1 }
 0x3f0   :  { %7386 = vmatpush1.bf16.msra.mxu1 %v16977_v34 }
 0x407   :  { %v16633_v62 = vpop.f32.mrf.mxu0 }
 0x408   :  { %v16655_v25 = vpop.f32.mrf.mxu1 }
 0x409   :  { %v16634_v48 = vpop.f32.mrf.mxu0 }
 0x40a   :  { %v16635_v54 = vadd.f32 %v16634_v48, %v16633_v62  ;;  %v16656_v28 = vpop.f32.mrf.mxu1 }
 0x40b   :  { %v16657_v55 = vadd.f32 %v16656_v28, %v16655_v25  ;;  %v16636_v31 = vpop.f32.mrf.mxu0 }
 0x40c   :  { %v6929_v32 = vadd.f32 %v16635_v54, %v6889_v45  ;;  %v16658_v30 = vpop.f32.mrf.mxu1 }
 0x40d   :  { %v16637_v33 = vpop.f32.mrf.mxu0 }
 0x40e   :  { %v6969_v41 = vadd.f32 %v16657_v55, %v6929_v32  ;;  %v16659_v36 = vpop.f32.mrf.mxu1 }
 0x427   :  { %v16677_v24 = vpop.f32.mrf.mxu0 }
 0x428   :  { %v16699_v47 = vpop.f32.mrf.mxu1 }
 0x429   :  { %v16678_v63 = vpop.f32.mrf.mxu0 }
 0x42a   :  { %v16679_v57 = vadd.f32 %v16678_v63, %v16677_v24  ;;  %v16700_v16 = vpop.f32.mrf.mxu1 }
 0x42b   :  { %v16701_v53 = vadd.f32 %v16700_v16, %v16699_v47  ;;  %v16680_v4 = vpop.f32.mrf.mxu0  ;;  %v7471_v47 = vld [vmem:[%s24402_s8] sm:$0x3] }
 0x42c   :  { %v7009_v46 = vadd.f32 %v16679_v57, %v6969_v41  ;;  %v16702_v5 = vpop.f32.mrf.mxu1  ;;  %v21350_v63 = vrot.slane %v7471_v47, %v19089_v51  ;;  %v21353_v57 = vrot.slane %v7471_v47, %v19097_v60  ;;  %v7958_v47 = vld [vmem:[%s24405_s11 + $0x340] sm:$0xff] }
 0x42d   :  { %v16681_v6 = vpop.f32.mrf.mxu0 }
 0x42e   :  { %v7049_v59 = vadd.f32 %v16701_v53, %v7009_v46  ;;  %v16703_v11 = vpop.f32.mrf.mxu1  ;;  %v16980_v6 = vld [vmem:[%s24403_s10 + $0x78] sm:$0xff]  }
 0x42f   :  { %16749 = vmatprep.subr.bf16.mxu1 %v16980_v6  ;;  %v16982_v11 = vld [vmem:[%s24403_s10 + $0x38] sm:$0xff]   ;;  %v7942_v6 = vld [vmem:[%s24405_s11 + $0x2c0] sm:$0xff] }
 0x451   :  { %v16721_v12 = vpop.f32.mrf.mxu0 }
 0x453   :  { %v16722_v26 = vpop.f32.mrf.mxu0 }
 0x454   :  { %v16723_v1 = vadd.f32 %v16722_v26, %v16721_v12  ;;  %v16983_v12 = vld [vmem:[%s24404_s9 + $0x38] sm:$0xff]   ;;  %v16984_v26 = vld [vmem:[%s24403_s10 + $0x70] sm:$0xff]  }
 0x455   :  { %v16724_v13 = vpop.f32.mrf.mxu0 }
 0x456   :  { %v7089_v17 = vadd.f32 %v16723_v1, %v7049_v59  ;;  %v16981_v59 = vld [vmem:[%s24404_s9 + $0x78] sm:$0xff]   ;;  %v16985_v1 = vld [vmem:[%s24404_s9 + $0x70] sm:$0xff]  }
 0x457   :  { %v16725_v18 = vpop.f32.mrf.mxu0  ;;  %v16986_v13 = vld [vmem:[%s24403_s10 + $0x30] sm:$0xff]  }
 0x458   :  { %v16987_v18 = vld [vmem:[%s24404_s9 + $0x30] sm:$0xff]  }
 0x493   :  { %v16743_v21 = vpop.f32.mrf.mxu1 }
 0x495   :  { %v16744_v23 = vpop.f32.mrf.mxu1 }
 0x496   :  { %v16745_v38 = vadd.f32 %v16744_v23, %v16743_v21  ;;  %v16988_v23 = vld [vmem:[%s24403_s10 + $0x68] sm:$0xff]  }
 0x497   :  { %v16746_v50 = vpop.f32.mrf.mxu1 }
 0x498   :  { %v7129_v45 = vadd.f32 %v16745_v38, %v7089_v17  ;;  %v16989_v38 = vld [vmem:[%s24404_s9 + $0x68] sm:$0xff]  }
 0x499   :  { %v16747_v39 = vpop.f32.mrf.mxu1  ;;  %v16990_v50 = vld [vmem:[%s24403_s10 + $0x28] sm:$0xff]  }
 0x49a   :  { %v7134_v62 = vpack.c.bf16 %v7129_v45, %v7129_v45  ;;  %v16992_v39 = vld [vmem:[%s24403_s10 + $0x60] sm:$0xff]  }
 0x49c   :  { %7283 = vmatmul.mubr.bf16.vlgmr.msra.gmra.mxu0 %v7134_v62  ;;  %7404 = vmatmul.mubr.bf16.vlgmr.msra.gmra.mxu1 %v7134_v62 }
 0x49d   :  { %7413 = vmatpush1.bf16.msra.mxu0 %v21198_v44  ;;  %7444 = vmatprep.mubr.bf16.mxu0 %v18168_v0  ;;  %v7135_v44 = vunpack.c.l.bf16 %v7134_v62  ;;  %v16993_v62 = vld [vmem:[%s24404_s9 + $0x60] sm:$0xff]  }
 0x49e   :  { %7414 = vmatprep.subr.bf16.mxu0 %v21221_v61  ;;  %16750 = vmatpush3.bf16.msra.mxu1 %v16982_v11 }
 0x49f   :  { %16751 = vmatprep.subr.bf16.mxu1 %v16984_v26 }
 0x4a1   :  { %7415 = vmatpush1.bf16.msra.mxu0 %v21215_v40  ;;  %v7136_v40 = vsub.f32 %v7129_v45, %v7135_v44  ;;  %v16991_v45 = vld [vmem:[%s24404_s9 + $0x28] sm:$0xff]   ;;  %v16994_v44 = vld [vmem:[%s24403_s10 + $0x20] sm:$0xff]  }
 0x4a2   :  { %7416 = vmatprep.subr.bf16.mxu0 %v21233_v20  ;;  %16752 = vmatpush3.bf16.msra.mxu1 %v16986_v13  ;;  %v7918_v13 = vld [vmem:[%s24405_s11 + $0x200] sm:$0xff] }
 0x4a3   :  { %v7137_v61 = vpack.c.bf16 %v7136_v40, %v7136_v40  ;;  %16753 = vmatprep.subr.bf16.mxu1 %v16988_v23  ;;  %v16995_v40 = vld [vmem:[%s24404_s9 + $0x20] sm:$0xff]  }
 0x4a5   :  { %7417 = vmatpush1.bf16.msra.mxu0 %v21238_v2 }
 0x4a6   :  { %7418 = vmatprep.subr.bf16.mxu0 %v21248_v43  ;;  %16754 = vmatpush3.bf16.msra.mxu1 %v16990_v50 }
 0x4a7   :  { %16755 = vmatprep.subr.bf16.mxu1 %v16992_v39  ;;  %v7902_v39 = vld [vmem:[%s24405_s11 + $0x180] sm:$0xff] }
 0x4a9   :  { %7419 = vmatpush1.bf16.msra.mxu0 %v21256_v3 }
 0x4aa   :  { %7420 = vmatprep.subr.bf16.mxu0 %v21269_v29  ;;  %16756 = vmatpush3.bf16.msra.mxu1 %v16994_v44  ;;  %v7903_v44 = vld [vmem:[%s24405_s11 + $0x188] sm:$0xff] }
 0x4ad   :  { %7421 = vmatpush1.bf16.msra.mxu0 %v21277_v7 }
 0x4ae   :  { %7422 = vmatprep.subr.bf16.mxu0 %v21287_v49 }
 0x4b1   :  { %7423 = vmatpush1.bf16.msra.mxu0 %v21296_v22  ;;  %v7455_v22 = vld [vmem:[%s24401_s7] sm:$0x3]  ;;  %s18170_s7 = smov 32  }
 0x4b2   :  { %7424 = vmatprep.subr.bf16.mxu0 %v16973_v37  ;;  %v7462_v30 = vrot.slane %v7455_v22, %v19089_v51  ;;  %v7466_v41 = vrot.slane %v7455_v22, %v19097_v60  ;;  %v17007_v22 = vld [vmem:[%s24404_s9 + $0x8] sm:$0xff]  }
 0x4b5   :  { %7425 = vmatpush1.bf16.msra.mxu0 %v16971_v56 }
 0x4b6   :  { %7426 = vmatprep.subr.bf16.mxu0 %v16979_v52 }
 0x4b9   :  { %7427 = vmatpush1.bf16.msra.mxu0 %v16977_v34 }
 0x4ba   :  { %16771 = vmatprep.subr.bf16.mxu0 %v16981_v59  ;;  %v18172_v59 = vmov 1.0|1.0  }
 0x4bc   :  { %7445 = vmatmul.mubr.bf16.vlgmr.msra.gmra.mxu0 %v7137_v61  ;;  %v16996_v61 = vld [vmem:[%s24403_s10 + $0x58] sm:$0xff]  }
 0x4bd   :  { %16772 = vmatpush3.bf16.msra.mxu0 %v16983_v12  ;;  %16757 = vmatprep.subr.bf16.mxu1 %v16996_v61 }
 0x4be   :  { %16773 = vmatprep.subr.bf16.mxu0 %v16985_v1 }
 0x4c1   :  { %16774 = vmatpush3.bf16.msra.mxu0 %v16987_v18  ;;  %v7919_v18 = vld [vmem:[%s24405_s11 + $0x208] sm:$0xff] }
 0x4c2   :  { %16775 = vmatprep.subr.bf16.mxu0 %v16989_v38 }
 0x4c5   :  { %16776 = vmatpush3.bf16.msra.mxu0 %v16991_v45 }
 0x4c6   :  { %16777 = vmatprep.subr.bf16.mxu0 %v16993_v62  ;;  %v7910_v62 = vld [vmem:[%s24405_s11 + $0x1c0] sm:$0xff] }
 0x4c9   :  { %16778 = vmatpush3.bf16.msra.mxu0 %v16995_v40  ;;  %v7911_v40 = vld [vmem:[%s24405_s11 + $0x1c8] sm:$0xff] }
 0x55c   :  { %v7284_v20 = vpop.f32.mrf.mxu0  ;;  %v7405_v2 = vpop.f32.mrf.mxu1 }
 0x55d   :  { %v7406_v54 = vadd.f32 %v7405_v2, %v7284_v20  ;;  %v16997_v20 = vld [vmem:[%s24404_s9 + $0x58] sm:$0xff]  }
 0x55e   :  { %v7286_v43 = vpop.f32.mrf.mxu0  ;;  %v7407_v3 = vpop.f32.mrf.mxu1  ;;  %v16998_v2 = vld [vmem:[%s24403_s10 + $0x18] sm:$0xff]   ;;  %16779 = vmatprep.subr.bf16.mxu0 %v16997_v20 }
 0x55f   :  { %v7408_v28 = vadd.f32 %v7407_v3, %v7286_v43  ;;  %v16999_v43 = vld [vmem:[%s24404_s9 + $0x18] sm:$0xff]   ;;  %16758 = vmatpush3.bf16.msra.mxu1 %v16998_v2  ;;  %v17000_v3 = vld [vmem:[%s24403_s10 + $0x50] sm:$0xff]   ;;  %v15726_v2 = vcombine.high %v7902_v39, %v7910_v62 }
 0x560   :  { %v7288_v25 = vpop.f32.mrf.mxu0  ;;  %v7409_v29 = vpop.f32.mrf.mxu1  ;;  %16780 = vmatpush3.bf16.msra.mxu0 %v16999_v43  ;;  %16759 = vmatprep.subr.bf16.mxu1 %v17000_v3  ;;  %v15728_v43 = vcombine.high %v7903_v44, %v7911_v40  ;;  %v7886_v3 = vld [vmem:[%s24405_s11 + $0x100] sm:$0xff] }
 0x561   :  { %v17001_v25 = vld [vmem:[%s24404_s9 + $0x50] sm:$0xff]  }
 0x562   :  { %v7289_v48 = vpop.f32.mrf.mxu0  ;;  %v7410_v7 = vpop.f32.mrf.mxu1  ;;  %v17002_v29 = vld [vmem:[%s24403_s10 + $0x10] sm:$0xff]   ;;  %16781 = vmatprep.subr.bf16.mxu0 %v17001_v25  ;;  %v7894_v25 = vld [vmem:[%s24405_s11 + $0x140] sm:$0xff] }
 0x563   :  { %v17003_v48 = vld [vmem:[%s24404_s9 + $0x10] sm:$0xff]   ;;  %16760 = vmatpush3.bf16.msra.mxu1 %v17002_v29  ;;  %v17004_v7 = vld [vmem:[%s24403_s10 + $0x48] sm:$0xff]  }
 0x564   :  { %16782 = vmatpush3.bf16.msra.mxu0 %v17003_v48  ;;  %16761 = vmatprep.subr.bf16.mxu1 %v17004_v7  ;;  %v7887_v29 = vld [vmem:[%s24405_s11 + $0x108] sm:$0xff]  ;;  %v15725_v7 = vcombine.low %v7902_v39, %v7910_v62 }
 0x565   :  { %v7895_v48 = vld [vmem:[%s24405_s11 + $0x148] sm:$0xff] }
 0x57c   :  { %v7446_v49 = vpop.f32.mrf.mxu0 }
 0x57d   :  { %v7453_v55 = vadd.f32 %v7446_v49, %v7406_v54  ;;  %v17005_v54 = vld [vmem:[%s24404_s9 + $0x48] sm:$0xff]  }
 0x57e   :  { %v7448_v31 = vpop.f32.mrf.mxu0  ;;  %v17006_v49 = vld [vmem:[%s24403_s10 + $0x8] sm:$0xff]   ;;  %16783 = vmatprep.subr.bf16.mxu0 %v17005_v54  ;;  %v15727_v54 = vcombine.low %v7903_v44, %v7911_v40  ;;  %v7936_v44 = vld [vmem:[%s24405_s11 + $0x290] sm:$0xff] }
 0x57f   :  { %v7456_v32 = vmul.f32 2.0, %v7453_v55  ;;  %v7454_v33 = vadd.f32 %v7448_v31, %v7408_v28  ;;  %16762 = vmatpush3.bf16.msra.mxu1 %v17006_v49  ;;  %16784 = vmatpush3.bf16.msra.mxu0 %v17007_v22  ;;  %v17008_v28 = vld [vmem:[%s24403_s10 + $0x40] sm:$0xff]   ;;  %v15710_v49 = vcombine.high %v7886_v3, %v7894_v25  ;;  %v15712_v22 = vcombine.high %v7887_v29, %v7895_v48  ;;  %v7944_v40 = vld [vmem:[%s24405_s11 + $0x2d0] sm:$0xff] }
 0x580   :  { %v7450_v36 = vpop.f32.mrf.mxu0  ;;  %v17009_v55 = vld [vmem:[%s24404_s9 + $0x40] sm:$0xff]   ;;  %16763 = vmatprep.subr.bf16.mxu1 %v17008_v28  ;;  %v15709_v28 = vcombine.low %v7886_v3, %v7894_v25  ;;  %v7945_v3 = vld [vmem:[%s24405_s11 + $0x2d8] sm:$0xff] }
 0x581   :  { %v7457_v19 = vmul.f32 2.0, %v7454_v33  ;;  %v7469_v56 = vsub.f32 %v7462_v30, %v7456_v32  ;;  %v17010_v31 = vld [vmem:[%s24403_s10] sm:$0xff]   ;;  %16785 = vmatprep.subr.bf16.mxu0 %v17009_v55  ;;  %v15711_v55 = vcombine.low %v7887_v29, %v7895_v48  ;;  %v7920_v48 = vld [vmem:[%s24405_s11 + $0x210] sm:$0xff] }
 0x582   :  { %v7451_v9 = vpop.f32.mrf.mxu0  ;;  %v17011_v32 = vld [vmem:[%s24404_s9] sm:$0xff]  }
 0x583   :  { %v7470_v37 = vsub.f32 %v7466_v41, %v7457_v19  ;;  %16764 = vmatpush3.bf16.msra.mxu1 %v17010_v31  ;;  %16786 = vmatpush3.bf16.msra.mxu0 %v17011_v32  ;;  %v7966_v30 = vld [vmem:[%s24405_s11 + $0x380] sm:$0xff]  ;;  %v7967_v41 = vld [vmem:[%s24405_s11 + $0x388] sm:$0xff] }
 0x584   :  { %v7974_v33 = vld [vmem:[%s24405_s11 + $0x3c0] sm:$0xff]  ;;  %v7975_v9 = vld [vmem:[%s24405_s11 + $0x3c8] sm:$0xff] }
 0x585   :  { %v7472_v58 = vmin.f32 %v7469_v56, %v7470_v37  ;;  %v15789_v36 = vcombine.low %v7966_v30, %v7974_v33  ;;  %v15790_v19 = vcombine.high %v7966_v30, %v7974_v33  ;;  %v7870_v31 = vld [vmem:[%s24405_s11 + $0x80] sm:$0xff]  ;;  %v7871_v30 = vld [vmem:[%s24405_s11 + $0x88] sm:$0xff] }
 0x586   :  { %v7878_v32 = vld [vmem:[%s24405_s11 + $0xc0] sm:$0xff] }
 0x587   :  { %7473 = vrot.lane.b32.xlu0 %v7472_v58, %s18169_s18  ;;  %8706 = vmatprep.subr.bf16.mxu1 %v15790_v19  ;;  %v15694_v33 = vcombine.high %v7870_v31, %v7878_v32 }
 0x5f9   :  { %v7474_v42 = vpop.permute.xlu0 %7473 }
 0x5fa   :  { %v7477_v52 = vmin.f32 %v7472_v58, %v7474_v42 }
 0x5fc   :  { %7478 = vrot.lane.b32.xlu0 %v7477_v52, %s18170_s7 }
 0x66e   :  { %v7479_v34 = vpop.permute.xlu0 %7478 }
 0x66f   :  { %v7480_v24 = vmin.f32 %v7477_v52, %v7479_v34  ;;  %v7950_v34 = vld [vmem:[%s24405_s11 + $0x300] sm:$0xff] }
 0x670   :  { %v15773_v11 = vcombine.low %v7950_v34, %v7958_v47 }
 0x671   :  { %7481 = vrot.lane.b32.xlu1 %v7480_v24, %s18171_s19 }
 0x6e3   :  { %v7482_v16 = vpop.permute.xlu1 %7481 }
 0x6e4   :  { %v7483_v53 = vmin.f32 %v7480_v24, %v7482_v16  ;;  %v7951_v16 = vld [vmem:[%s24405_s11 + $0x308] sm:$0xff] }
 0x6e6   :  { %vm7484_vm0 = vcmp.le.f32.partialorder %v7469_v56, %v7483_v53  ;;  %vm7485_vm1 = vcmp.le.f32.partialorder %v7470_v37, %v7483_v53  ;;  %v15791_v56 = vcombine.low %v7967_v41, %v7975_v9  ;;  %v15792_v37 = vcombine.high %v7967_v41, %v7975_v9  ;;  %v7959_v53 = vld [vmem:[%s24405_s11 + $0x348] sm:$0xff] }
 0x6e7   :  { %v7497_v4 = vsel %vm7484_vm0, %v21350_v63, 16.0  ;;  %v7498_v46 = vsel %vm7485_vm1, %v21353_v57, 16.0  ;;  %v15775_v12 = vcombine.low %v7951_v16, %v7959_v53  ;;  %v7879_v41 = vld [vmem:[%s24405_s11 + $0xc8] sm:$0xff] }
 0x6e8   :  { %v7499_v5 = vmin.f32 %v7497_v4, %v7498_v46  ;;  %8747 = vmatprep.subr.bf16.mxu0 %v15792_v37  ;;  %v15774_v4 = vcombine.high %v7950_v34, %v7958_v47  ;;  %v15776_v46 = vcombine.high %v7951_v16, %v7959_v53  ;;  %v15695_v19 = vcombine.low %v7871_v30, %v7879_v41  ;;  %v7862_v37 = vld [vmem:[%s24405_s11 + $0x40] sm:$0xff]  ;;  %v7968_v16 = vld [vmem:[%s24405_s11 + $0x390] sm:$0xff] }
 0x6e9   :  { %v15696_v9 = vcombine.high %v7871_v30, %v7879_v41  ;;  %v7976_v53 = vld [vmem:[%s24405_s11 + $0x3d0] sm:$0xff] }
 0x6ea   :  { %7500 = vrot.lane.b32.xlu1 %v7499_v5, %s18169_s18  ;;  %v7912_v30 = vld [vmem:[%s24405_s11 + $0x1d0] sm:$0xff] }
 0x75c   :  { %v7501_v17 = vpop.permute.xlu1 %7500 }
 0x75d   :  { %v21381_v21 = vmin.f32 %v7499_v5, %v7501_v17  ;;  %v7934_v5 = vld [vmem:[%s24405_s11 + $0x280] sm:$0xff] }
 0x75e   :  { %v15758_v26 = vcombine.high %v7934_v5, %v7942_v6  ;;  %v7926_v17 = vld [vmem:[%s24405_s11 + $0x240] sm:$0xff]  ;;  %v15757_v23 = vcombine.low %v7934_v5, %v7942_v6  ;;  %v15794_v5 = vcombine.high %v7968_v16, %v7976_v53  ;;  %v7977_v6 = vld [vmem:[%s24405_s11 + $0x3d8] sm:$0xff] }
 0x75f   :  { %7503 = vrot.lane.b32.xlu0 %v21381_v21, %s18170_s7  ;;  %v15742_v50 = vcombine.high %v7918_v13, %v7926_v17  ;;  %v15741_v61 = vcombine.low %v7918_v13, %v7926_v17  ;;  %v7960_v13 = vld [vmem:[%s24405_s11 + $0x350] sm:$0xff] }
 0x7d1   :  { %v7504_v58 = vpop.permute.xlu0 %7503 }
 0x7d2   :  { %v7505_v42 = vmin.f32 %v21381_v21, %v7504_v58  ;;  %v7927_v21 = vld [vmem:[%s24405_s11 + $0x248] sm:$0xff] }
 0x7d3   :  { %v15744_v45 = vcombine.high %v7919_v18, %v7927_v21  ;;  %v15743_v20 = vcombine.low %v7919_v18, %v7927_v21  ;;  %v7855_v58 = vld [vmem:[%s24405_s11 + $0x8] sm:$0xff]  ;;  %v7953_v21 = vld [vmem:[%s24405_s11 + $0x318] sm:$0xff] }
 0x7d4   :  { %7506 = vrot.lane.b32.xlu1 %v7505_v42, %s18171_s19 }
 0x846   :  { %v7507_v52 = vpop.permute.xlu1 %7506 }
 0x847   :  { %v7508_v24 = vmin.f32 %v7505_v42, %v7507_v52  ;;  %v7863_v52 = vld [vmem:[%s24405_s11 + $0x48] sm:$0xff] }
 0x848   :  { %v15680_v47 = vcombine.high %v7855_v58, %v7863_v52 }
 0x849   :  { %vm7509_vm2 = vcmp.eq.f32.partialorder %v21350_v63, %v7508_v24  ;;  %vm7510_vm3 = vcmp.eq.f32.partialorder %v21353_v57, %v7508_v24  ;;  %v7935_v63 = vld [vmem:[%s24405_s11 + $0x288] sm:$0xff]  ;;  %v15679_v24 = vcombine.low %v7855_v58, %v7863_v52  ;;  %v7896_v58 = vld [vmem:[%s24405_s11 + $0x150] sm:$0xff] }
 0x84a   :  { %vm15653_vm4 = vmpackc.low %vm7510_vm3, %vm7510_vm3  ;;  %v7943_v57 = vld [vmem:[%s24405_s11 + $0x2c8] sm:$0xff] }
 0x84b   :  { %vm15655_vm5 = vmpackc.low %vm7509_vm2, %vm7509_vm2  ;;  %15654 = vmatprep.mubr.msk.bf16.mxu1 %vm15653_vm4, %v18172_v59  ;;  %15674 = vmatprep.mubr.msk.bf16.mxu0 %vm15653_vm4, %v18172_v59  ;;  %v15760_v1 = vcombine.high %v7935_v63, %v7943_v57  ;;  %v15759_v38 = vcombine.low %v7935_v63, %v7943_v57 }
 0x84c   :  { %15656 = vmatmul.mubr.msk.bf16.vlgmr.msra.gmra.mxu1 %vm15655_vm5, %v18172_v59  ;;  %15676 = vmatmul.mubr.msk.bf16.vlgmr.msra.gmra.mxu0 %vm15655_vm5, %v18172_v59 }
 0x84d   :  { %8707 = vmatpush1.bf16.msra.mxu1 %v15789_v36  ;;  %8748 = vmatpush1.bf16.msra.mxu0 %v15791_v56  ;;  %v15693_v36 = vcombine.low %v7870_v31, %v7878_v32  ;;  %v7854_v56 = vld [vmem:[%s24405_s11] sm:$0xff]  ;;  %v7904_v32 = vld [vmem:[%s24405_s11 + $0x190] sm:$0xff] }
 0x84e   :  { %8708 = vmatprep.subr.bf16.mxu1 %v15774_v4  ;;  %8749 = vmatprep.subr.bf16.mxu0 %v15776_v46  ;;  %v15678_v42 = vcombine.high %v7854_v56, %v7862_v37  ;;  %v15677_v34 = vcombine.low %v7854_v56, %v7862_v37  ;;  %v7969_v4 = vld [vmem:[%s24405_s11 + $0x398] sm:$0xff]  ;;  %v15793_v46 = vcombine.low %v7968_v16, %v7976_v53  ;;  %v7888_v37 = vld [vmem:[%s24405_s11 + $0x110] sm:$0xff] }
 0x84f   :  { %8738 = vmatprep.mubr.bf16.mxu1 %v18168_v0  ;;  %8779 = vmatprep.mubr.bf16.mxu0 %v18168_v0  ;;  %v15795_v59 = vcombine.low %v7969_v4, %v7977_v6  ;;  %v15796_v63 = vcombine.high %v7969_v4, %v7977_v6  ;;  %v7872_v53 = vld [vmem:[%s24405_s11 + $0x90] sm:$0xff]  ;;  %v7873_v6 = vld [vmem:[%s24405_s11 + $0x98] sm:$0xff] }
 0x850   :  { %v7880_v4 = vld [vmem:[%s24405_s11 + $0xd0] sm:$0xff] }
 0x851   :  { %8709 = vmatpush1.bf16.msra.mxu1 %v15773_v11  ;;  %8750 = vmatpush1.bf16.msra.mxu0 %v15775_v12 }
 0x852   :  { %8710 = vmatprep.subr.bf16.mxu1 %v15758_v26  ;;  %8751 = vmatprep.subr.bf16.mxu0 %v15760_v1  ;;  %v7952_v1 = vld [vmem:[%s24405_s11 + $0x310] sm:$0xff] }
 0x853   :  { %v15777_v25 = vcombine.low %v7952_v1, %v7960_v13 }
 0x855   :  { %8711 = vmatpush1.bf16.msra.mxu1 %v15757_v23  ;;  %8752 = vmatpush1.bf16.msra.mxu0 %v15759_v38  ;;  %v7961_v23 = vld [vmem:[%s24405_s11 + $0x358] sm:$0xff] }
 0x856   :  { %8712 = vmatprep.subr.bf16.mxu1 %v15742_v50  ;;  %8753 = vmatprep.subr.bf16.mxu0 %v15744_v45  ;;  %v15779_v29 = vcombine.low %v7953_v21, %v7961_v23 }
 0x859   :  { %8713 = vmatpush1.bf16.msra.mxu1 %v15741_v61  ;;  %8754 = vmatpush1.bf16.msra.mxu0 %v15743_v20  ;;  %v15778_v20 = vcombine.high %v7952_v1, %v7960_v13  ;;  %v7857_v13 = vld [vmem:[%s24405_s11 + $0x18] sm:$0xff] }
 0x85a   :  { %8714 = vmatprep.subr.bf16.mxu1 %v15726_v2  ;;  %8755 = vmatprep.subr.bf16.mxu0 %v15728_v43  ;;  %v15780_v2 = vcombine.high %v7953_v21, %v7961_v23  ;;  %v7937_v43 = vld [vmem:[%s24405_s11 + $0x298] sm:$0xff]  ;;  %v7970_v23 = vld [vmem:[%s24405_s11 + $0x3a0] sm:$0xff] }
 0x85b   :  { %v15763_v31 = vcombine.low %v7937_v43, %v7945_v3 }
 0x85d   :  { %8715 = vmatpush1.bf16.msra.mxu1 %v15725_v7  ;;  %8756 = vmatpush1.bf16.msra.mxu0 %v15727_v54  ;;  %v7928_v7 = vld [vmem:[%s24405_s11 + $0x250] sm:$0xff]  ;;  %v15762_v54 = vcombine.high %v7936_v44, %v7944_v40 }
 0x85e   :  { %8716 = vmatprep.subr.bf16.mxu1 %v15710_v49  ;;  %8757 = vmatprep.subr.bf16.mxu0 %v15712_v22  ;;  %v15764_v49 = vcombine.high %v7937_v43, %v7945_v3  ;;  %v7921_v22 = vld [vmem:[%s24405_s11 + $0x218] sm:$0xff]  ;;  %v7955_v43 = vld [vmem:[%s24405_s11 + $0x328] sm:$0xff] }
 0x85f   :  { %v7963_v3 = vld [vmem:[%s24405_s11 + $0x368] sm:$0xff] }
 0x861   :  { %8717 = vmatpush1.bf16.msra.mxu1 %v15709_v28  ;;  %8758 = vmatpush1.bf16.msra.mxu0 %v15711_v55  ;;  %v7929_v28 = vld [vmem:[%s24405_s11 + $0x258] sm:$0xff]  ;;  %v15761_v55 = vcombine.low %v7936_v44, %v7944_v40 }
 0x862   :  { %8718 = vmatprep.subr.bf16.mxu1 %v15694_v33  ;;  %8759 = vmatprep.subr.bf16.mxu0 %v15696_v9  ;;  %v15746_v33 = vcombine.high %v7920_v48, %v7928_v7  ;;  %v15748_v41 = vcombine.high %v7921_v22, %v7929_v28  ;;  %v15745_v9 = vcombine.low %v7920_v48, %v7928_v7 }
 0x863   :  { %v15747_v56 = vcombine.low %v7921_v22, %v7929_v28  ;;  %v7939_v22 = vld [vmem:[%s24405_s11 + $0x2a8] sm:$0xff] }
 0x864   :  { %v7947_v28 = vld [vmem:[%s24405_s11 + $0x2e8] sm:$0xff] }
 0x865   :  { %8719 = vmatpush1.bf16.msra.mxu1 %v15693_v36  ;;  %8760 = vmatpush1.bf16.msra.mxu0 %v15695_v19  ;;  %v7905_v36 = vld [vmem:[%s24405_s11 + $0x198] sm:$0xff] }
 0x866   :  { %8720 = vmatprep.subr.bf16.mxu1 %v15678_v42  ;;  %8761 = vmatprep.subr.bf16.mxu0 %v15680_v47  ;;  %v7913_v19 = vld [vmem:[%s24405_s11 + $0x1d8] sm:$0xff]  ;;  %v15730_v42 = vcombine.high %v7904_v32, %v7912_v30  ;;  %v15729_v47 = vcombine.low %v7904_v32, %v7912_v30  ;;  %v15783_v30 = vcombine.low %v7955_v43, %v7963_v3 }
 0x867   :  { %v15732_v52 = vcombine.high %v7905_v36, %v7913_v19  ;;  %v15731_v16 = vcombine.low %v7905_v36, %v7913_v19  ;;  %v7923_v36 = vld [vmem:[%s24405_s11 + $0x228] sm:$0xff] }
 0x868   :  { %v7931_v19 = vld [vmem:[%s24405_s11 + $0x268] sm:$0xff] }
 0x869   :  { %8721 = vmatpush1.bf16.msra.mxu1 %v15677_v34  ;;  %8762 = vmatpush1.bf16.msra.mxu0 %v15679_v24  ;;  %v7889_v34 = vld [vmem:[%s24405_s11 + $0x118] sm:$0xff] }
 0x86a   :  { %8788 = vmatprep.subr.bf16.mxu1 %v15794_v5  ;;  %8829 = vmatprep.subr.bf16.mxu0 %v15796_v63  ;;  %v7897_v24 = vld [vmem:[%s24405_s11 + $0x158] sm:$0xff]  ;;  %v15713_v63 = vcombine.low %v7888_v37, %v7896_v58 }
 0x86b   :  { %v15716_v5 = vcombine.high %v7889_v34, %v7897_v24 }
 0x90c   :  { %v16765_v57 = vpop.f32.mrf.mxu1  ;;  %v16787_v11 = vpop.f32.mrf.mxu0 }
 0x90e   :  { %v16766_v12 = vpop.f32.mrf.mxu1  ;;  %v16788_v26 = vpop.f32.mrf.mxu0 }
 0x90f   :  { %v16767_v17 = vadd.f32 %v16766_v12, %v16765_v57  ;;  %v16789_v18 = vadd.f32 %v16788_v26, %v16787_v11  ;;  %v15715_v57 = vcombine.low %v7889_v34, %v7897_v24  ;;  %v7856_v11 = vld [vmem:[%s24405_s11 + $0x10] sm:$0xff]  ;;  %v15698_v26 = vcombine.high %v7872_v53, %v7880_v4  ;;  %v7907_v34 = vld [vmem:[%s24405_s11 + $0x1a8] sm:$0xff] }
 0x910   :  { %v16768_v38 = vpop.f32.mrf.mxu1  ;;  %v16790_v50 = vpop.f32.mrf.mxu0  ;;  %v7864_v12 = vld [vmem:[%s24405_s11 + $0x50] sm:$0xff]  ;;  %v7915_v24 = vld [vmem:[%s24405_s11 + $0x1e8] sm:$0xff] }
 0x911   :  { %v7848_v45 = vadd.f32 %v16789_v18, %v16767_v17  ;;  %v7865_v17 = vld [vmem:[%s24405_s11 + $0x58] sm:$0xff]  ;;  %v15697_v18 = vcombine.low %v7872_v53, %v7880_v4  ;;  %v7978_v38 = vld [vmem:[%s24405_s11 + $0x3e0] sm:$0xff]  ;;  %v7971_v50 = vld [vmem:[%s24405_s11 + $0x3a8] sm:$0xff]  ;;  %v15681_v44 = vcombine.low %v7856_v11, %v7864_v12  ;;  %v15751_v4 = vcombine.low %v7923_v36, %v7931_v19 }
 0x912   :  { %v16769_v39 = vpop.f32.mrf.mxu1  ;;  %v16791_v62 = vpop.f32.mrf.mxu0  ;;  %v15683_v40 = vcombine.low %v7857_v13, %v7865_v17  ;;  %v15797_v48 = vcombine.low %v7970_v23, %v7978_v38 }
 0x913   :  { %v21589_v61 = vpack.c.bf16 %v7848_v45, %v7848_v45  ;;  %v15682_v45 = vcombine.high %v7856_v11, %v7864_v12  ;;  %v15684_v39 = vcombine.high %v7857_v13, %v7865_v17  ;;  %v7979_v62 = vld [vmem:[%s24405_s11 + $0x3e8] sm:$0xff]  ;;  %v15735_v12 = vcombine.low %v7907_v34, %v7915_v24 }
 0x914   :  { %v15799_v7 = vcombine.low %v7971_v50, %v7979_v62  ;;  %v7875_v13 = vld [vmem:[%s24405_s11 + $0xa8] sm:$0xff] }
 0x915   :  { %8739 = vmatmul.mubr.bf16.vlgmr.msra.gmra.mxu1 %v21589_v61  ;;  %8780 = vmatmul.mubr.bf16.vlgmr.msra.gmra.mxu0 %v21589_v61  ;;  %v7883_v17 = vld [vmem:[%s24405_s11 + $0xe8] sm:$0xff] }
 0x916   :  { %8789 = vmatpush1.bf16.msra.mxu1 %v15793_v46  ;;  %8830 = vmatpush1.bf16.msra.mxu0 %v15795_v59  ;;  %v15714_v46 = vcombine.high %v7888_v37, %v7896_v58  ;;  %v7881_v59 = vld [vmem:[%s24405_s11 + $0xd8] sm:$0xff]  ;;  %v15767_v58 = vcombine.low %v7939_v22, %v7947_v28 }
 0x917   :  { %8790 = vmatprep.subr.bf16.mxu1 %v15778_v20  ;;  %8831 = vmatprep.subr.bf16.mxu0 %v15780_v2  ;;  %v15700_v1 = vcombine.high %v7873_v6, %v7881_v59  ;;  %v15699_v21 = vcombine.low %v7873_v6, %v7881_v59  ;;  %v7954_v20 = vld [vmem:[%s24405_s11 + $0x320] sm:$0xff]  ;;  %v7891_v6 = vld [vmem:[%s24405_s11 + $0x128] sm:$0xff] }
 0x918   :  { %8820 = vmatprep.mubr.bf16.mxu1 %v18168_v0  ;;  %8861 = vmatprep.mubr.bf16.mxu0 %v18168_v0  ;;  %v7962_v2 = vld [vmem:[%s24405_s11 + $0x360] sm:$0xff]  ;;  %v7899_v59 = vld [vmem:[%s24405_s11 + $0x168] sm:$0xff] }
 0x919   :  { %v15781_v32 = vcombine.low %v7954_v20, %v7962_v2 }
 0x91a   :  { %8791 = vmatpush1.bf16.msra.mxu1 %v15777_v25  ;;  %8832 = vmatpush1.bf16.msra.mxu0 %v15779_v29  ;;  %v15798_v25 = vcombine.high %v7970_v23, %v7978_v38  ;;  %v15800_v29 = vcombine.high %v7971_v50, %v7979_v62  ;;  %v15719_v38 = vcombine.low %v7891_v6, %v7899_v59  ;;  %v7858_v50 = vld [vmem:[%s24405_s11 + $0x20] sm:$0xff]  ;;  %v7867_v62 = vld [vmem:[%s24405_s11 + $0x68] sm:$0xff] }
 0x91b   :  { %8792 = vmatprep.subr.bf16.mxu1 %v15762_v54  ;;  %8833 = vmatprep.subr.bf16.mxu0 %v15764_v49  ;;  %v7938_v54 = vld [vmem:[%s24405_s11 + $0x2a0] sm:$0xff] }
 0x91c   :  { %v7946_v49 = vld [vmem:[%s24405_s11 + $0x2e0] sm:$0xff] }
 0x91d   :  { %v15765_v37 = vcombine.low %v7938_v54, %v7946_v49 }
 0x91e   :  { %8793 = vmatpush1.bf16.msra.mxu1 %v15761_v55  ;;  %8834 = vmatpush1.bf16.msra.mxu0 %v15763_v31  ;;  %v15782_v55 = vcombine.high %v7954_v20, %v7962_v2  ;;  %v15784_v31 = vcombine.high %v7955_v43, %v7963_v3  ;;  %v15703_v2 = vcombine.low %v7875_v13, %v7883_v17  ;;  %v7972_v43 = vld [vmem:[%s24405_s11 + $0x3b0] sm:$0xff] }
 0x91f   :  { %8794 = vmatprep.subr.bf16.mxu1 %v15746_v33  ;;  %8835 = vmatprep.subr.bf16.mxu0 %v15748_v41  ;;  %v7922_v33 = vld [vmem:[%s24405_s11 + $0x220] sm:$0xff]  ;;  %v7980_v3 = vld [vmem:[%s24405_s11 + $0x3f0] sm:$0xff] }
 0x920   :  { %v7930_v41 = vld [vmem:[%s24405_s11 + $0x260] sm:$0xff] }
 0x921   :  { %v15749_v53 = vcombine.low %v7922_v33, %v7930_v41 }
 0x922   :  { %8795 = vmatpush1.bf16.msra.mxu1 %v15745_v9  ;;  %8836 = vmatpush1.bf16.msra.mxu0 %v15747_v56  ;;  %v15766_v9 = vcombine.high %v7938_v54, %v7946_v49  ;;  %v15768_v56 = vcombine.high %v7939_v22, %v7947_v28  ;;  %v7956_v22 = vld [vmem:[%s24405_s11 + $0x330] sm:$0xff] }
 0x923   :  { %8796 = vmatprep.subr.bf16.mxu1 %v15730_v42  ;;  %8837 = vmatprep.subr.bf16.mxu0 %v15732_v52  ;;  %v7906_v42 = vld [vmem:[%s24405_s11 + $0x1a0] sm:$0xff]  ;;  %v7964_v28 = vld [vmem:[%s24405_s11 + $0x370] sm:$0xff] }
 0x924   :  { %v7914_v52 = vld [vmem:[%s24405_s11 + $0x1e0] sm:$0xff] }
 0x925   :  { %v15733_v11 = vcombine.low %v7906_v42, %v7914_v52 }
 0x926   :  { %8797 = vmatpush1.bf16.msra.mxu1 %v15729_v47  ;;  %8838 = vmatpush1.bf16.msra.mxu0 %v15731_v16  ;;  %v15750_v47 = vcombine.high %v7922_v33, %v7930_v41  ;;  %v15752_v16 = vcombine.high %v7923_v36, %v7931_v19  ;;  %v15801_v33 = vcombine.low %v7972_v43, %v7980_v3  ;;  %v7940_v36 = vld [vmem:[%s24405_s11 + $0x2b0] sm:$0xff] }
 0x927   :  { %8798 = vmatprep.subr.bf16.mxu1 %v15714_v46  ;;  %8839 = vmatprep.subr.bf16.mxu0 %v15716_v5  ;;  %v7890_v46 = vld [vmem:[%s24405_s11 + $0x120] sm:$0xff]  ;;  %v7948_v19 = vld [vmem:[%s24405_s11 + $0x2f0] sm:$0xff] }
 0x928   :  { %v7898_v5 = vld [vmem:[%s24405_s11 + $0x160] sm:$0xff] }
 0x929   :  { %v15717_v23 = vcombine.low %v7890_v46, %v7898_v5 }
 0x92a   :  { %8799 = vmatpush1.bf16.msra.mxu1 %v15713_v63  ;;  %8840 = vmatpush1.bf16.msra.mxu0 %v15715_v57  ;;  %v15734_v63 = vcombine.high %v7906_v42, %v7914_v52  ;;  %v15736_v57 = vcombine.high %v7907_v34, %v7915_v24  ;;  %v15785_v42 = vcombine.low %v7956_v22, %v7964_v28  ;;  %v7924_v34 = vld [vmem:[%s24405_s11 + $0x230] sm:$0xff] }
 0x92b   :  { %8800 = vmatprep.subr.bf16.mxu1 %v15698_v26  ;;  %8841 = vmatprep.subr.bf16.mxu0 %v15700_v1  ;;  %v7874_v26 = vld [vmem:[%s24405_s11 + $0xa0] sm:$0xff]  ;;  %v7932_v24 = vld [vmem:[%s24405_s11 + $0x270] sm:$0xff] }
 0x92c   :  { %v7882_v1 = vld [vmem:[%s24405_s11 + $0xe0] sm:$0xff] }
 0x92d   :  { %v15701_v20 = vcombine.low %v7874_v26, %v7882_v1 }
 0x92e   :  { %8801 = vmatpush1.bf16.msra.mxu1 %v15697_v18  ;;  %8842 = vmatpush1.bf16.msra.mxu0 %v15699_v21  ;;  %v15718_v18 = vcombine.high %v7890_v46, %v7898_v5  ;;  %v15720_v21 = vcombine.high %v7891_v6, %v7899_v59  ;;  %v15769_v46 = vcombine.low %v7940_v36, %v7948_v19  ;;  %v7908_v6 = vld [vmem:[%s24405_s11 + $0x1b0] sm:$0xff] }
 0x92f   :  { %8802 = vmatprep.subr.bf16.mxu1 %v15682_v45  ;;  %8843 = vmatprep.subr.bf16.mxu0 %v15684_v39  ;;  %v7866_v45 = vld [vmem:[%s24405_s11 + $0x60] sm:$0xff]  ;;  %v7859_v39 = vld [vmem:[%s24405_s11 + $0x28] sm:$0xff]  ;;  %v7916_v59 = vld [vmem:[%s24405_s11 + $0x1f0] sm:$0xff] }
 0x930   :  { %v15685_v54 = vcombine.low %v7858_v50, %v7866_v45  ;;  %v15687_v49 = vcombine.low %v7859_v39, %v7867_v62 }
 0x932   :  { %8803 = vmatpush1.bf16.msra.mxu1 %v15681_v44  ;;  %8844 = vmatpush1.bf16.msra.mxu0 %v15683_v40  ;;  %v15702_v44 = vcombine.high %v7874_v26, %v7882_v1  ;;  %v15704_v40 = vcombine.high %v7875_v13, %v7883_v17  ;;  %v7892_v1 = vld [vmem:[%s24405_s11 + $0x130] sm:$0xff]  ;;  %v15738_v17 = vcombine.high %v7908_v6, %v7916_v59 }
 0x933   :  { %8870 = vmatprep.subr.bf16.mxu1 %v15798_v25  ;;  %8911 = vmatprep.subr.bf16.mxu0 %v15800_v29  ;;  %v7973_v25 = vld [vmem:[%s24405_s11 + $0x3b8] sm:$0xff]  ;;  %v7900_v13 = vld [vmem:[%s24405_s11 + $0x170] sm:$0xff] }
 0x934   :  { %v7981_v29 = vld [vmem:[%s24405_s11 + $0x3f8] sm:$0xff] }
 0x935   :  { %8821 = vmatmul.mubr.bf16.vlgmr.msra.gmra.mxu1 %v21589_v61  ;;  %8862 = vmatmul.mubr.bf16.vlgmr.msra.gmra.mxu0 %v21589_v61  ;;  %v15803_v41 = vcombine.low %v7973_v25, %v7981_v29 }
 0x936   :  { %8871 = vmatpush1.bf16.msra.mxu1 %v15797_v48  ;;  %8912 = vmatpush1.bf16.msra.mxu0 %v15799_v7  ;;  %v15686_v48 = vcombine.high %v7858_v50, %v7866_v45  ;;  %v15688_v7 = vcombine.high %v7859_v39, %v7867_v62  ;;  %v7876_v45 = vld [vmem:[%s24405_s11 + $0xb0] sm:$0xff]  ;;  %v15722_v62 = vcombine.high %v7892_v1, %v7900_v13 }
 0x937   :  { %8872 = vmatprep.subr.bf16.mxu1 %v15782_v55  ;;  %8913 = vmatprep.subr.bf16.mxu0 %v15784_v31  ;;  %v7957_v55 = vld [vmem:[%s24405_s11 + $0x338] sm:$0xff]  ;;  %v7884_v39 = vld [vmem:[%s24405_s11 + $0xf0] sm:$0xff] }
 0x938   :  { %8902 = vmatprep.mubr.bf16.mxu1 %v18168_v0  ;;  %8943 = vmatprep.mubr.bf16.mxu0 %v18168_v0  ;;  %v7965_v31 = vld [vmem:[%s24405_s11 + $0x378] sm:$0xff] }
 0x939   :  { %v15787_v52 = vcombine.low %v7957_v55, %v7965_v31 }
 0x93a   :  { %8873 = vmatpush1.bf16.msra.mxu1 %v15781_v32  ;;  %8914 = vmatpush1.bf16.msra.mxu0 %v15783_v30  ;;  %v15802_v32 = vcombine.high %v7972_v43, %v7980_v3  ;;  %v15804_v30 = vcombine.high %v7973_v25, %v7981_v29  ;;  %v7860_v3 = vld [vmem:[%s24405_s11 + $0x30] sm:$0xff]  ;;  %v15706_v29 = vcombine.high %v7876_v45, %v7884_v39 }
 0x93b   :  { %8874 = vmatprep.subr.bf16.mxu1 %v15766_v9  ;;  %8915 = vmatprep.subr.bf16.mxu0 %v15768_v56  ;;  %v7941_v9 = vld [vmem:[%s24405_s11 + $0x2b8] sm:$0xff]  ;;  %v7868_v25 = vld [vmem:[%s24405_s11 + $0x70] sm:$0xff] }
 0x93c   :  { %v7949_v56 = vld [vmem:[%s24405_s11 + $0x2f8] sm:$0xff] }
 0x93d   :  { %v15771_v5 = vcombine.low %v7941_v9, %v7949_v56 }
 0x93e   :  { %8875 = vmatpush1.bf16.msra.mxu1 %v15765_v37  ;;  %8916 = vmatpush1.bf16.msra.mxu0 %v15767_v58  ;;  %v15786_v37 = vcombine.high %v7956_v22, %v7964_v28  ;;  %v15788_v58 = vcombine.high %v7957_v55, %v7965_v31  ;;  %v15690_v28 = vcombine.high %v7860_v3, %v7868_v25  ;;  %v17014_v31 = vld [vmem:[%s24406_s13 + $0x154] ss:$24 sps:$4 sm:$0xff]  }
 0x93f   :  { %8876 = vmatprep.subr.bf16.mxu1 %v15750_v47  ;;  %8917 = vmatprep.subr.bf16.mxu0 %v15752_v16  ;;  %v7925_v47 = vld [vmem:[%s24405_s11 + $0x238] sm:$0xff] }
 0x940   :  { %v7933_v16 = vld [vmem:[%s24405_s11 + $0x278] sm:$0xff] }
 0x941   :  { %v15755_v26 = vcombine.low %v7925_v47, %v7933_v16 }
 0x942   :  { %8877 = vmatpush1.bf16.msra.mxu1 %v15749_v53  ;;  %8918 = vmatpush1.bf16.msra.mxu0 %v15751_v4  ;;  %v15770_v53 = vcombine.high %v7940_v36, %v7948_v19  ;;  %v15772_v4 = vcombine.high %v7941_v9, %v7949_v56  ;;  %v17015_v36 = vld [vmem:[%s24406_s13 + $0x450] ss:$24 sps:$4 sm:$0xff]   ;;  %v17020_v19 = vld [vmem:[%s24406_s13 + $0x124] ss:$24 sps:$4 sm:$0xff]   ;;  %v17018_v56 = vld [vmem:[%s24406_s13 + $0x120] ss:$24 sps:$4 sm:$0xff]  }
 0x943   :  { %8878 = vmatprep.subr.bf16.mxu1 %v15734_v63  ;;  %8919 = vmatprep.subr.bf16.mxu0 %v15736_v57  ;;  %v7909_v63 = vld [vmem:[%s24405_s11 + $0x1b8] sm:$0xff]  ;;  %v15754_v57 = vcombine.high %v7924_v34, %v7932_v24 }
 0x944   :  { %v17023_v9 = vld [vmem:[%s24406_s13 + $0x424] ss:$24 sps:$4 sm:$0xff]  }
 0x946   :  { %8879 = vmatpush1.bf16.msra.mxu1 %v15733_v11  ;;  %8920 = vmatpush1.bf16.msra.mxu0 %v15735_v12  ;;  %v15756_v11 = vcombine.high %v7925_v47, %v7933_v16  ;;  %v15753_v12 = vcombine.low %v7924_v34, %v7932_v24  ;;  %v17032_v34 = vld [vmem:[%s24406_s13 + $0xc4] ss:$24 sps:$4 sm:$0xff]   ;;  %v17030_v47 = vld [vmem:[%s24406_s13 + $0xc0] ss:$24 sps:$4 sm:$0xff]  }
 0x947   :  { %8880 = vmatprep.subr.bf16.mxu1 %v15718_v18  ;;  %8921 = vmatprep.subr.bf16.mxu0 %v15720_v21  ;;  %v7893_v21 = vld [vmem:[%s24405_s11 + $0x138] sm:$0xff] }
 0x948   :  { %v17035_v24 = vld [vmem:[%s24406_s13 + $0x3c4] ss:$24 sps:$4 sm:$0xff]   ;;  %v17033_v16 = vld [vmem:[%s24406_s13 + $0x3c0] ss:$24 sps:$4 sm:$0xff]  }
 0x94a   :  { %8881 = vmatpush1.bf16.msra.mxu1 %v15717_v23  ;;  %8922 = vmatpush1.bf16.msra.mxu0 %v15719_v38  ;;  %v7901_v23 = vld [vmem:[%s24405_s11 + $0x178] sm:$0xff]  ;;  %v15737_v38 = vcombine.low %v7908_v6, %v7916_v59 }
 0x94b   :  { %8882 = vmatprep.subr.bf16.mxu1 %v15702_v44  ;;  %8923 = vmatprep.subr.bf16.mxu0 %v15704_v40  ;;  %v15724_v44 = vcombine.high %v7893_v21, %v7901_v23  ;;  %v7877_v40 = vld [vmem:[%s24405_s11 + $0xb8] sm:$0xff]  ;;  %v15723_v43 = vcombine.low %v7893_v21, %v7901_v23  ;;  %v17062_v21 = vld [vmem:[%s24406_s13 + $0x2d4] ss:$24 sps:$4 sm:$0xff]  }
 0x94c   :  { %v17044_v6 = vld [vmem:[%s24406_s13 + $0x64] ss:$24 sps:$4 sm:$0xff]   ;;  %v17065_v23 = vld [vmem:[%s24406_s13 + $0x5d4] ss:$24 sps:$4 sm:$0xff]  }
 0x94d   :  { %v17047_v59 = vld [vmem:[%s24406_s13 + $0x364] ss:$24 sps:$4 sm:$0xff]  }
 0x94e   :  { %8883 = vmatpush1.bf16.msra.mxu1 %v15701_v20  ;;  %8924 = vmatpush1.bf16.msra.mxu0 %v15703_v2  ;;  %v7885_v20 = vld [vmem:[%s24405_s11 + $0xf8] sm:$0xff]  ;;  %v15721_v2 = vcombine.low %v7892_v1, %v7900_v13 }
 0x94f   :  { %8884 = vmatprep.subr.bf16.mxu1 %v15686_v48  ;;  %8925 = vmatprep.subr.bf16.mxu0 %v15688_v7  ;;  %v15708_v48 = vcombine.high %v7877_v40, %v7885_v20  ;;  %v7861_v7 = vld [vmem:[%s24405_s11 + $0x38] sm:$0xff]  ;;  %v15707_v22 = vcombine.low %v7877_v40, %v7885_v20  ;;  %v17074_v40 = vld [vmem:[%s24406_s13 + $0x274] ss:$24 sps:$4 sm:$0xff]  }
 0x950   :  { %v17056_v1 = vld [vmem:[%s24406_s13 + $0x4] ss:$24 sps:$4 sm:$0xff]   ;;  %v17077_v20 = vld [vmem:[%s24406_s13 + $0x574] ss:$24 sps:$4 sm:$0xff]  }
 0x951   :  { %v17059_v13 = vld [vmem:[%s24406_s13 + $0x304] ss:$24 sps:$4 sm:$0xff]  }
 0x952   :  { %8885 = vmatpush1.bf16.msra.mxu1 %v15685_v54  ;;  %8926 = vmatpush1.bf16.msra.mxu0 %v15687_v49  ;;  %v7869_v54 = vld [vmem:[%s24405_s11 + $0x78] sm:$0xff]  ;;  %v15705_v49 = vcombine.low %v7876_v45, %v7884_v39 }
 0x953   :  { %8952 = vmatprep.subr.bf16.mxu1 %v15802_v32  ;;  %8993 = vmatprep.subr.bf16.mxu0 %v15804_v30  ;;  %v15692_v55 = vcombine.high %v7861_v7, %v7869_v54  ;;  %v17017_v32 = vld [vmem:[%s24406_s13 + $0x454] ss:$24 sps:$4 sm:$0xff]   ;;  %v15689_v30 = vcombine.low %v7860_v3, %v7868_v25  ;;  %v17068_v45 = vld [vmem:[%s24406_s13 + $0x2a4] ss:$24 sps:$4 sm:$0xff]  }
 0x954   :  { %v17071_v39 = vld [vmem:[%s24406_s13 + $0x5a4] ss:$24 sps:$4 sm:$0xff]  }
 0x955   :  { %8903 = vmatmul.mubr.bf16.vlgmr.msra.gmra.mxu1 %v21589_v61  ;;  %8944 = vmatmul.mubr.bf16.vlgmr.msra.gmra.mxu0 %v21589_v61  ;;  %v17080_v3 = vld [vmem:[%s24406_s13 + $0x244] ss:$24 sps:$4 sm:$0xff]  }
 0x956   :  { %8953 = vmatpush1.bf16.msra.mxu1 %v15801_v33  ;;  %8994 = vmatpush1.bf16.msra.mxu0 %v15803_v41  ;;  %v15691_v33 = vcombine.low %v7861_v7, %v7869_v54  ;;  %v17012_v41 = vld [vmem:[%s24406_s13 + $0x150] ss:$24 sps:$4 sm:$0xff]   ;;  %v17083_v25 = vld [vmem:[%s24406_s13 + $0x544] ss:$24 sps:$4 sm:$0xff]   ;;  %v17086_v7 = vld [vmem:[%s24406_s13 + $0x214] ss:$24 sps:$4 sm:$0xff]  }
 0x957   :  { %8954 = vmatprep.subr.bf16.mxu1 %v15786_v37  ;;  %8995 = vmatprep.subr.bf16.mxu0 %v15788_v58  ;;  %v17021_v37 = vld [vmem:[%s24406_s13 + $0x420] ss:$24 sps:$4 sm:$0xff]   ;;  %v17026_v58 = vld [vmem:[%s24406_s13 + $0xf4] ss:$24 sps:$4 sm:$0xff]  }
 0x958   :  { %8984 = vmatprep.mubr.bf16.mxu1 %v18168_v0  ;;  %9025 = vmatprep.mubr.bf16.mxu0 %v18168_v0  ;;  %v7917_v0 = vld [vmem:[%s24405_s11 + $0x1f8] sm:$0xff]  ;;  %v17089_v54 = vld [vmem:[%s24406_s13 + $0x514] ss:$24 sps:$4 sm:$0xff]  }
 0x959   :  { %v15740_v18 = vcombine.high %v7909_v63, %v7917_v0  ;;  %v15739_v50 = vcombine.low %v7909_v63, %v7917_v0  ;;  %v17042_v63 = vld [vmem:[%s24406_s13 + $0x60] ss:$24 sps:$4 sm:$0xff]  }
 0x95a   :  { %8955 = vmatpush1.bf16.msra.mxu1 %v15785_v42  ;;  %8996 = vmatpush1.bf16.msra.mxu0 %v15787_v52  ;;  %v17029_v42 = vld [vmem:[%s24406_s13 + $0x3f4] ss:$24 sps:$4 sm:$0xff]   ;;  %v17027_v52 = vld [vmem:[%s24406_s13 + $0x3f0] ss:$24 sps:$4 sm:$0xff]   ;;  %v17045_v0 = vld [vmem:[%s24406_s13 + $0x360] ss:$24 sps:$4 sm:$0xff]  }
 0x95b   :  { %8956 = vmatprep.subr.bf16.mxu1 %v15770_v53  ;;  %8997 = vmatprep.subr.bf16.mxu0 %v15772_v4  ;;  %v17038_v53 = vld [vmem:[%s24406_s13 + $0x94] ss:$24 sps:$4 sm:$0xff]  }
 0x95c   :  { %v17041_v4 = vld [vmem:[%s24406_s13 + $0x394] ss:$24 sps:$4 sm:$0xff]  }
 0x95e   :  { %8957 = vmatpush1.bf16.msra.mxu1 %v15769_v46  ;;  %8998 = vmatpush1.bf16.msra.mxu0 %v15771_v5  ;;  %v17036_v46 = vld [vmem:[%s24406_s13 + $0x90] ss:$24 sps:$4 sm:$0xff]  }
 0x95f   :  { %8958 = vmatprep.subr.bf16.mxu1 %v15754_v57  ;;  %8999 = vmatprep.subr.bf16.mxu0 %v15756_v11  ;;  %v17039_v5 = vld [vmem:[%s24406_s13 + $0x390] ss:$24 sps:$4 sm:$0xff]   ;;  %v17050_v57 = vld [vmem:[%s24406_s13 + $0x34] ss:$24 sps:$4 sm:$0xff]  }
 0x960   :  { %v17053_v11 = vld [vmem:[%s24406_s13 + $0x334] ss:$24 sps:$4 sm:$0xff]  }
 0x962   :  { %8959 = vmatpush1.bf16.msra.mxu1 %v15753_v12  ;;  %9000 = vmatpush1.bf16.msra.mxu0 %v15755_v26  ;;  %v17048_v12 = vld [vmem:[%s24406_s13 + $0x30] ss:$24 sps:$4 sm:$0xff]  }
 0x963   :  { %8960 = vmatprep.subr.bf16.mxu1 %v15738_v17  ;;  %9001 = vmatprep.subr.bf16.mxu0 %v15740_v18  ;;  %v17051_v26 = vld [vmem:[%s24406_s13 + $0x330] ss:$24 sps:$4 sm:$0xff]   ;;  %v17054_v17 = vld [vmem:[%s24406_s13] ss:$24 sps:$4 sm:$0xff]  }
 0x964   :  { %v17057_v18 = vld [vmem:[%s24406_s13 + $0x300] ss:$24 sps:$4 sm:$0xff]  }
 0x966   :  { %8961 = vmatpush1.bf16.msra.mxu1 %v15737_v38  ;;  %9002 = vmatpush1.bf16.msra.mxu0 %v15739_v50  ;;  %v17060_v38 = vld [vmem:[%s24406_s13 + $0x2d0] ss:$24 sps:$4 sm:$0xff]  }
 0x967   :  { %8962 = vmatprep.subr.bf16.mxu1 %v15722_v62  ;;  %9003 = vmatprep.subr.bf16.mxu0 %v15724_v44  ;;  %v17063_v50 = vld [vmem:[%s24406_s13 + $0x5d0] ss:$24 sps:$4 sm:$0xff]   ;;  %v17066_v62 = vld [vmem:[%s24406_s13 + $0x2a0] ss:$24 sps:$4 sm:$0xff]  }
 0x968   :  { %v17069_v44 = vld [vmem:[%s24406_s13 + $0x5a0] ss:$24 sps:$4 sm:$0xff]  }
 0x96a   :  { %8963 = vmatpush1.bf16.msra.mxu1 %v15721_v2  ;;  %9004 = vmatpush1.bf16.msra.mxu0 %v15723_v43  ;;  %v17072_v2 = vld [vmem:[%s24406_s13 + $0x270] ss:$24 sps:$4 sm:$0xff]  }
 0x96b   :  { %8964 = vmatprep.subr.bf16.mxu1 %v15706_v29  ;;  %9005 = vmatprep.subr.bf16.mxu0 %v15708_v48  ;;  %v17075_v43 = vld [vmem:[%s24406_s13 + $0x570] ss:$24 sps:$4 sm:$0xff]   ;;  %v17078_v29 = vld [vmem:[%s24406_s13 + $0x240] ss:$24 sps:$4 sm:$0xff]  }
 0x96c   :  { %v17081_v48 = vld [vmem:[%s24406_s13 + $0x540] ss:$24 sps:$4 sm:$0xff]  }
 0x96e   :  { %8965 = vmatpush1.bf16.msra.mxu1 %v15705_v49  ;;  %9006 = vmatpush1.bf16.msra.mxu0 %v15707_v22  ;;  %v17084_v49 = vld [vmem:[%s24406_s13 + $0x210] ss:$24 sps:$4 sm:$0xff]  }
 0x96f   :  { %8966 = vmatprep.subr.bf16.mxu1 %v15690_v28  ;;  %9007 = vmatprep.subr.bf16.mxu0 %v15692_v55  ;;  %v17087_v22 = vld [vmem:[%s24406_s13 + $0x510] ss:$24 sps:$4 sm:$0xff]   ;;  %v17092_v28 = vld [vmem:[%s24406_s13 + $0x1e4] ss:$24 sps:$4 sm:$0xff]  }
 0x970   :  { %v17095_v55 = vld [vmem:[%s24406_s13 + $0x4e4] ss:$24 sps:$4 sm:$0xff]  }
 0x972   :  { %8967 = vmatpush1.bf16.msra.mxu1 %v15689_v30  ;;  %9008 = vmatpush1.bf16.msra.mxu0 %v15691_v33  ;;  %v17098_v30 = vld [vmem:[%s24406_s13 + $0x1b4] ss:$24 sps:$4 sm:$0xff]  }
 0x973   :  { %13706 = vmatprep.subr.bf16.mxu1 %v17014_v31  ;;  %13747 = vmatprep.subr.bf16.mxu0 %v17017_v32  ;;  %v17090_v31 = vld [vmem:[%s24406_s13 + $0x1e0] ss:$24 sps:$4 sm:$0xff]   ;;  %v17101_v33 = vld [vmem:[%s24406_s13 + $0x4b4] ss:$24 sps:$4 sm:$0xff]  }
 0x974   :  { %v17093_v32 = vld [vmem:[%s24406_s13 + $0x4e0] ss:$24 sps:$4 sm:$0xff]  }
 0x975   :  { %8985 = vmatmul.mubr.bf16.vlgmr.msra.gmra.mxu1 %v21589_v61  ;;  %9026 = vmatmul.mubr.bf16.vlgmr.msra.gmra.mxu0 %v21589_v61  ;;  %v17024_v61 = vld [vmem:[%s24406_s13 + $0xf0] ss:$24 sps:$4 sm:$0xff]  }
 0x976   :  { %13707 = vmatpush1.bf16.msra.mxu1 %v17012_v41  ;;  %13748 = vmatpush1.bf16.msra.mxu0 %v17015_v36  ;;  %v17096_v41 = vld [vmem:[%s24406_s13 + $0x1b0] ss:$24 sps:$4 sm:$0xff]  }
 0x977   :  { %13708 = vmatprep.subr.bf16.mxu1 %v17020_v19  ;;  %13749 = vmatprep.subr.bf16.mxu0 %v17023_v9  ;;  %v17099_v36 = vld [vmem:[%s24406_s13 + $0x4b0] ss:$24 sps:$4 sm:$0xff]   ;;  %v17104_v19 = vld [vmem:[%s24406_s13 + $0x184] ss:$24 sps:$4 sm:$0xff]  }
 0x978   :  { %v17107_v9 = vld [vmem:[%s24406_s13 + $0x484] ss:$24 sps:$4 sm:$0xff]  }
 0x97a   :  { %13709 = vmatpush1.bf16.msra.mxu1 %v17018_v56  ;;  %13750 = vmatpush1.bf16.msra.mxu0 %v17021_v37  ;;  %v17102_v56 = vld [vmem:[%s24406_s13 + $0x180] ss:$24 sps:$4 sm:$0xff]  }
 0x97b   :  { %13710 = vmatprep.subr.bf16.mxu1 %v17026_v58  ;;  %13751 = vmatprep.subr.bf16.mxu0 %v17029_v42  ;;  %v17105_v37 = vld [vmem:[%s24406_s13 + $0x480] ss:$24 sps:$4 sm:$0xff]   ;;  %v17110_v58 = vld [vmem:[%s24406_s13 + $0x754] ss:$24 sps:$4 sm:$0xff]  }
 0x97c   :  { %v17113_v42 = vld [vmem:[%s24406_s13 + $0xa54] ss:$24 sps:$4 sm:$0xff]  }
 0x97e   :  { %13711 = vmatpush1.bf16.msra.mxu1 %v17024_v61  ;;  %13752 = vmatpush1.bf16.msra.mxu0 %v17027_v52  ;;  %v22064_v61 = vld [vmem:[%s24407_s12] sm:$0xff] }
 0x97f   :  { %13712 = vmatprep.subr.bf16.mxu1 %v17032_v34  ;;  %13753 = vmatprep.subr.bf16.mxu0 %v17035_v24  ;;  %v7989_v52 = vrot.slane %v22064_v61, %v19089_v51  ;;  %v7997_v34 = vrot.slane %v22064_v61, %v19498_v8  ;;  %v7993_v24 = vrot.slane %v22064_v61, %v19097_v60 }
 0x982   :  { %13713 = vmatpush1.bf16.msra.mxu1 %v17030_v47  ;;  %13754 = vmatpush1.bf16.msra.mxu0 %v17033_v16  ;;  %v8001_v47 = vrot.slane %v22064_v61, %v19513_v14 }
 0x983   :  { %13714 = vmatprep.subr.bf16.mxu1 %v17038_v53  ;;  %13755 = vmatprep.subr.bf16.mxu0 %v17041_v4 }
 0x986   :  { %13715 = vmatpush1.bf16.msra.mxu1 %v17036_v46  ;;  %13756 = vmatpush1.bf16.msra.mxu0 %v17039_v5 }
 0x987   :  { %13716 = vmatprep.subr.bf16.mxu1 %v17044_v6  ;;  %13757 = vmatprep.subr.bf16.mxu0 %v17047_v59 }
 0x98a   :  { %13717 = vmatpush1.bf16.msra.mxu1 %v17042_v63  ;;  %13758 = vmatpush1.bf16.msra.mxu0 %v17045_v0 }
 0x98b   :  { %13718 = vmatprep.subr.bf16.mxu1 %v17050_v57  ;;  %13759 = vmatprep.subr.bf16.mxu0 %v17053_v11 }
 0x98e   :  { %13719 = vmatpush1.bf16.msra.mxu1 %v17048_v12  ;;  %13760 = vmatpush1.bf16.msra.mxu0 %v17051_v26 }
 0x98f   :  { %13720 = vmatprep.subr.bf16.mxu1 %v17056_v1  ;;  %13761 = vmatprep.subr.bf16.mxu0 %v17059_v13  ;;  %v17108_v13 = vld [vmem:[%s24406_s13 + $0x750] ss:$24 sps:$4 sm:$0xff]  }
 0x992   :  { %13721 = vmatpush1.bf16.msra.mxu1 %v17054_v17  ;;  %13762 = vmatpush1.bf16.msra.mxu0 %v17057_v18  ;;  %v17111_v17 = vld [vmem:[%s24406_s13 + $0xa50] ss:$24 sps:$4 sm:$0xff]  }
 0x993   :  { %13722 = vmatprep.subr.bf16.mxu1 %v17062_v21  ;;  %13763 = vmatprep.subr.bf16.mxu0 %v17065_v23  ;;  %v17116_v23 = vld [vmem:[%s24406_s13 + $0x724] ss:$24 sps:$4 sm:$0xff]  }
 0x996   :  { %13723 = vmatpush2.bf16.msra.mxu1 %v17060_v38  ;;  %13764 = vmatpush2.bf16.msra.mxu0 %v17063_v50  ;;  %v17119_v38 = vld [vmem:[%s24406_s13 + $0xa24] ss:$24 sps:$4 sm:$0xff]  }
 0x997   :  { %13724 = vmatprep.subr.bf16.mxu1 %v17068_v45  ;;  %13765 = vmatprep.subr.bf16.mxu0 %v17071_v39 }
 0x99a   :  { %13725 = vmatpush2.bf16.msra.mxu1 %v17066_v62  ;;  %13766 = vmatpush2.bf16.msra.mxu0 %v17069_v44  ;;  %v17114_v44 = vld [vmem:[%s24406_s13 + $0x720] ss:$24 sps:$4 sm:$0xff]  }
 0x99b   :  { %13726 = vmatprep.subr.bf16.mxu1 %v17074_v40  ;;  %13767 = vmatprep.subr.bf16.mxu0 %v17077_v20  ;;  %v17117_v40 = vld [vmem:[%s24406_s13 + $0xa20] ss:$24 sps:$4 sm:$0xff]   ;;  %v17122_v20 = vld [vmem:[%s24406_s13 + $0x6f4] ss:$24 sps:$4 sm:$0xff]  }
 0x99e   :  { %13727 = vmatpush2.bf16.msra.mxu1 %v17072_v2  ;;  %13768 = vmatpush2.bf16.msra.mxu0 %v17075_v43  ;;  %v17125_v2 = vld [vmem:[%s24406_s13 + $0x9f4] ss:$24 sps:$4 sm:$0xff]   ;;  %v17120_v43 = vld [vmem:[%s24406_s13 + $0x6f0] ss:$24 sps:$4 sm:$0xff]  }
 0x99f   :  { %13728 = vmatprep.subr.bf16.mxu1 %v17080_v3  ;;  %13769 = vmatprep.subr.bf16.mxu0 %v17083_v25  ;;  %v17123_v3 = vld [vmem:[%s24406_s13 + $0x9f0] ss:$24 sps:$4 sm:$0xff]   ;;  %v17128_v25 = vld [vmem:[%s24406_s13 + $0x6c4] ss:$24 sps:$4 sm:$0xff]  }
 0x9a2   :  { %13729 = vmatpush2.bf16.msra.mxu1 %v17078_v29  ;;  %13770 = vmatpush2.bf16.msra.mxu0 %v17081_v48  ;;  %v17131_v29 = vld [vmem:[%s24406_s13 + $0x9c4] ss:$24 sps:$4 sm:$0xff]   ;;  %v17126_v48 = vld [vmem:[%s24406_s13 + $0x6c0] ss:$24 sps:$4 sm:$0xff]  }
 0x9a3   :  { %13730 = vmatprep.subr.bf16.mxu1 %v17086_v7  ;;  %13771 = vmatprep.subr.bf16.mxu0 %v17089_v54  ;;  %v17129_v7 = vld [vmem:[%s24406_s13 + $0x9c0] ss:$24 sps:$4 sm:$0xff]   ;;  %v17134_v54 = vld [vmem:[%s24406_s13 + $0x694] ss:$24 sps:$4 sm:$0xff]  }
 0x9a6   :  { %13731 = vmatpush2.bf16.msra.mxu1 %v17084_v49  ;;  %13772 = vmatpush2.bf16.msra.mxu0 %v17087_v22  ;;  %v17137_v49 = vld [vmem:[%s24406_s13 + $0x994] ss:$24 sps:$4 sm:$0xff]   ;;  %v17132_v22 = vld [vmem:[%s24406_s13 + $0x690] ss:$24 sps:$4 sm:$0xff]  }
 0x9a7   :  { %13732 = vmatprep.subr.bf16.mxu1 %v17092_v28  ;;  %13773 = vmatprep.subr.bf16.mxu0 %v17095_v55  ;;  %v17135_v28 = vld [vmem:[%s24406_s13 + $0x990] ss:$24 sps:$4 sm:$0xff]   ;;  %v17140_v55 = vld [vmem:[%s24406_s13 + $0x664] ss:$24 sps:$4 sm:$0xff]  }
 0x9aa   :  { %13733 = vmatpush2.bf16.msra.mxu1 %v17090_v31  ;;  %13774 = vmatpush2.bf16.msra.mxu0 %v17093_v32  ;;  %v17143_v31 = vld [vmem:[%s24406_s13 + $0x964] ss:$24 sps:$4 sm:$0xff]   ;;  %v17138_v32 = vld [vmem:[%s24406_s13 + $0x660] ss:$24 sps:$4 sm:$0xff]  }
 0x9ab   :  { %13734 = vmatprep.subr.bf16.mxu1 %v17098_v30  ;;  %13775 = vmatprep.subr.bf16.mxu0 %v17101_v33  ;;  %v17141_v30 = vld [vmem:[%s24406_s13 + $0x960] ss:$24 sps:$4 sm:$0xff]   ;;  %v17146_v33 = vld [vmem:[%s24406_s13 + $0x634] ss:$24 sps:$4 sm:$0xff]  }
 0x9ae   :  { %13735 = vmatpush2.bf16.msra.mxu1 %v17096_v41  ;;  %13776 = vmatpush2.bf16.msra.mxu0 %v17099_v36  ;;  %v17149_v41 = vld [vmem:[%s24406_s13 + $0x934] ss:$24 sps:$4 sm:$0xff]   ;;  %v17144_v36 = vld [vmem:[%s24406_s13 + $0x630] ss:$24 sps:$4 sm:$0xff]  }
 0x9af   :  { %13736 = vmatprep.subr.bf16.mxu1 %v17104_v19  ;;  %13777 = vmatprep.subr.bf16.mxu0 %v17107_v9  ;;  %v17147_v19 = vld [vmem:[%s24406_s13 + $0x930] ss:$24 sps:$4 sm:$0xff]   ;;  %v8009_v9 = vrot.slane %v22064_v61, %v19725_v15 }
 0x9b2   :  { %13737 = vmatpush2.bf16.msra.mxu1 %v17102_v56  ;;  %13778 = vmatpush2.bf16.msra.mxu0 %v17105_v37  ;;  %v8017_v56 = vrot.slane %v22064_v61, %v20146_v35 }
 0x9b3   :  { %13788 = vmatprep.subr.bf16.mxu1 %v17110_v58  ;;  %13829 = vmatprep.subr.bf16.mxu0 %v17113_v42  ;;  %v17152_v42 = vld [vmem:[%s24406_s13 + $0x604] ss:$24 sps:$4 sm:$0xff]  }
 0x9d5   :  { %v8740_v16 = vpop.f32.mrf.mxu1  ;;  %v8781_v53 = vpop.f32.mrf.mxu0 }
 0x9d6   :  { %v8741_v4 = vadd.f32 %v8740_v16, %v7989_v52  ;;  %v8782_v46 = vadd.f32 %v8781_v53, %v7997_v34  ;;  %v17155_v52 = vld [vmem:[%s24406_s13 + $0x904] ss:$24 sps:$4 sm:$0xff]   ;;  %v17150_v34 = vld [vmem:[%s24406_s13 + $0x600] ss:$24 sps:$4 sm:$0xff]  }
 0x9d7   :  { %v8742_v5 = vpop.f32.mrf.mxu1  ;;  %v8783_v6 = vpop.f32.mrf.mxu0 }
 0x9d8   :  { %v8743_v59 = vadd.f32 %v8742_v5, %v7993_v24  ;;  %v8784_v63 = vadd.f32 %v8783_v6, %v8001_v47  ;;  %v9034_v0 = vmax.f32 %v8741_v4, 0.0  ;;  %v9036_v57 = vmax.f32 %v8782_v46, 0.0  ;;  %v17153_v24 = vld [vmem:[%s24406_s13 + $0x900] ss:$24 sps:$4 sm:$0xff]   ;;  %v17158_v6 = vld [vmem:[%s24406_s13 + $0x8d4] ss:$24 sps:$4 sm:$0xff]  }
 0x9d9   :  { %v8744_v11 = vpop.f32.mrf.mxu1  ;;  %v8785_v12 = vpop.f32.mrf.mxu0 }
 0x9da   :  { %v9035_v26 = vmax.f32 %v8743_v59, 0.0  ;;  %v9037_v1 = vmax.f32 %v8784_v63, 0.0  ;;  %v22090_v39 = vpack.c.bf16 %v9034_v0, %v9034_v0  ;;  %v22092_v62 = vpack.c.bf16 %v9036_v57, %v9036_v57  ;;  %v17161_v59 = vld [vmem:[%s24406_s13 + $0xbd4] ss:$24 sps:$4 sm:$0xff]   ;;  %v17156_v57 = vld [vmem:[%s24406_s13 + $0x8d0] ss:$24 sps:$4 sm:$0xff]  }
 0x9db   :  { %v8745_v18 = vpop.f32.mrf.mxu1  ;;  %v8786_v21 = vpop.f32.mrf.mxu0  ;;  %v17159_v11 = vld [vmem:[%s24406_s13 + $0xbd0] ss:$24 sps:$4 sm:$0xff]  }
 0x9dc   :  { %v22086_v50 = vpack.c.bf16 %v9035_v26, %v9035_v26  ;;  %v22088_v45 = vpack.c.bf16 %v9037_v1, %v9037_v1  ;;  %v17167_v18 = vld [vmem:[%s24406_s13 + $0xba4] ss:$24 sps:$4 sm:$0xff]   ;;  %v17162_v21 = vld [vmem:[%s24406_s13 + $0x8a0] ss:$24 sps:$4 sm:$0xff]  }
 0x9de   :  { %13738 = vmatprep.mubr.bf16.mxu1 %v22086_v50  ;;  %13779 = vmatprep.mubr.bf16.mxu0 %v22088_v45 }
 0x9df   :  { %13739 = vmatmul.mubr.bf16.vlgmr.msra.gmra.mxu1 %v22090_v39  ;;  %13780 = vmatmul.mubr.bf16.vlgmr.msra.gmra.mxu0 %v22092_v62 }
 0x9e0   :  { %13789 = vmatpush1.bf16.msra.mxu1 %v17108_v13  ;;  %13830 = vmatpush1.bf16.msra.mxu0 %v17111_v17  ;;  %v17164_v17 = vld [vmem:[%s24406_s13 + $0x8a4] ss:$24 sps:$4 sm:$0xff]  }
 0x9e1   :  { %13790 = vmatprep.subr.bf16.mxu1 %v17116_v23  ;;  %13831 = vmatprep.subr.bf16.mxu0 %v17119_v38  ;;  %v17165_v23 = vld [vmem:[%s24406_s13 + $0xba0] ss:$24 sps:$4 sm:$0xff]   ;;  %v17170_v38 = vld [vmem:[%s24406_s13 + $0x874] ss:$24 sps:$4 sm:$0xff]  }
 0x9e4   :  { %13791 = vmatpush1.bf16.msra.mxu1 %v17114_v44  ;;  %13832 = vmatpush1.bf16.msra.mxu0 %v17117_v40  ;;  %v17173_v44 = vld [vmem:[%s24406_s13 + $0xb74] ss:$24 sps:$4 sm:$0xff]   ;;  %v17168_v40 = vld [vmem:[%s24406_s13 + $0x870] ss:$24 sps:$4 sm:$0xff]  }
 0x9e5   :  { %13792 = vmatprep.subr.bf16.mxu1 %v17122_v20  ;;  %13833 = vmatprep.subr.bf16.mxu0 %v17125_v2  ;;  %v17171_v20 = vld [vmem:[%s24406_s13 + $0xb70] ss:$24 sps:$4 sm:$0xff]   ;;  %v17176_v2 = vld [vmem:[%s24406_s13 + $0x844] ss:$24 sps:$4 sm:$0xff]  }
 0x9e8   :  { %13793 = vmatpush1.bf16.msra.mxu1 %v17120_v43  ;;  %13834 = vmatpush1.bf16.msra.mxu0 %v17123_v3  ;;  %v17179_v43 = vld [vmem:[%s24406_s13 + $0xb44] ss:$24 sps:$4 sm:$0xff]   ;;  %v17174_v3 = vld [vmem:[%s24406_s13 + $0x840] ss:$24 sps:$4 sm:$0xff]  }
 0x9e9   :  { %13794 = vmatprep.subr.bf16.mxu1 %v17128_v25  ;;  %13835 = vmatprep.subr.bf16.mxu0 %v17131_v29  ;;  %v17177_v25 = vld [vmem:[%s24406_s13 + $0xb40] ss:$24 sps:$4 sm:$0xff]   ;;  %v17182_v29 = vld [vmem:[%s24406_s13 + $0x814] ss:$24 sps:$4 sm:$0xff]  }
 0x9ec   :  { %13795 = vmatpush1.bf16.msra.mxu1 %v17126_v48  ;;  %13836 = vmatpush1.bf16.msra.mxu0 %v17129_v7  ;;  %v17185_v48 = vld [vmem:[%s24406_s13 + $0xb14] ss:$24 sps:$4 sm:$0xff]   ;;  %v17180_v7 = vld [vmem:[%s24406_s13 + $0x810] ss:$24 sps:$4 sm:$0xff]  }
 0x9ed   :  { %13796 = vmatprep.subr.bf16.mxu1 %v17134_v54  ;;  %13837 = vmatprep.subr.bf16.mxu0 %v17137_v49  ;;  %v17183_v54 = vld [vmem:[%s24406_s13 + $0xb10] ss:$24 sps:$4 sm:$0xff]   ;;  %v17188_v49 = vld [vmem:[%s24406_s13 + $0x7e4] ss:$24 sps:$4 sm:$0xff]  }
 0x9f0   :  { %13797 = vmatpush1.bf16.msra.mxu1 %v17132_v22  ;;  %13838 = vmatpush1.bf16.msra.mxu0 %v17135_v28  ;;  %v17191_v22 = vld [vmem:[%s24406_s13 + $0xae4] ss:$24 sps:$4 sm:$0xff]   ;;  %v17186_v28 = vld [vmem:[%s24406_s13 + $0x7e0] ss:$24 sps:$4 sm:$0xff]  }
 0x9f1   :  { %13798 = vmatprep.subr.bf16.mxu1 %v17140_v55  ;;  %13839 = vmatprep.subr.bf16.mxu0 %v17143_v31  ;;  %v17189_v55 = vld [vmem:[%s24406_s13 + $0xae0] ss:$24 sps:$4 sm:$0xff]   ;;  %v22265_v31 = vld [vmem:[%s24407_s12 + $0x8] sm:$0xff] }
 0x9f4   :  { %13799 = vmatpush1.bf16.msra.mxu1 %v17138_v32  ;;  %13840 = vmatpush1.bf16.msra.mxu0 %v17141_v30  ;;  %v8005_v32 = vrot.slane %v22064_v61, %v19722_v10  ;;  %v8013_v30 = vrot.slane %v22064_v61, %v20131_v27  ;;  %v17195_v61 = vld [vmem:[%s24406_s13 + $0xab0] ss:$24 sps:$4 sm:$0xff]  }
 0x9f5   :  { %v22168_v37 = vpop.f32.mrf.mxu1  ;;  %v22170_v58 = vpop.f32.mrf.mxu0  ;;  %13800 = vmatprep.subr.bf16.mxu1 %v17146_v33  ;;  %13841 = vmatprep.subr.bf16.mxu0 %v17149_v41  ;;  %v17194_v33 = vld [vmem:[%s24406_s13 + $0x7b4] ss:$24 sps:$4 sm:$0xff]  }
 0x9f6   :  { %v17197_v41 = vld [vmem:[%s24406_s13 + $0xab4] ss:$24 sps:$4 sm:$0xff]  }
 0x9f7   :  { %v8824_v47 = vpop.f32.mrf.mxu1  ;;  %v8865_v16 = vpop.f32.mrf.mxu0 }
 0x9f8   :  { %v8825_v53 = vadd.f32 %v8824_v47, %v8009_v9  ;;  %v8866_v4 = vadd.f32 %v8865_v16, %v8017_v56  ;;  %13801 = vmatpush1.bf16.msra.mxu1 %v17144_v36  ;;  %13842 = vmatpush1.bf16.msra.mxu0 %v17147_v19  ;;  %v8029_v36 = vrot.slane %v22265_v31, %v19498_v8  ;;  %v17192_v19 = vld [vmem:[%s24406_s13 + $0x7b0] ss:$24 sps:$4 sm:$0xff]   ;;  %v17200_v47 = vld [vmem:[%s24406_s13 + $0x784] ss:$24 sps:$4 sm:$0xff]  }
 0x9f9   :  { %v8826_v46 = vpop.f32.mrf.mxu1  ;;  %v8867_v5 = vpop.f32.mrf.mxu0  ;;  %13802 = vmatprep.subr.bf16.mxu1 %v17152_v42  ;;  %13843 = vmatprep.subr.bf16.mxu0 %v17155_v52  ;;  %v8025_v9 = vrot.slane %v22265_v31, %v19097_v60  ;;  %v8033_v56 = vrot.slane %v22265_v31, %v19513_v14  ;;  %v8823_v42 = vadd.f32 %v22168_v37, %v8005_v32  ;;  %v17203_v16 = vld [vmem:[%s24406_s13 + $0xa84] ss:$24 sps:$4 sm:$0xff]   ;;  %v17198_v37 = vld [vmem:[%s24406_s13 + $0x780] ss:$24 sps:$4 sm:$0xff]  }
 0x9fa   :  { %v9039_v63 = vmax.f32 %v8825_v53, 0.0  ;;  %v9041_v0 = vmax.f32 %v8866_v4, 0.0  ;;  %v8864_v52 = vadd.f32 %v22170_v58, %v8013_v30  ;;  %v17201_v58 = vld [vmem:[%s24406_s13 + $0xa80] ss:$24 sps:$4 sm:$0xff]   ;;  %v17230_v30 = vld [vmem:[%s24406_s13 + $0xc94] ss:$24 sps:$4 sm:$0xff]  }
 0x9fb   :  { %v8827_v12 = vpop.f32.mrf.mxu1  ;;  %v8868_v26 = vpop.f32.mrf.mxu0  ;;  %v17225_v32 = vld [vmem:[%s24406_s13 + $0xfc0] ss:$24 sps:$4 sm:$0xff]  }
 0x9fc   :  { %v22196_v1 = vpack.c.bf16 %v9039_v63, %v9039_v63  ;;  %v22198_v13 = vpack.c.bf16 %v9041_v0, %v9041_v0  ;;  %13803 = vmatpush1.bf16.msra.mxu1 %v17150_v34  ;;  %13844 = vmatpush1.bf16.msra.mxu0 %v17153_v24  ;;  %v9040_v63 = vmax.f32 %v8864_v52, 0.0  ;;  %v17209_v12 = vld [vmem:[%s24406_s13 + $0x1054] ss:$24 sps:$4 sm:$0xff]  }
 0x9fd   :  { %13804 = vmatprep.subr.bf16.mxu1 %v17158_v6  ;;  %13845 = vmatprep.subr.bf16.mxu0 %v17161_v59  ;;  %v9038_v59 = vmax.f32 %v8823_v42, 0.0  ;;  %v17242_v42 = vld [vmem:[%s24406_s13 + $0xc34] ss:$24 sps:$4 sm:$0xff]  }
 0x9fe   :  { %13820 = vmatprep.mubr.bf16.mxu1 %v22196_v1  ;;  %13861 = vmatprep.mubr.bf16.mxu0 %v22198_v13  ;;  %v17245_v52 = vld [vmem:[%s24406_s13 + $0xf34] ss:$24 sps:$4 sm:$0xff]  }
 0xa00   :  { %13805 = vmatpush2.bf16.msra.mxu1 %v17156_v57  ;;  %13846 = vmatpush2.bf16.msra.mxu0 %v17159_v11  ;;  %v17206_v11 = vld [vmem:[%s24406_s13 + $0xd54] ss:$24 sps:$4 sm:$0xff]  }
 0xa01   :  { %13806 = vmatprep.subr.bf16.mxu1 %v17164_v17  ;;  %13847 = vmatprep.subr.bf16.mxu0 %v17167_v18  ;;  %v17204_v17 = vld [vmem:[%s24406_s13 + $0xd50] ss:$24 sps:$4 sm:$0xff]  }
 0xa04   :  { %13807 = vmatpush2.bf16.msra.mxu1 %v17162_v21  ;;  %13848 = vmatpush2.bf16.msra.mxu0 %v17165_v23 }
 0xa05   :  { %13808 = vmatprep.subr.bf16.mxu1 %v17170_v38  ;;  %13849 = vmatprep.subr.bf16.mxu0 %v17173_v44  ;;  %v17207_v38 = vld [vmem:[%s24406_s13 + $0x1050] ss:$24 sps:$4 sm:$0xff]   ;;  %v17212_v44 = vld [vmem:[%s24406_s13 + $0xd24] ss:$24 sps:$4 sm:$0xff]  }
 0xa08   :  { %13809 = vmatpush2.bf16.msra.mxu1 %v17168_v40  ;;  %13850 = vmatpush2.bf16.msra.mxu0 %v17171_v20  ;;  %v17215_v40 = vld [vmem:[%s24406_s13 + $0x1024] ss:$24 sps:$4 sm:$0xff]   ;;  %v22325_v20 = vpack.c.bf16 %v9038_v59, %v9038_v59  ;;  %v17246_v59 = vld [vmem:[%s24406_s13 + $0xc00] ss:$24 sps:$4 sm:$0xff]  }
 0xa09   :  { %13810 = vmatprep.subr.bf16.mxu1 %v17176_v2  ;;  %13851 = vmatprep.subr.bf16.mxu0 %v17179_v43  ;;  %v22327_v2 = vpack.c.bf16 %v9040_v63, %v9040_v63 }
 0xa0c   :  { %13811 = vmatpush2.bf16.msra.mxu1 %v17174_v3  ;;  %13852 = vmatpush2.bf16.msra.mxu0 %v17177_v25  ;;  %v17210_v25 = vld [vmem:[%s24406_s13 + $0xd20] ss:$24 sps:$4 sm:$0xff]  }
 0xa0d   :  { %13812 = vmatprep.subr.bf16.mxu1 %v17182_v29  ;;  %13853 = vmatprep.subr.bf16.mxu0 %v17185_v48  ;;  %v17213_v29 = vld [vmem:[%s24406_s13 + $0x1020] ss:$24 sps:$4 sm:$0xff]   ;;  %v17218_v48 = vld [vmem:[%s24406_s13 + $0xcf4] ss:$24 sps:$4 sm:$0xff]  }
 0xa10   :  { %13813 = vmatpush2.bf16.msra.mxu1 %v17180_v7  ;;  %13854 = vmatpush2.bf16.msra.mxu0 %v17183_v54  ;;  %v17221_v7 = vld [vmem:[%s24406_s13 + $0xff4] ss:$24 sps:$4 sm:$0xff]   ;;  %v17216_v54 = vld [vmem:[%s24406_s13 + $0xcf0] ss:$24 sps:$4 sm:$0xff]  }
 0xa11   :  { %13814 = vmatprep.subr.bf16.mxu1 %v17188_v49  ;;  %13855 = vmatprep.subr.bf16.mxu0 %v17191_v22  ;;  %v17219_v49 = vld [vmem:[%s24406_s13 + $0xff0] ss:$24 sps:$4 sm:$0xff]   ;;  %v17224_v22 = vld [vmem:[%s24406_s13 + $0xcc4] ss:$24 sps:$4 sm:$0xff]  }
 0xa14   :  { %13815 = vmatpush2.bf16.msra.mxu1 %v17186_v28  ;;  %13856 = vmatpush2.bf16.msra.mxu0 %v17189_v55  ;;  %v17222_v28 = vld [vmem:[%s24406_s13 + $0xcc0] ss:$24 sps:$4 sm:$0xff]   ;;  %v17227_v55 = vld [vmem:[%s24406_s13 + $0xfc4] ss:$24 sps:$4 sm:$0xff]  }
 0xa15   :  { %v22291_v34 = vpop.f32.mrf.mxu1  ;;  %v8945_v24 = vpop.f32.mrf.mxu0  ;;  %13816 = vmatprep.subr.bf16.mxu1 %v17194_v33  ;;  %13857 = vmatprep.subr.bf16.mxu0 %v17197_v41  ;;  %v17228_v33 = vld [vmem:[%s24406_s13 + $0xc90] ss:$24 sps:$4 sm:$0xff]   ;;  %v17233_v41 = vld [vmem:[%s24406_s13 + $0xf94] ss:$24 sps:$4 sm:$0xff]  }
 0xa16   :  { %v22299_v53 = vadd.f32 %v8945_v24, %v8029_v36  ;;  %v17231_v36 = vld [vmem:[%s24406_s13 + $0xf90] ss:$24 sps:$4 sm:$0xff]   ;;  %v8037_v24 = vrot.slane %v22265_v31, %v19722_v10 }
 0xa17   :  { %v8906_v4 = vpop.f32.mrf.mxu1  ;;  %v8947_v46 = vpop.f32.mrf.mxu0 }
 0xa18   :  { %v8907_v5 = vadd.f32 %v8906_v4, %v8025_v9  ;;  %v8948_v6 = vadd.f32 %v8947_v46, %v8033_v56  ;;  %13817 = vmatpush2.bf16.msra.mxu1 %v17192_v19  ;;  %13858 = vmatpush2.bf16.msra.mxu0 %v17195_v61  ;;  %v17236_v19 = vld [vmem:[%s24406_s13 + $0xc64] ss:$24 sps:$4 sm:$0xff]   ;;  %v17234_v61 = vld [vmem:[%s24406_s13 + $0xc60] ss:$24 sps:$4 sm:$0xff]   ;;  %v17243_v4 = vld [vmem:[%s24406_s13 + $0xf30] ss:$24 sps:$4 sm:$0xff]  }
 0xa19   :  { %v8908_v0 = vpop.f32.mrf.mxu1  ;;  %v8949_v57 = vpop.f32.mrf.mxu0  ;;  %13818 = vmatprep.subr.bf16.mxu1 %v17200_v47  ;;  %13859 = vmatprep.subr.bf16.mxu0 %v17203_v16  ;;  %v17239_v9 = vld [vmem:[%s24406_s13 + $0xf64] ss:$24 sps:$4 sm:$0xff]   ;;  %v17237_v56 = vld [vmem:[%s24406_s13 + $0xf60] ss:$24 sps:$4 sm:$0xff]   ;;  %v8045_v47 = vrot.slane %v22265_v31, %v20131_v27  ;;  %v17240_v16 = vld [vmem:[%s24406_s13 + $0xc30] ss:$24 sps:$4 sm:$0xff]  }
 0xa1a   :  { %v9043_v26 = vmax.f32 %v8907_v5, 0.0  ;;  %v9045_v18 = vmax.f32 %v8948_v6, 0.0  ;;  %v17248_v46 = vld [vmem:[%s24406_s13 + $0xc04] ss:$24 sps:$4 sm:$0xff]  }
 0xa1b   :  { %v8909_v21 = vpop.f32.mrf.mxu1  ;;  %v8950_v23 = vpop.f32.mrf.mxu0  ;;  %v17251_v27 = vld [vmem:[%s24406_s13 + $0xf04] ss:$24 sps:$4 sm:$0xff]  }
 0xa1c   :  { %13819 = vmatpush2.bf16.msra.mxu1 %v17198_v37  ;;  %13860 = vmatpush2.bf16.msra.mxu0 %v17201_v58  ;;  %v22329_v43 = vpack.c.bf16 %v9043_v26, %v9043_v26  ;;  %v22331_v3 = vpack.c.bf16 %v9045_v18, %v9045_v18  ;;  %v17254_v26 = vld [vmem:[%s24406_s13 + $0xed4] ss:$24 sps:$4 sm:$0xff]  }
 0xa1d   :  { %13870 = vmatprep.subr.bf16.mxu1 %v17206_v11  ;;  %13911 = vmatprep.subr.bf16.mxu0 %v17209_v12  ;;  %v17249_v12 = vld [vmem:[%s24406_s13 + $0xf00] ss:$24 sps:$4 sm:$0xff]   ;;  %v17257_v18 = vld [vmem:[%s24406_s13 + $0x11d4] ss:$24 sps:$4 sm:$0xff]  }
 0xa1f   :  { %13821 = vmatmul.mubr.bf16.vlgmr.msra.gmra.mxu1 %v22325_v20  ;;  %13862 = vmatmul.mubr.bf16.vlgmr.msra.gmra.mxu0 %v22327_v2 }
 0xa20   :  { %13871 = vmatpush1.bf16.msra.mxu1 %v17204_v17  ;;  %13902 = vmatprep.mubr.bf16.mxu1 %v22329_v43  ;;  %v17252_v17 = vld [vmem:[%s24406_s13 + $0xed0] ss:$24 sps:$4 sm:$0xff]  }
 0xa21   :  { %13912 = vmatpush1.bf16.msra.mxu0 %v17207_v38  ;;  %13943 = vmatprep.mubr.bf16.mxu0 %v22331_v3  ;;  %v17255_v38 = vld [vmem:[%s24406_s13 + $0x11d0] ss:$24 sps:$4 sm:$0xff]  }
 0xa22   :  { %13872 = vmatprep.subr.bf16.mxu1 %v17212_v44  ;;  %13913 = vmatprep.subr.bf16.mxu0 %v17215_v40  ;;  %v17260_v44 = vld [vmem:[%s24406_s13 + $0xea4] ss:$24 sps:$4 sm:$0xff]   ;;  %v17258_v40 = vld [vmem:[%s24406_s13 + $0xea0] ss:$24 sps:$4 sm:$0xff]  }
 0xa24   :  { %13873 = vmatpush1.bf16.msra.mxu1 %v17210_v25  ;;  %v17263_v25 = vld [vmem:[%s24406_s13 + $0x11a4] ss:$24 sps:$4 sm:$0xff]  }
 0xa25   :  { %13914 = vmatpush1.bf16.msra.mxu0 %v17213_v29  ;;  %13874 = vmatprep.subr.bf16.mxu1 %v17218_v48  ;;  %v17261_v29 = vld [vmem:[%s24406_s13 + $0x11a0] ss:$24 sps:$4 sm:$0xff]   ;;  %v17266_v48 = vld [vmem:[%s24406_s13 + $0xe74] ss:$24 sps:$4 sm:$0xff]  }
 0xa26   :  { %13915 = vmatprep.subr.bf16.mxu0 %v17221_v7  ;;  %v17264_v7 = vld [vmem:[%s24406_s13 + $0xe70] ss:$24 sps:$4 sm:$0xff]  }
 0xa28   :  { %13875 = vmatpush1.bf16.msra.mxu1 %v17216_v54  ;;  %v17269_v54 = vld [vmem:[%s24406_s13 + $0x1174] ss:$24 sps:$4 sm:$0xff]  }
 0xa29   :  { %13916 = vmatpush1.bf16.msra.mxu0 %v17219_v49  ;;  %13876 = vmatprep.subr.bf16.mxu1 %v17224_v22  ;;  %v17267_v49 = vld [vmem:[%s24406_s13 + $0x1170] ss:$24 sps:$4 sm:$0xff]   ;;  %v17272_v22 = vld [vmem:[%s24406_s13 + $0xe44] ss:$24 sps:$4 sm:$0xff]  }
 0xa2a   :  { %13917 = vmatprep.subr.bf16.mxu0 %v17227_v55  ;;  %v17275_v55 = vld [vmem:[%s24406_s13 + $0x1144] ss:$24 sps:$4 sm:$0xff]  }
 0xa2c   :  { %13877 = vmatpush1.bf16.msra.mxu1 %v17222_v28  ;;  %v17270_v28 = vld [vmem:[%s24406_s13 + $0xe40] ss:$24 sps:$4 sm:$0xff]  }
 0xa2d   :  { %13918 = vmatpush1.bf16.msra.mxu0 %v17225_v32  ;;  %13878 = vmatprep.subr.bf16.mxu1 %v17230_v30  ;;  %v17273_v32 = vld [vmem:[%s24406_s13 + $0x1140] ss:$24 sps:$4 sm:$0xff]   ;;  %v17278_v30 = vld [vmem:[%s24406_s13 + $0xe14] ss:$24 sps:$4 sm:$0xff]  }
 0xa2e   :  { %13919 = vmatprep.subr.bf16.mxu0 %v17233_v41  ;;  %v17281_v41 = vld [vmem:[%s24406_s13 + $0x1114] ss:$24 sps:$4 sm:$0xff]  }
 0xa30   :  { %13879 = vmatpush1.bf16.msra.mxu1 %v17228_v33  ;;  %v17276_v33 = vld [vmem:[%s24406_s13 + $0xe10] ss:$24 sps:$4 sm:$0xff]  }
 0xa31   :  { %13920 = vmatpush1.bf16.msra.mxu0 %v17231_v36  ;;  %13880 = vmatprep.subr.bf16.mxu1 %v17236_v19  ;;  %v17279_v36 = vld [vmem:[%s24406_s13 + $0x1110] ss:$24 sps:$4 sm:$0xff]   ;;  %v17284_v19 = vld [vmem:[%s24406_s13 + $0xde4] ss:$24 sps:$4 sm:$0xff]  }
 0xa32   :  { %13921 = vmatprep.subr.bf16.mxu0 %v17239_v9  ;;  %v17287_v9 = vld [vmem:[%s24406_s13 + $0x10e4] ss:$24 sps:$4 sm:$0xff]  }
 0xa34   :  { %13881 = vmatpush1.bf16.msra.mxu1 %v17234_v61  ;;  %v17282_v61 = vld [vmem:[%s24406_s13 + $0xde0] ss:$24 sps:$4 sm:$0xff]  }
 0xa35   :  { %13922 = vmatpush1.bf16.msra.mxu0 %v17237_v56  ;;  %v8986_v37 = vpop.f32.mrf.mxu1  ;;  %v9027_v58 = vpop.f32.mrf.mxu0  ;;  %13882 = vmatprep.subr.bf16.mxu1 %v17242_v42  ;;  %v8021_v56 = vrot.slane %v22265_v31, %v19089_v51  ;;  %v17285_v42 = vld [vmem:[%s24406_s13 + $0x10e0] ss:$24 sps:$4 sm:$0xff]  }
 0xa36   :  { %v22413_v5 = vadd.f32 %v8986_v37, %v8037_v24  ;;  %v22415_v6 = vadd.f32 %v9027_v58, %v8045_v47  ;;  %13923 = vmatprep.subr.bf16.mxu0 %v17245_v52  ;;  %v17290_v52 = vld [vmem:[%s24406_s13 + $0xdb4] ss:$24 sps:$4 sm:$0xff]   ;;  %v17288_v24 = vld [vmem:[%s24406_s13 + $0xdb0] ss:$24 sps:$4 sm:$0xff]   ;;  %v8049_v37 = vrot.slane %v22265_v31, %v20146_v35  ;;  %v17299_v35 = vld [vmem:[%s24406_s13 + $0x1084] ss:$24 sps:$4 sm:$0xff]  }
 0xa37   :  { %v22420_v63 = vpop.f32.mrf.mxu1  ;;  %v22422_v0 = vpop.f32.mrf.mxu0  ;;  %v17293_v47 = vld [vmem:[%s24406_s13 + $0x10b4] ss:$24 sps:$4 sm:$0xff]   ;;  %v8905_v58 = vadd.f32 %v22291_v34, %v8021_v56  ;;  %v17297_v34 = vld [vmem:[%s24406_s13 + $0x1080] ss:$24 sps:$4 sm:$0xff]  }
 0xa38   :  { %13883 = vmatpush1.bf16.msra.mxu1 %v17240_v16  ;;  %v8041_v16 = vrot.slane %v22265_v31, %v19725_v15  ;;  %v17333_v56 = vld [vmem:[%s24406_s13 + $0x1560] ss:$24 sps:$4 sm:$0xff]  }
 0xa39   :  { %13924 = vmatpush1.bf16.msra.mxu0 %v17243_v4  ;;  %v8990_v57 = vpop.f32.mrf.mxu1  ;;  %v9031_v11 = vpop.f32.mrf.mxu0  ;;  %13884 = vmatprep.subr.bf16.mxu1 %v17248_v46  ;;  %v17291_v4 = vld [vmem:[%s24406_s13 + $0x10b0] ss:$24 sps:$4 sm:$0xff]   ;;  %v17296_v46 = vld [vmem:[%s24406_s13 + $0xd84] ss:$24 sps:$4 sm:$0xff]  }
 0xa3a   :  { %13925 = vmatprep.subr.bf16.mxu0 %v17251_v27  ;;  %v17294_v27 = vld [vmem:[%s24406_s13 + $0xd80] ss:$24 sps:$4 sm:$0xff]   ;;  %v8989_v31 = vadd.f32 %v22420_v63, %v8041_v16  ;;  %v9042_v57 = vmax.f32 %v8905_v58, 0.0  ;;  %v17302_v11 = vld [vmem:[%s24406_s13 + $0x1354] ss:$24 sps:$4 sm:$0xff]   ;;  %v9044_v63 = vmax.f32 %v22299_v53, 0.0 }
 0xa3b   :  { %v8991_v21 = vpop.f32.mrf.mxu1  ;;  %v9032_v23 = vpop.f32.mrf.mxu0  ;;  %v17344_v16 = vld [vmem:[%s24406_s13 + $0x1204] ss:$24 sps:$4 sm:$0xff]   ;;  %v17342_v58 = vld [vmem:[%s24406_s13 + $0x1200] ss:$24 sps:$4 sm:$0xff]  }
 0xa3c   :  { %13885 = vmatpush1.bf16.msra.mxu1 %v17246_v59  ;;  %v9030_v59 = vadd.f32 %v22422_v0, %v8049_v37  ;;  %v9047_v0 = vmax.f32 %v8989_v31, 0.0  ;;  %v17308_v21 = vld [vmem:[%s24406_s13 + $0x1324] ss:$24 sps:$4 sm:$0xff]   ;;  %v22548_v23 = vpack.c.bf16 %v9042_v57, %v9042_v57  ;;  %v22550_v53 = vpack.c.bf16 %v9044_v63, %v9044_v63  ;;  %v17351_v31 = vld [vmem:[%s24406_s13 + $0x17d0] ss:$24 sps:$4 sm:$0xff]  }
 0xa3d   :  { %13926 = vmatpush1.bf16.msra.mxu0 %v17249_v12  ;;  %13886 = vmatprep.subr.bf16.mxu1 %v17254_v26  ;;  %v17305_v12 = vld [vmem:[%s24406_s13 + $0x1654] ss:$24 sps:$4 sm:$0xff]   ;;  %v17300_v26 = vld [vmem:[%s24406_s13 + $0x1350] ss:$24 sps:$4 sm:$0xff]   ;;  %v17347_v37 = vld [vmem:[%s24406_s13 + $0x1504] ss:$24 sps:$4 sm:$0xff]  }
 0xa3e   :  { %13927 = vmatprep.subr.bf16.mxu0 %v17257_v18  ;;  %v9049_v18 = vmax.f32 %v9030_v59, 0.0  ;;  %v17359_v59 = vld [vmem:[%s24406_s13 + $0x17a4] ss:$24 sps:$4 sm:$0xff]   ;;  %v17354_v57 = vld [vmem:[%s24406_s13 + $0x14a0] ss:$24 sps:$4 sm:$0xff]  }
 0xa3f   :  { %v17365_v63 = vld [vmem:[%s24406_s13 + $0x1774] ss:$24 sps:$4 sm:$0xff]  }
 0xa40   :  { %13887 = vmatpush2.bf16.msra.mxu1 %v17252_v17  ;;  %v17303_v17 = vld [vmem:[%s24406_s13 + $0x1650] ss:$24 sps:$4 sm:$0xff]  }
 0xa41   :  { %13928 = vmatpush2.bf16.msra.mxu0 %v17255_v38  ;;  %13888 = vmatprep.subr.bf16.mxu1 %v17260_v44  ;;  %v17306_v38 = vld [vmem:[%s24406_s13 + $0x1320] ss:$24 sps:$4 sm:$0xff]   ;;  %v22555_v44 = vpack.c.bf16 %v9047_v0, %v9047_v0  ;;  %v17363_v0 = vld [vmem:[%s24406_s13 + $0x1770] ss:$24 sps:$4 sm:$0xff]  }
 0xa42   :  { %13929 = vmatprep.subr.bf16.mxu0 %v17263_v25  ;;  %v17311_v25 = vld [vmem:[%s24406_s13 + $0x1624] ss:$24 sps:$4 sm:$0xff]  }
 0xa44   :  { %13889 = vmatpush2.bf16.msra.mxu1 %v17258_v40  ;;  %v17309_v40 = vld [vmem:[%s24406_s13 + $0x1620] ss:$24 sps:$4 sm:$0xff]  }
 0xa45   :  { %13930 = vmatpush2.bf16.msra.mxu0 %v17261_v29  ;;  %13890 = vmatprep.subr.bf16.mxu1 %v17266_v48  ;;  %v22564_v29 = vpack.c.bf16 %v9049_v18, %v9049_v18  ;;  %v17314_v48 = vld [vmem:[%s24406_s13 + $0x12f4] ss:$24 sps:$4 sm:$0xff]   ;;  %v17371_v18 = vld [vmem:[%s24406_s13 + $0x1744] ss:$24 sps:$4 sm:$0xff]  }
 0xa46   :  { %13931 = vmatprep.subr.bf16.mxu0 %v17269_v54  ;;  %v17312_v54 = vld [vmem:[%s24406_s13 + $0x12f0] ss:$24 sps:$4 sm:$0xff]  }
 0xa48   :  { %13891 = vmatpush2.bf16.msra.mxu1 %v17264_v7  ;;  %v17317_v7 = vld [vmem:[%s24406_s13 + $0x15f4] ss:$24 sps:$4 sm:$0xff]  }
 0xa49   :  { %13932 = vmatpush2.bf16.msra.mxu0 %v17267_v49  ;;  %13892 = vmatprep.subr.bf16.mxu1 %v17272_v22  ;;  %v17315_v49 = vld [vmem:[%s24406_s13 + $0x15f0] ss:$24 sps:$4 sm:$0xff]   ;;  %v17320_v22 = vld [vmem:[%s24406_s13 + $0x12c4] ss:$24 sps:$4 sm:$0xff]  }
 0xa4a   :  { %13933 = vmatprep.subr.bf16.mxu0 %v17275_v55  ;;  %v17318_v55 = vld [vmem:[%s24406_s13 + $0x12c0] ss:$24 sps:$4 sm:$0xff]  }
 0xa4c   :  { %13893 = vmatpush2.bf16.msra.mxu1 %v17270_v28  ;;  %v17323_v28 = vld [vmem:[%s24406_s13 + $0x15c4] ss:$24 sps:$4 sm:$0xff]  }
 0xa4d   :  { %13934 = vmatpush2.bf16.msra.mxu0 %v17273_v32  ;;  %13894 = vmatprep.subr.bf16.mxu1 %v17278_v30  ;;  %v17321_v32 = vld [vmem:[%s24406_s13 + $0x15c0] ss:$24 sps:$4 sm:$0xff]   ;;  %v17326_v30 = vld [vmem:[%s24406_s13 + $0x1294] ss:$24 sps:$4 sm:$0xff]  }
 0xa4e   :  { %13935 = vmatprep.subr.bf16.mxu0 %v17281_v41  ;;  %v17324_v41 = vld [vmem:[%s24406_s13 + $0x1290] ss:$24 sps:$4 sm:$0xff]  }
 0xa50   :  { %13895 = vmatpush2.bf16.msra.mxu1 %v17276_v33  ;;  %v17329_v33 = vld [vmem:[%s24406_s13 + $0x1594] ss:$24 sps:$4 sm:$0xff]  }
 0xa51   :  { %13936 = vmatpush2.bf16.msra.mxu0 %v17279_v36  ;;  %13896 = vmatprep.subr.bf16.mxu1 %v17284_v19  ;;  %v17327_v36 = vld [vmem:[%s24406_s13 + $0x1590] ss:$24 sps:$4 sm:$0xff]   ;;  %v17332_v19 = vld [vmem:[%s24406_s13 + $0x1264] ss:$24 sps:$4 sm:$0xff]  }
 0xa52   :  { %13937 = vmatprep.subr.bf16.mxu0 %v17287_v9  ;;  %v17330_v9 = vld [vmem:[%s24406_s13 + $0x1260] ss:$24 sps:$4 sm:$0xff]  }
 0xa54   :  { %13897 = vmatpush2.bf16.msra.mxu1 %v17282_v61  ;;  %v17335_v61 = vld [vmem:[%s24406_s13 + $0x1564] ss:$24 sps:$4 sm:$0xff]  }
 0xa55   :  { %13938 = vmatpush2.bf16.msra.mxu0 %v17285_v42  ;;  %13898 = vmatprep.subr.bf16.mxu1 %v17290_v52  ;;  %v17338_v42 = vld [vmem:[%s24406_s13 + $0x1234] ss:$24 sps:$4 sm:$0xff]  }
 0xa56   :  { %13939 = vmatprep.subr.bf16.mxu0 %v17293_v47  ;;  %v17341_v52 = vld [vmem:[%s24406_s13 + $0x1534] ss:$24 sps:$4 sm:$0xff]   ;;  %v17339_v47 = vld [vmem:[%s24406_s13 + $0x1530] ss:$24 sps:$4 sm:$0xff]  }
 0xa58   :  { %13899 = vmatpush2.bf16.msra.mxu1 %v17288_v24  ;;  %v17336_v24 = vld [vmem:[%s24406_s13 + $0x1230] ss:$24 sps:$4 sm:$0xff]  }
 0xa59   :  { %13940 = vmatpush2.bf16.msra.mxu0 %v17291_v4  ;;  %13900 = vmatprep.subr.bf16.mxu1 %v17296_v46  ;;  %v17345_v4 = vld [vmem:[%s24406_s13 + $0x1500] ss:$24 sps:$4 sm:$0xff]   ;;  %v17350_v46 = vld [vmem:[%s24406_s13 + $0x14d4] ss:$24 sps:$4 sm:$0xff]  }
 0xa5a   :  { %13941 = vmatprep.subr.bf16.mxu0 %v17299_v35  ;;  %v17348_v35 = vld [vmem:[%s24406_s13 + $0x14d0] ss:$24 sps:$4 sm:$0xff]  }
 0xa5c   :  { %13901 = vmatpush2.bf16.msra.mxu1 %v17294_v27  ;;  %v17353_v27 = vld [vmem:[%s24406_s13 + $0x17d4] ss:$24 sps:$4 sm:$0xff]  }
 0xa5d   :  { %13942 = vmatpush2.bf16.msra.mxu0 %v17297_v34  ;;  %13952 = vmatprep.subr.bf16.mxu1 %v17302_v11  ;;  %v17356_v34 = vld [vmem:[%s24406_s13 + $0x14a4] ss:$24 sps:$4 sm:$0xff]   ;;  %v17357_v11 = vld [vmem:[%s24406_s13 + $0x17a0] ss:$24 sps:$4 sm:$0xff]  }
 0xa5e   :  { %13993 = vmatprep.subr.bf16.mxu0 %v17305_v12  ;;  %v17362_v12 = vld [vmem:[%s24406_s13 + $0x1474] ss:$24 sps:$4 sm:$0xff]  }
 0xa5f   :  { %13903 = vmatmul.mubr.bf16.vlgmr.msra.gmra.mxu1 %v22548_v23 }
 0xa60   :  { %13944 = vmatmul.mubr.bf16.vlgmr.msra.gmra.mxu0 %v22550_v53  ;;  %13953 = vmatpush1.bf16.msra.mxu1 %v17300_v26  ;;  %v17360_v26 = vld [vmem:[%s24406_s13 + $0x1470] ss:$24 sps:$4 sm:$0xff]  }
 0xa61   :  { %13984 = vmatprep.mubr.bf16.mxu1 %v22555_v44  ;;  %13994 = vmatpush1.bf16.msra.mxu0 %v17303_v17  ;;  %v17368_v17 = vld [vmem:[%s24406_s13 + $0x1444] ss:$24 sps:$4 sm:$0xff]  }
 0xa62   :  { %14025 = vmatprep.mubr.bf16.mxu0 %v22564_v29  ;;  %13954 = vmatprep.subr.bf16.mxu1 %v17308_v21  ;;  %v17366_v21 = vld [vmem:[%s24406_s13 + $0x1440] ss:$24 sps:$4 sm:$0xff]  }
 0xa63   :  { %13995 = vmatprep.subr.bf16.mxu0 %v17311_v25  ;;  %v17377_v25 = vld [vmem:[%s24406_s13 + $0x1714] ss:$24 sps:$4 sm:$0xff]  }
 0xa64   :  { %13955 = vmatpush1.bf16.msra.mxu1 %v17306_v38  ;;  %v17369_v38 = vld [vmem:[%s24406_s13 + $0x1740] ss:$24 sps:$4 sm:$0xff]  }
 0xa65   :  { %13996 = vmatpush1.bf16.msra.mxu0 %v17309_v40  ;;  %13956 = vmatprep.subr.bf16.mxu1 %v17314_v48  ;;  %v17374_v40 = vld [vmem:[%s24406_s13 + $0x1414] ss:$24 sps:$4 sm:$0xff]   ;;  %v17372_v48 = vld [vmem:[%s24406_s13 + $0x1410] ss:$24 sps:$4 sm:$0xff]  }
 0xa66   :  { %13997 = vmatprep.subr.bf16.mxu0 %v17317_v7  ;;  %v17375_v7 = vld [vmem:[%s24406_s13 + $0x1710] ss:$24 sps:$4 sm:$0xff]  }
 0xa68   :  { %13957 = vmatpush1.bf16.msra.mxu1 %v17312_v54  ;;  %v17380_v54 = vld [vmem:[%s24406_s13 + $0x13e4] ss:$24 sps:$4 sm:$0xff]  }
 0xa69   :  { %13998 = vmatpush1.bf16.msra.mxu0 %v17315_v49  ;;  %13958 = vmatprep.subr.bf16.mxu1 %v17320_v22  ;;  %v17383_v49 = vld [vmem:[%s24406_s13 + $0x16e4] ss:$24 sps:$4 sm:$0xff]   ;;  %v17378_v22 = vld [vmem:[%s24406_s13 + $0x13e0] ss:$24 sps:$4 sm:$0xff]  }
 0xa6a   :  { %13999 = vmatprep.subr.bf16.mxu0 %v17323_v28  ;;  %v17381_v28 = vld [vmem:[%s24406_s13 + $0x16e0] ss:$24 sps:$4 sm:$0xff]  }
 0xa6c   :  { %13959 = vmatpush1.bf16.msra.mxu1 %v17318_v55  ;;  %v17386_v55 = vld [vmem:[%s24406_s13 + $0x13b4] ss:$24 sps:$4 sm:$0xff]  }
 0xa6d   :  { %14000 = vmatpush1.bf16.msra.mxu0 %v17321_v32  ;;  %13960 = vmatprep.subr.bf16.mxu1 %v17326_v30  ;;  %v17389_v32 = vld [vmem:[%s24406_s13 + $0x16b4] ss:$24 sps:$4 sm:$0xff]   ;;  %v17384_v30 = vld [vmem:[%s24406_s13 + $0x13b0] ss:$24 sps:$4 sm:$0xff]  }
 0xa6e   :  { %14001 = vmatprep.subr.bf16.mxu0 %v17329_v33  ;;  %v17387_v33 = vld [vmem:[%s24406_s13 + $0x16b0] ss:$24 sps:$4 sm:$0xff]  }
 0xa70   :  { %13961 = vmatpush1.bf16.msra.mxu1 %v17324_v41  ;;  %v17392_v41 = vld [vmem:[%s24406_s13 + $0x1384] ss:$24 sps:$4 sm:$0xff]  }
 0xa71   :  { %14002 = vmatpush1.bf16.msra.mxu0 %v17327_v36  ;;  %13962 = vmatprep.subr.bf16.mxu1 %v17332_v19  ;;  %v17395_v36 = vld [vmem:[%s24406_s13 + $0x1684] ss:$24 sps:$4 sm:$0xff]   ;;  %v17390_v19 = vld [vmem:[%s24406_s13 + $0x1380] ss:$24 sps:$4 sm:$0xff]  }
 0xa72   :  { %14003 = vmatprep.subr.bf16.mxu0 %v17335_v61  ;;  %v17393_v61 = vld [vmem:[%s24406_s13 + $0x1680] ss:$24 sps:$4 sm:$0xff]  }
 0xa74   :  { %13963 = vmatpush1.bf16.msra.mxu1 %v17330_v9  ;;  %v9046_v9 = vmax.f32 %v22413_v5, 0.0  ;;  %v17396_v5 = vld [vmem:[%s24406_s13 + $0x158] ss:$24 sps:$4 sm:$0xff]  }
 0xa75   :  { %14004 = vmatpush1.bf16.msra.mxu0 %v17333_v56  ;;  %13964 = vmatprep.subr.bf16.mxu1 %v17338_v42  ;;  %v17398_v56 = vld [vmem:[%s24406_s13 + $0x15c] ss:$24 sps:$4 sm:$0xff]   ;;  %v9834_v42 = vld [vmem:[%s24408_s14] sm:$0x3f] }
 0xa76   :  { %14005 = vmatprep.subr.bf16.mxu0 %v17341_v52  ;;  %v9048_v52 = vmax.f32 %v22415_v6, 0.0  ;;  %v17399_v6 = vld [vmem:[%s24406_s13 + $0x458] ss:$24 sps:$4 sm:$0xff]  }
 0xa78   :  { %13965 = vmatpush1.bf16.msra.mxu1 %v17336_v24  ;;  %v17401_v24 = vld [vmem:[%s24406_s13 + $0x45c] ss:$24 sps:$4 sm:$0xff]  }
 0xa79   :  { %14006 = vmatpush1.bf16.msra.mxu0 %v17339_v47  ;;  %13966 = vmatprep.subr.bf16.mxu1 %v17344_v16  ;;  %v9839_v47 = vrot.slane %v9834_v42, %v19089_v51  ;;  %v22752_v16 = vpack.c.bf16 %v9046_v9, %v9046_v9  ;;  %v17435_v9 = vld [vmem:[%s24406_s13 + $0x338] ss:$24 sps:$4 sm:$0xff]  }
 0xa7a   :  { %14007 = vmatprep.subr.bf16.mxu0 %v17347_v37  ;;  %v22757_v37 = vpack.c.bf16 %v9048_v52, %v9048_v52  ;;  %v17438_v52 = vld [vmem:[%s24406_s13 + $0x8] ss:$24 sps:$4 sm:$0xff]  }
 0xa7c   :  { %13967 = vmatpush1.bf16.msra.mxu1 %v17342_v58  ;;  %v9843_v58 = vrot.slane %v9834_v42, %v19097_v60  ;;  %v17402_v60 = vld [vmem:[%s24406_s13 + $0x128] ss:$24 sps:$4 sm:$0xff]   ;;  %v17443_v42 = vld [vmem:[%s24406_s13 + $0x30c] ss:$24 sps:$4 sm:$0xff]  }
 0xa7d   :  { %14008 = vmatpush1.bf16.msra.mxu0 %v17345_v4  ;;  %13968 = vmatprep.subr.bf16.mxu1 %v17350_v46  ;;  %v17404_v4 = vld [vmem:[%s24406_s13 + $0x12c] ss:$24 sps:$4 sm:$0xff]  }
 0xa7e   :  { %14009 = vmatprep.subr.bf16.mxu0 %v17353_v27  ;;  %v17407_v27 = vld [vmem:[%s24406_s13 + $0x42c] ss:$24 sps:$4 sm:$0xff]  }
 0xa80   :  { %13969 = vmatpush2.bf16.msra.mxu1 %v17348_v35 }
 0xa81   :  { %14010 = vmatpush2.bf16.msra.mxu0 %v17351_v31  ;;  %13970 = vmatprep.subr.bf16.mxu1 %v17356_v34 }
 0xa82   :  { %14011 = vmatprep.subr.bf16.mxu0 %v17359_v59  ;;  %v17405_v59 = vld [vmem:[%s24406_s13 + $0x428] ss:$24 sps:$4 sm:$0xff]  }
 0xa84   :  { %13971 = vmatpush2.bf16.msra.mxu1 %v17354_v57  ;;  %v17410_v57 = vld [vmem:[%s24406_s13 + $0xfc] ss:$24 sps:$4 sm:$0xff]  }
 0xa85   :  { %14012 = vmatpush2.bf16.msra.mxu0 %v17357_v11  ;;  %13972 = vmatprep.subr.bf16.mxu1 %v17362_v12 }
 0xa86   :  { %14013 = vmatprep.subr.bf16.mxu0 %v17365_v63  ;;  %v17413_v63 = vld [vmem:[%s24406_s13 + $0x3fc] ss:$24 sps:$4 sm:$0xff]  }
 0xa88   :  { %13973 = vmatpush2.bf16.msra.mxu1 %v17360_v26 }
 0xa89   :  { %14014 = vmatpush2.bf16.msra.mxu0 %v17363_v0  ;;  %13974 = vmatprep.subr.bf16.mxu1 %v17368_v17 }
 0xa8a   :  { %14015 = vmatprep.subr.bf16.mxu0 %v17371_v18  ;;  %v17408_v18 = vld [vmem:[%s24406_s13 + $0xf8] ss:$24 sps:$4 sm:$0xff]  }
 0xa8c   :  { %13975 = vmatpush2.bf16.msra.mxu1 %v17366_v21 }
 0xa8d   :  { %14016 = vmatpush2.bf16.msra.mxu0 %v17369_v38  ;;  %13976 = vmatprep.subr.bf16.mxu1 %v17374_v40  ;;  %v17411_v40 = vld [vmem:[%s24406_s13 + $0x3f8] ss:$24 sps:$4 sm:$0xff]  }
 0xa8e   :  { %14017 = vmatprep.subr.bf16.mxu0 %v17377_v25  ;;  %v17416_v25 = vld [vmem:[%s24406_s13 + $0xcc] ss:$24 sps:$4 sm:$0xff]  }
 0xa90   :  { %13977 = vmatpush2.bf16.msra.mxu1 %v17372_v48  ;;  %v17419_v48 = vld [vmem:[%s24406_s13 + $0x3cc] ss:$24 sps:$4 sm:$0xff]  }
 0xa91   :  { %14018 = vmatpush2.bf16.msra.mxu0 %v17375_v7  ;;  %13978 = vmatprep.subr.bf16.mxu1 %v17380_v54  ;;  %v17414_v7 = vld [vmem:[%s24406_s13 + $0xc8] ss:$24 sps:$4 sm:$0xff]  }
 0xa92   :  { %14019 = vmatprep.subr.bf16.mxu0 %v17383_v49  ;;  %v17417_v54 = vld [vmem:[%s24406_s13 + $0x3c8] ss:$24 sps:$4 sm:$0xff]   ;;  %v17422_v49 = vld [vmem:[%s24406_s13 + $0x9c] ss:$24 sps:$4 sm:$0xff]  }
 0xa94   :  { %13979 = vmatpush2.bf16.msra.mxu1 %v17378_v22  ;;  %v17425_v22 = vld [vmem:[%s24406_s13 + $0x39c] ss:$24 sps:$4 sm:$0xff]  }
 0xa95   :  { %14020 = vmatpush2.bf16.msra.mxu0 %v17381_v28  ;;  %13980 = vmatprep.subr.bf16.mxu1 %v17386_v55  ;;  %v17420_v28 = vld [vmem:[%s24406_s13 + $0x98] ss:$24 sps:$4 sm:$0xff]  }
 0xa96   :  { %14021 = vmatprep.subr.bf16.mxu0 %v17389_v32  ;;  %v17423_v55 = vld [vmem:[%s24406_s13 + $0x398] ss:$24 sps:$4 sm:$0xff]   ;;  %v17428_v32 = vld [vmem:[%s24406_s13 + $0x6c] ss:$24 sps:$4 sm:$0xff]  }
 0xa98   :  { %13981 = vmatpush2.bf16.msra.mxu1 %v17384_v30  ;;  %v17431_v30 = vld [vmem:[%s24406_s13 + $0x36c] ss:$24 sps:$4 sm:$0xff]  }
 0xa99   :  { %14022 = vmatpush2.bf16.msra.mxu0 %v17387_v33  ;;  %13982 = vmatprep.subr.bf16.mxu1 %v17392_v41  ;;  %v17426_v33 = vld [vmem:[%s24406_s13 + $0x68] ss:$24 sps:$4 sm:$0xff]  }
 0xa9a   :  { %14023 = vmatprep.subr.bf16.mxu0 %v17395_v36  ;;  %v17429_v41 = vld [vmem:[%s24406_s13 + $0x368] ss:$24 sps:$4 sm:$0xff]   ;;  %v17434_v36 = vld [vmem:[%s24406_s13 + $0x3c] ss:$24 sps:$4 sm:$0xff]  }
 0xa9c   :  { %13983 = vmatpush2.bf16.msra.mxu1 %v17390_v19  ;;  %v17437_v19 = vld [vmem:[%s24406_s13 + $0x33c] ss:$24 sps:$4 sm:$0xff]  }
 0xa9d   :  { %14024 = vmatpush2.bf16.msra.mxu0 %v17393_v61  ;;  %14034 = vmatprep.subr.bf16.mxu1 %v17398_v56  ;;  %v17432_v61 = vld [vmem:[%s24406_s13 + $0x38] ss:$24 sps:$4 sm:$0xff]   ;;  %v17440_v56 = vld [vmem:[%s24406_s13 + $0xc] ss:$24 sps:$4 sm:$0xff]  }
 0xa9e   :  { %14075 = vmatprep.subr.bf16.mxu0 %v17401_v24  ;;  %v17441_v24 = vld [vmem:[%s24406_s13 + $0x308] ss:$24 sps:$4 sm:$0xff]  }
 0xa9f   :  { %13985 = vmatmul.mubr.bf16.vlgmr.msra.gmra.mxu1 %v22752_v16  ;;  %v13740_v51 = vpop.f32.mrf.mxu1  ;;  %v13781_v46 = vpop.f32.mrf.mxu0 }
 0xaa0   :  { %14026 = vmatmul.mubr.bf16.vlgmr.msra.gmra.mxu0 %v22757_v37  ;;  %v13741_v35 = vadd.f32 %v13740_v51, %v9839_v47  ;;  %14035 = vmatpush1.bf16.msra.mxu1 %v17396_v5  ;;  %v17446_v5 = vld [vmem:[%s24406_s13 + $0x2dc] ss:$24 sps:$4 sm:$0xff]   ;;  %v17455_v51 = vld [vmem:[%s24406_s13 + $0x5ac] ss:$24 sps:$4 sm:$0xff]  }
 0xaa1   :  { %14066 = vmatprep.mubr.bf16.mxu1 %v22086_v50  ;;  %14076 = vmatpush1.bf16.msra.mxu0 %v17399_v6  ;;  %v13742_v31 = vpop.f32.mrf.mxu1  ;;  %v13783_v34 = vpop.f32.mrf.mxu0  ;;  %v17449_v47 = vld [vmem:[%s24406_s13 + $0x5dc] ss:$24 sps:$4 sm:$0xff]   ;;  %v17444_v6 = vld [vmem:[%s24406_s13 + $0x2d8] ss:$24 sps:$4 sm:$0xff]  }
 0xaa2   :  { %v22778_v11 = vadd.f32 %v13781_v46, %v13741_v35  ;;  %14107 = vmatprep.mubr.bf16.mxu0 %v22088_v45  ;;  %v13743_v12 = vadd.f32 %v13742_v31, %v9843_v58  ;;  %14036 = vmatprep.subr.bf16.mxu1 %v17404_v4  ;;  %v17447_v58 = vld [vmem:[%s24406_s13 + $0x5d8] ss:$24 sps:$4 sm:$0xff]   ;;  %v17452_v4 = vld [vmem:[%s24406_s13 + $0x2ac] ss:$24 sps:$4 sm:$0xff]   ;;  %v17450_v46 = vld [vmem:[%s24406_s13 + $0x2a8] ss:$24 sps:$4 sm:$0xff]  }
 0xaa3   :  { %14077 = vmatprep.subr.bf16.mxu0 %v17407_v27  ;;  %v13744_v26 = vpop.f32.mrf.mxu1  ;;  %v13785_v0 = vpop.f32.mrf.mxu0  ;;  %v17453_v27 = vld [vmem:[%s24406_s13 + $0x5a8] ss:$24 sps:$4 sm:$0xff]   ;;  %v17458_v35 = vld [vmem:[%s24406_s13 + $0x27c] ss:$24 sps:$4 sm:$0xff]   ;;  %v17456_v31 = vld [vmem:[%s24406_s13 + $0x278] ss:$24 sps:$4 sm:$0xff]  }
 0xaa4   :  { %v22784_v17 = vadd.f32 %v13783_v34, %v13743_v12  ;;  %14037 = vmatpush1.bf16.msra.mxu1 %v17402_v60  ;;  %v17461_v60 = vld [vmem:[%s24406_s13 + $0x57c] ss:$24 sps:$4 sm:$0xff]   ;;  %v17459_v34 = vld [vmem:[%s24406_s13 + $0x578] ss:$24 sps:$4 sm:$0xff]   ;;  %v17462_v12 = vld [vmem:[%s24406_s13 + $0x248] ss:$24 sps:$4 sm:$0xff]  }
 0xaa5   :  { %14078 = vmatpush1.bf16.msra.mxu0 %v17405_v59  ;;  %v13745_v21 = vpop.f32.mrf.mxu1  ;;  %v13786_v38 = vpop.f32.mrf.mxu0  ;;  %14038 = vmatprep.subr.bf16.mxu1 %v17410_v57  ;;  %v17464_v59 = vld [vmem:[%s24406_s13 + $0x24c] ss:$24 sps:$4 sm:$0xff]   ;;  %v17470_v26 = vld [vmem:[%s24406_s13 + $0x21c] ss:$24 sps:$4 sm:$0xff]  }
 0xaa6   :  { %14079 = vmatprep.subr.bf16.mxu0 %v17413_v63  ;;  %v17467_v57 = vld [vmem:[%s24406_s13 + $0x54c] ss:$24 sps:$4 sm:$0xff]   ;;  %v17465_v63 = vld [vmem:[%s24406_s13 + $0x548] ss:$24 sps:$4 sm:$0xff]   ;;  %v17473_v0 = vld [vmem:[%s24406_s13 + $0x51c] ss:$24 sps:$4 sm:$0xff]  }
 0xaa7   :  { %v17471_v21 = vld [vmem:[%s24406_s13 + $0x518] ss:$24 sps:$4 sm:$0xff]   ;;  %v17476_v38 = vld [vmem:[%s24406_s13 + $0x1ec] ss:$24 sps:$4 sm:$0xff]  }
 0xaa8   :  { %14039 = vmatpush1.bf16.msra.mxu1 %v17408_v18  ;;  %v17468_v18 = vld [vmem:[%s24406_s13 + $0x218] ss:$24 sps:$4 sm:$0xff]  }
 0xaa9   :  { %14080 = vmatpush1.bf16.msra.mxu0 %v17411_v40  ;;  %14040 = vmatprep.subr.bf16.mxu1 %v17416_v25  ;;  %v17479_v40 = vld [vmem:[%s24406_s13 + $0x4ec] ss:$24 sps:$4 sm:$0xff]   ;;  %v17474_v25 = vld [vmem:[%s24406_s13 + $0x1e8] ss:$24 sps:$4 sm:$0xff]  }
 0xaaa   :  { %14081 = vmatprep.subr.bf16.mxu0 %v17419_v48  ;;  %v17477_v48 = vld [vmem:[%s24406_s13 + $0x4e8] ss:$24 sps:$4 sm:$0xff]  }
 0xaac   :  { %14041 = vmatpush1.bf16.msra.mxu1 %v17414_v7  ;;  %v17482_v7 = vld [vmem:[%s24406_s13 + $0x1bc] ss:$24 sps:$4 sm:$0xff]  }
 0xaad   :  { %14082 = vmatpush1.bf16.msra.mxu0 %v17417_v54  ;;  %14042 = vmatprep.subr.bf16.mxu1 %v17422_v49  ;;  %v17485_v54 = vld [vmem:[%s24406_s13 + $0x4bc] ss:$24 sps:$4 sm:$0xff]   ;;  %v17480_v49 = vld [vmem:[%s24406_s13 + $0x1b8] ss:$24 sps:$4 sm:$0xff]  }
 0xaae   :  { %14083 = vmatprep.subr.bf16.mxu0 %v17425_v22  ;;  %v17483_v22 = vld [vmem:[%s24406_s13 + $0x4b8] ss:$24 sps:$4 sm:$0xff]  }
 0xab0   :  { %14043 = vmatpush1.bf16.msra.mxu1 %v17420_v28  ;;  %v17488_v28 = vld [vmem:[%s24406_s13 + $0x18c] ss:$24 sps:$4 sm:$0xff]  }
 0xab1   :  { %14084 = vmatpush1.bf16.msra.mxu0 %v17423_v55  ;;  %14044 = vmatprep.subr.bf16.mxu1 %v17428_v32  ;;  %v17491_v55 = vld [vmem:[%s24406_s13 + $0x48c] ss:$24 sps:$4 sm:$0xff]   ;;  %v17486_v32 = vld [vmem:[%s24406_s13 + $0x188] ss:$24 sps:$4 sm:$0xff]  }
 0xab2   :  { %14085 = vmatprep.subr.bf16.mxu0 %v17431_v30  ;;  %v17489_v30 = vld [vmem:[%s24406_s13 + $0x488] ss:$24 sps:$4 sm:$0xff]  }
 0xab4   :  { %14045 = vmatpush1.bf16.msra.mxu1 %v17426_v33  ;;  %v17494_v33 = vld [vmem:[%s24406_s13 + $0x75c] ss:$24 sps:$4 sm:$0xff]  }
 0xab5   :  { %14086 = vmatpush1.bf16.msra.mxu0 %v17429_v41  ;;  %14046 = vmatprep.subr.bf16.mxu1 %v17434_v36  ;;  %v17497_v41 = vld [vmem:[%s24406_s13 + $0xa5c] ss:$24 sps:$4 sm:$0xff]   ;;  %v17492_v36 = vld [vmem:[%s24406_s13 + $0x758] ss:$24 sps:$4 sm:$0xff]  }
 0xab6   :  { %14087 = vmatprep.subr.bf16.mxu0 %v17437_v19  ;;  %v17495_v19 = vld [vmem:[%s24406_s13 + $0xa58] ss:$24 sps:$4 sm:$0xff]  }
 0xab8   :  { %14047 = vmatpush1.bf16.msra.mxu1 %v17432_v61  ;;  %v17500_v61 = vld [vmem:[%s24406_s13 + $0x72c] ss:$24 sps:$4 sm:$0xff]  }
 0xab9   :  { %14088 = vmatpush1.bf16.msra.mxu0 %v17435_v9  ;;  %14048 = vmatprep.subr.bf16.mxu1 %v17440_v56 }
 0xaba   :  { %14089 = vmatprep.subr.bf16.mxu0 %v17443_v42  ;;  %v17503_v42 = vld [vmem:[%s24406_s13 + $0xa2c] ss:$24 sps:$4 sm:$0xff]  }
 0xabc   :  { %14049 = vmatpush1.bf16.msra.mxu1 %v17438_v52 }
 0xabd   :  { %14090 = vmatpush1.bf16.msra.mxu0 %v17441_v24  ;;  %14050 = vmatprep.subr.bf16.mxu1 %v17446_v5  ;;  %v17498_v24 = vld [vmem:[%s24406_s13 + $0x728] ss:$24 sps:$4 sm:$0xff]  }
 0xabe   :  { %14091 = vmatprep.subr.bf16.mxu0 %v17449_v47 }
 0xac0   :  { %14051 = vmatpush2.bf16.msra.mxu1 %v17444_v6  ;;  %v17501_v6 = vld [vmem:[%s24406_s13 + $0xa28] ss:$24 sps:$4 sm:$0xff]  }
 0xac1   :  { %14092 = vmatpush2.bf16.msra.mxu0 %v17447_v58  ;;  %14052 = vmatprep.subr.bf16.mxu1 %v17452_v4 }
 0xac2   :  { %14093 = vmatprep.subr.bf16.mxu0 %v17455_v51  ;;  %v17509_v51 = vld [vmem:[%s24406_s13 + $0x9fc] ss:$24 sps:$4 sm:$0xff]  }
 0xac4   :  { %14053 = vmatpush2.bf16.msra.mxu1 %v17450_v46 }
 0xac5   :  { %14094 = vmatpush2.bf16.msra.mxu0 %v17453_v27  ;;  %14054 = vmatprep.subr.bf16.mxu1 %v17458_v35 }
 0xac6   :  { %14095 = vmatprep.subr.bf16.mxu0 %v17461_v60  ;;  %v17504_v60 = vld [vmem:[%s24406_s13 + $0x6f8] ss:$24 sps:$4 sm:$0xff]  }
 0xac8   :  { %14055 = vmatpush2.bf16.msra.mxu1 %v17456_v31 }
 0xac9   :  { %14096 = vmatpush2.bf16.msra.mxu0 %v17459_v34  ;;  %14056 = vmatprep.subr.bf16.mxu1 %v17464_v59  ;;  %v17512_v59 = vld [vmem:[%s24406_s13 + $0x6cc] ss:$24 sps:$4 sm:$0xff]  }
 0xaca   :  { %14097 = vmatprep.subr.bf16.mxu0 %v17467_v57  ;;  %v17515_v57 = vld [vmem:[%s24406_s13 + $0x9cc] ss:$24 sps:$4 sm:$0xff]  }
 0xacc   :  { %14057 = vmatpush2.bf16.msra.mxu1 %v17462_v12  ;;  %v17510_v12 = vld [vmem:[%s24406_s13 + $0x6c8] ss:$24 sps:$4 sm:$0xff]  }
 0xacd   :  { %14098 = vmatpush2.bf16.msra.mxu0 %v17465_v63  ;;  %14058 = vmatprep.subr.bf16.mxu1 %v17470_v26  ;;  %v17513_v63 = vld [vmem:[%s24406_s13 + $0x9c8] ss:$24 sps:$4 sm:$0xff]   ;;  %v17518_v26 = vld [vmem:[%s24406_s13 + $0x69c] ss:$24 sps:$4 sm:$0xff]  }
 0xace   :  { %14099 = vmatprep.subr.bf16.mxu0 %v17473_v0  ;;  %v17521_v0 = vld [vmem:[%s24406_s13 + $0x99c] ss:$24 sps:$4 sm:$0xff]  }
 0xad0   :  { %14059 = vmatpush2.bf16.msra.mxu1 %v17468_v18  ;;  %v17516_v18 = vld [vmem:[%s24406_s13 + $0x698] ss:$24 sps:$4 sm:$0xff]  }
 0xad1   :  { %14100 = vmatpush2.bf16.msra.mxu0 %v17471_v21  ;;  %14060 = vmatprep.subr.bf16.mxu1 %v17476_v38  ;;  %v17519_v21 = vld [vmem:[%s24406_s13 + $0x998] ss:$24 sps:$4 sm:$0xff]   ;;  %v17524_v38 = vld [vmem:[%s24406_s13 + $0x66c] ss:$24 sps:$4 sm:$0xff]  }
 0xad2   :  { %14101 = vmatprep.subr.bf16.mxu0 %v17479_v40  ;;  %v17527_v40 = vld [vmem:[%s24406_s13 + $0x96c] ss:$24 sps:$4 sm:$0xff]  }
 0xad4   :  { %14061 = vmatpush2.bf16.msra.mxu1 %v17474_v25  ;;  %v17522_v25 = vld [vmem:[%s24406_s13 + $0x668] ss:$24 sps:$4 sm:$0xff]  }
 0xad5   :  { %14102 = vmatpush2.bf16.msra.mxu0 %v17477_v48  ;;  %14062 = vmatprep.subr.bf16.mxu1 %v17482_v7  ;;  %v17525_v48 = vld [vmem:[%s24406_s13 + $0x968] ss:$24 sps:$4 sm:$0xff]   ;;  %v17530_v7 = vld [vmem:[%s24406_s13 + $0x63c] ss:$24 sps:$4 sm:$0xff]  }
 0xad6   :  { %14103 = vmatprep.subr.bf16.mxu0 %v17485_v54  ;;  %v17533_v54 = vld [vmem:[%s24406_s13 + $0x93c] ss:$24 sps:$4 sm:$0xff]  }
 0xad8   :  { %14063 = vmatpush2.bf16.msra.mxu1 %v17480_v49  ;;  %v17528_v49 = vld [vmem:[%s24406_s13 + $0x638] ss:$24 sps:$4 sm:$0xff]  }
 0xad9   :  { %14104 = vmatpush2.bf16.msra.mxu0 %v17483_v22  ;;  %14064 = vmatprep.subr.bf16.mxu1 %v17488_v28  ;;  %v17531_v22 = vld [vmem:[%s24406_s13 + $0x938] ss:$24 sps:$4 sm:$0xff]   ;;  %v17536_v28 = vld [vmem:[%s24406_s13 + $0x60c] ss:$24 sps:$4 sm:$0xff]  }
 0xada   :  { %14105 = vmatprep.subr.bf16.mxu0 %v17491_v55  ;;  %v17539_v55 = vld [vmem:[%s24406_s13 + $0x90c] ss:$24 sps:$4 sm:$0xff]  }
 0xadc   :  { %14065 = vmatpush2.bf16.msra.mxu1 %v17486_v32  ;;  %v17534_v32 = vld [vmem:[%s24406_s13 + $0x608] ss:$24 sps:$4 sm:$0xff]  }
 0xadd   :  { %14106 = vmatpush2.bf16.msra.mxu0 %v17489_v30  ;;  %14116 = vmatprep.subr.bf16.mxu1 %v17494_v33  ;;  %v17537_v30 = vld [vmem:[%s24406_s13 + $0x908] ss:$24 sps:$4 sm:$0xff]   ;;  %v17542_v33 = vld [vmem:[%s24406_s13 + $0x8dc] ss:$24 sps:$4 sm:$0xff]  }
 0xade   :  { %14157 = vmatprep.subr.bf16.mxu0 %v17497_v41  ;;  %v17545_v41 = vld [vmem:[%s24406_s13 + $0xbdc] ss:$24 sps:$4 sm:$0xff]  }
 0xadf   :  { %v13822_v9 = vpop.f32.mrf.mxu1  ;;  %v13863_v56 = vpop.f32.mrf.mxu0  ;;  %14067 = vmatmul.mubr.bf16.vlgmr.msra.gmra.mxu1 %v22090_v39 }
 0xae0   :  { %v13823_v52 = vadd.f32 %v13822_v9, %v22778_v11  ;;  %14108 = vmatmul.mubr.bf16.vlgmr.msra.gmra.mxu0 %v22092_v62  ;;  %14117 = vmatpush1.bf16.msra.mxu1 %v17492_v36  ;;  %v17506_v11 = vld [vmem:[%s24406_s13 + $0x6fc] ss:$24 sps:$4 sm:$0xff]   ;;  %v17540_v36 = vld [vmem:[%s24406_s13 + $0x8d8] ss:$24 sps:$4 sm:$0xff]   ;;  %v17551_v9 = vld [vmem:[%s24406_s13 + $0xbac] ss:$24 sps:$4 sm:$0xff]  }
 0xae1   :  { %14148 = vmatprep.mubr.bf16.mxu1 %v22196_v1  ;;  %14158 = vmatpush1.bf16.msra.mxu0 %v17495_v19  ;;  %v13824_v5 = vpop.f32.mrf.mxu1  ;;  %v13865_v47 = vpop.f32.mrf.mxu0  ;;  %v17543_v19 = vld [vmem:[%s24406_s13 + $0xbd8] ss:$24 sps:$4 sm:$0xff]  }
 0xae2   :  { %v22979_v58 = vadd.f32 %v13863_v56, %v13823_v52  ;;  %14189 = vmatprep.mubr.bf16.mxu0 %v22198_v13  ;;  %v13825_v4 = vadd.f32 %v13824_v5, %v22784_v17  ;;  %14118 = vmatprep.subr.bf16.mxu1 %v17500_v61  ;;  %v17507_v17 = vld [vmem:[%s24406_s13 + $0x9f8] ss:$24 sps:$4 sm:$0xff]   ;;  %v17548_v61 = vld [vmem:[%s24406_s13 + $0x8ac] ss:$24 sps:$4 sm:$0xff]   ;;  %v17546_v56 = vld [vmem:[%s24406_s13 + $0x8a8] ss:$24 sps:$4 sm:$0xff]  }
 0xae3   :  { %v13826_v46 = vpop.f32.mrf.mxu1  ;;  %v13867_v27 = vpop.f32.mrf.mxu0  ;;  %14159 = vmatprep.subr.bf16.mxu0 %v17503_v42  ;;  %v17549_v42 = vld [vmem:[%s24406_s13 + $0xba8] ss:$24 sps:$4 sm:$0xff]   ;;  %v17554_v52 = vld [vmem:[%s24406_s13 + $0x87c] ss:$24 sps:$4 sm:$0xff]   ;;  %v17552_v5 = vld [vmem:[%s24406_s13 + $0x878] ss:$24 sps:$4 sm:$0xff]  }
 0xae4   :  { %v22986_v35 = vadd.f32 %v13865_v47, %v13825_v4  ;;  %14119 = vmatpush1.bf16.msra.mxu1 %v17498_v24  ;;  %v17557_v24 = vld [vmem:[%s24406_s13 + $0xb7c] ss:$24 sps:$4 sm:$0xff]   ;;  %v17555_v47 = vld [vmem:[%s24406_s13 + $0xb78] ss:$24 sps:$4 sm:$0xff]   ;;  %v17558_v4 = vld [vmem:[%s24406_s13 + $0x848] ss:$24 sps:$4 sm:$0xff]  }
 0xae5   :  { %14160 = vmatpush1.bf16.msra.mxu0 %v17501_v6  ;;  %v13827_v31 = vpop.f32.mrf.mxu1  ;;  %v13868_v34 = vpop.f32.mrf.mxu0  ;;  %14120 = vmatprep.subr.bf16.mxu1 %v17506_v11  ;;  %v17560_v6 = vld [vmem:[%s24406_s13 + $0x84c] ss:$24 sps:$4 sm:$0xff]   ;;  %v17566_v46 = vld [vmem:[%s24406_s13 + $0x81c] ss:$24 sps:$4 sm:$0xff]  }
 0xae6   :  { %14161 = vmatprep.subr.bf16.mxu0 %v17509_v51  ;;  %v17563_v11 = vld [vmem:[%s24406_s13 + $0xb4c] ss:$24 sps:$4 sm:$0xff]   ;;  %v17561_v51 = vld [vmem:[%s24406_s13 + $0xb48] ss:$24 sps:$4 sm:$0xff]   ;;  %v17569_v27 = vld [vmem:[%s24406_s13 + $0xb1c] ss:$24 sps:$4 sm:$0xff]  }
 0xae7   :  { %v17567_v31 = vld [vmem:[%s24406_s13 + $0xb18] ss:$24 sps:$4 sm:$0xff]   ;;  %v17572_v34 = vld [vmem:[%s24406_s13 + $0x7ec] ss:$24 sps:$4 sm:$0xff]  }
 0xae8   :  { %14121 = vmatpush1.bf16.msra.mxu1 %v17504_v60  ;;  %v17564_v60 = vld [vmem:[%s24406_s13 + $0x818] ss:$24 sps:$4 sm:$0xff]  }
 0xae9   :  { %14162 = vmatpush1.bf16.msra.mxu0 %v17507_v17  ;;  %14122 = vmatprep.subr.bf16.mxu1 %v17512_v59  ;;  %v17575_v17 = vld [vmem:[%s24406_s13 + $0xaec] ss:$24 sps:$4 sm:$0xff]   ;;  %v17570_v59 = vld [vmem:[%s24406_s13 + $0x7e8] ss:$24 sps:$4 sm:$0xff]  }
 0xaea   :  { %14163 = vmatprep.subr.bf16.mxu0 %v17515_v57  ;;  %v17573_v57 = vld [vmem:[%s24406_s13 + $0xae8] ss:$24 sps:$4 sm:$0xff]  }
 0xaec   :  { %14123 = vmatpush1.bf16.msra.mxu1 %v17510_v12  ;;  %v17578_v12 = vld [vmem:[%s24406_s13 + $0x7bc] ss:$24 sps:$4 sm:$0xff]  }
 0xaed   :  { %14164 = vmatpush1.bf16.msra.mxu0 %v17513_v63  ;;  %14124 = vmatprep.subr.bf16.mxu1 %v17518_v26  ;;  %v17581_v63 = vld [vmem:[%s24406_s13 + $0xabc] ss:$24 sps:$4 sm:$0xff]   ;;  %v17576_v26 = vld [vmem:[%s24406_s13 + $0x7b8] ss:$24 sps:$4 sm:$0xff]  }
 0xaee   :  { %14165 = vmatprep.subr.bf16.mxu0 %v17521_v0  ;;  %v17579_v0 = vld [vmem:[%s24406_s13 + $0xab8] ss:$24 sps:$4 sm:$0xff]  }
 0xaf0   :  { %14125 = vmatpush1.bf16.msra.mxu1 %v17516_v18  ;;  %v17584_v18 = vld [vmem:[%s24406_s13 + $0x78c] ss:$24 sps:$4 sm:$0xff]  }
 0xaf1   :  { %14166 = vmatpush1.bf16.msra.mxu0 %v17519_v21  ;;  %14126 = vmatprep.subr.bf16.mxu1 %v17524_v38  ;;  %v17587_v21 = vld [vmem:[%s24406_s13 + $0xa8c] ss:$24 sps:$4 sm:$0xff]   ;;  %v17582_v38 = vld [vmem:[%s24406_s13 + $0x788] ss:$24 sps:$4 sm:$0xff]  }
 0xaf2   :  { %14167 = vmatprep.subr.bf16.mxu0 %v17527_v40  ;;  %v17585_v40 = vld [vmem:[%s24406_s13 + $0xa88] ss:$24 sps:$4 sm:$0xff]  }
 0xaf4   :  { %14127 = vmatpush1.bf16.msra.mxu1 %v17522_v25  ;;  %v17590_v25 = vld [vmem:[%s24406_s13 + $0xd5c] ss:$24 sps:$4 sm:$0xff]  }
 0xaf5   :  { %14168 = vmatpush1.bf16.msra.mxu0 %v17525_v48  ;;  %14128 = vmatprep.subr.bf16.mxu1 %v17530_v7  ;;  %v17593_v48 = vld [vmem:[%s24406_s13 + $0x105c] ss:$24 sps:$4 sm:$0xff]   ;;  %v17588_v7 = vld [vmem:[%s24406_s13 + $0xd58] ss:$24 sps:$4 sm:$0xff]  }
 0xaf6   :  { %14169 = vmatprep.subr.bf16.mxu0 %v17533_v54  ;;  %v17591_v54 = vld [vmem:[%s24406_s13 + $0x1058] ss:$24 sps:$4 sm:$0xff]  }
 0xaf8   :  { %14129 = vmatpush1.bf16.msra.mxu1 %v17528_v49  ;;  %v17596_v49 = vld [vmem:[%s24406_s13 + $0xd2c] ss:$24 sps:$4 sm:$0xff]  }
 0xaf9   :  { %14170 = vmatpush1.bf16.msra.mxu0 %v17531_v22  ;;  %14130 = vmatprep.subr.bf16.mxu1 %v17536_v28  ;;  %v17599_v28 = vld [vmem:[%s24406_s13 + $0x102c] ss:$24 sps:$4 sm:$0xff]  }
 0xafa   :  { %14171 = vmatprep.subr.bf16.mxu0 %v17539_v55 }
 0xafc   :  { %14131 = vmatpush1.bf16.msra.mxu1 %v17534_v32  ;;  %v17594_v32 = vld [vmem:[%s24406_s13 + $0xd28] ss:$24 sps:$4 sm:$0xff]  }
 0xafd   :  { %14172 = vmatpush1.bf16.msra.mxu0 %v17537_v30  ;;  %14132 = vmatprep.subr.bf16.mxu1 %v17542_v33  ;;  %v17597_v33 = vld [vmem:[%s24406_s13 + $0x1028] ss:$24 sps:$4 sm:$0xff]  }
 0xafe   :  { %14173 = vmatprep.subr.bf16.mxu0 %v17545_v41  ;;  %v17602_v41 = vld [vmem:[%s24406_s13 + $0xcfc] ss:$24 sps:$4 sm:$0xff]  }
 0xb00   :  { %14133 = vmatpush2.bf16.msra.mxu1 %v17540_v36 }
 0xb01   :  { %14174 = vmatpush2.bf16.msra.mxu0 %v17543_v19  ;;  %14134 = vmatprep.subr.bf16.mxu1 %v17548_v61  ;;  %v17605_v19 = vld [vmem:[%s24406_s13 + $0xffc] ss:$24 sps:$4 sm:$0xff]  }
 0xb02   :  { %14175 = vmatprep.subr.bf16.mxu0 %v17551_v9 }
 0xb04   :  { %14135 = vmatpush2.bf16.msra.mxu1 %v17546_v56  ;;  %v17600_v56 = vld [vmem:[%s24406_s13 + $0xcf8] ss:$24 sps:$4 sm:$0xff]  }
 0xb05   :  { %14176 = vmatpush2.bf16.msra.mxu0 %v17549_v42  ;;  %14136 = vmatprep.subr.bf16.mxu1 %v17554_v52  ;;  %v17603_v52 = vld [vmem:[%s24406_s13 + $0xff8] ss:$24 sps:$4 sm:$0xff]  }
 0xb06   :  { %14177 = vmatprep.subr.bf16.mxu0 %v17557_v24  ;;  %v17608_v24 = vld [vmem:[%s24406_s13 + $0xccc] ss:$24 sps:$4 sm:$0xff]  }
 0xb08   :  { %14137 = vmatpush2.bf16.msra.mxu1 %v17552_v5 }
 0xb09   :  { %14178 = vmatpush2.bf16.msra.mxu0 %v17555_v47  ;;  %14138 = vmatprep.subr.bf16.mxu1 %v17560_v6  ;;  %v17611_v47 = vld [vmem:[%s24406_s13 + $0xfcc] ss:$24 sps:$4 sm:$0xff]   ;;  %v17606_v6 = vld [vmem:[%s24406_s13 + $0xcc8] ss:$24 sps:$4 sm:$0xff]  }
 0xb0a   :  { %14179 = vmatprep.subr.bf16.mxu0 %v17563_v11  ;;  %v17609_v11 = vld [vmem:[%s24406_s13 + $0xfc8] ss:$24 sps:$4 sm:$0xff]  }
 0xb0c   :  { %14139 = vmatpush2.bf16.msra.mxu1 %v17558_v4  ;;  %v17614_v4 = vld [vmem:[%s24406_s13 + $0xc9c] ss:$24 sps:$4 sm:$0xff]  }
 0xb0d   :  { %14180 = vmatpush2.bf16.msra.mxu0 %v17561_v51  ;;  %14140 = vmatprep.subr.bf16.mxu1 %v17566_v46  ;;  %v17617_v51 = vld [vmem:[%s24406_s13 + $0xf9c] ss:$24 sps:$4 sm:$0xff]   ;;  %v17612_v46 = vld [vmem:[%s24406_s13 + $0xc98] ss:$24 sps:$4 sm:$0xff]  }
 0xb0e   :  { %14181 = vmatprep.subr.bf16.mxu0 %v17569_v27  ;;  %v17615_v27 = vld [vmem:[%s24406_s13 + $0xf98] ss:$24 sps:$4 sm:$0xff]  }
 0xb10   :  { %14141 = vmatpush2.bf16.msra.mxu1 %v17564_v60  ;;  %v17620_v60 = vld [vmem:[%s24406_s13 + $0xc6c] ss:$24 sps:$4 sm:$0xff]  }
 0xb11   :  { %14182 = vmatpush2.bf16.msra.mxu0 %v17567_v31  ;;  %14142 = vmatprep.subr.bf16.mxu1 %v17572_v34  ;;  %v17623_v31 = vld [vmem:[%s24406_s13 + $0xf6c] ss:$24 sps:$4 sm:$0xff]   ;;  %v17618_v34 = vld [vmem:[%s24406_s13 + $0xc68] ss:$24 sps:$4 sm:$0xff]  }
 0xb12   :  { %14183 = vmatprep.subr.bf16.mxu0 %v17575_v17  ;;  %v17621_v17 = vld [vmem:[%s24406_s13 + $0xf68] ss:$24 sps:$4 sm:$0xff]  }
 0xb14   :  { %14143 = vmatpush2.bf16.msra.mxu1 %v17570_v59  ;;  %v17626_v59 = vld [vmem:[%s24406_s13 + $0xc3c] ss:$24 sps:$4 sm:$0xff]  }
 0xb15   :  { %14184 = vmatpush2.bf16.msra.mxu0 %v17573_v57  ;;  %14144 = vmatprep.subr.bf16.mxu1 %v17578_v12  ;;  %v17629_v57 = vld [vmem:[%s24406_s13 + $0xf3c] ss:$24 sps:$4 sm:$0xff]   ;;  %v17624_v12 = vld [vmem:[%s24406_s13 + $0xc38] ss:$24 sps:$4 sm:$0xff]  }
 0xb16   :  { %14185 = vmatprep.subr.bf16.mxu0 %v17581_v63  ;;  %v17627_v63 = vld [vmem:[%s24406_s13 + $0xf38] ss:$24 sps:$4 sm:$0xff]  }
 0xb18   :  { %14145 = vmatpush2.bf16.msra.mxu1 %v17576_v26  ;;  %v17632_v26 = vld [vmem:[%s24406_s13 + $0xc0c] ss:$24 sps:$4 sm:$0xff]  }
 0xb19   :  { %14186 = vmatpush2.bf16.msra.mxu0 %v17579_v0  ;;  %14146 = vmatprep.subr.bf16.mxu1 %v17584_v18  ;;  %v17635_v0 = vld [vmem:[%s24406_s13 + $0xf0c] ss:$24 sps:$4 sm:$0xff]   ;;  %v17630_v18 = vld [vmem:[%s24406_s13 + $0xc08] ss:$24 sps:$4 sm:$0xff]  }
 0xb1a   :  { %14187 = vmatprep.subr.bf16.mxu0 %v17587_v21  ;;  %v17633_v21 = vld [vmem:[%s24406_s13 + $0xf08] ss:$24 sps:$4 sm:$0xff]  }
 0xb1c   :  { %14147 = vmatpush2.bf16.msra.mxu1 %v17582_v38  ;;  %v17638_v38 = vld [vmem:[%s24406_s13 + $0xedc] ss:$24 sps:$4 sm:$0xff]  }
 0xb1d   :  { %14188 = vmatpush2.bf16.msra.mxu0 %v17585_v40  ;;  %14198 = vmatprep.subr.bf16.mxu1 %v17590_v25  ;;  %v17641_v40 = vld [vmem:[%s24406_s13 + $0x11dc] ss:$24 sps:$4 sm:$0xff]   ;;  %v17636_v25 = vld [vmem:[%s24406_s13 + $0xed8] ss:$24 sps:$4 sm:$0xff]  }
 0xb1e   :  { %14239 = vmatprep.subr.bf16.mxu0 %v17593_v48  ;;  %v17639_v48 = vld [vmem:[%s24406_s13 + $0x11d8] ss:$24 sps:$4 sm:$0xff]  }
 0xb1f   :  { %v23165_v22 = vpop.f32.mrf.mxu1  ;;  %14149 = vmatmul.mubr.bf16.vlgmr.msra.gmra.mxu1 %v22325_v20 }
 0xb20   :  { %v23171_v55 = vpop.f32.mrf.mxu0  ;;  %14190 = vmatmul.mubr.bf16.vlgmr.msra.gmra.mxu0 %v22327_v2  ;;  %14199 = vmatpush1.bf16.msra.mxu1 %v17588_v7  ;;  %v17644_v7 = vld [vmem:[%s24406_s13 + $0xeac] ss:$24 sps:$4 sm:$0xff]  }
 0xb21   :  { %14230 = vmatprep.mubr.bf16.mxu1 %v22329_v43  ;;  %14240 = vmatpush1.bf16.msra.mxu0 %v17591_v54  ;;  %v23178_v30 = vpop.f32.mrf.mxu1  ;;  %v17647_v54 = vld [vmem:[%s24406_s13 + $0x11ac] ss:$24 sps:$4 sm:$0xff]  }
 0xb22   :  { %14271 = vmatprep.mubr.bf16.mxu0 %v22331_v3  ;;  %v23187_v36 = vpop.f32.mrf.mxu0  ;;  %14200 = vmatprep.subr.bf16.mxu1 %v17596_v49  ;;  %v17642_v49 = vld [vmem:[%s24406_s13 + $0xea8] ss:$24 sps:$4 sm:$0xff]  }
 0xb23   :  { %v13908_v61 = vpop.f32.mrf.mxu1  ;;  %14241 = vmatprep.subr.bf16.mxu0 %v17599_v28  ;;  %v17645_v28 = vld [vmem:[%s24406_s13 + $0x11a8] ss:$24 sps:$4 sm:$0xff]  }
 0xb24   :  { %v13949_v9 = vpop.f32.mrf.mxu0  ;;  %14201 = vmatpush1.bf16.msra.mxu1 %v17594_v32  ;;  %v17650_v32 = vld [vmem:[%s24406_s13 + $0xe7c] ss:$24 sps:$4 sm:$0xff]   ;;  %v17656_v61 = vld [vmem:[%s24406_s13 + $0xe4c] ss:$24 sps:$4 sm:$0xff]  }
 0xb25   :  { %14242 = vmatpush1.bf16.msra.mxu0 %v17597_v33  ;;  %v13909_v42 = vpop.f32.mrf.mxu1  ;;  %14202 = vmatprep.subr.bf16.mxu1 %v17602_v41  ;;  %v17653_v33 = vld [vmem:[%s24406_s13 + $0x117c] ss:$24 sps:$4 sm:$0xff]   ;;  %v17648_v41 = vld [vmem:[%s24406_s13 + $0xe78] ss:$24 sps:$4 sm:$0xff]   ;;  %v17659_v9 = vld [vmem:[%s24406_s13 + $0x114c] ss:$24 sps:$4 sm:$0xff]  }
 0xb26   :  { %v13950_v5 = vpop.f32.mrf.mxu0  ;;  %14243 = vmatprep.subr.bf16.mxu0 %v17605_v19  ;;  %v17651_v19 = vld [vmem:[%s24406_s13 + $0x1178] ss:$24 sps:$4 sm:$0xff]   ;;  %v17657_v42 = vld [vmem:[%s24406_s13 + $0x1148] ss:$24 sps:$4 sm:$0xff]  }
 0xb27   :  { %v17660_v5 = vld [vmem:[%s24406_s13 + $0xe18] ss:$24 sps:$4 sm:$0xff]  }
 0xb28   :  { %14203 = vmatpush1.bf16.msra.mxu1 %v17600_v56  ;;  %v17654_v56 = vld [vmem:[%s24406_s13 + $0xe48] ss:$24 sps:$4 sm:$0xff]  }
 0xb29   :  { %14244 = vmatpush1.bf16.msra.mxu0 %v17603_v52  ;;  %14204 = vmatprep.subr.bf16.mxu1 %v17608_v24  ;;  %v17662_v52 = vld [vmem:[%s24406_s13 + $0xe1c] ss:$24 sps:$4 sm:$0xff]  }
 0xb2a   :  { %14245 = vmatprep.subr.bf16.mxu0 %v17611_v47  ;;  %v17665_v24 = vld [vmem:[%s24406_s13 + $0x111c] ss:$24 sps:$4 sm:$0xff]   ;;  %v17663_v47 = vld [vmem:[%s24406_s13 + $0x1118] ss:$24 sps:$4 sm:$0xff]  }
 0xb2c   :  { %14205 = vmatpush1.bf16.msra.mxu1 %v17606_v6  ;;  %v17668_v6 = vld [vmem:[%s24406_s13 + $0xdec] ss:$24 sps:$4 sm:$0xff]  }
 0xb2d   :  { %14246 = vmatpush1.bf16.msra.mxu0 %v17609_v11  ;;  %14206 = vmatprep.subr.bf16.mxu1 %v17614_v4  ;;  %v17671_v11 = vld [vmem:[%s24406_s13 + $0x10ec] ss:$24 sps:$4 sm:$0xff]   ;;  %v17666_v4 = vld [vmem:[%s24406_s13 + $0xde8] ss:$24 sps:$4 sm:$0xff]  }
 0xb2e   :  { %14247 = vmatprep.subr.bf16.mxu0 %v17617_v51  ;;  %v17669_v51 = vld [vmem:[%s24406_s13 + $0x10e8] ss:$24 sps:$4 sm:$0xff]  }
 0xb30   :  { %14207 = vmatpush1.bf16.msra.mxu1 %v17612_v46  ;;  %v17674_v46 = vld [vmem:[%s24406_s13 + $0xdbc] ss:$24 sps:$4 sm:$0xff]  }
 0xb31   :  { %14248 = vmatpush1.bf16.msra.mxu0 %v17615_v27  ;;  %14208 = vmatprep.subr.bf16.mxu1 %v17620_v60  ;;  %v17677_v27 = vld [vmem:[%s24406_s13 + $0x10bc] ss:$24 sps:$4 sm:$0xff]   ;;  %v17672_v60 = vld [vmem:[%s24406_s13 + $0xdb8] ss:$24 sps:$4 sm:$0xff]  }
 0xb32   :  { %14249 = vmatprep.subr.bf16.mxu0 %v17623_v31  ;;  %v17675_v31 = vld [vmem:[%s24406_s13 + $0x10b8] ss:$24 sps:$4 sm:$0xff]  }
 0xb34   :  { %14209 = vmatpush1.bf16.msra.mxu1 %v17618_v34  ;;  %v17680_v34 = vld [vmem:[%s24406_s13 + $0xd8c] ss:$24 sps:$4 sm:$0xff]  }
 0xb35   :  { %14250 = vmatpush1.bf16.msra.mxu0 %v17621_v17  ;;  %14210 = vmatprep.subr.bf16.mxu1 %v17626_v59  ;;  %v17683_v17 = vld [vmem:[%s24406_s13 + $0x108c] ss:$24 sps:$4 sm:$0xff]   ;;  %v17678_v59 = vld [vmem:[%s24406_s13 + $0xd88] ss:$24 sps:$4 sm:$0xff]  }
 0xb36   :  { %14251 = vmatprep.subr.bf16.mxu0 %v17629_v57  ;;  %v17681_v57 = vld [vmem:[%s24406_s13 + $0x1088] ss:$24 sps:$4 sm:$0xff]  }
 0xb38   :  { %14211 = vmatpush1.bf16.msra.mxu1 %v17624_v12  ;;  %v17686_v12 = vld [vmem:[%s24406_s13 + $0x135c] ss:$24 sps:$4 sm:$0xff]  }
 0xb39   :  { %14252 = vmatpush1.bf16.msra.mxu0 %v17627_v63  ;;  %14212 = vmatprep.subr.bf16.mxu1 %v17632_v26  ;;  %v13905_v63 = vadd.f32 %v23165_v22, %v22979_v58  ;;  %v17689_v26 = vld [vmem:[%s24406_s13 + $0x165c] ss:$24 sps:$4 sm:$0xff]   ;;  %v17692_v22 = vld [vmem:[%s24406_s13 + $0x132c] ss:$24 sps:$4 sm:$0xff]  }
 0xb3a   :  { %14253 = vmatprep.subr.bf16.mxu0 %v17635_v0  ;;  %v13907_v0 = vadd.f32 %v23178_v30, %v22986_v35  ;;  %v17695_v35 = vld [vmem:[%s24406_s13 + $0x162c] ss:$24 sps:$4 sm:$0xff]  }
 0xb3b   :  { %v13946_v58 = vadd.f32 %v23171_v55, %v13905_v63  ;;  %v17690_v55 = vld [vmem:[%s24406_s13 + $0x1328] ss:$24 sps:$4 sm:$0xff]   ;;  %v17731_v63 = vld [vmem:[%s24406_s13 + $0x150c] ss:$24 sps:$4 sm:$0xff]  }
 0xb3c   :  { %14213 = vmatpush1.bf16.msra.mxu1 %v17630_v18  ;;  %v17684_v18 = vld [vmem:[%s24406_s13 + $0x1358] ss:$24 sps:$4 sm:$0xff]   ;;  %v13948_v30 = vadd.f32 %v23187_v36, %v13907_v0  ;;  %v17698_v36 = vld [vmem:[%s24406_s13 + $0x12fc] ss:$24 sps:$4 sm:$0xff]   ;;  %v17729_v0 = vld [vmem:[%s24406_s13 + $0x1508] ss:$24 sps:$4 sm:$0xff]  }
 0xb3d   :  { %14254 = vmatpush1.bf16.msra.mxu0 %v17633_v21  ;;  %14214 = vmatprep.subr.bf16.mxu1 %v17638_v38  ;;  %v17687_v21 = vld [vmem:[%s24406_s13 + $0x1658] ss:$24 sps:$4 sm:$0xff]  }
 0xb3e   :  { %14255 = vmatprep.subr.bf16.mxu0 %v17641_v40 }
 0xb40   :  { %14215 = vmatpush2.bf16.msra.mxu1 %v17636_v25 }
 0xb41   :  { %14256 = vmatpush2.bf16.msra.mxu0 %v17639_v48  ;;  %14216 = vmatprep.subr.bf16.mxu1 %v17644_v7  ;;  %v17693_v7 = vld [vmem:[%s24406_s13 + $0x1628] ss:$24 sps:$4 sm:$0xff]  }
 0xb42   :  { %14257 = vmatprep.subr.bf16.mxu0 %v17647_v54 }
 0xb44   :  { %14217 = vmatpush2.bf16.msra.mxu1 %v17642_v49 }
 0xb45   :  { %14258 = vmatpush2.bf16.msra.mxu0 %v17645_v28  ;;  %14218 = vmatprep.subr.bf16.mxu1 %v17650_v32  ;;  %v17701_v32 = vld [vmem:[%s24406_s13 + $0x15fc] ss:$24 sps:$4 sm:$0xff]  }
 0xb46   :  { %14259 = vmatprep.subr.bf16.mxu0 %v17653_v33 }
 0xb48   :  { %14219 = vmatpush2.bf16.msra.mxu1 %v17648_v41 }
 0xb49   :  { %14260 = vmatpush2.bf16.msra.mxu0 %v17651_v19  ;;  %14220 = vmatprep.subr.bf16.mxu1 %v17656_v61  ;;  %v17696_v61 = vld [vmem:[%s24406_s13 + $0x12f8] ss:$24 sps:$4 sm:$0xff]  }
 0xb4a   :  { %14261 = vmatprep.subr.bf16.mxu0 %v17659_v9 }
 0xb4c   :  { %14221 = vmatpush2.bf16.msra.mxu1 %v17654_v56  ;;  %v17699_v56 = vld [vmem:[%s24406_s13 + $0x15f8] ss:$24 sps:$4 sm:$0xff]  }
 0xb4d   :  { %14262 = vmatpush2.bf16.msra.mxu0 %v17657_v42  ;;  %14222 = vmatprep.subr.bf16.mxu1 %v17662_v52  ;;  %v17704_v42 = vld [vmem:[%s24406_s13 + $0x12cc] ss:$24 sps:$4 sm:$0xff]  }
 0xb4e   :  { %14263 = vmatprep.subr.bf16.mxu0 %v17665_v24  ;;  %v17707_v24 = vld [vmem:[%s24406_s13 + $0x15cc] ss:$24 sps:$4 sm:$0xff]  }
 0xb50   :  { %14223 = vmatpush2.bf16.msra.mxu1 %v17660_v5  ;;  %v17702_v5 = vld [vmem:[%s24406_s13 + $0x12c8] ss:$24 sps:$4 sm:$0xff]  }
 0xb51   :  { %14264 = vmatpush2.bf16.msra.mxu0 %v17663_v47  ;;  %14224 = vmatprep.subr.bf16.mxu1 %v17668_v6  ;;  %v17705_v47 = vld [vmem:[%s24406_s13 + $0x15c8] ss:$24 sps:$4 sm:$0xff]   ;;  %v17710_v6 = vld [vmem:[%s24406_s13 + $0x129c] ss:$24 sps:$4 sm:$0xff]  }
 0xb52   :  { %14265 = vmatprep.subr.bf16.mxu0 %v17671_v11  ;;  %v17713_v11 = vld [vmem:[%s24406_s13 + $0x159c] ss:$24 sps:$4 sm:$0xff]  }
 0xb54   :  { %14225 = vmatpush2.bf16.msra.mxu1 %v17666_v4  ;;  %v17708_v4 = vld [vmem:[%s24406_s13 + $0x1298] ss:$24 sps:$4 sm:$0xff]  }
 0xb55   :  { %14266 = vmatpush2.bf16.msra.mxu0 %v17669_v51  ;;  %14226 = vmatprep.subr.bf16.mxu1 %v17674_v46  ;;  %v17711_v51 = vld [vmem:[%s24406_s13 + $0x1598] ss:$24 sps:$4 sm:$0xff]   ;;  %v17716_v46 = vld [vmem:[%s24406_s13 + $0x126c] ss:$24 sps:$4 sm:$0xff]  }
 0xb56   :  { %14267 = vmatprep.subr.bf16.mxu0 %v17677_v27  ;;  %v17719_v27 = vld [vmem:[%s24406_s13 + $0x156c] ss:$24 sps:$4 sm:$0xff]  }
 0xb58   :  { %14227 = vmatpush2.bf16.msra.mxu1 %v17672_v60  ;;  %v17714_v60 = vld [vmem:[%s24406_s13 + $0x1268] ss:$24 sps:$4 sm:$0xff]  }
 0xb59   :  { %14268 = vmatpush2.bf16.msra.mxu0 %v17675_v31  ;;  %14228 = vmatprep.subr.bf16.mxu1 %v17680_v34  ;;  %v17717_v31 = vld [vmem:[%s24406_s13 + $0x1568] ss:$24 sps:$4 sm:$0xff]   ;;  %v17722_v34 = vld [vmem:[%s24406_s13 + $0x123c] ss:$24 sps:$4 sm:$0xff]  }
 0xb5a   :  { %14269 = vmatprep.subr.bf16.mxu0 %v17683_v17  ;;  %v17725_v17 = vld [vmem:[%s24406_s13 + $0x153c] ss:$24 sps:$4 sm:$0xff]  }
 0xb5c   :  { %14229 = vmatpush2.bf16.msra.mxu1 %v17678_v59  ;;  %v17720_v59 = vld [vmem:[%s24406_s13 + $0x1238] ss:$24 sps:$4 sm:$0xff]  }
 0xb5d   :  { %14270 = vmatpush2.bf16.msra.mxu0 %v17681_v57  ;;  %14280 = vmatprep.subr.bf16.mxu1 %v17686_v12  ;;  %v17723_v57 = vld [vmem:[%s24406_s13 + $0x1538] ss:$24 sps:$4 sm:$0xff]   ;;  %v17728_v12 = vld [vmem:[%s24406_s13 + $0x120c] ss:$24 sps:$4 sm:$0xff]  }
 0xb5e   :  { %14321 = vmatprep.subr.bf16.mxu0 %v17689_v26  ;;  %v17726_v26 = vld [vmem:[%s24406_s13 + $0x1208] ss:$24 sps:$4 sm:$0xff]  }
 0xb5f   :  { %v13986_v38 = vpop.f32.mrf.mxu1  ;;  %14231 = vmatmul.mubr.bf16.vlgmr.msra.gmra.mxu1 %v22548_v23 }
 0xb60   :  { %v13987_v40 = vadd.f32 %v13986_v38, %v13946_v58  ;;  %v14027_v25 = vpop.f32.mrf.mxu0  ;;  %14272 = vmatmul.mubr.bf16.vlgmr.msra.gmra.mxu0 %v22550_v53  ;;  %14281 = vmatpush1.bf16.msra.mxu1 %v17684_v18  ;;  %v17734_v18 = vld [vmem:[%s24406_s13 + $0x14dc] ss:$24 sps:$4 sm:$0xff]   ;;  %v17732_v58 = vld [vmem:[%s24406_s13 + $0x14d8] ss:$24 sps:$4 sm:$0xff]   ;;  %v17740_v38 = vld [vmem:[%s24406_s13 + $0x14ac] ss:$24 sps:$4 sm:$0xff]  }
 0xb61   :  { %14312 = vmatprep.mubr.bf16.mxu1 %v22555_v44  ;;  %14322 = vmatpush1.bf16.msra.mxu0 %v17687_v21  ;;  %v13988_v48 = vpop.f32.mrf.mxu1  ;;  %v17737_v21 = vld [vmem:[%s24406_s13 + $0x17dc] ss:$24 sps:$4 sm:$0xff]  }
 0xb62   :  { %v14028_v54 = vadd.f32 %v14027_v25, %v13987_v40  ;;  %14353 = vmatprep.mubr.bf16.mxu0 %v22564_v29  ;;  %v13989_v49 = vadd.f32 %v13988_v48, %v13948_v30  ;;  %v14029_v28 = vpop.f32.mrf.mxu0  ;;  %14282 = vmatprep.subr.bf16.mxu1 %v17692_v22  ;;  %v17735_v22 = vld [vmem:[%s24406_s13 + $0x17d8] ss:$24 sps:$4 sm:$0xff]   ;;  %v17738_v30 = vld [vmem:[%s24406_s13 + $0x14a8] ss:$24 sps:$4 sm:$0xff]   ;;  %v17746_v25 = vld [vmem:[%s24406_s13 + $0x147c] ss:$24 sps:$4 sm:$0xff]  }
 0xb63   :  { %v13990_v33 = vpop.f32.mrf.mxu1  ;;  %14323 = vmatprep.subr.bf16.mxu0 %v17695_v35  ;;  %v17743_v35 = vld [vmem:[%s24406_s13 + $0x17ac] ss:$24 sps:$4 sm:$0xff]   ;;  %v17741_v40 = vld [vmem:[%s24406_s13 + $0x17a8] ss:$24 sps:$4 sm:$0xff]   ;;  %v17744_v48 = vld [vmem:[%s24406_s13 + $0x1478] ss:$24 sps:$4 sm:$0xff]  }
 0xb64   :  { %14690 = vst [vmem:[%s24409_s15] sm:$0xff] %v14028_v54  ;;  %v14030_v41 = vadd.f32 %v14029_v28, %v13989_v49  ;;  %v14031_v19 = vpop.f32.mrf.mxu0  ;;  %14283 = vmatpush1.bf16.msra.mxu1 %v17690_v55  ;;  %v17749_v55 = vld [vmem:[%s24406_s13 + $0x177c] ss:$24 sps:$4 sm:$0xff]   ;;  %v17755_v54 = vld [vmem:[%s24406_s13 + $0x174c] ss:$24 sps:$4 sm:$0xff]   ;;  %v17750_v49 = vld [vmem:[%s24406_s13 + $0x1448] ss:$24 sps:$4 sm:$0xff]  }
 0xb65   :  { %14324 = vmatpush1.bf16.msra.mxu0 %v17693_v7  ;;  %v13991_v9 = vpop.f32.mrf.mxu1  ;;  %14284 = vmatprep.subr.bf16.mxu1 %v17698_v36  ;;  %v17747_v7 = vld [vmem:[%s24406_s13 + $0x1778] ss:$24 sps:$4 sm:$0xff]   ;;  %v17752_v36 = vld [vmem:[%s24406_s13 + $0x144c] ss:$24 sps:$4 sm:$0xff]   ;;  %v17753_v28 = vld [vmem:[%s24406_s13 + $0x1748] ss:$24 sps:$4 sm:$0xff]  }
 0xb66   :  { %14691 = vst [vmem:[%s24409_s15 + $0x8] sm:$0xff] %v14030_v41  ;;  %v14032_v52 = vpop.f32.mrf.mxu0  ;;  %14325 = vmatprep.subr.bf16.mxu0 %v17701_v32  ;;  %v17758_v32 = vld [vmem:[%s24406_s13 + $0x141c] ss:$24 sps:$4 sm:$0xff]   ;;  %v17756_v41 = vld [vmem:[%s24406_s13 + $0x1418] ss:$24 sps:$4 sm:$0xff]  }
 0xb67   :  { %v17761_v33 = vld [vmem:[%s24406_s13 + $0x171c] ss:$24 sps:$4 sm:$0xff]   ;;  %v17759_v19 = vld [vmem:[%s24406_s13 + $0x1718] ss:$24 sps:$4 sm:$0xff]   ;;  %v17767_v9 = vld [vmem:[%s24406_s13 + $0x16ec] ss:$24 sps:$4 sm:$0xff]  }
 0xb68   :  { %14285 = vmatpush1.bf16.msra.mxu1 %v17696_v61  ;;  %v17764_v61 = vld [vmem:[%s24406_s13 + $0x13ec] ss:$24 sps:$4 sm:$0xff]   ;;  %v17770_v52 = vld [vmem:[%s24406_s13 + $0x13bc] ss:$24 sps:$4 sm:$0xff]  }
 0xb69   :  { %14326 = vmatpush1.bf16.msra.mxu0 %v17699_v56  ;;  %14286 = vmatprep.subr.bf16.mxu1 %v17704_v42  ;;  %v17762_v56 = vld [vmem:[%s24406_s13 + $0x13e8] ss:$24 sps:$4 sm:$0xff]  }
 0xb6a   :  { %14327 = vmatprep.subr.bf16.mxu0 %v17707_v24  ;;  %v17765_v42 = vld [vmem:[%s24406_s13 + $0x16e8] ss:$24 sps:$4 sm:$0xff]   ;;  %v17773_v24 = vld [vmem:[%s24406_s13 + $0x16bc] ss:$24 sps:$4 sm:$0xff]  }
 0xb6c   :  { %14287 = vmatpush1.bf16.msra.mxu1 %v17702_v5  ;;  %v17768_v5 = vld [vmem:[%s24406_s13 + $0x13b8] ss:$24 sps:$4 sm:$0xff]  }
 0xb6d   :  { %14328 = vmatpush1.bf16.msra.mxu0 %v17705_v47  ;;  %14288 = vmatprep.subr.bf16.mxu1 %v17710_v6  ;;  %v17771_v47 = vld [vmem:[%s24406_s13 + $0x16b8] ss:$24 sps:$4 sm:$0xff]   ;;  %v17776_v6 = vld [vmem:[%s24406_s13 + $0x138c] ss:$24 sps:$4 sm:$0xff]  }
 0xb6e   :  { %14329 = vmatprep.subr.bf16.mxu0 %v17713_v11  ;;  %v17779_v11 = vld [vmem:[%s24406_s13 + $0x168c] ss:$24 sps:$4 sm:$0xff]  }
 0xb70   :  { %14289 = vmatpush1.bf16.msra.mxu1 %v17708_v4  ;;  %v17774_v4 = vld [vmem:[%s24406_s13 + $0x1388] ss:$24 sps:$4 sm:$0xff]  }
 0xb71   :  { %14330 = vmatpush1.bf16.msra.mxu0 %v17711_v51  ;;  %14290 = vmatprep.subr.bf16.mxu1 %v17716_v46  ;;  %v17777_v51 = vld [vmem:[%s24406_s13 + $0x1688] ss:$24 sps:$4 sm:$0xff]   ;;  %v17782_v46 = vld [vmem:[%s24406_s13 + $0x164] ss:$24 sps:$4 sm:$0xff]  }
 0xb72   :  { %14331 = vmatprep.subr.bf16.mxu0 %v17719_v27  ;;  %v17785_v27 = vld [vmem:[%s24406_s13 + $0x464] ss:$24 sps:$4 sm:$0xff]  }
 0xb74   :  { %14291 = vmatpush1.bf16.msra.mxu1 %v17714_v60  ;;  %v18166_v60 = vld [vmem:[%s24408_s14] sm:$0x3f] }
 0xb75   :  { %14332 = vmatpush1.bf16.msra.mxu0 %v17717_v31  ;;  %14292 = vmatprep.subr.bf16.mxu1 %v17722_v34  ;;  %v9847_v31 = vrot.slane %v18166_v60, %v19498_v8  ;;  %v17780_v34 = vld [vmem:[%s24406_s13 + $0x160] ss:$24 sps:$4 sm:$0xff]   ;;  %v17791_v8 = vld [vmem:[%s24406_s13 + $0x434] ss:$24 sps:$4 sm:$0xff]  }
 0xb76   :  { %14333 = vmatprep.subr.bf16.mxu0 %v17725_v17  ;;  %v17783_v17 = vld [vmem:[%s24406_s13 + $0x460] ss:$24 sps:$4 sm:$0xff]  }
 0xb78   :  { %14293 = vmatpush1.bf16.msra.mxu1 %v17720_v59  ;;  %v9851_v59 = vrot.slane %v18166_v60, %v19513_v14  ;;  %v17786_v14 = vld [vmem:[%s24406_s13 + $0x130] ss:$24 sps:$4 sm:$0xff]   ;;  %v17831_v60 = vld [vmem:[%s24406_s13 + $0x5e0] ss:$24 sps:$4 sm:$0xff]  }
 0xb79   :  { %14334 = vmatpush1.bf16.msra.mxu0 %v17723_v57  ;;  %14294 = vmatprep.subr.bf16.mxu1 %v17728_v12  ;;  %v17788_v57 = vld [vmem:[%s24406_s13 + $0x134] ss:$24 sps:$4 sm:$0xff]  }
 0xb7a   :  { %14335 = vmatprep.subr.bf16.mxu0 %v17731_v63 }
 0xb7c   :  { %14295 = vmatpush1.bf16.msra.mxu1 %v17726_v26 }
 0xb7d   :  { %14336 = vmatpush1.bf16.msra.mxu0 %v17729_v0  ;;  %14296 = vmatprep.subr.bf16.mxu1 %v17734_v18  ;;  %v17789_v18 = vld [vmem:[%s24406_s13 + $0x430] ss:$24 sps:$4 sm:$0xff]  }
 0xb7e   :  { %14337 = vmatprep.subr.bf16.mxu0 %v17737_v21  ;;  %v17794_v21 = vld [vmem:[%s24406_s13 + $0x104] ss:$24 sps:$4 sm:$0xff]  }
 0xb80   :  { %14297 = vmatpush2.bf16.msra.mxu1 %v17732_v58 }
 0xb81   :  { %14338 = vmatpush2.bf16.msra.mxu0 %v17735_v22  ;;  %14298 = vmatprep.subr.bf16.mxu1 %v17740_v38 }
 0xb82   :  { %14339 = vmatprep.subr.bf16.mxu0 %v17743_v35 }
 0xb84   :  { %14299 = vmatpush2.bf16.msra.mxu1 %v17738_v30 }
 0xb85   :  { %14340 = vmatpush2.bf16.msra.mxu0 %v17741_v40  ;;  %14300 = vmatprep.subr.bf16.mxu1 %v17746_v25  ;;  %v17792_v25 = vld [vmem:[%s24406_s13 + $0x100] ss:$24 sps:$4 sm:$0xff]  }
 0xb86   :  { %14341 = vmatprep.subr.bf16.mxu0 %v17749_v55 }
 0xb88   :  { %14301 = vmatpush2.bf16.msra.mxu1 %v17744_v48  ;;  %v17800_v48 = vld [vmem:[%s24406_s13 + $0xd4] ss:$24 sps:$4 sm:$0xff]  }
 0xb89   :  { %14342 = vmatpush2.bf16.msra.mxu0 %v17747_v7  ;;  %14302 = vmatprep.subr.bf16.mxu1 %v17752_v36  ;;  %v17803_v36 = vld [vmem:[%s24406_s13 + $0x3d4] ss:$24 sps:$4 sm:$0xff]  }
 0xb8a   :  { %14343 = vmatprep.subr.bf16.mxu0 %v17755_v54  ;;  %v17798_v54 = vld [vmem:[%s24406_s13 + $0xd0] ss:$24 sps:$4 sm:$0xff]  }
 0xb8c   :  { %14303 = vmatpush2.bf16.msra.mxu1 %v17750_v49  ;;  %v17801_v49 = vld [vmem:[%s24406_s13 + $0x3d0] ss:$24 sps:$4 sm:$0xff]  }
 0xb8d   :  { %14344 = vmatpush2.bf16.msra.mxu0 %v17753_v28  ;;  %14304 = vmatprep.subr.bf16.mxu1 %v17758_v32  ;;  %v17806_v28 = vld [vmem:[%s24406_s13 + $0xa4] ss:$24 sps:$4 sm:$0xff]  }
 0xb8e   :  { %14345 = vmatprep.subr.bf16.mxu0 %v17761_v33  ;;  %v17809_v32 = vld [vmem:[%s24406_s13 + $0x3a4] ss:$24 sps:$4 sm:$0xff]   ;;  %v17804_v33 = vld [vmem:[%s24406_s13 + $0xa0] ss:$24 sps:$4 sm:$0xff]  }
 0xb90   :  { %14305 = vmatpush2.bf16.msra.mxu1 %v17756_v41  ;;  %v17807_v41 = vld [vmem:[%s24406_s13 + $0x3a0] ss:$24 sps:$4 sm:$0xff]  }
 0xb91   :  { %14346 = vmatpush2.bf16.msra.mxu0 %v17759_v19  ;;  %14306 = vmatprep.subr.bf16.mxu1 %v17764_v61  ;;  %v17812_v19 = vld [vmem:[%s24406_s13 + $0x74] ss:$24 sps:$4 sm:$0xff]  }
 0xb92   :  { %14347 = vmatprep.subr.bf16.mxu0 %v17767_v9  ;;  %v17815_v61 = vld [vmem:[%s24406_s13 + $0x374] ss:$24 sps:$4 sm:$0xff]   ;;  %v17810_v9 = vld [vmem:[%s24406_s13 + $0x70] ss:$24 sps:$4 sm:$0xff]  }
 0xb94   :  { %14307 = vmatpush2.bf16.msra.mxu1 %v17762_v56  ;;  %v17813_v56 = vld [vmem:[%s24406_s13 + $0x370] ss:$24 sps:$4 sm:$0xff]  }
 0xb95   :  { %14348 = vmatpush2.bf16.msra.mxu0 %v17765_v42  ;;  %14308 = vmatprep.subr.bf16.mxu1 %v17770_v52  ;;  %v17818_v42 = vld [vmem:[%s24406_s13 + $0x44] ss:$24 sps:$4 sm:$0xff]  }
 0xb96   :  { %14349 = vmatprep.subr.bf16.mxu0 %v17773_v24  ;;  %v17821_v52 = vld [vmem:[%s24406_s13 + $0x344] ss:$24 sps:$4 sm:$0xff]   ;;  %v17816_v24 = vld [vmem:[%s24406_s13 + $0x40] ss:$24 sps:$4 sm:$0xff]  }
 0xb98   :  { %14309 = vmatpush2.bf16.msra.mxu1 %v17768_v5  ;;  %v17819_v5 = vld [vmem:[%s24406_s13 + $0x340] ss:$24 sps:$4 sm:$0xff]  }
 0xb99   :  { %14350 = vmatpush2.bf16.msra.mxu0 %v17771_v47  ;;  %14310 = vmatprep.subr.bf16.mxu1 %v17776_v6  ;;  %v17824_v47 = vld [vmem:[%s24406_s13 + $0x14] ss:$24 sps:$4 sm:$0xff]  }
 0xb9a   :  { %14351 = vmatprep.subr.bf16.mxu0 %v17779_v11  ;;  %v17827_v6 = vld [vmem:[%s24406_s13 + $0x314] ss:$24 sps:$4 sm:$0xff]   ;;  %v17822_v11 = vld [vmem:[%s24406_s13 + $0x10] ss:$24 sps:$4 sm:$0xff]  }
 0xb9c   :  { %14311 = vmatpush2.bf16.msra.mxu1 %v17774_v4  ;;  %v17825_v4 = vld [vmem:[%s24406_s13 + $0x310] ss:$24 sps:$4 sm:$0xff]  }
 0xb9d   :  { %14352 = vmatpush2.bf16.msra.mxu0 %v17777_v51  ;;  %14362 = vmatprep.subr.bf16.mxu1 %v17782_v46  ;;  %v17830_v51 = vld [vmem:[%s24406_s13 + $0x2e4] ss:$24 sps:$4 sm:$0xff]  }
 0xb9e   :  { %14403 = vmatprep.subr.bf16.mxu0 %v17785_v27  ;;  %v17833_v46 = vld [vmem:[%s24406_s13 + $0x5e4] ss:$24 sps:$4 sm:$0xff]   ;;  %v17828_v27 = vld [vmem:[%s24406_s13 + $0x2e0] ss:$24 sps:$4 sm:$0xff]  }
 0xb9f   :  { %v14068_v12 = vpop.f32.mrf.mxu1  ;;  %14313 = vmatmul.mubr.bf16.vlgmr.msra.gmra.mxu1 %v22752_v16 }
 0xba0   :  { %v14069_v63 = vadd.f32 %v14068_v12, %v9847_v31  ;;  %v14109_v26 = vpop.f32.mrf.mxu0  ;;  %14354 = vmatmul.mubr.bf16.vlgmr.msra.gmra.mxu0 %v22757_v37  ;;  %14363 = vmatpush1.bf16.msra.mxu1 %v17780_v34  ;;  %v17836_v31 = vld [vmem:[%s24406_s13 + $0x2b4] ss:$24 sps:$4 sm:$0xff]   ;;  %v17845_v12 = vld [vmem:[%s24406_s13 + $0x584] ss:$24 sps:$4 sm:$0xff]  }
 0xba1   :  { %14394 = vmatprep.mubr.bf16.mxu1 %v22086_v50  ;;  %14404 = vmatpush1.bf16.msra.mxu0 %v17783_v17  ;;  %v14070_v0 = vpop.f32.mrf.mxu1  ;;  %v17797_v50 = vld [vmem:[%s24406_s13 + $0x404] ss:$24 sps:$4 sm:$0xff]   ;;  %v17839_v34 = vld [vmem:[%s24406_s13 + $0x5b4] ss:$24 sps:$4 sm:$0xff]   ;;  %v17834_v17 = vld [vmem:[%s24406_s13 + $0x2b0] ss:$24 sps:$4 sm:$0xff]  }
 0xba2   :  { %v23597_v58 = vadd.f32 %v14109_v26, %v14069_v63  ;;  %14435 = vmatprep.mubr.bf16.mxu0 %v22088_v45  ;;  %v14071_v22 = vadd.f32 %v14070_v0, %v9851_v59  ;;  %v14111_v38 = vpop.f32.mrf.mxu0  ;;  %14364 = vmatprep.subr.bf16.mxu1 %v17788_v57  ;;  %v17795_v45 = vld [vmem:[%s24406_s13 + $0x400] ss:$24 sps:$4 sm:$0xff]   ;;  %v17837_v59 = vld [vmem:[%s24406_s13 + $0x5b0] ss:$24 sps:$4 sm:$0xff]   ;;  %v17842_v57 = vld [vmem:[%s24406_s13 + $0x284] ss:$24 sps:$4 sm:$0xff]  }
 0xba3   :  { %v14072_v35 = vpop.f32.mrf.mxu1  ;;  %14405 = vmatprep.subr.bf16.mxu0 %v17791_v8  ;;  %v17840_v8 = vld [vmem:[%s24406_s13 + $0x280] ss:$24 sps:$4 sm:$0xff]   ;;  %v17848_v26 = vld [vmem:[%s24406_s13 + $0x254] ss:$24 sps:$4 sm:$0xff]   ;;  %v17846_v0 = vld [vmem:[%s24406_s13 + $0x250] ss:$24 sps:$4 sm:$0xff]  }
 0xba4   :  { %v23603_v30 = vadd.f32 %v14111_v38, %v14071_v22  ;;  %v14113_v40 = vpop.f32.mrf.mxu0  ;;  %14365 = vmatpush1.bf16.msra.mxu1 %v17786_v14  ;;  %v17843_v63 = vld [vmem:[%s24406_s13 + $0x580] ss:$24 sps:$4 sm:$0xff]   ;;  %v17851_v14 = vld [vmem:[%s24406_s13 + $0x554] ss:$24 sps:$4 sm:$0xff]   ;;  %v17857_v22 = vld [vmem:[%s24406_s13 + $0x524] ss:$24 sps:$4 sm:$0xff]  }
 0xba5   :  { %14406 = vmatpush1.bf16.msra.mxu0 %v17789_v18  ;;  %v14073_v55 = vpop.f32.mrf.mxu1  ;;  %14366 = vmatprep.subr.bf16.mxu1 %v17794_v21  ;;  %v17849_v18 = vld [vmem:[%s24406_s13 + $0x550] ss:$24 sps:$4 sm:$0xff]   ;;  %v17854_v21 = vld [vmem:[%s24406_s13 + $0x224] ss:$24 sps:$4 sm:$0xff]   ;;  %v17852_v38 = vld [vmem:[%s24406_s13 + $0x220] ss:$24 sps:$4 sm:$0xff]  }
 0xba6   :  { %v14114_v7 = vpop.f32.mrf.mxu0  ;;  %14407 = vmatprep.subr.bf16.mxu0 %v17797_v50  ;;  %v17855_v50 = vld [vmem:[%s24406_s13 + $0x520] ss:$24 sps:$4 sm:$0xff]   ;;  %v17860_v35 = vld [vmem:[%s24406_s13 + $0x1f4] ss:$24 sps:$4 sm:$0xff]   ;;  %v17861_v55 = vld [vmem:[%s24406_s13 + $0x4f0] ss:$24 sps:$4 sm:$0xff]  }
 0xba7   :  { %v17863_v40 = vld [vmem:[%s24406_s13 + $0x4f4] ss:$24 sps:$4 sm:$0xff]   ;;  %v17864_v7 = vld [vmem:[%s24406_s13 + $0x1c0] ss:$24 sps:$4 sm:$0xff]  }
 0xba8   :  { %14367 = vmatpush1.bf16.msra.mxu1 %v17792_v25  ;;  %v17858_v25 = vld [vmem:[%s24406_s13 + $0x1f0] ss:$24 sps:$4 sm:$0xff]  }
 0xba9   :  { %14408 = vmatpush1.bf16.msra.mxu0 %v17795_v45  ;;  %14368 = vmatprep.subr.bf16.mxu1 %v17800_v48  ;;  %v17866_v45 = vld [vmem:[%s24406_s13 + $0x1c4] ss:$24 sps:$4 sm:$0xff]  }
 0xbaa   :  { %14409 = vmatprep.subr.bf16.mxu0 %v17803_v36  ;;  %v17869_v48 = vld [vmem:[%s24406_s13 + $0x4c4] ss:$24 sps:$4 sm:$0xff]   ;;  %v17867_v36 = vld [vmem:[%s24406_s13 + $0x4c0] ss:$24 sps:$4 sm:$0xff]  }
 0xbac   :  { %14369 = vmatpush1.bf16.msra.mxu1 %v17798_v54  ;;  %v17872_v54 = vld [vmem:[%s24406_s13 + $0x194] ss:$24 sps:$4 sm:$0xff]  }
 0xbad   :  { %14410 = vmatpush1.bf16.msra.mxu0 %v17801_v49  ;;  %14370 = vmatprep.subr.bf16.mxu1 %v17806_v28  ;;  %v17875_v49 = vld [vmem:[%s24406_s13 + $0x494] ss:$24 sps:$4 sm:$0xff]   ;;  %v17870_v28 = vld [vmem:[%s24406_s13 + $0x190] ss:$24 sps:$4 sm:$0xff]  }
 0xbae   :  { %14411 = vmatprep.subr.bf16.mxu0 %v17809_v32  ;;  %v17873_v32 = vld [vmem:[%s24406_s13 + $0x490] ss:$24 sps:$4 sm:$0xff]  }
 0xbb0   :  { %14371 = vmatpush1.bf16.msra.mxu1 %v17804_v33  ;;  %v17878_v33 = vld [vmem:[%s24406_s13 + $0x764] ss:$24 sps:$4 sm:$0xff]  }
 0xbb1   :  { %14412 = vmatpush1.bf16.msra.mxu0 %v17807_v41  ;;  %14372 = vmatprep.subr.bf16.mxu1 %v17812_v19  ;;  %v17881_v41 = vld [vmem:[%s24406_s13 + $0xa64] ss:$24 sps:$4 sm:$0xff]   ;;  %v17876_v19 = vld [vmem:[%s24406_s13 + $0x760] ss:$24 sps:$4 sm:$0xff]  }
 0xbb2   :  { %14413 = vmatprep.subr.bf16.mxu0 %v17815_v61  ;;  %v17879_v61 = vld [vmem:[%s24406_s13 + $0xa60] ss:$24 sps:$4 sm:$0xff]  }
 0xbb4   :  { %14373 = vmatpush1.bf16.msra.mxu1 %v17810_v9  ;;  %v17884_v9 = vld [vmem:[%s24406_s13 + $0x734] ss:$24 sps:$4 sm:$0xff]  }
 0xbb5   :  { %14414 = vmatpush1.bf16.msra.mxu0 %v17813_v56  ;;  %14374 = vmatprep.subr.bf16.mxu1 %v17818_v42  ;;  %v17887_v42 = vld [vmem:[%s24406_s13 + $0xa34] ss:$24 sps:$4 sm:$0xff]  }
 0xbb6   :  { %14415 = vmatprep.subr.bf16.mxu0 %v17821_v52 }
 0xbb8   :  { %14375 = vmatpush1.bf16.msra.mxu1 %v17816_v24 }
 0xbb9   :  { %14416 = vmatpush1.bf16.msra.mxu0 %v17819_v5  ;;  %14376 = vmatprep.subr.bf16.mxu1 %v17824_v47  ;;  %v17882_v5 = vld [vmem:[%s24406_s13 + $0x730] ss:$24 sps:$4 sm:$0xff]  }
 0xbba   :  { %14417 = vmatprep.subr.bf16.mxu0 %v17827_v6 }
 0xbbc   :  { %14377 = vmatpush1.bf16.msra.mxu1 %v17822_v11 }
 0xbbd   :  { %14418 = vmatpush1.bf16.msra.mxu0 %v17825_v4  ;;  %14378 = vmatprep.subr.bf16.mxu1 %v17830_v51 }
 0xbbe   :  { %14419 = vmatprep.subr.bf16.mxu0 %v17833_v46 }
 0xbc0   :  { %14379 = vmatpush2.bf16.msra.mxu1 %v17828_v27  ;;  %v17888_v27 = vld [vmem:[%s24406_s13 + $0x700] ss:$24 sps:$4 sm:$0xff]  }
 0xbc1   :  { %14420 = vmatpush2.bf16.msra.mxu0 %v17831_v60  ;;  %14380 = vmatprep.subr.bf16.mxu1 %v17836_v31  ;;  %v17896_v60 = vld [vmem:[%s24406_s13 + $0x6d4] ss:$24 sps:$4 sm:$0xff]  }
 0xbc2   :  { %14421 = vmatprep.subr.bf16.mxu0 %v17839_v34  ;;  %v17899_v34 = vld [vmem:[%s24406_s13 + $0x9d4] ss:$24 sps:$4 sm:$0xff]  }
 0xbc4   :  { %14381 = vmatpush2.bf16.msra.mxu1 %v17834_v17  ;;  %v17894_v17 = vld [vmem:[%s24406_s13 + $0x6d0] ss:$24 sps:$4 sm:$0xff]  }
 0xbc5   :  { %14422 = vmatpush2.bf16.msra.mxu0 %v17837_v59  ;;  %14382 = vmatprep.subr.bf16.mxu1 %v17842_v57  ;;  %v17897_v59 = vld [vmem:[%s24406_s13 + $0x9d0] ss:$24 sps:$4 sm:$0xff]   ;;  %v17902_v57 = vld [vmem:[%s24406_s13 + $0x6a4] ss:$24 sps:$4 sm:$0xff]  }
 0xbc6   :  { %14423 = vmatprep.subr.bf16.mxu0 %v17845_v12  ;;  %v17905_v12 = vld [vmem:[%s24406_s13 + $0x9a4] ss:$24 sps:$4 sm:$0xff]  }
 0xbc8   :  { %14383 = vmatpush2.bf16.msra.mxu1 %v17840_v8  ;;  %v17900_v8 = vld [vmem:[%s24406_s13 + $0x6a0] ss:$24 sps:$4 sm:$0xff]  }
 0xbc9   :  { %14424 = vmatpush2.bf16.msra.mxu0 %v17843_v63  ;;  %14384 = vmatprep.subr.bf16.mxu1 %v17848_v26  ;;  %v17903_v63 = vld [vmem:[%s24406_s13 + $0x9a0] ss:$24 sps:$4 sm:$0xff]   ;;  %v17908_v26 = vld [vmem:[%s24406_s13 + $0x674] ss:$24 sps:$4 sm:$0xff]  }
 0xbca   :  { %14425 = vmatprep.subr.bf16.mxu0 %v17851_v14  ;;  %v17911_v14 = vld [vmem:[%s24406_s13 + $0x974] ss:$24 sps:$4 sm:$0xff]  }
 0xbcc   :  { %14385 = vmatpush2.bf16.msra.mxu1 %v17846_v0  ;;  %v17906_v0 = vld [vmem:[%s24406_s13 + $0x670] ss:$24 sps:$4 sm:$0xff]  }
 0xbcd   :  { %14426 = vmatpush2.bf16.msra.mxu0 %v17849_v18  ;;  %14386 = vmatprep.subr.bf16.mxu1 %v17854_v21  ;;  %v17909_v18 = vld [vmem:[%s24406_s13 + $0x970] ss:$24 sps:$4 sm:$0xff]   ;;  %v17914_v21 = vld [vmem:[%s24406_s13 + $0x644] ss:$24 sps:$4 sm:$0xff]  }
 0xbce   :  { %14427 = vmatprep.subr.bf16.mxu0 %v17857_v22  ;;  %v17917_v22 = vld [vmem:[%s24406_s13 + $0x944] ss:$24 sps:$4 sm:$0xff]  }
 0xbd0   :  { %14387 = vmatpush2.bf16.msra.mxu1 %v17852_v38  ;;  %v17912_v38 = vld [vmem:[%s24406_s13 + $0x640] ss:$24 sps:$4 sm:$0xff]  }
 0xbd1   :  { %14428 = vmatpush2.bf16.msra.mxu0 %v17855_v50  ;;  %14388 = vmatprep.subr.bf16.mxu1 %v17860_v35  ;;  %v17915_v50 = vld [vmem:[%s24406_s13 + $0x940] ss:$24 sps:$4 sm:$0xff]   ;;  %v17920_v35 = vld [vmem:[%s24406_s13 + $0x614] ss:$24 sps:$4 sm:$0xff]  }
 0xbd2   :  { %14429 = vmatprep.subr.bf16.mxu0 %v17863_v40  ;;  %v17923_v40 = vld [vmem:[%s24406_s13 + $0x914] ss:$24 sps:$4 sm:$0xff]  }
 0xbd4   :  { %14389 = vmatpush2.bf16.msra.mxu1 %v17858_v25  ;;  %v17918_v25 = vld [vmem:[%s24406_s13 + $0x610] ss:$24 sps:$4 sm:$0xff]  }
 0xbd5   :  { %14430 = vmatpush2.bf16.msra.mxu0 %v17861_v55  ;;  %14390 = vmatprep.subr.bf16.mxu1 %v17866_v45  ;;  %v17921_v55 = vld [vmem:[%s24406_s13 + $0x910] ss:$24 sps:$4 sm:$0xff]   ;;  %v17926_v45 = vld [vmem:[%s24406_s13 + $0x8e4] ss:$24 sps:$4 sm:$0xff]  }
 0xbd6   :  { %14431 = vmatprep.subr.bf16.mxu0 %v17869_v48  ;;  %v17929_v48 = vld [vmem:[%s24406_s13 + $0xbe4] ss:$24 sps:$4 sm:$0xff]  }
 0xbd8   :  { %14391 = vmatpush2.bf16.msra.mxu1 %v17864_v7  ;;  %v17924_v7 = vld [vmem:[%s24406_s13 + $0x8e0] ss:$24 sps:$4 sm:$0xff]  }
 0xbd9   :  { %14432 = vmatpush2.bf16.msra.mxu0 %v17867_v36  ;;  %14392 = vmatprep.subr.bf16.mxu1 %v17872_v54  ;;  %v17927_v36 = vld [vmem:[%s24406_s13 + $0xbe0] ss:$24 sps:$4 sm:$0xff]   ;;  %v17932_v54 = vld [vmem:[%s24406_s13 + $0x8b4] ss:$24 sps:$4 sm:$0xff]  }
 0xbda   :  { %14433 = vmatprep.subr.bf16.mxu0 %v17875_v49  ;;  %v17935_v49 = vld [vmem:[%s24406_s13 + $0xbb4] ss:$24 sps:$4 sm:$0xff]  }
 0xbdc   :  { %14393 = vmatpush2.bf16.msra.mxu1 %v17870_v28  ;;  %v17930_v28 = vld [vmem:[%s24406_s13 + $0x8b0] ss:$24 sps:$4 sm:$0xff]  }
 0xbdd   :  { %14434 = vmatpush2.bf16.msra.mxu0 %v17873_v32  ;;  %14444 = vmatprep.subr.bf16.mxu1 %v17878_v33  ;;  %v17933_v32 = vld [vmem:[%s24406_s13 + $0xbb0] ss:$24 sps:$4 sm:$0xff]   ;;  %v17938_v33 = vld [vmem:[%s24406_s13 + $0x884] ss:$24 sps:$4 sm:$0xff]  }
 0xbde   :  { %14485 = vmatprep.subr.bf16.mxu0 %v17881_v41  ;;  %v17941_v41 = vld [vmem:[%s24406_s13 + $0xb84] ss:$24 sps:$4 sm:$0xff]  }
 0xbdf   :  { %v14150_v56 = vpop.f32.mrf.mxu1  ;;  %14395 = vmatmul.mubr.bf16.vlgmr.msra.gmra.mxu1 %v22090_v39  ;;  %v17885_v39 = vld [vmem:[%s24406_s13 + $0xa30] ss:$24 sps:$4 sm:$0xff]  }
 0xbe0   :  { %v14151_v52 = vadd.f32 %v14150_v56, %v23597_v58  ;;  %v14191_v24 = vpop.f32.mrf.mxu0  ;;  %14436 = vmatmul.mubr.bf16.vlgmr.msra.gmra.mxu0 %v22092_v62  ;;  %14445 = vmatpush1.bf16.msra.mxu1 %v17876_v19  ;;  %v17890_v58 = vld [vmem:[%s24406_s13 + $0x704] ss:$24 sps:$4 sm:$0xff]   ;;  %v17936_v19 = vld [vmem:[%s24406_s13 + $0x880] ss:$24 sps:$4 sm:$0xff]   ;;  %v17947_v56 = vld [vmem:[%s24406_s13 + $0xb54] ss:$24 sps:$4 sm:$0xff]  }
 0xbe1   :  { %14476 = vmatprep.mubr.bf16.mxu1 %v22196_v1  ;;  %14486 = vmatpush1.bf16.msra.mxu0 %v17879_v61  ;;  %v14152_v47 = vpop.f32.mrf.mxu1  ;;  %v17893_v1 = vld [vmem:[%s24406_s13 + $0xa04] ss:$24 sps:$4 sm:$0xff]   ;;  %v17939_v61 = vld [vmem:[%s24406_s13 + $0xb80] ss:$24 sps:$4 sm:$0xff]  }
 0xbe2   :  { %v23798_v6 = vadd.f32 %v14191_v24, %v14151_v52  ;;  %14517 = vmatprep.mubr.bf16.mxu0 %v22198_v13  ;;  %v14153_v62 = vadd.f32 %v14152_v47, %v23603_v30  ;;  %v14193_v11 = vpop.f32.mrf.mxu0  ;;  %14446 = vmatprep.subr.bf16.mxu1 %v17884_v9  ;;  %v17891_v30 = vld [vmem:[%s24406_s13 + $0xa00] ss:$24 sps:$4 sm:$0xff]   ;;  %v17944_v9 = vld [vmem:[%s24406_s13 + $0x854] ss:$24 sps:$4 sm:$0xff]   ;;  %v17945_v52 = vld [vmem:[%s24406_s13 + $0xb50] ss:$24 sps:$4 sm:$0xff]  }
 0xbe3   :  { %v14154_v4 = vpop.f32.mrf.mxu1  ;;  %14487 = vmatprep.subr.bf16.mxu0 %v17887_v42  ;;  %v17942_v42 = vld [vmem:[%s24406_s13 + $0x850] ss:$24 sps:$4 sm:$0xff]   ;;  %v17950_v24 = vld [vmem:[%s24406_s13 + $0x824] ss:$24 sps:$4 sm:$0xff]   ;;  %v17948_v47 = vld [vmem:[%s24406_s13 + $0x820] ss:$24 sps:$4 sm:$0xff]  }
 0xbe4   :  { %v23805_v51 = vadd.f32 %v14193_v11, %v14153_v62  ;;  %v14195_v46 = vpop.f32.mrf.mxu0  ;;  %14447 = vmatpush1.bf16.msra.mxu1 %v17882_v5  ;;  %v17953_v5 = vld [vmem:[%s24406_s13 + $0xb24] ss:$24 sps:$4 sm:$0xff]   ;;  %v17959_v62 = vld [vmem:[%s24406_s13 + $0xaf4] ss:$24 sps:$4 sm:$0xff]   ;;  %v17954_v11 = vld [vmem:[%s24406_s13 + $0x7f0] ss:$24 sps:$4 sm:$0xff]  }
 0xbe5   :  { %14488 = vmatpush1.bf16.msra.mxu0 %v17885_v39  ;;  %v14155_v13 = vpop.f32.mrf.mxu1  ;;  %14448 = vmatprep.subr.bf16.mxu1 %v17890_v58  ;;  %v17951_v39 = vld [vmem:[%s24406_s13 + $0xb20] ss:$24 sps:$4 sm:$0xff]   ;;  %v17956_v58 = vld [vmem:[%s24406_s13 + $0x7f4] ss:$24 sps:$4 sm:$0xff]   ;;  %v17962_v4 = vld [vmem:[%s24406_s13 + $0x7c4] ss:$24 sps:$4 sm:$0xff]  }
 0xbe6   :  { %v14196_v31 = vpop.f32.mrf.mxu0  ;;  %14489 = vmatprep.subr.bf16.mxu0 %v17893_v1  ;;  %v17957_v1 = vld [vmem:[%s24406_s13 + $0xaf0] ss:$24 sps:$4 sm:$0xff]   ;;  %v17965_v46 = vld [vmem:[%s24406_s13 + $0xac4] ss:$24 sps:$4 sm:$0xff]   ;;  %v17963_v13 = vld [vmem:[%s24406_s13 + $0xac0] ss:$24 sps:$4 sm:$0xff]  }
 0xbe7   :  { %v17966_v31 = vld [vmem:[%s24406_s13 + $0x790] ss:$24 sps:$4 sm:$0xff]  }
 0xbe8   :  { %14449 = vmatpush1.bf16.msra.mxu1 %v17888_v27  ;;  %v17960_v27 = vld [vmem:[%s24406_s13 + $0x7c0] ss:$24 sps:$4 sm:$0xff]  }
 0xbe9   :  { %14490 = vmatpush1.bf16.msra.mxu0 %v17891_v30  ;;  %14450 = vmatprep.subr.bf16.mxu1 %v17896_v60  ;;  %v17968_v30 = vld [vmem:[%s24406_s13 + $0x794] ss:$24 sps:$4 sm:$0xff]  }
 0xbea   :  { %14491 = vmatprep.subr.bf16.mxu0 %v17899_v34  ;;  %v17971_v60 = vld [vmem:[%s24406_s13 + $0xa94] ss:$24 sps:$4 sm:$0xff]   ;;  %v17969_v34 = vld [vmem:[%s24406_s13 + $0xa90] ss:$24 sps:$4 sm:$0xff]  }
 0xbec   :  { %14451 = vmatpush1.bf16.msra.mxu1 %v17894_v17  ;;  %v17974_v17 = vld [vmem:[%s24406_s13 + $0xd64] ss:$24 sps:$4 sm:$0xff]  }
 0xbed   :  { %14492 = vmatpush1.bf16.msra.mxu0 %v17897_v59  ;;  %14452 = vmatprep.subr.bf16.mxu1 %v17902_v57  ;;  %v17977_v59 = vld [vmem:[%s24406_s13 + $0x1064] ss:$24 sps:$4 sm:$0xff]   ;;  %v17972_v57 = vld [vmem:[%s24406_s13 + $0xd60] ss:$24 sps:$4 sm:$0xff]  }
 0xbee   :  { %14493 = vmatprep.subr.bf16.mxu0 %v17905_v12  ;;  %v17975_v12 = vld [vmem:[%s24406_s13 + $0x1060] ss:$24 sps:$4 sm:$0xff]  }
 0xbf0   :  { %14453 = vmatpush1.bf16.msra.mxu1 %v17900_v8  ;;  %v17980_v8 = vld [vmem:[%s24406_s13 + $0xd34] ss:$24 sps:$4 sm:$0xff]  }
 0xbf1   :  { %14494 = vmatpush1.bf16.msra.mxu0 %v17903_v63  ;;  %14454 = vmatprep.subr.bf16.mxu1 %v17908_v26  ;;  %v17983_v26 = vld [vmem:[%s24406_s13 + $0x1034] ss:$24 sps:$4 sm:$0xff]  }
 0xbf2   :  { %14495 = vmatprep.subr.bf16.mxu0 %v17911_v14 }
 0xbf4   :  { %14455 = vmatpush1.bf16.msra.mxu1 %v17906_v0  ;;  %v17978_v0 = vld [vmem:[%s24406_s13 + $0xd30] ss:$24 sps:$4 sm:$0xff]  }
 0xbf5   :  { %14496 = vmatpush1.bf16.msra.mxu0 %v17909_v18  ;;  %14456 = vmatprep.subr.bf16.mxu1 %v17914_v21  ;;  %v17986_v21 = vld [vmem:[%s24406_s13 + $0xd04] ss:$24 sps:$4 sm:$0xff]  }
 0xbf6   :  { %14497 = vmatprep.subr.bf16.mxu0 %v17917_v22 }
 0xbf8   :  { %14457 = vmatpush1.bf16.msra.mxu1 %v17912_v38 }
 0xbf9   :  { %14498 = vmatpush1.bf16.msra.mxu0 %v17915_v50  ;;  %14458 = vmatprep.subr.bf16.mxu1 %v17920_v35  ;;  %v17984_v50 = vld [vmem:[%s24406_s13 + $0xd00] ss:$24 sps:$4 sm:$0xff]  }
 0xbfa   :  { %14499 = vmatprep.subr.bf16.mxu0 %v17923_v40  ;;  %v17992_v40 = vld [vmem:[%s24406_s13 + $0xcd4] ss:$24 sps:$4 sm:$0xff]  }
 0xbfc   :  { %14459 = vmatpush1.bf16.msra.mxu1 %v17918_v25 }
 0xbfd   :  { %14500 = vmatpush1.bf16.msra.mxu0 %v17921_v55  ;;  %14460 = vmatprep.subr.bf16.mxu1 %v17926_v45  ;;  %v17995_v55 = vld [vmem:[%s24406_s13 + $0xfd4] ss:$24 sps:$4 sm:$0xff]   ;;  %v17990_v45 = vld [vmem:[%s24406_s13 + $0xcd0] ss:$24 sps:$4 sm:$0xff]  }
 0xbfe   :  { %14501 = vmatprep.subr.bf16.mxu0 %v17929_v48  ;;  %v17993_v48 = vld [vmem:[%s24406_s13 + $0xfd0] ss:$24 sps:$4 sm:$0xff]  }
 0xc00   :  { %14461 = vmatpush2.bf16.msra.mxu1 %v17924_v7  ;;  %v17998_v7 = vld [vmem:[%s24406_s13 + $0xca4] ss:$24 sps:$4 sm:$0xff]  }
 0xc01   :  { %14502 = vmatpush2.bf16.msra.mxu0 %v17927_v36  ;;  %14462 = vmatprep.subr.bf16.mxu1 %v17932_v54  ;;  %v18001_v36 = vld [vmem:[%s24406_s13 + $0xfa4] ss:$24 sps:$4 sm:$0xff]   ;;  %v17996_v54 = vld [vmem:[%s24406_s13 + $0xca0] ss:$24 sps:$4 sm:$0xff]  }
 0xc02   :  { %14503 = vmatprep.subr.bf16.mxu0 %v17935_v49  ;;  %v17999_v49 = vld [vmem:[%s24406_s13 + $0xfa0] ss:$24 sps:$4 sm:$0xff]  }
 0xc04   :  { %14463 = vmatpush2.bf16.msra.mxu1 %v17930_v28  ;;  %v18004_v28 = vld [vmem:[%s24406_s13 + $0xc74] ss:$24 sps:$4 sm:$0xff]  }
 0xc05   :  { %14504 = vmatpush2.bf16.msra.mxu0 %v17933_v32  ;;  %14464 = vmatprep.subr.bf16.mxu1 %v17938_v33  ;;  %v18007_v32 = vld [vmem:[%s24406_s13 + $0xf74] ss:$24 sps:$4 sm:$0xff]   ;;  %v18002_v33 = vld [vmem:[%s24406_s13 + $0xc70] ss:$24 sps:$4 sm:$0xff]  }
 0xc06   :  { %14505 = vmatprep.subr.bf16.mxu0 %v17941_v41  ;;  %v18005_v41 = vld [vmem:[%s24406_s13 + $0xf70] ss:$24 sps:$4 sm:$0xff]  }
 0xc08   :  { %14465 = vmatpush2.bf16.msra.mxu1 %v17936_v19  ;;  %v18010_v19 = vld [vmem:[%s24406_s13 + $0xc44] ss:$24 sps:$4 sm:$0xff]  }
 0xc09   :  { %14506 = vmatpush2.bf16.msra.mxu0 %v17939_v61  ;;  %14466 = vmatprep.subr.bf16.mxu1 %v17944_v9  ;;  %v18013_v61 = vld [vmem:[%s24406_s13 + $0xf44] ss:$24 sps:$4 sm:$0xff]   ;;  %v18008_v9 = vld [vmem:[%s24406_s13 + $0xc40] ss:$24 sps:$4 sm:$0xff]  }
 0xc0a   :  { %14507 = vmatprep.subr.bf16.mxu0 %v17947_v56  ;;  %v18011_v56 = vld [vmem:[%s24406_s13 + $0xf40] ss:$24 sps:$4 sm:$0xff]  }
 0xc0c   :  { %14467 = vmatpush2.bf16.msra.mxu1 %v17942_v42  ;;  %v18016_v42 = vld [vmem:[%s24406_s13 + $0xc14] ss:$24 sps:$4 sm:$0xff]  }
 0xc0d   :  { %14508 = vmatpush2.bf16.msra.mxu0 %v17945_v52  ;;  %14468 = vmatprep.subr.bf16.mxu1 %v17950_v24  ;;  %v18019_v52 = vld [vmem:[%s24406_s13 + $0xf14] ss:$24 sps:$4 sm:$0xff]   ;;  %v18014_v24 = vld [vmem:[%s24406_s13 + $0xc10] ss:$24 sps:$4 sm:$0xff]  }
 0xc0e   :  { %14509 = vmatprep.subr.bf16.mxu0 %v17953_v5  ;;  %v18017_v5 = vld [vmem:[%s24406_s13 + $0xf10] ss:$24 sps:$4 sm:$0xff]  }
 0xc10   :  { %14469 = vmatpush2.bf16.msra.mxu1 %v17948_v47  ;;  %v18022_v47 = vld [vmem:[%s24406_s13 + $0xee4] ss:$24 sps:$4 sm:$0xff]  }
 0xc11   :  { %14510 = vmatpush2.bf16.msra.mxu0 %v17951_v39  ;;  %14470 = vmatprep.subr.bf16.mxu1 %v17956_v58  ;;  %v18025_v39 = vld [vmem:[%s24406_s13 + $0x11e4] ss:$24 sps:$4 sm:$0xff]   ;;  %v18020_v58 = vld [vmem:[%s24406_s13 + $0xee0] ss:$24 sps:$4 sm:$0xff]  }
 0xc12   :  { %14511 = vmatprep.subr.bf16.mxu0 %v17959_v62  ;;  %v18023_v62 = vld [vmem:[%s24406_s13 + $0x11e0] ss:$24 sps:$4 sm:$0xff]  }
 0xc14   :  { %14471 = vmatpush2.bf16.msra.mxu1 %v17954_v11  ;;  %v18028_v11 = vld [vmem:[%s24406_s13 + $0xeb4] ss:$24 sps:$4 sm:$0xff]  }
 0xc15   :  { %14512 = vmatpush2.bf16.msra.mxu0 %v17957_v1  ;;  %14472 = vmatprep.subr.bf16.mxu1 %v17962_v4  ;;  %v18031_v1 = vld [vmem:[%s24406_s13 + $0x11b4] ss:$24 sps:$4 sm:$0xff]   ;;  %v18026_v4 = vld [vmem:[%s24406_s13 + $0xeb0] ss:$24 sps:$4 sm:$0xff]  }
 0xc16   :  { %14513 = vmatprep.subr.bf16.mxu0 %v17965_v46  ;;  %v18029_v46 = vld [vmem:[%s24406_s13 + $0x11b0] ss:$24 sps:$4 sm:$0xff]  }
 0xc18   :  { %14473 = vmatpush2.bf16.msra.mxu1 %v17960_v27  ;;  %v18034_v27 = vld [vmem:[%s24406_s13 + $0xe84] ss:$24 sps:$4 sm:$0xff]  }
 0xc19   :  { %14514 = vmatpush2.bf16.msra.mxu0 %v17963_v13  ;;  %14474 = vmatprep.subr.bf16.mxu1 %v17968_v30  ;;  %v18037_v13 = vld [vmem:[%s24406_s13 + $0x1184] ss:$24 sps:$4 sm:$0xff]   ;;  %v18032_v30 = vld [vmem:[%s24406_s13 + $0xe80] ss:$24 sps:$4 sm:$0xff]  }
 0xc1a   :  { %14515 = vmatprep.subr.bf16.mxu0 %v17971_v60  ;;  %v18035_v60 = vld [vmem:[%s24406_s13 + $0x1180] ss:$24 sps:$4 sm:$0xff]  }
 0xc1c   :  { %14475 = vmatpush2.bf16.msra.mxu1 %v17966_v31  ;;  %v18040_v31 = vld [vmem:[%s24406_s13 + $0xe54] ss:$24 sps:$4 sm:$0xff]  }
 0xc1d   :  { %14516 = vmatpush2.bf16.msra.mxu0 %v17969_v34  ;;  %14526 = vmatprep.subr.bf16.mxu1 %v17974_v17  ;;  %v18043_v34 = vld [vmem:[%s24406_s13 + $0x1154] ss:$24 sps:$4 sm:$0xff]   ;;  %v18038_v17 = vld [vmem:[%s24406_s13 + $0xe50] ss:$24 sps:$4 sm:$0xff]  }
 0xc1e   :  { %14567 = vmatprep.subr.bf16.mxu0 %v17977_v59  ;;  %v18041_v59 = vld [vmem:[%s24406_s13 + $0x1150] ss:$24 sps:$4 sm:$0xff]  }
 0xc1f   :  { %v23984_v63 = vpop.f32.mrf.mxu1  ;;  %14477 = vmatmul.mubr.bf16.vlgmr.msra.gmra.mxu1 %v22325_v20  ;;  %v17981_v20 = vld [vmem:[%s24406_s13 + $0x1030] ss:$24 sps:$4 sm:$0xff]  }
 0xc20   :  { %v23990_v14 = vpop.f32.mrf.mxu0  ;;  %14518 = vmatmul.mubr.bf16.vlgmr.msra.gmra.mxu0 %v22327_v2  ;;  %14527 = vmatpush1.bf16.msra.mxu1 %v17972_v57  ;;  %v18046_v57 = vld [vmem:[%s24406_s13 + $0xe24] ss:$24 sps:$4 sm:$0xff]  }
 0xc21   :  { %14558 = vmatprep.mubr.bf16.mxu1 %v22329_v43  ;;  %14568 = vmatpush1.bf16.msra.mxu0 %v17975_v12  ;;  %v23997_v18 = vpop.f32.mrf.mxu1  ;;  %v17989_v43 = vld [vmem:[%s24406_s13 + $0x1004] ss:$24 sps:$4 sm:$0xff]  }
 0xc22   :  { %14599 = vmatprep.mubr.bf16.mxu0 %v22331_v3  ;;  %v24006_v2 = vpop.f32.mrf.mxu0  ;;  %14528 = vmatprep.subr.bf16.mxu1 %v17980_v8  ;;  %v17987_v3 = vld [vmem:[%s24406_s13 + $0x1000] ss:$24 sps:$4 sm:$0xff]   ;;  %v18049_v12 = vld [vmem:[%s24406_s13 + $0x1124] ss:$24 sps:$4 sm:$0xff]  }
 0xc23   :  { %v14236_v22 = vpop.f32.mrf.mxu1  ;;  %14569 = vmatprep.subr.bf16.mxu0 %v17983_v26  ;;  %v18044_v8 = vld [vmem:[%s24406_s13 + $0xe20] ss:$24 sps:$4 sm:$0xff]  }
 0xc24   :  { %v14277_v38 = vpop.f32.mrf.mxu0  ;;  %14529 = vmatpush1.bf16.msra.mxu1 %v17978_v0  ;;  %v18047_v26 = vld [vmem:[%s24406_s13 + $0x1120] ss:$24 sps:$4 sm:$0xff]   ;;  %v18052_v0 = vld [vmem:[%s24406_s13 + $0xdf4] ss:$24 sps:$4 sm:$0xff]   ;;  %v18058_v22 = vld [vmem:[%s24406_s13 + $0xdc4] ss:$24 sps:$4 sm:$0xff]  }
 0xc25   :  { %14570 = vmatpush1.bf16.msra.mxu0 %v17981_v20  ;;  %v14237_v35 = vpop.f32.mrf.mxu1  ;;  %14530 = vmatprep.subr.bf16.mxu1 %v17986_v21  ;;  %v18055_v20 = vld [vmem:[%s24406_s13 + $0x10f4] ss:$24 sps:$4 sm:$0xff]   ;;  %v18050_v21 = vld [vmem:[%s24406_s13 + $0xdf0] ss:$24 sps:$4 sm:$0xff]   ;;  %v18061_v38 = vld [vmem:[%s24406_s13 + $0x10c4] ss:$24 sps:$4 sm:$0xff]  }
 0xc26   :  { %v14278_v25 = vpop.f32.mrf.mxu0  ;;  %14571 = vmatprep.subr.bf16.mxu0 %v17989_v43  ;;  %v18053_v43 = vld [vmem:[%s24406_s13 + $0x10f0] ss:$24 sps:$4 sm:$0xff]   ;;  %v18059_v35 = vld [vmem:[%s24406_s13 + $0x10c0] ss:$24 sps:$4 sm:$0xff]  }
 0xc27   :  { %v18062_v25 = vld [vmem:[%s24406_s13 + $0xd90] ss:$24 sps:$4 sm:$0xff]  }
 0xc28   :  { %14531 = vmatpush1.bf16.msra.mxu1 %v17984_v50  ;;  %v18056_v50 = vld [vmem:[%s24406_s13 + $0xdc0] ss:$24 sps:$4 sm:$0xff]  }
 0xc29   :  { %14572 = vmatpush1.bf16.msra.mxu0 %v17987_v3  ;;  %14532 = vmatprep.subr.bf16.mxu1 %v17992_v40  ;;  %v18064_v3 = vld [vmem:[%s24406_s13 + $0xd94] ss:$24 sps:$4 sm:$0xff]  }
 0xc2a   :  { %14573 = vmatprep.subr.bf16.mxu0 %v17995_v55  ;;  %v18067_v40 = vld [vmem:[%s24406_s13 + $0x1094] ss:$24 sps:$4 sm:$0xff]   ;;  %v18065_v55 = vld [vmem:[%s24406_s13 + $0x1090] ss:$24 sps:$4 sm:$0xff]  }
 0xc2c   :  { %14533 = vmatpush1.bf16.msra.mxu1 %v17990_v45  ;;  %v18070_v45 = vld [vmem:[%s24406_s13 + $0x1364] ss:$24 sps:$4 sm:$0xff]  }
 0xc2d   :  { %14574 = vmatpush1.bf16.msra.mxu0 %v17993_v48  ;;  %14534 = vmatprep.subr.bf16.mxu1 %v17998_v7  ;;  %v14233_v48 = vadd.f32 %v23984_v63, %v23798_v6  ;;  %v18073_v7 = vld [vmem:[%s24406_s13 + $0x1664] ss:$24 sps:$4 sm:$0xff]   ;;  %v18076_v63 = vld [vmem:[%s24406_s13 + $0x1334] ss:$24 sps:$4 sm:$0xff]  }
 0xc2e   :  { %14575 = vmatprep.subr.bf16.mxu0 %v18001_v36  ;;  %v14235_v36 = vadd.f32 %v23997_v18, %v23805_v51  ;;  %v18079_v51 = vld [vmem:[%s24406_s13 + $0x1634] ss:$24 sps:$4 sm:$0xff]  }
 0xc2f   :  { %v14274_v6 = vadd.f32 %v23990_v14, %v14233_v48  ;;  %v18074_v14 = vld [vmem:[%s24406_s13 + $0x1330] ss:$24 sps:$4 sm:$0xff]   ;;  %v18139_v48 = vld [vmem:[%s24406_s13 + $0x1754] ss:$24 sps:$4 sm:$0xff]  }
 0xc30   :  { %14535 = vmatpush1.bf16.msra.mxu1 %v17996_v54  ;;  %v18068_v54 = vld [vmem:[%s24406_s13 + $0x1360] ss:$24 sps:$4 sm:$0xff]   ;;  %v14276_v18 = vadd.f32 %v24006_v2, %v14235_v36  ;;  %v18082_v2 = vld [vmem:[%s24406_s13 + $0x1304] ss:$24 sps:$4 sm:$0xff]   ;;  %v18137_v36 = vld [vmem:[%s24406_s13 + $0x1750] ss:$24 sps:$4 sm:$0xff]  }
 0xc31   :  { %14576 = vmatpush1.bf16.msra.mxu0 %v17999_v49  ;;  %14536 = vmatprep.subr.bf16.mxu1 %v18004_v28  ;;  %v18071_v49 = vld [vmem:[%s24406_s13 + $0x1660] ss:$24 sps:$4 sm:$0xff]  }
 0xc32   :  { %14577 = vmatprep.subr.bf16.mxu0 %v18007_v32 }
 0xc34   :  { %14537 = vmatpush1.bf16.msra.mxu1 %v18002_v33 }
 0xc35   :  { %14578 = vmatpush1.bf16.msra.mxu0 %v18005_v41  ;;  %14538 = vmatprep.subr.bf16.mxu1 %v18010_v19 }
 0xc36   :  { %14579 = vmatprep.subr.bf16.mxu0 %v18013_v61 }
 0xc38   :  { %14539 = vmatpush1.bf16.msra.mxu1 %v18008_v9 }
 0xc39   :  { %14580 = vmatpush1.bf16.msra.mxu0 %v18011_v56  ;;  %14540 = vmatprep.subr.bf16.mxu1 %v18016_v42 }
 0xc3a   :  { %14581 = vmatprep.subr.bf16.mxu0 %v18019_v52 }
 0xc3c   :  { %14541 = vmatpush1.bf16.msra.mxu1 %v18014_v24  ;;  %v18083_v24 = vld [vmem:[%s24406_s13 + $0x1600] ss:$24 sps:$4 sm:$0xff]  }
 0xc3d   :  { %14582 = vmatpush1.bf16.msra.mxu0 %v18017_v5  ;;  %14542 = vmatprep.subr.bf16.mxu1 %v18022_v47  ;;  %v18088_v5 = vld [vmem:[%s24406_s13 + $0x12d4] ss:$24 sps:$4 sm:$0xff]  }
 0xc3e   :  { %14583 = vmatprep.subr.bf16.mxu0 %v18025_v39  ;;  %v18091_v39 = vld [vmem:[%s24406_s13 + $0x15d4] ss:$24 sps:$4 sm:$0xff]  }
 0xc40   :  { %14543 = vmatpush2.bf16.msra.mxu1 %v18020_v58  ;;  %v18086_v58 = vld [vmem:[%s24406_s13 + $0x12d0] ss:$24 sps:$4 sm:$0xff]  }
 0xc41   :  { %14584 = vmatpush2.bf16.msra.mxu0 %v18023_v62  ;;  %14544 = vmatprep.subr.bf16.mxu1 %v18028_v11  ;;  %v18089_v62 = vld [vmem:[%s24406_s13 + $0x15d0] ss:$24 sps:$4 sm:$0xff]   ;;  %v18094_v11 = vld [vmem:[%s24406_s13 + $0x12a4] ss:$24 sps:$4 sm:$0xff]  }
 0xc42   :  { %14585 = vmatprep.subr.bf16.mxu0 %v18031_v1  ;;  %v18097_v1 = vld [vmem:[%s24406_s13 + $0x15a4] ss:$24 sps:$4 sm:$0xff]  }
 0xc44   :  { %14545 = vmatpush2.bf16.msra.mxu1 %v18026_v4  ;;  %v18092_v4 = vld [vmem:[%s24406_s13 + $0x12a0] ss:$24 sps:$4 sm:$0xff]  }
 0xc45   :  { %14586 = vmatpush2.bf16.msra.mxu0 %v18029_v46  ;;  %14546 = vmatprep.subr.bf16.mxu1 %v18034_v27  ;;  %v18095_v46 = vld [vmem:[%s24406_s13 + $0x15a0] ss:$24 sps:$4 sm:$0xff]   ;;  %v18100_v27 = vld [vmem:[%s24406_s13 + $0x1274] ss:$24 sps:$4 sm:$0xff]  }
 0xc46   :  { %14587 = vmatprep.subr.bf16.mxu0 %v18037_v13  ;;  %v18103_v13 = vld [vmem:[%s24406_s13 + $0x1574] ss:$24 sps:$4 sm:$0xff]  }
 0xc48   :  { %14547 = vmatpush2.bf16.msra.mxu1 %v18032_v30  ;;  %v18098_v30 = vld [vmem:[%s24406_s13 + $0x1270] ss:$24 sps:$4 sm:$0xff]  }
 0xc49   :  { %14588 = vmatpush2.bf16.msra.mxu0 %v18035_v60  ;;  %14548 = vmatprep.subr.bf16.mxu1 %v18040_v31  ;;  %v18101_v60 = vld [vmem:[%s24406_s13 + $0x1570] ss:$24 sps:$4 sm:$0xff]   ;;  %v18106_v31 = vld [vmem:[%s24406_s13 + $0x1244] ss:$24 sps:$4 sm:$0xff]  }
 0xc4a   :  { %14589 = vmatprep.subr.bf16.mxu0 %v18043_v34  ;;  %v18109_v34 = vld [vmem:[%s24406_s13 + $0x1544] ss:$24 sps:$4 sm:$0xff]  }
 0xc4c   :  { %14549 = vmatpush2.bf16.msra.mxu1 %v18038_v17  ;;  %v18104_v17 = vld [vmem:[%s24406_s13 + $0x1240] ss:$24 sps:$4 sm:$0xff]  }
 0xc4d   :  { %14590 = vmatpush2.bf16.msra.mxu0 %v18041_v59  ;;  %14550 = vmatprep.subr.bf16.mxu1 %v18046_v57  ;;  %v18107_v59 = vld [vmem:[%s24406_s13 + $0x1540] ss:$24 sps:$4 sm:$0xff]   ;;  %v18112_v57 = vld [vmem:[%s24406_s13 + $0x1214] ss:$24 sps:$4 sm:$0xff]  }
 0xc4e   :  { %14591 = vmatprep.subr.bf16.mxu0 %v18049_v12  ;;  %v18115_v12 = vld [vmem:[%s24406_s13 + $0x1514] ss:$24 sps:$4 sm:$0xff]  }
 0xc50   :  { %14551 = vmatpush2.bf16.msra.mxu1 %v18044_v8  ;;  %v18110_v8 = vld [vmem:[%s24406_s13 + $0x1210] ss:$24 sps:$4 sm:$0xff]  }
 0xc51   :  { %14592 = vmatpush2.bf16.msra.mxu0 %v18047_v26  ;;  %14552 = vmatprep.subr.bf16.mxu1 %v18052_v0  ;;  %v18113_v26 = vld [vmem:[%s24406_s13 + $0x1510] ss:$24 sps:$4 sm:$0xff]   ;;  %v18118_v0 = vld [vmem:[%s24406_s13 + $0x14e4] ss:$24 sps:$4 sm:$0xff]  }
 0xc52   :  { %14593 = vmatprep.subr.bf16.mxu0 %v18055_v20  ;;  %v18121_v20 = vld [vmem:[%s24406_s13 + $0x17e4] ss:$24 sps:$4 sm:$0xff]  }
 0xc54   :  { %14553 = vmatpush2.bf16.msra.mxu1 %v18050_v21  ;;  %v18116_v21 = vld [vmem:[%s24406_s13 + $0x14e0] ss:$24 sps:$4 sm:$0xff]  }
 0xc55   :  { %14594 = vmatpush2.bf16.msra.mxu0 %v18053_v43  ;;  %14554 = vmatprep.subr.bf16.mxu1 %v18058_v22  ;;  %v18119_v43 = vld [vmem:[%s24406_s13 + $0x17e0] ss:$24 sps:$4 sm:$0xff]   ;;  %v18124_v22 = vld [vmem:[%s24406_s13 + $0x14b4] ss:$24 sps:$4 sm:$0xff]  }
 0xc56   :  { %14595 = vmatprep.subr.bf16.mxu0 %v18061_v38  ;;  %v18127_v38 = vld [vmem:[%s24406_s13 + $0x17b4] ss:$24 sps:$4 sm:$0xff]  }
 0xc58   :  { %14555 = vmatpush2.bf16.msra.mxu1 %v18056_v50  ;;  %v18122_v50 = vld [vmem:[%s24406_s13 + $0x14b0] ss:$24 sps:$4 sm:$0xff]  }
 0xc59   :  { %14596 = vmatpush2.bf16.msra.mxu0 %v18059_v35  ;;  %14556 = vmatprep.subr.bf16.mxu1 %v18064_v3  ;;  %v18125_v35 = vld [vmem:[%s24406_s13 + $0x17b0] ss:$24 sps:$4 sm:$0xff]   ;;  %v18130_v3 = vld [vmem:[%s24406_s13 + $0x1484] ss:$24 sps:$4 sm:$0xff]  }
 0xc5a   :  { %14597 = vmatprep.subr.bf16.mxu0 %v18067_v40  ;;  %v18133_v40 = vld [vmem:[%s24406_s13 + $0x1784] ss:$24 sps:$4 sm:$0xff]  }
 0xc5c   :  { %14557 = vmatpush2.bf16.msra.mxu1 %v18062_v25  ;;  %v18128_v25 = vld [vmem:[%s24406_s13 + $0x1480] ss:$24 sps:$4 sm:$0xff]  }
 0xc5d   :  { %14598 = vmatpush2.bf16.msra.mxu0 %v18065_v55  ;;  %14608 = vmatprep.subr.bf16.mxu1 %v18070_v45  ;;  %v18131_v55 = vld [vmem:[%s24406_s13 + $0x1780] ss:$24 sps:$4 sm:$0xff]   ;;  %v18136_v45 = vld [vmem:[%s24406_s13 + $0x1454] ss:$24 sps:$4 sm:$0xff]  }
 0xc5e   :  { %14649 = vmatprep.subr.bf16.mxu0 %v18073_v7  ;;  %v18134_v7 = vld [vmem:[%s24406_s13 + $0x1450] ss:$24 sps:$4 sm:$0xff]  }
 0xc5f   :  { %v14314_v28 = vpop.f32.mrf.mxu1  ;;  %14559 = vmatmul.mubr.bf16.vlgmr.msra.gmra.mxu1 %v22548_v23  ;;  %v18077_v23 = vld [vmem:[%s24406_s13 + $0x1630] ss:$24 sps:$4 sm:$0xff]  }
 0xc60   :  { %v14315_v32 = vadd.f32 %v14314_v28, %v14274_v6  ;;  %v14355_v33 = vpop.f32.mrf.mxu0  ;;  %14600 = vmatmul.mubr.bf16.vlgmr.msra.gmra.mxu0 %v22550_v53  ;;  %14609 = vmatpush1.bf16.msra.mxu1 %v18068_v54  ;;  %v18142_v54 = vld [vmem:[%s24406_s13 + $0x1424] ss:$24 sps:$4 sm:$0xff]   ;;  %v18140_v6 = vld [vmem:[%s24406_s13 + $0x1420] ss:$24 sps:$4 sm:$0xff]   ;;  %v18148_v28 = vld [vmem:[%s24406_s13 + $0x13f4] ss:$24 sps:$4 sm:$0xff]  }
 0xc61   :  { %14640 = vmatprep.mubr.bf16.mxu1 %v22555_v44  ;;  %14650 = vmatpush1.bf16.msra.mxu0 %v18071_v49  ;;  %v14316_v41 = vpop.f32.mrf.mxu1  ;;  %v18085_v44 = vld [vmem:[%s24406_s13 + $0x1604] ss:$24 sps:$4 sm:$0xff]  }
 0xc62   :  { %v14356_v19 = vadd.f32 %v14355_v33, %v14315_v32  ;;  %14681 = vmatprep.mubr.bf16.mxu0 %v22564_v29  ;;  %v14317_v53 = vadd.f32 %v14316_v41, %v14276_v18  ;;  %v14357_v61 = vpop.f32.mrf.mxu0  ;;  %14610 = vmatprep.subr.bf16.mxu1 %v18076_v63  ;;  %v18080_v29 = vld [vmem:[%s24406_s13 + $0x1300] ss:$24 sps:$4 sm:$0xff]   ;;  %v18145_v49 = vld [vmem:[%s24406_s13 + $0x1724] ss:$24 sps:$4 sm:$0xff]   ;;  %v18146_v18 = vld [vmem:[%s24406_s13 + $0x13f0] ss:$24 sps:$4 sm:$0xff]  }
 0xc63   :  { %v14318_v9 = vpop.f32.mrf.mxu1  ;;  %14651 = vmatprep.subr.bf16.mxu0 %v18079_v51  ;;  %v18143_v63 = vld [vmem:[%s24406_s13 + $0x1720] ss:$24 sps:$4 sm:$0xff]   ;;  %v18151_v51 = vld [vmem:[%s24406_s13 + $0x16f4] ss:$24 sps:$4 sm:$0xff]   ;;  %v18149_v32 = vld [vmem:[%s24406_s13 + $0x16f0] ss:$24 sps:$4 sm:$0xff]  }
 0xc64   :  { %14692 = vst [vmem:[%s24409_s15 + $0x10] sm:$0xff] %v14356_v19  ;;  %v14358_v56 = vadd.f32 %v14357_v61, %v14317_v53  ;;  %v14359_v42 = vpop.f32.mrf.mxu0  ;;  %14611 = vmatpush1.bf16.msra.mxu1 %v18074_v14  ;;  %v18154_v33 = vld [vmem:[%s24406_s13 + $0x13c4] ss:$24 sps:$4 sm:$0xff]   ;;  %v18152_v41 = vld [vmem:[%s24406_s13 + $0x13c0] ss:$24 sps:$4 sm:$0xff]  }
 0xc65   :  { %14652 = vmatpush1.bf16.msra.mxu0 %v18077_v23  ;;  %v14319_v52 = vpop.f32.mrf.mxu1  ;;  %14612 = vmatprep.subr.bf16.mxu1 %v18082_v2  ;;  %v18157_v14 = vld [vmem:[%s24406_s13 + $0x16c4] ss:$24 sps:$4 sm:$0xff]   ;;  %v18155_v23 = vld [vmem:[%s24406_s13 + $0x16c0] ss:$24 sps:$4 sm:$0xff]   ;;  %v18160_v2 = vld [vmem:[%s24406_s13 + $0x1394] ss:$24 sps:$4 sm:$0xff]  }
 0xc66   :  { %14693 = vst [vmem:[%s24409_s15 + $0x18] sm:$0xff] %v14358_v56  ;;  %v14360_v47 = vpop.f32.mrf.mxu0  ;;  %14653 = vmatprep.subr.bf16.mxu0 %v18085_v44  ;;  %v18163_v19 = vld [vmem:[%s24406_s13 + $0x1694] ss:$24 sps:$4 sm:$0xff]   ;;  %v18158_v53 = vld [vmem:[%s24406_s13 + $0x1390] ss:$24 sps:$4 sm:$0xff]  }
 0xc67   :  { %v18161_v61 = vld [vmem:[%s24406_s13 + $0x1690] ss:$24 sps:$4 sm:$0xff]   ;;  %v18167_v44 = vld [vmem:[%s24408_s14] sm:$0x3f] }
 0xc68   :  { %14613 = vmatpush1.bf16.msra.mxu1 %v18080_v29  ;;  %v9855_v9 = vrot.slane %v18167_v44, %v19722_v10  ;;  %v9859_v56 = vrot.slane %v18167_v44, %v19725_v15 }
 0xc69   :  { %14654 = vmatpush1.bf16.msra.mxu0 %v18083_v24  ;;  %14614 = vmatprep.subr.bf16.mxu1 %v18088_v5 }
 0xc6a   :  { %14655 = vmatprep.subr.bf16.mxu0 %v18091_v39 }
 0xc6c   :  { %14615 = vmatpush1.bf16.msra.mxu1 %v18086_v58 }
 0xc6d   :  { %14656 = vmatpush1.bf16.msra.mxu0 %v18089_v62  ;;  %14616 = vmatprep.subr.bf16.mxu1 %v18094_v11 }
 0xc6e   :  { %14657 = vmatprep.subr.bf16.mxu0 %v18097_v1 }
 0xc70   :  { %14617 = vmatpush1.bf16.msra.mxu1 %v18092_v4 }
 0xc71   :  { %14658 = vmatpush1.bf16.msra.mxu0 %v18095_v46  ;;  %14618 = vmatprep.subr.bf16.mxu1 %v18100_v27 }
 0xc72   :  { %14659 = vmatprep.subr.bf16.mxu0 %v18103_v13 }
 0xc74   :  { %14619 = vmatpush1.bf16.msra.mxu1 %v18098_v30 }
 0xc75   :  { %14660 = vmatpush1.bf16.msra.mxu0 %v18101_v60  ;;  %14620 = vmatprep.subr.bf16.mxu1 %v18106_v31 }
 0xc76   :  { %14661 = vmatprep.subr.bf16.mxu0 %v18109_v34 }
 0xc78   :  { %14621 = vmatpush1.bf16.msra.mxu1 %v18104_v17 }
 0xc79   :  { %14662 = vmatpush1.bf16.msra.mxu0 %v18107_v59  ;;  %14622 = vmatprep.subr.bf16.mxu1 %v18112_v57 }
 0xc7a   :  { %14663 = vmatprep.subr.bf16.mxu0 %v18115_v12 }
 0xc7c   :  { %14623 = vmatpush1.bf16.msra.mxu1 %v18110_v8 }
 0xc7d   :  { %14664 = vmatpush1.bf16.msra.mxu0 %v18113_v26  ;;  %14624 = vmatprep.subr.bf16.mxu1 %v18118_v0 }
 0xc7e   :  { %14665 = vmatprep.subr.bf16.mxu0 %v18121_v20 }
 0xc80   :  { %14625 = vmatpush2.bf16.msra.mxu1 %v18116_v21 }
 0xc81   :  { %14666 = vmatpush2.bf16.msra.mxu0 %v18119_v43  ;;  %14626 = vmatprep.subr.bf16.mxu1 %v18124_v22 }
 0xc82   :  { %14667 = vmatprep.subr.bf16.mxu0 %v18127_v38 }
 0xc84   :  { %14627 = vmatpush2.bf16.msra.mxu1 %v18122_v50 }
 0xc85   :  { %14668 = vmatpush2.bf16.msra.mxu0 %v18125_v35  ;;  %14628 = vmatprep.subr.bf16.mxu1 %v18130_v3 }
 0xc86   :  { %14669 = vmatprep.subr.bf16.mxu0 %v18133_v40 }
 0xc88   :  { %14629 = vmatpush2.bf16.msra.mxu1 %v18128_v25 }
 0xc89   :  { %14670 = vmatpush2.bf16.msra.mxu0 %v18131_v55  ;;  %14630 = vmatprep.subr.bf16.mxu1 %v18136_v45 }
 0xc8a   :  { %14671 = vmatprep.subr.bf16.mxu0 %v18139_v48 }
 0xc8c   :  { %14631 = vmatpush2.bf16.msra.mxu1 %v18134_v7 }
 0xc8d   :  { %14672 = vmatpush2.bf16.msra.mxu0 %v18137_v36  ;;  %14632 = vmatprep.subr.bf16.mxu1 %v18142_v54 }
 0xc8e   :  { %14673 = vmatprep.subr.bf16.mxu0 %v18145_v49 }
 0xc90   :  { %14633 = vmatpush2.bf16.msra.mxu1 %v18140_v6 }
 0xc91   :  { %14674 = vmatpush2.bf16.msra.mxu0 %v18143_v63  ;;  %14634 = vmatprep.subr.bf16.mxu1 %v18148_v28 }
 0xc92   :  { %14675 = vmatprep.subr.bf16.mxu0 %v18151_v51 }
 0xc94   :  { %14635 = vmatpush2.bf16.msra.mxu1 %v18146_v18 }
 0xc95   :  { %14676 = vmatpush2.bf16.msra.mxu0 %v18149_v32  ;;  %14636 = vmatprep.subr.bf16.mxu1 %v18154_v33 }
 0xc96   :  { %14677 = vmatprep.subr.bf16.mxu0 %v18157_v14 }
 0xc98   :  { %14637 = vmatpush2.bf16.msra.mxu1 %v18152_v41 }
 0xc99   :  { %14678 = vmatpush2.bf16.msra.mxu0 %v18155_v23  ;;  %14638 = vmatprep.subr.bf16.mxu1 %v18160_v2 }
 0xc9a   :  { %14679 = vmatprep.subr.bf16.mxu0 %v18163_v19 }
 0xc9c   :  { %14639 = vmatpush2.bf16.msra.mxu1 %v18158_v53 }
 0xc9d   :  { %14680 = vmatpush2.bf16.msra.mxu0 %v18161_v61 }
 0xc9f   :  { %v14396_v42 = vpop.f32.mrf.mxu1  ;;  %14641 = vmatmul.mubr.bf16.vlgmr.msra.gmra.mxu1 %v22752_v16 }
 0xca0   :  { %v14397_v29 = vadd.f32 %v14396_v42, %v9855_v9  ;;  %v14437_v52 = vpop.f32.mrf.mxu0  ;;  %14682 = vmatmul.mubr.bf16.vlgmr.msra.gmra.mxu0 %v22757_v37 }
 0xca1   :  { %v14398_v24 = vpop.f32.mrf.mxu1 }
 0xca2   :  { %v14438_v5 = vadd.f32 %v14437_v52, %v14397_v29  ;;  %v14399_v47 = vadd.f32 %v14398_v24, %v9859_v56  ;;  %v14439_v39 = vpop.f32.mrf.mxu0 }
 0xca3   :  { %v14400_v58 = vpop.f32.mrf.mxu1 }
 0xca4   :  { %v14440_v62 = vadd.f32 %v14439_v39, %v14399_v47  ;;  %v14441_v11 = vpop.f32.mrf.mxu0 }
 0xca5   :  { %v14401_v1 = vpop.f32.mrf.mxu1 }
 0xca6   :  { %v14442_v4 = vpop.f32.mrf.mxu0 }
 0xcdf   :  { %v14478_v10 = vpop.f32.mrf.mxu1 }
 0xce0   :  { %v14479_v46 = vadd.f32 %v14478_v10, %v14438_v5  ;;  %v14519_v27 = vpop.f32.mrf.mxu0 }
 0xce1   :  { %v14480_v15 = vpop.f32.mrf.mxu1 }
 0xce2   :  { %v14520_v13 = vadd.f32 %v14519_v27, %v14479_v46  ;;  %v14481_v30 = vadd.f32 %v14480_v15, %v14440_v62  ;;  %v14521_v16 = vpop.f32.mrf.mxu0 }
 0xce3   :  { %v14482_v60 = vpop.f32.mrf.mxu1 }
 0xce4   :  { %v14522_v31 = vadd.f32 %v14521_v16, %v14481_v30  ;;  %v14523_v34 = vpop.f32.mrf.mxu0 }
 0xce5   :  { %v14483_v37 = vpop.f32.mrf.mxu1 }
 0xce6   :  { %v14524_v17 = vpop.f32.mrf.mxu0 }
 0xd1f   :  { %v14560_v59 = vpop.f32.mrf.mxu1 }
 0xd20   :  { %v14601_v57 = vpop.f32.mrf.mxu0  ;;  %v14561_v43 = vadd.f32 %v14560_v59, %v14520_v13 }
 0xd21   :  { %v14562_v12 = vpop.f32.mrf.mxu1 }
 0xd22   :  { %v14603_v8 = vpop.f32.mrf.mxu0  ;;  %v14563_v22 = vadd.f32 %v14562_v12, %v14522_v31  ;;  %v14602_v38 = vadd.f32 %v14601_v57, %v14561_v43 }
 0xd23   :  { %v14564_v26 = vpop.f32.mrf.mxu1 }
 0xd24   :  { %v14605_v0 = vpop.f32.mrf.mxu0  ;;  %v14604_v35 = vadd.f32 %v14603_v8, %v14563_v22 }
 0xd25   :  { %v14565_v20 = vpop.f32.mrf.mxu1 }
 0xd26   :  { %v14606_v21 = vpop.f32.mrf.mxu0 }
 0xd5f   :  { %v14642_v50 = vpop.f32.mrf.mxu1 }
 0xd60   :  { %v14643_v3 = vadd.f32 %v14642_v50, %v14602_v38  ;;  %v14683_v40 = vpop.f32.mrf.mxu0 }
 0xd61   :  { %v14644_v25 = vpop.f32.mrf.mxu1 }
 0xd62   :  { %v14684_v55 = vadd.f32 %v14683_v40, %v14643_v3  ;;  %v14645_v45 = vadd.f32 %v14644_v25, %v14604_v35  ;;  %v14685_v48 = vpop.f32.mrf.mxu0 }
 0xd63   :  { %v14646_v7 = vpop.f32.mrf.mxu1 }
 0xd64   :  { %14694 = vst [vmem:[%s24409_s15 + $0x20] sm:$0xff] %v14684_v55  ;;  %v14686_v36 = vadd.f32 %v14685_v48, %v14645_v45  ;;  %v14687_v54 = vpop.f32.mrf.mxu0 }
 0xd65   :  { %v14647_v49 = vpop.f32.mrf.mxu1 }
 0xd66   :  { %14695 = vst [vmem:[%s24409_s15 + $0x28] sm:$0xff] %v14686_v36  ;;  %v14688_v6 = vpop.f32.mrf.mxu0 }

</bundles_post_ra>
